<compile_context>
chip_gen: v6e
topology: v6e:2x2x1
jax: 0.10.0
libtpu: 0.0.40
codegen_flags: <defaults>
</compile_context>

<pallas_src>
import math
import functools

import jax
import jax.numpy as jnp
from jax.experimental import pallas as pl
from jax.experimental.pallas import tpu as pltpu

LEAKY_SLOPE = 0.01   # nn.LeakyReLU default
LN_EPS = 1e-5        # nn.LayerNorm default
BN_EPS = 1e-5        # nn.BatchNorm1d default
BN_SCALE = 1.0 / math.sqrt(1.0 + BN_EPS)   # eval-mode BN with default running stats
NORM_EPS = 1e-12     # F.normalize default


def _leaky_relu(x):
    return jnp.where(x >= 0, x, LEAKY_SLOPE * x)


def _layer_norm(x):
    mu = jnp.mean(x, axis=-1, keepdims=True)
    var = jnp.mean((x - mu) * (x - mu), axis=-1, keepdims=True)
    return (x - mu) * jax.lax.rsqrt(var + LN_EPS)


def _pick_tile(n, target, mult):
    """Largest multiple of `mult` that divides n and is <= target (else full n)."""
    if n <= target:
        return n
    t = (target // mult) * mult
    while t >= mult:
        if n % t == 0:
            return t
        t -= mult
    return n


def _vmem_budget_bytes():
    """Usable scoped-VMEM budget for this device generation (with headroom)."""
    try:
        cap = pltpu.get_tpu_info().vmem_capacity_bytes
    except Exception:
        cap = 64 * 1024 * 1024      # conservative (v7x per-TC physical)
    return int(cap * 3 // 4)


# ----------------------------------------------------------------------------
# Kernel 1: one GCN Aggregator layer (eval mode, no residual), row- and K-tiled.
#   side = A @ ego ; hi = ego + side ; z = LeakyReLU(hi @ W + b)
#   emb  = LayerNorm(z) ; norm_emb = emb * rsqrt(max(||emb||^2, eps^2))  (per row)
# Grid (i, k): rows [i*tm, (i+1)*tm), contraction slab [k*tk, (k+1)*tk).
#   A block (tm, tk) bf16; ego contraction slab (tk, d_in) bf16; ego row tile
#   (tm, d_in) f32 (residual); resident W (bf16) / b (f32); f32 accumulator
#   scratch; outputs written only at the last K step.
# ----------------------------------------------------------------------------
def _gcn_agg_kernel(a_ref, ego_k_ref, ego_rows_ref, w_ref, b_ref,
                    emb_ref, norm_ref, acc_ref):
    k = pl.program_id(1)

    @pl.when(k == 0)
    def _():
        acc_ref[...] = jnp.zeros_like(acc_ref)

    acc_ref[...] += jnp.dot(a_ref[...], ego_k_ref[...],
                            preferred_element_type=jnp.float32)

    @pl.when(k == pl.num_programs(1) - 1)
    def _():
        hi = ego_rows_ref[...] + acc_ref[...]
        z = jnp.dot(hi.astype(jnp.bfloat16), w_ref[...],
                    preferred_element_type=jnp.float32) + b_ref[...]
        z = _leaky_relu(z)
        ln = _layer_norm(z)
        emb_ref[...] = ln
        sumsq = jnp.sum(ln * ln, axis=-1, keepdims=True)
        inv_nrm = jax.lax.rsqrt(jnp.maximum(sumsq, NORM_EPS * NORM_EPS))
        norm_ref[...] = (ln * inv_nrm).astype(norm_ref.dtype)


def gcn_aggregator(A_bf16, ego_f32, ego_bf16, w_bf16, b,
                   row_tile_target=512, k_tile_target=2048):
    N, d_in = ego_f32.shape
    d_out = w_bf16.shape[1]
    tm = _pick_tile(N, row_tile_target, 8)
    tk = _pick_tile(N, k_tile_target, 128)
    n_row_tiles = N // tm
    n_k_tiles = N // tk

    # Actual double-buffered block footprint (index-varying blocks x2, constants
    # counted x2 for safety), plus accumulator scratch.
    footprint = (2 * tm * tk * 2          # A (bf16)
                 + 2 * tk * d_in * 2      # ego contraction slab (bf16)
                 + 2 * tm * d_in * 4      # ego residual rows (f32)
                 + 2 * d_in * d_out * 2   # W (bf16, resident)
                 + 2 * 8 * 128 * 4        # b (padded)
                 + 2 * tm * d_out * 4     # emb out (f32)
                 + 2 * tm * d_out * 2     # norm out (bf16)
                 + tm * d_in * 4)         # accumulator scratch
    vmem_limit = int(min(max(2 * footprint, 16 * 1024 * 1024),
                         _vmem_budget_bytes()))

    emb, norm_emb = pl.pallas_call(
        _gcn_agg_kernel,
        grid=(n_row_tiles, n_k_tiles),
        in_specs=[
            pl.BlockSpec((tm, tk), lambda i, k: (i, k)),        # A (bf16)
            pl.BlockSpec((tk, d_in), lambda i, k: (k, 0)),      # ego slab (bf16)
            pl.BlockSpec((tm, d_in), lambda i, k: (i, 0)),      # ego rows (f32)
            pl.BlockSpec((d_in, d_out), lambda i, k: (0, 0)),   # W (bf16)
            pl.BlockSpec((1, d_out), lambda i, k: (0, 0)),      # b
        ],
        out_specs=(pl.BlockSpec((tm, d_out), lambda i, k: (i, 0)),
                   pl.BlockSpec((tm, d_out), lambda i, k: (i, 0))),
        out_shape=(jax.ShapeDtypeStruct((N, d_out), jnp.float32),
                   jax.ShapeDtypeStruct((N, d_out), jnp.bfloat16)),
        scratch_shapes=[pltpu.VMEM((tm, d_in), jnp.float32)],
        compiler_params=pltpu.CompilerParams(
            dimension_semantics=("parallel", "arbitrary"),
            vmem_limit_bytes=vmem_limit),
    )(A_bf16, ego_bf16, ego_f32, w_bf16, b.reshape(1, d_out))
    return emb, norm_emb


# ----------------------------------------------------------------------------
# Kernel 2: fused head.  Operates only on the 2*batch gathered rows of the
# per-layer embeddings (gather commutes with the row-wise gat projection, so
# gat_embed over all N rows is never materialized), batch-row tiled:
#   h = LeakyReLU(head_rows @ W_gat + b_gat) ; t = LeakyReLU(tail_rows @ W_gat + b_gat)
#   x = concat([h, t])  (expressed as split fc1 weights: h @ W1_top + t @ W1_bot)
#   x -> fc1/ReLU -> fc2/ReLU -> fc3 -> sigmoid   (BN eval scale folded into W2/W3)
# ----------------------------------------------------------------------------
def _head_kernel(h_ref, t_ref, wg_ref, bg_ref, w1h_ref, w1t_ref, b1_ref,
                 w2_ref, b2_ref, w3_ref, b3_ref, o_ref):
    wg = wg_ref[...]                                   # bf16 (pre-cast)
    h = jnp.dot(h_ref[...], wg, preferred_element_type=jnp.float32) + bg_ref[...]
    t = jnp.dot(t_ref[...], wg, preferred_element_type=jnp.float32) + bg_ref[...]
    h = _leaky_relu(h)
    t = _leaky_relu(t)
    # fc1 on concat([h, t]) == h @ W1[:Dg] + t @ W1[Dg:]
    z = (jnp.dot(h, w1h_ref[...], preferred_element_type=jnp.float32)
         + jnp.dot(t, w1t_ref[...], preferred_element_type=jnp.float32)
         + b1_ref[...])
    z = jnp.maximum(z, 0.0)                            # BN scale folded into W2
    z = jnp.dot(z, w2_ref[...], preferred_element_type=jnp.float32) + b2_ref[...]
    z = jnp.maximum(z, 0.0)                            # BN scale folded into W3
    z = jnp.dot(z, w3_ref[...], preferred_element_type=jnp.float32) + b3_ref[...]
    o_ref[...] = jax.nn.sigmoid(z)


def fused_head(head_rows, tail_rows, wg, bg, w1, b1, w2, b2, w3, b3,
               batch_tile_target=256):
    B, Dt = head_rows.shape
    Dg = wg.shape[1]
    d1, d2, d3 = w1.shape[1], w2.shape[1], w3.shape[1]
    # Pad batch to a sublane multiple; padded rows are sliced off afterwards.
    Bp = ((B + 7) // 8) * 8
    if Bp != B:
        pad = ((0, Bp - B), (0, 0))
        head_rows = jnp.pad(head_rows, pad)
        tail_rows = jnp.pad(tail_rows, pad)
    tb = _pick_tile(Bp, batch_tile_target, 8)

    w1h, w1t = w1[:Dg], w1[Dg:]
    w2s = w2 * BN_SCALE            # fold eval-mode BN into the following matmul
    w3s = w3 * BN_SCALE
    wg_bf16 = wg.astype(jnp.bfloat16)

    const = lambda shp: pl.BlockSpec(shp, lambda i: (0, 0))
    out = pl.pallas_call(
        _head_kernel,
        grid=(Bp // tb,),
        in_specs=[pl.BlockSpec((tb, Dt), lambda i: (i, 0)),
                  pl.BlockSpec((tb, Dt), lambda i: (i, 0)),
                  const((Dt, Dg)), const((1, Dg)),
                  const((Dg, d1)), const((Dg, d1)), const((1, d1)),
                  const((d1, d2)), const((1, d2)),
                  const((d2, d3)), const((1, d3))],
        out_specs=pl.BlockSpec((tb, d3), lambda i: (i, 0)),
        out_shape=jax.ShapeDtypeStruct((Bp, d3), jnp.float32),
        compiler_params=pltpu.CompilerParams(
            dimension_semantics=("parallel",)),
    )(head_rows, tail_rows, wg_bf16, bg.reshape(1, Dg), w1h, w1t,
      b1.reshape(1, d1), w2s, b2.reshape(1, d2), w3s, b3.reshape(1, d3))
    return out[:B]


# ----------------------------------------------------------------------------
# Parameter construction (deterministic, synthetic)
# ----------------------------------------------------------------------------
def xavier_uniform(key, fan_in, fan_out, shape):
    bound = math.sqrt(6.0 / (fan_in + fan_out))
    return jax.random.uniform(key, shape, jnp.float32, -bound, bound)


def init_params(key, n_entities, embed_dim, conv_dim, n_layers, scale_gat_dim):
    keys = jax.random.split(key, 32)
    ki = iter(range(32))
    p = {}
    # entity embeddings (xavier_uniform_ on (n_entities, embed_dim))
    p["entity_embed"] = xavier_uniform(keys[next(ki)], n_entities, embed_dim,
                                       (n_entities, embed_dim))
    # attention matrix A_in (dense stand-in for torch.sparse, row-softmaxed),
    # stored in bf16: the GCN layer is HBM-bound on this N^2 stream.
    logits = jax.random.normal(keys[next(ki)], (n_entities, n_entities), jnp.float32)
    p["A_in"] = jax.nn.softmax(logits, axis=1).astype(jnp.bfloat16)
    # aggregator layers (gcn):  Linear(in_dim, out_dim), weights stored (in, out)
    conv_dims = [embed_dim] + [conv_dim] * n_layers
    for k in range(n_layers):
        d_in, d_out = conv_dims[k], conv_dims[k + 1]
        p[f"agg{k}_w"] = xavier_uniform(keys[next(ki)], d_in, d_out, (d_in, d_out))
        bnd = 1.0 / math.sqrt(d_in)
        p[f"agg{k}_b"] = jax.random.uniform(keys[next(ki)], (d_out,), jnp.float32, -bnd, bnd)
    total_conv_dim = sum(conv_dims)
    # linear_gat: total_conv_dim -> scale_gat_dim
    p["gat_w"] = xavier_uniform(keys[next(ki)], total_conv_dim, scale_gat_dim,
                                (total_conv_dim, scale_gat_dim))
    bnd = 1.0 / math.sqrt(total_conv_dim)
    p["gat_b"] = jax.random.uniform(keys[next(ki)], (scale_gat_dim,), jnp.float32, -bnd, bnd)
    # MLP head: fc1 (2*scale_gat_dim -> 32), fc2 (32 -> 16), fc3 (16 -> 1)
    dims = [(2 * scale_gat_dim, 32), (32, 16), (16, 1)]
    for li, (d_in, d_out) in enumerate(dims, start=1):
        p[f"fc{li}_w"] = xavier_uniform(keys[next(ki)], d_in, d_out, (d_in, d_out))
        bnd = 1.0 / math.sqrt(d_in)
        p[f"fc{li}_b"] = jax.random.uniform(keys[next(ki)], (d_out,), jnp.float32, -bnd, bnd)
    return p


# ----------------------------------------------------------------------------
# Full forward: LiteralKG.forward(head_ids, tail_ids, mode='mlp')
# ----------------------------------------------------------------------------
@functools.partial(jax.jit, static_argnames=("n_layers",))
def literalkg_mlp_forward(params, head_ids, tail_ids, n_layers):
    A_bf16 = params["A_in"]
    # gate_embeddings(): no literals -> entity embeddings
    ego = params["entity_embed"]
    # Gather head/tail rows per component instead of materializing the full
    # (N, total_conv_dim) concat; the rows feed the bf16 MXU gat projection.
    head_parts = [ego[head_ids].astype(jnp.bfloat16)]
    tail_parts = [ego[tail_ids].astype(jnp.bfloat16)]
    # gat_embeddings(): stacked GCN aggregator layers (row/K-tiled Pallas kernel)
    for k in range(n_layers):
        w_bf16 = params[f"agg{k}_w"].astype(jnp.bfloat16)   # cast once per layer
        emb, norm_emb = gcn_aggregator(A_bf16, ego, ego.astype(jnp.bfloat16),
                                       w_bf16, params[f"agg{k}_b"])
        ego = emb                             # next layer consumes un-normalized f32
        head_parts.append(norm_emb[head_ids])  # concat uses the L2-normalized (bf16)
        tail_parts.append(norm_emb[tail_ids])
    head_rows = jnp.concatenate(head_parts, axis=1)
    tail_rows = jnp.concatenate(tail_parts, axis=1)
    # train_MLP(): gat projection + concat + MLP head fused in one kernel,
    # operating only on the 2*batch gathered rows.
    return fused_head(head_rows, tail_rows,
                      params["gat_w"], params["gat_b"],
                      params["fc1_w"], params["fc1_b"],
                      params["fc2_w"], params["fc2_b"],
                      params["fc3_w"], params["fc3_b"])


# ----------------------------------------------------------------------------
# Pure-JAX f32 reference (for a loose numerical sanity check vs. bf16 MXU path)
# ----------------------------------------------------------------------------
def literalkg_mlp_reference(params, head_ids, tail_ids, n_layers):
    ego = params["entity_embed"]
    A = params["A_in"].astype(jnp.float32)
    all_embed = [ego]
    for k in range(n_layers):
        side = A @ ego
        hi = ego + side
        z = hi @ params[f"agg{k}_w"] + params[f"agg{k}_b"]
        z = jnp.where(z >= 0, z, LEAKY_SLOPE * z)
        mu = z.mean(-1, keepdims=True)
        var = ((z - mu) ** 2).mean(-1, keepdims=True)
        ln = (z - mu) / jnp.sqrt(var + LN_EPS)
        nrm = jnp.sqrt((ln * ln).sum(-1, keepdims=True))
        all_embed.append(ln / jnp.maximum(nrm, NORM_EPS))
        ego = ln
    gat_in = jnp.concatenate(all_embed, axis=1)
    gat = gat_in @ params["gat_w"] + params["gat_b"]
    gat = jnp.where(gat >= 0, gat, LEAKY_SLOPE * gat)
    x = jnp.concatenate([gat[head_ids], gat[tail_ids]], axis=1)
    h = jnp.maximum(x @ params["fc1_w"] + params["fc1_b"], 0.0) * BN_SCALE
    h = jnp.maximum(h @ params["fc2_w"] + params["fc2_b"], 0.0) * BN_SCALE
    return jax.nn.sigmoid(h @ params["fc3_w"] + params["fc3_b"])


if __name__ == "__main__":
    # Small but lane/sublane-friendly shapes (feature dims multiples of 128).
    n_entities = 512
    embed_dim = 128
    conv_dim = 128
    n_layers = 2
    scale_gat_dim = 128
    batch = 8

    key = jax.random.PRNGKey(0)
    k_params, k_head, k_tail = jax.random.split(key, 3)
    params = init_params(k_params, n_entities, embed_dim, conv_dim,
                         n_layers, scale_gat_dim)
    head_ids = jax.random.randint(k_head, (batch,), 0, n_entities)
    tail_ids = jax.random.randint(k_tail, (batch,), 0, n_entities)

    out = literalkg_mlp_forward(params, head_ids, tail_ids, n_layers)
    out = jax.block_until_ready(out)
    assert out.shape == (batch, 1)
    assert bool(jnp.all(jnp.isfinite(out)))

    # Loose check vs. f32 reference (kernel uses bf16 MXU inputs, f32 accum,
    # bf16 normalized-embedding writeback).
    ref = literalkg_mlp_reference(params, head_ids, tail_ids, n_layers)
    max_err = float(jnp.max(jnp.abs(out - ref)))
    assert max_err < 0.1, f"mismatch vs f32 reference: {max_err}"

    print("KERNEL_OK")
</pallas_src>

<mosaic_0001>
module attributes {stable_mosaic.version = 11 : i64} {
  func.func @_gcn_agg_kernel(%arg0: i32, %arg1: i32, %arg2: memref<512x512xbf16, #tpu.memory_space<vmem>>, %arg3: memref<512x128xbf16, #tpu.memory_space<vmem>>, %arg4: memref<512x128xf32, #tpu.memory_space<vmem>>, %arg5: memref<128x128xbf16, #tpu.memory_space<vmem>>, %arg6: memref<1x128xf32, #tpu.memory_space<vmem>>, %arg7: memref<512x128xf32, #tpu.memory_space<vmem>>, %arg8: memref<512x128xbf16, #tpu.memory_space<vmem>>, %arg9: memref<512x128xf32, #tpu.memory_space<vmem>>) attributes {dimension_semantics = [#tpu.dimension_semantics<parallel>, #tpu.dimension_semantics<arbitrary>], iteration_bounds = array<i64: 1, 1>, scalar_prefetch = 0 : i64, scratch_operands = 1 : i64, tpu.core_type = #tpu.core_type<tc>, window_params = [{transform_indices = @transform_0, window_bounds = array<i64: 512, 512>}, {transform_indices = @transform_1, window_bounds = array<i64: 512, 128>}, {transform_indices = @transform_2, window_bounds = array<i64: 512, 128>}, {pipeline_mode = #tpu.pipeline_mode<synchronous>, transform_indices = @transform_3, window_bounds = array<i64: 128, 128>}, {pipeline_mode = #tpu.pipeline_mode<synchronous>, transform_indices = @transform_4, window_bounds = array<i64: 1, 128>}, {transform_indices = @transform_5, window_bounds = array<i64: 512, 128>}, {transform_indices = @transform_6, window_bounds = array<i64: 512, 128>}]} {
    %c0_i32 = arith.constant 0 : i32
    %0 = arith.cmpi eq, %arg1, %c0_i32 : i32
    %1 = arith.extui %0 : i1 to i32
    %c0_i32_0 = arith.constant 0 : i32
    %2 = arith.cmpi ne, %1, %c0_i32_0 : i32
    scf.if %2 {
      %cst_10 = arith.constant 0.000000e+00 : f32
      %12 = vector.broadcast %cst_10 : f32 to vector<512x128xf32>
      %c0_11 = arith.constant 0 : index
      %c0_12 = arith.constant 0 : index
      %13 = vector.load %arg9[%c0_11, %c0_12] : memref<512x128xf32, #tpu.memory_space<vmem>>, vector<512x128xf32>
      tpu.vector_store %arg9[%c0_11, %c0_12], %12 {strides = array<i32>} : memref<512x128xf32, #tpu.memory_space<vmem>>, vector<512x128xf32>,
    } else {
    }
    %c0 = arith.constant 0 : index
    %c0_1 = arith.constant 0 : index
    %3 = vector.load %arg9[%c0, %c0_1] : memref<512x128xf32, #tpu.memory_space<vmem>>, vector<512x128xf32>
    %c0_2 = arith.constant 0 : index
    %c0_3 = arith.constant 0 : index
    %4 = vector.load %arg2[%c0_2, %c0_3] : memref<512x512xbf16, #tpu.memory_space<vmem>>, vector<512x512xbf16>
    %c0_4 = arith.constant 0 : index
    %c0_5 = arith.constant 0 : index
    %5 = vector.load %arg3[%c0_4, %c0_5] : memref<512x128xbf16, #tpu.memory_space<vmem>>, vector<512x128xbf16>
    %cst = arith.constant dense<0.000000e+00> : vector<512x128xf32>
    %6 = tpu.matmul %4, %5, %cst {dimension_numbers = #tpu.dot_dimension_numbers<[1], [0], [0], [1], [0, 0, 1, 1], [], []>} : vector<512x512xbf16>, vector<512x128xbf16>, vector<512x128xf32> -> vector<512x128xf32>
    %7 = arith.addf %3, %6 : vector<512x128xf32>
    %c0_6 = arith.constant 0 : index
    %c0_7 = arith.constant 0 : index
    %8 = vector.load %arg9[%c0_6, %c0_7] : memref<512x128xf32, #tpu.memory_space<vmem>>, vector<512x128xf32>
    tpu.vector_store %arg9[%c0_6, %c0_7], %7 {strides = array<i32>} : memref<512x128xf32, #tpu.memory_space<vmem>>, vector<512x128xf32>,
    %c0_i32_8 = arith.constant 0 : i32
    %9 = arith.cmpi eq, %arg1, %c0_i32_8 : i32
    %10 = arith.extui %9 : i1 to i32
    %c0_i32_9 = arith.constant 0 : i32
    %11 = arith.cmpi ne, %10, %c0_i32_9 : i32
    scf.if %11 {
      %c0_10 = arith.constant 0 : index
      %c0_11 = arith.constant 0 : index
      %12 = vector.load %arg4[%c0_10, %c0_11] : memref<512x128xf32, #tpu.memory_space<vmem>>, vector<512x128xf32>
      %c0_12 = arith.constant 0 : index
      %c0_13 = arith.constant 0 : index
      %13 = vector.load %arg9[%c0_12, %c0_13] : memref<512x128xf32, #tpu.memory_space<vmem>>, vector<512x128xf32>
      %14 = arith.addf %12, %13 : vector<512x128xf32>
      %15 = arith.truncf %14 : vector<512x128xf32> to vector<512x128xbf16>
      %c0_14 = arith.constant 0 : index
      %c0_15 = arith.constant 0 : index
      %16 = vector.load %arg5[%c0_14, %c0_15] : memref<128x128xbf16, #tpu.memory_space<vmem>>, vector<128x128xbf16>
      %cst_16 = arith.constant dense<0.000000e+00> : vector<512x128xf32>
      %17 = tpu.matmul %15, %16, %cst_16 {dimension_numbers = #tpu.dot_dimension_numbers<[1], [0], [0], [1], [0, 0, 1, 1], [], []>} : vector<512x128xbf16>, vector<128x128xbf16>, vector<512x128xf32> -> vector<512x128xf32>
      %c0_17 = arith.constant 0 : index
      %c0_18 = arith.constant 0 : index
      %18 = vector.load %arg6[%c0_17, %c0_18] : memref<1x128xf32, #tpu.memory_space<vmem>>, vector<1x128xf32>
      %19 = vector.broadcast %18 : vector<1x128xf32> to vector<512x128xf32>
      %20 = arith.addf %17, %19 : vector<512x128xf32>
      %cst_19 = arith.constant 0.000000e+00 : f32
      %21 = vector.broadcast %cst_19 : f32 to vector<512x128xf32>
      %22 = arith.cmpf oge, %20, %21 : vector<512x128xf32>
      %cst_20 = arith.constant 0.00999999977 : f32
      %23 = vector.broadcast %cst_20 : f32 to vector<512x128xf32>
      %24 = arith.mulf %23, %20 : vector<512x128xf32>
      %25 = arith.select %22, %20, %24 : vector<512x128xi1>, vector<512x128xf32>
      %cst_21 = arith.constant dense<0.000000e+00> : vector<512xf32>
      %26 = vector.multi_reduction <add>, %25, %cst_21 [1] : vector<512x128xf32> to vector<512xf32>
      %27 = vector.shape_cast %26 : vector<512xf32> to vector<512x1xf32>
      %cst_22 = arith.constant 1.280000e+02 : f32
      %28 = vector.broadcast %cst_22 : f32 to vector<512x1xf32>
      %29 = arith.divf %27, %28 : vector<512x1xf32>
      %30 = vector.broadcast %29 : vector<512x1xf32> to vector<512x128xf32>
      %31 = arith.subf %25, %30 : vector<512x128xf32>
      %32 = vector.broadcast %29 : vector<512x1xf32> to vector<512x128xf32>
      %33 = arith.subf %25, %32 : vector<512x128xf32>
      %34 = arith.mulf %31, %33 : vector<512x128xf32>
      %cst_23 = arith.constant dense<0.000000e+00> : vector<512xf32>
      %35 = vector.multi_reduction <add>, %34, %cst_23 [1] : vector<512x128xf32> to vector<512xf32>
      %36 = vector.shape_cast %35 : vector<512xf32> to vector<512x1xf32>
      %cst_24 = arith.constant 1.280000e+02 : f32
      %37 = vector.broadcast %cst_24 : f32 to vector<512x1xf32>
      %38 = arith.divf %36, %37 : vector<512x1xf32>
      %39 = vector.broadcast %29 : vector<512x1xf32> to vector<512x128xf32>
      %40 = arith.subf %25, %39 : vector<512x128xf32>
      %cst_25 = arith.constant 9.99999974E-6 : f32
      %41 = vector.broadcast %cst_25 : f32 to vector<512x1xf32>
      %42 = arith.addf %38, %41 : vector<512x1xf32>
      %43 = math.rsqrt %42 : vector<512x1xf32>
      %44 = vector.broadcast %43 : vector<512x1xf32> to vector<512x128xf32>
      %45 = arith.mulf %40, %44 : vector<512x128xf32>
      %c0_26 = arith.constant 0 : index
      %c0_27 = arith.constant 0 : index
      %46 = vector.load %arg7[%c0_26, %c0_27] : memref<512x128xf32, #tpu.memory_space<vmem>>, vector<512x128xf32>
      tpu.vector_store %arg7[%c0_26, %c0_27], %45 {strides = array<i32>} : memref<512x128xf32, #tpu.memory_space<vmem>>, vector<512x128xf32>,
      %47 = arith.mulf %45, %45 : vector<512x128xf32>
      %cst_28 = arith.constant dense<0.000000e+00> : vector<512xf32>
      %48 = vector.multi_reduction <add>, %47, %cst_28 [1] : vector<512x128xf32> to vector<512xf32>
      %49 = vector.shape_cast %48 : vector<512xf32> to vector<512x1xf32>
      %cst_29 = arith.constant 1.000000e-24 : f32
      %50 = vector.broadcast %cst_29 : f32 to vector<512x1xf32>
      %51 = arith.maximumf %49, %50 : vector<512x1xf32>
      %52 = math.rsqrt %51 : vector<512x1xf32>
      %53 = vector.broadcast %52 : vector<512x1xf32> to vector<512x128xf32>
      %54 = arith.mulf %45, %53 : vector<512x128xf32>
      %55 = arith.truncf %54 : vector<512x128xf32> to vector<512x128xbf16>
      %c0_30 = arith.constant 0 : index
      %c0_31 = arith.constant 0 : index
      %56 = vector.load %arg8[%c0_30, %c0_31] : memref<512x128xbf16, #tpu.memory_space<vmem>>, vector<512x128xbf16>
      tpu.vector_store %arg8[%c0_30, %c0_31], %55 {strides = array<i32>} : memref<512x128xbf16, #tpu.memory_space<vmem>>, vector<512x128xbf16>,
    } else {
    }
    return
  }
  func.func @transform_0(%arg0: i32, %arg1: i32) -> (i32, i32) {
    %c0_i32 = arith.constant 0 : i32
    return %arg0, %arg1 : i32, i32
  }
  func.func @transform_1(%arg0: i32, %arg1: i32) -> (i32, i32) {
    %c0_i32 = arith.constant 0 : i32
    %c0_i32_0 = arith.constant 0 : i32
    return %arg1, %c0_i32 : i32, i32
  }
  func.func @transform_2(%arg0: i32, %arg1: i32) -> (i32, i32) {
    %c0_i32 = arith.constant 0 : i32
    %c0_i32_0 = arith.constant 0 : i32
    return %arg0, %c0_i32 : i32, i32
  }
  func.func @transform_3(%arg0: i32, %arg1: i32) -> (i32, i32) {
    %c0_i32 = arith.constant 0 : i32
    %c0_i32_0 = arith.constant 0 : i32
    %c0_i32_1 = arith.constant 0 : i32
    return %c0_i32, %c0_i32_0 : i32, i32
  }
  func.func @transform_4(%arg0: i32, %arg1: i32) -> (i32, i32) {
    %c0_i32 = arith.constant 0 : i32
    %c0_i32_0 = arith.constant 0 : i32
    %c0_i32_1 = arith.constant 0 : i32
    return %c0_i32, %c0_i32_0 : i32, i32
  }
  func.func @transform_5(%arg0: i32, %arg1: i32) -> (i32, i32) {
    %c0_i32 = arith.constant 0 : i32
    %c0_i32_0 = arith.constant 0 : i32
    return %arg0, %c0_i32 : i32, i32
  }
  func.func @transform_6(%arg0: i32, %arg1: i32) -> (i32, i32) {
    %c0_i32 = arith.constant 0 : i32
    %c0_i32_0 = arith.constant 0 : i32
    return %arg0, %c0_i32 : i32, i32
  }
}

module attributes {stable_mosaic.version = 11 : i64} {
  func.func @_gcn_agg_kernel(%arg0: i32, %arg1: i32, %arg2: memref<512x512xbf16, #tpu.memory_space<vmem>>, %arg3: memref<512x128xbf16, #tpu.memory_space<vmem>>, %arg4: memref<512x128xf32, #tpu.memory_space<vmem>>, %arg5: memref<128x128xbf16, #tpu.memory_space<vmem>>, %arg6: memref<1x128xf32, #tpu.memory_space<vmem>>, %arg7: memref<512x128xf32, #tpu.memory_space<vmem>>, %arg8: memref<512x128xbf16, #tpu.memory_space<vmem>>, %arg9: memref<512x128xf32, #tpu.memory_space<vmem>>) attributes {dimension_semantics = [#tpu.dimension_semantics<parallel>, #tpu.dimension_semantics<arbitrary>], iteration_bounds = array<i64: 1, 1>, scalar_prefetch = 0 : i64, scratch_operands = 1 : i64, tpu.core_type = #tpu.core_type<tc>, window_params = [{transform_indices = @transform_0, window_bounds = array<i64: 512, 512>}, {transform_indices = @transform_1, window_bounds = array<i64: 512, 128>}, {transform_indices = @transform_2, window_bounds = array<i64: 512, 128>}, {pipeline_mode = #tpu.pipeline_mode<synchronous>, transform_indices = @transform_3, window_bounds = array<i64: 128, 128>}, {pipeline_mode = #tpu.pipeline_mode<synchronous>, transform_indices = @transform_4, window_bounds = array<i64: 1, 128>}, {transform_indices = @transform_5, window_bounds = array<i64: 512, 128>}, {transform_indices = @transform_6, window_bounds = array<i64: 512, 128>}]} {
    %c0_i32 = arith.constant 0 : i32
    %0 = arith.cmpi eq, %arg1, %c0_i32 : i32
    %1 = arith.extui %0 : i1 to i32
    %c0_i32_0 = arith.constant 0 : i32
    %2 = arith.cmpi ne, %1, %c0_i32_0 : i32
    scf.if %2 {
      %cst_10 = arith.constant 0.000000e+00 : f32
      %12 = vector.broadcast %cst_10 : f32 to vector<512x128xf32>
      %c0_11 = arith.constant 0 : index
      %c0_12 = arith.constant 0 : index
      %13 = vector.load %arg9[%c0_11, %c0_12] : memref<512x128xf32, #tpu.memory_space<vmem>>, vector<512x128xf32>
      tpu.vector_store %arg9[%c0_11, %c0_12], %12 {strides = array<i32>} : memref<512x128xf32, #tpu.memory_space<vmem>>, vector<512x128xf32>,
    } else {
    }
    %c0 = arith.constant 0 : index
    %c0_1 = arith.constant 0 : index
    %3 = vector.load %arg9[%c0, %c0_1] : memref<512x128xf32, #tpu.memory_space<vmem>>, vector<512x128xf32>
    %c0_2 = arith.constant 0 : index
    %c0_3 = arith.constant 0 : index
    %4 = vector.load %arg2[%c0_2, %c0_3] : memref<512x512xbf16, #tpu.memory_space<vmem>>, vector<512x512xbf16>
    %c0_4 = arith.constant 0 : index
    %c0_5 = arith.constant 0 : index
    %5 = vector.load %arg3[%c0_4, %c0_5] : memref<512x128xbf16, #tpu.memory_space<vmem>>, vector<512x128xbf16>
    %cst = arith.constant dense<0.000000e+00> : vector<512x128xf32>
    %6 = tpu.matmul %4, %5, %cst {dimension_numbers = #tpu.dot_dimension_numbers<[1], [0], [0], [1], [0, 0, 1, 1], [], []>} : vector<512x512xbf16>, vector<512x128xbf16>, vector<512x128xf32> -> vector<512x128xf32>
    %7 = arith.addf %3, %6 : vector<512x128xf32>
    %c0_6 = arith.constant 0 : index
    %c0_7 = arith.constant 0 : index
    %8 = vector.load %arg9[%c0_6, %c0_7] : memref<512x128xf32, #tpu.memory_space<vmem>>, vector<512x128xf32>
    tpu.vector_store %arg9[%c0_6, %c0_7], %7 {strides = array<i32>} : memref<512x128xf32, #tpu.memory_space<vmem>>, vector<512x128xf32>,
    %c0_i32_8 = arith.constant 0 : i32
    %9 = arith.cmpi eq, %arg1, %c0_i32_8 : i32
    %10 = arith.extui %9 : i1 to i32
    %c0_i32_9 = arith.constant 0 : i32
    %11 = arith.cmpi ne, %10, %c0_i32_9 : i32
    scf.if %11 {
      %c0_10 = arith.constant 0 : index
      %c0_11 = arith.constant 0 : index
      %12 = vector.load %arg4[%c0_10, %c0_11] : memref<512x128xf32, #tpu.memory_space<vmem>>, vector<512x128xf32>
      %c0_12 = arith.constant 0 : index
      %c0_13 = arith.constant 0 : index
      %13 = vector.load %arg9[%c0_12, %c0_13] : memref<512x128xf32, #tpu.memory_space<vmem>>, vector<512x128xf32>
      %14 = arith.addf %12, %13 : vector<512x128xf32>
      %15 = arith.truncf %14 : vector<512x128xf32> to vector<512x128xbf16>
      %c0_14 = arith.constant 0 : index
      %c0_15 = arith.constant 0 : index
      %16 = vector.load %arg5[%c0_14, %c0_15] : memref<128x128xbf16, #tpu.memory_space<vmem>>, vector<128x128xbf16>
      %cst_16 = arith.constant dense<0.000000e+00> : vector<512x128xf32>
      %17 = tpu.matmul %15, %16, %cst_16 {dimension_numbers = #tpu.dot_dimension_numbers<[1], [0], [0], [1], [0, 0, 1, 1], [], []>} : vector<512x128xbf16>, vector<128x128xbf16>, vector<512x128xf32> -> vector<512x128xf32>
      %c0_17 = arith.constant 0 : index
      %c0_18 = arith.constant 0 : index
      %18 = vector.load %arg6[%c0_17, %c0_18] : memref<1x128xf32, #tpu.memory_space<vmem>>, vector<1x128xf32>
      %19 = vector.broadcast %18 : vector<1x128xf32> to vector<512x128xf32>
      %20 = arith.addf %17, %19 : vector<512x128xf32>
      %cst_19 = arith.constant 0.000000e+00 : f32
      %21 = vector.broadcast %cst_19 : f32 to vector<512x128xf32>
      %22 = arith.cmpf oge, %20, %21 : vector<512x128xf32>
      %cst_20 = arith.constant 0.00999999977 : f32
      %23 = vector.broadcast %cst_20 : f32 to vector<512x128xf32>
      %24 = arith.mulf %23, %20 : vector<512x128xf32>
      %25 = arith.select %22, %20, %24 : vector<512x128xi1>, vector<512x128xf32>
      %cst_21 = arith.constant dense<0.000000e+00> : vector<512xf32>
      %26 = vector.multi_reduction <add>, %25, %cst_21 [1] : vector<512x128xf32> to vector<512xf32>
      %27 = vector.shape_cast %26 : vector<512xf32> to vector<512x1xf32>
      %cst_22 = arith.constant 1.280000e+02 : f32
      %28 = vector.broadcast %cst_22 : f32 to vector<512x1xf32>
      %29 = arith.divf %27, %28 : vector<512x1xf32>
      %30 = vector.broadcast %29 : vector<512x1xf32> to vector<512x128xf32>
      %31 = arith.subf %25, %30 : vector<512x128xf32>
      %32 = vector.broadcast %29 : vector<512x1xf32> to vector<512x128xf32>
      %33 = arith.subf %25, %32 : vector<512x128xf32>
      %34 = arith.mulf %31, %33 : vector<512x128xf32>
      %cst_23 = arith.constant dense<0.000000e+00> : vector<512xf32>
      %35 = vector.multi_reduction <add>, %34, %cst_23 [1] : vector<512x128xf32> to vector<512xf32>
      %36 = vector.shape_cast %35 : vector<512xf32> to vector<512x1xf32>
      %cst_24 = arith.constant 1.280000e+02 : f32
      %37 = vector.broadcast %cst_24 : f32 to vector<512x1xf32>
      %38 = arith.divf %36, %37 : vector<512x1xf32>
      %39 = vector.broadcast %29 : vector<512x1xf32> to vector<512x128xf32>
      %40 = arith.subf %25, %39 : vector<512x128xf32>
      %cst_25 = arith.constant 9.99999974E-6 : f32
      %41 = vector.broadcast %cst_25 : f32 to vector<512x1xf32>
      %42 = arith.addf %38, %41 : vector<512x1xf32>
      %43 = math.rsqrt %42 : vector<512x1xf32>
      %44 = vector.broadcast %43 : vector<512x1xf32> to vector<512x128xf32>
      %45 = arith.mulf %40, %44 : vector<512x128xf32>
      %c0_26 = arith.constant 0 : index
      %c0_27 = arith.constant 0 : index
      %46 = vector.load %arg7[%c0_26, %c0_27] : memref<512x128xf32, #tpu.memory_space<vmem>>, vector<512x128xf32>
      tpu.vector_store %arg7[%c0_26, %c0_27], %45 {strides = array<i32>} : memref<512x128xf32, #tpu.memory_space<vmem>>, vector<512x128xf32>,
      %47 = arith.mulf %45, %45 : vector<512x128xf32>
      %cst_28 = arith.constant dense<0.000000e+00> : vector<512xf32>
      %48 = vector.multi_reduction <add>, %47, %cst_28 [1] : vector<512x128xf32> to vector<512xf32>
      %49 = vector.shape_cast %48 : vector<512xf32> to vector<512x1xf32>
      %cst_29 = arith.constant 1.000000e-24 : f32
      %50 = vector.broadcast %cst_29 : f32 to vector<512x1xf32>
      %51 = arith.maximumf %49, %50 : vector<512x1xf32>
      %52 = math.rsqrt %51 : vector<512x1xf32>
      %53 = vector.broadcast %52 : vector<512x1xf32> to vector<512x128xf32>
      %54 = arith.mulf %45, %53 : vector<512x128xf32>
      %55 = arith.truncf %54 : vector<512x128xf32> to vector<512x128xbf16>
      %c0_30 = arith.constant 0 : index
      %c0_31 = arith.constant 0 : index
      %56 = vector.load %arg8[%c0_30, %c0_31] : memref<512x128xbf16, #tpu.memory_space<vmem>>, vector<512x128xbf16>
      tpu.vector_store %arg8[%c0_30, %c0_31], %55 {strides = array<i32>} : memref<512x128xbf16, #tpu.memory_space<vmem>>, vector<512x128xbf16>,
    } else {
    }
    return
  }
  func.func @transform_0(%arg0: i32, %arg1: i32) -> (i32, i32) {
    %c0_i32 = arith.constant 0 : i32
    return %arg0, %arg1 : i32, i32
  }
  func.func @transform_1(%arg0: i32, %arg1: i32) -> (i32, i32) {
    %c0_i32 = arith.constant 0 : i32
    %c0_i32_0 = arith.constant 0 : i32
    return %arg1, %c0_i32 : i32, i32
  }
  func.func @transform_2(%arg0: i32, %arg1: i32) -> (i32, i32) {
    %c0_i32 = arith.constant 0 : i32
    %c0_i32_0 = arith.constant 0 : i32
    return %arg0, %c0_i32 : i32, i32
  }
  func.func @transform_3(%arg0: i32, %arg1: i32) -> (i32, i32) {
    %c0_i32 = arith.constant 0 : i32
    %c0_i32_0 = arith.constant 0 : i32
    %c0_i32_1 = arith.constant 0 : i32
    return %c0_i32, %c0_i32_0 : i32, i32
  }
  func.func @transform_4(%arg0: i32, %arg1: i32) -> (i32, i32) {
    %c0_i32 = arith.constant 0 : i32
    %c0_i32_0 = arith.constant 0 : i32
    %c0_i32_1 = arith.constant 0 : i32
    return %c0_i32, %c0_i32_0 : i32, i32
  }
  func.func @transform_5(%arg0: i32, %arg1: i32) -> (i32, i32) {
    %c0_i32 = arith.constant 0 : i32
    %c0_i32_0 = arith.constant 0 : i32
    return %arg0, %c0_i32 : i32, i32
  }
  func.func @transform_6(%arg0: i32, %arg1: i32) -> (i32, i32) {
    %c0_i32 = arith.constant 0 : i32
    %c0_i32_0 = arith.constant 0 : i32
    return %arg0, %c0_i32 : i32, i32
  }
}

module attributes {stable_mosaic.version = 11 : i64} {
  func.func @_head_kernel(%arg0: i32, %arg1: memref<8x384xbf16, #tpu.memory_space<vmem>>, %arg2: memref<8x384xbf16, #tpu.memory_space<vmem>>, %arg3: memref<384x128xbf16, #tpu.memory_space<vmem>>, %arg4: memref<1x128xf32, #tpu.memory_space<vmem>>, %arg5: memref<128x32xf32, #tpu.memory_space<vmem>>, %arg6: memref<128x32xf32, #tpu.memory_space<vmem>>, %arg7: memref<1x32xf32, #tpu.memory_space<vmem>>, %arg8: memref<32x16xf32, #tpu.memory_space<vmem>>, %arg9: memref<1x16xf32, #tpu.memory_space<vmem>>, %arg10: memref<16x1xf32, #tpu.memory_space<vmem>>, %arg11: memref<1x1xf32, #tpu.memory_space<vmem>>, %arg12: memref<8x1xf32, #tpu.memory_space<vmem>>) attributes {dimension_semantics = [#tpu.dimension_semantics<parallel>], iteration_bounds = array<i64: 1>, scalar_prefetch = 0 : i64, scratch_operands = 0 : i64, tpu.core_type = #tpu.core_type<tc>, window_params = [{transform_indices = @transform_0, window_bounds = array<i64: 8, 384>}, {transform_indices = @transform_1, window_bounds = array<i64: 8, 384>}, {pipeline_mode = #tpu.pipeline_mode<synchronous>, transform_indices = @transform_2, window_bounds = array<i64: 384, 128>}, {pipeline_mode = #tpu.pipeline_mode<synchronous>, transform_indices = @transform_3, window_bounds = array<i64: 1, 128>}, {pipeline_mode = #tpu.pipeline_mode<synchronous>, transform_indices = @transform_4, window_bounds = array<i64: 128, 32>}, {pipeline_mode = #tpu.pipeline_mode<synchronous>, transform_indices = @transform_5, window_bounds = array<i64: 128, 32>}, {pipeline_mode = #tpu.pipeline_mode<synchronous>, transform_indices = @transform_6, window_bounds = array<i64: 1, 32>}, {pipeline_mode = #tpu.pipeline_mode<synchronous>, transform_indices = @transform_7, window_bounds = array<i64: 32, 16>}, {pipeline_mode = #tpu.pipeline_mode<synchronous>, transform_indices = @transform_8, window_bounds = array<i64: 1, 16>}, {pipeline_mode = #tpu.pipeline_mode<synchronous>, transform_indices = @transform_9, window_bounds = array<i64: 16, 1>}, {pipeline_mode = #tpu.pipeline_mode<synchronous>, transform_indices = @transform_10, window_bounds = array<i64: 1, 1>}, {transform_indices = @transform_11, window_bounds = array<i64: 8, 1>}]} {
    %c0 = arith.constant 0 : index
    %c0_0 = arith.constant 0 : index
    %0 = vector.load %arg3[%c0, %c0_0] : memref<384x128xbf16, #tpu.memory_space<vmem>>, vector<384x128xbf16>
    %c0_1 = arith.constant 0 : index
    %c0_2 = arith.constant 0 : index
    %1 = vector.load %arg1[%c0_1, %c0_2] : memref<8x384xbf16, #tpu.memory_space<vmem>>, vector<8x384xbf16>
    %cst = arith.constant dense<0.000000e+00> : vector<8x128xf32>
    %2 = tpu.matmul %1, %0, %cst {dimension_numbers = #tpu.dot_dimension_numbers<[1], [0], [0], [1], [0, 0, 1, 1], [], []>} : vector<8x384xbf16>, vector<384x128xbf16>, vector<8x128xf32> -> vector<8x128xf32>
    %c0_3 = arith.constant 0 : index
    %c0_4 = arith.constant 0 : index
    %3 = vector.load %arg4[%c0_3, %c0_4] : memref<1x128xf32, #tpu.memory_space<vmem>>, vector<1x128xf32>
    %4 = vector.broadcast %3 : vector<1x128xf32> to vector<8x128xf32>
    %5 = arith.addf %2, %4 : vector<8x128xf32>
    %c0_5 = arith.constant 0 : index
    %c0_6 = arith.constant 0 : index
    %6 = vector.load %arg2[%c0_5, %c0_6] : memref<8x384xbf16, #tpu.memory_space<vmem>>, vector<8x384xbf16>
    %cst_7 = arith.constant dense<0.000000e+00> : vector<8x128xf32>
    %7 = tpu.matmul %6, %0, %cst_7 {dimension_numbers = #tpu.dot_dimension_numbers<[1], [0], [0], [1], [0, 0, 1, 1], [], []>} : vector<8x384xbf16>, vector<384x128xbf16>, vector<8x128xf32> -> vector<8x128xf32>
    %c0_8 = arith.constant 0 : index
    %c0_9 = arith.constant 0 : index
    %8 = vector.load %arg4[%c0_8, %c0_9] : memref<1x128xf32, #tpu.memory_space<vmem>>, vector<1x128xf32>
    %9 = vector.broadcast %8 : vector<1x128xf32> to vector<8x128xf32>
    %10 = arith.addf %7, %9 : vector<8x128xf32>
    %cst_10 = arith.constant 0.000000e+00 : f32
    %11 = vector.broadcast %cst_10 : f32 to vector<8x128xf32>
    %12 = arith.cmpf oge, %5, %11 : vector<8x128xf32>
    %cst_11 = arith.constant 0.00999999977 : f32
    %13 = vector.broadcast %cst_11 : f32 to vector<8x128xf32>
    %14 = arith.mulf %13, %5 : vector<8x128xf32>
    %15 = arith.select %12, %5, %14 : vector<8x128xi1>, vector<8x128xf32>
    %cst_12 = arith.constant 0.000000e+00 : f32
    %16 = vector.broadcast %cst_12 : f32 to vector<8x128xf32>
    %17 = arith.cmpf oge, %10, %16 : vector<8x128xf32>
    %cst_13 = arith.constant 0.00999999977 : f32
    %18 = vector.broadcast %cst_13 : f32 to vector<8x128xf32>
    %19 = arith.mulf %18, %10 : vector<8x128xf32>
    %20 = arith.select %17, %10, %19 : vector<8x128xi1>, vector<8x128xf32>
    %c0_14 = arith.constant 0 : index
    %c0_15 = arith.constant 0 : index
    %21 = vector.load %arg5[%c0_14, %c0_15] : memref<128x32xf32, #tpu.memory_space<vmem>>, vector<128x32xf32>
    %cst_16 = arith.constant dense<0.000000e+00> : vector<8x32xf32>
    %22 = tpu.matmul %15, %21, %cst_16 {dimension_numbers = #tpu.dot_dimension_numbers<[1], [0], [0], [1], [0, 0, 1, 1], [], []>} : vector<8x128xf32>, vector<128x32xf32>, vector<8x32xf32> -> vector<8x32xf32>
    %c0_17 = arith.constant 0 : index
    %c0_18 = arith.constant 0 : index
    %23 = vector.load %arg6[%c0_17, %c0_18] : memref<128x32xf32, #tpu.memory_space<vmem>>, vector<128x32xf32>
    %cst_19 = arith.constant dense<0.000000e+00> : vector<8x32xf32>
    %24 = tpu.matmul %20, %23, %cst_19 {dimension_numbers = #tpu.dot_dimension_numbers<[1], [0], [0], [1], [0, 0, 1, 1], [], []>} : vector<8x128xf32>, vector<128x32xf32>, vector<8x32xf32> -> vector<8x32xf32>
    %25 = arith.addf %22, %24 : vector<8x32xf32>
    %c0_20 = arith.constant 0 : index
    %c0_21 = arith.constant 0 : index
    %26 = vector.load %arg7[%c0_20, %c0_21] : memref<1x32xf32, #tpu.memory_space<vmem>>, vector<1x32xf32>
    %27 = vector.broadcast %26 : vector<1x32xf32> to vector<8x32xf32>
    %28 = arith.addf %25, %27 : vector<8x32xf32>
    %cst_22 = arith.constant 0.000000e+00 : f32
    %29 = vector.broadcast %cst_22 : f32 to vector<8x32xf32>
    %30 = arith.maximumf %28, %29 : vector<8x32xf32>
    %c0_23 = arith.constant 0 : index
    %c0_24 = arith.constant 0 : index
    %31 = vector.load %arg8[%c0_23, %c0_24] : memref<32x16xf32, #tpu.memory_space<vmem>>, vector<32x16xf32>
    %cst_25 = arith.constant dense<0.000000e+00> : vector<8x16xf32>
    %32 = tpu.matmul %30, %31, %cst_25 {dimension_numbers = #tpu.dot_dimension_numbers<[1], [0], [0], [1], [0, 0, 1, 1], [], []>} : vector<8x32xf32>, vector<32x16xf32>, vector<8x16xf32> -> vector<8x16xf32>
    %c0_26 = arith.constant 0 : index
    %c0_27 = arith.constant 0 : index
    %33 = vector.load %arg9[%c0_26, %c0_27] : memref<1x16xf32, #tpu.memory_space<vmem>>, vector<1x16xf32>
    %34 = vector.broadcast %33 : vector<1x16xf32> to vector<8x16xf32>
    %35 = arith.addf %32, %34 : vector<8x16xf32>
    %cst_28 = arith.constant 0.000000e+00 : f32
    %36 = vector.broadcast %cst_28 : f32 to vector<8x16xf32>
    %37 = arith.maximumf %35, %36 : vector<8x16xf32>
    %c0_29 = arith.constant 0 : index
    %c0_30 = arith.constant 0 : index
    %38 = vector.load %arg10[%c0_29, %c0_30] : memref<16x1xf32, #tpu.memory_space<vmem>>, vector<16x1xf32>
    %cst_31 = arith.constant dense<0.000000e+00> : vector<8x1xf32>
    %39 = tpu.matmul %37, %38, %cst_31 {dimension_numbers = #tpu.dot_dimension_numbers<[1], [0], [0], [1], [0, 0, 1, 1], [], []>} : vector<8x16xf32>, vector<16x1xf32>, vector<8x1xf32> -> vector<8x1xf32>
    %c0_32 = arith.constant 0 : index
    %c0_33 = arith.constant 0 : index
    %40 = vector.load %arg11[%c0_32, %c0_33] : memref<1x1xf32, #tpu.memory_space<vmem>>, vector<1x1xf32>
    %41 = vector.broadcast %40 : vector<1x1xf32> to vector<8x1xf32>
    %42 = arith.addf %39, %41 : vector<8x1xf32>
    %43 = arith.negf %42 : vector<8x1xf32>
    %44 = math.exp %43 : vector<8x1xf32>
    %cst_34 = arith.constant 1.000000e+00 : f32
    %45 = vector.broadcast %cst_34 : f32 to vector<8x1xf32>
    %46 = arith.addf %45, %44 : vector<8x1xf32>
    %47 = arith.divf %45, %46 : vector<8x1xf32>
    %c0_35 = arith.constant 0 : index
    %c0_36 = arith.constant 0 : index
    %48 = vector.load %arg12[%c0_35, %c0_36] : memref<8x1xf32, #tpu.memory_space<vmem>>, vector<8x1xf32>
    tpu.vector_store %arg12[%c0_35, %c0_36], %47 {strides = array<i32>} : memref<8x1xf32, #tpu.memory_space<vmem>>, vector<8x1xf32>,
    return
  }
  func.func @transform_0(%arg0: i32) -> (i32, i32) {
    %c0_i32 = arith.constant 0 : i32
    %c0_i32_0 = arith.constant 0 : i32
    return %arg0, %c0_i32 : i32, i32
  }
  func.func @transform_1(%arg0: i32) -> (i32, i32) {
    %c0_i32 = arith.constant 0 : i32
    %c0_i32_0 = arith.constant 0 : i32
    return %arg0, %c0_i32 : i32, i32
  }
  func.func @transform_2(%arg0: i32) -> (i32, i32) {
    %c0_i32 = arith.constant 0 : i32
    %c0_i32_0 = arith.constant 0 : i32
    %c0_i32_1 = arith.constant 0 : i32
    return %c0_i32, %c0_i32_0 : i32, i32
  }
  func.func @transform_3(%arg0: i32) -> (i32, i32) {
    %c0_i32 = arith.constant 0 : i32
    %c0_i32_0 = arith.constant 0 : i32
    %c0_i32_1 = arith.constant 0 : i32
    return %c0_i32, %c0_i32_0 : i32, i32
  }
  func.func @transform_4(%arg0: i32) -> (i32, i32) {
    %c0_i32 = arith.constant 0 : i32
    %c0_i32_0 = arith.constant 0 : i32
    %c0_i32_1 = arith.constant 0 : i32
    return %c0_i32, %c0_i32_0 : i32, i32
  }
  func.func @transform_5(%arg0: i32) -> (i32, i32) {
    %c0_i32 = arith.constant 0 : i32
    %c0_i32_0 = arith.constant 0 : i32
    %c0_i32_1 = arith.constant 0 : i32
    return %c0_i32, %c0_i32_0 : i32, i32
  }
  func.func @transform_6(%arg0: i32) -> (i32, i32) {
    %c0_i32 = arith.constant 0 : i32
    %c0_i32_0 = arith.constant 0 : i32
    %c0_i32_1 = arith.constant 0 : i32
    return %c0_i32, %c0_i32_0 : i32, i32
  }
  func.func @transform_7(%arg0: i32) -> (i32, i32) {
    %c0_i32 = arith.constant 0 : i32
    %c0_i32_0 = arith.constant 0 : i32
    %c0_i32_1 = arith.constant 0 : i32
    return %c0_i32, %c0_i32_0 : i32, i32
  }
  func.func @transform_8(%arg0: i32) -> (i32, i32) {
    %c0_i32 = arith.constant 0 : i32
    %c0_i32_0 = arith.constant 0 : i32
    %c0_i32_1 = arith.constant 0 : i32
    return %c0_i32, %c0_i32_0 : i32, i32
  }
  func.func @transform_9(%arg0: i32) -> (i32, i32) {
    %c0_i32 = arith.constant 0 : i32
    %c0_i32_0 = arith.constant 0 : i32
    %c0_i32_1 = arith.constant 0 : i32
    return %c0_i32, %c0_i32_0 : i32, i32
  }
  func.func @transform_10(%arg0: i32) -> (i32, i32) {
    %c0_i32 = arith.constant 0 : i32
    %c0_i32_0 = arith.constant 0 : i32
    %c0_i32_1 = arith.constant 0 : i32
    return %c0_i32, %c0_i32_0 : i32, i32
  }
  func.func @transform_11(%arg0: i32) -> (i32, i32) {
    %c0_i32 = arith.constant 0 : i32
    %c0_i32_0 = arith.constant 0 : i32
    return %arg0, %c0_i32 : i32, i32
  }
}

</mosaic_0001>

<bundles_post_ra>
// kernel: literalkg_mlp_forward.5
= control target key start
LH: loop header
LB: loop body
LE: loop exit
PB: predicated region body
PF: predicated region fallthrough
CT: control target
= control target key end

     0   :  { %v1099_v1 = vmov 0.0   ;;  %vm1100_vm0 = vmmov 0   ;;  %vm624_vm3 = vcmask 261120   ;;  %vm708_vm4 = vcmask 130048   ;;  %s1472_s2 = inlined_call_operand.vmem [shape: bf16[384,128], index: 2, kind: input, shape index: {}]   ;;  %s1473_s0 = inlined_call_operand.vmem [shape: bf16[8,384], index: 0, kind: input, shape index: {}]   ;;  %s1474_s1 = inlined_call_operand.vmem [shape: bf16[8,384], index: 1, kind: input, shape index: {}]   ;;  %s1475_s4 = inlined_call_operand.vmem [shape: f32[128,32], index: 4, kind: input, shape index: {}]   ;;  %s1476_s5 = inlined_call_operand.vmem [shape: f32[128,32], index: 5, kind: input, shape index: {}]   ;;  %s1477_s3 = inlined_call_operand.vmem [shape: f32[1,128], index: 3, kind: input, shape index: {}]   ;;  %s1478_s7 = inlined_call_operand.vmem [shape: f32[32,16], index: 7, kind: input, shape index: {}]   ;;  %s1479_s6 = inlined_call_operand.vmem [shape: f32[1,32], index: 6, kind: input, shape index: {}]   ;;  %s1480_s9 = inlined_call_operand.vmem [shape: f32[16,1], index: 9, kind: input, shape index: {}]   ;;  %s1481_s10 = inlined_call_operand.<no memory space> [shape: f32[1,1], index: 10, kind: input, shape index: {}]   ;;  %s1482_s8 = inlined_call_operand.vmem [shape: f32[1,16], index: 8, kind: input, shape index: {}]   ;;  %s1483_s11 = inlined_call_operand.vmem [shape: f32[8,1], index: 11, kind: output, shape index: {}]  }
   0x1   :  { %v1164_v0 = vld [vmem:[%s1472_s2 + $0x78] sm:$0xff]   ;;  %935 = vmatprep.subr.bf16.mxu1 %v1099_v1  ;;  %951 = vmatprep.mubr.msk.bf16.mxu1 %vm1100_vm0, %v1099_v1  ;;  %v1184_v4 = vld [vmem:[%s1472_s2 + $0x70] sm:$0xff]   ;;  %v1202_v7 = vld [vmem:[%s1472_s2 + $0x68] sm:$0xff]   ;;  %vm788_vm5 = vcmask 7168  }
   0x2   :  { %v1172_v2 = vld [vmem:[%s1472_s2 + $0x38] sm:$0xff]   ;;  %831 = vmatprep.subr.bf16.mxu0 %v1164_v0  ;;  %v1190_v5 = vld [vmem:[%s1472_s2 + $0x30] sm:$0xff]   ;;  %v1208_v8 = vld [vmem:[%s1472_s2 + $0x28] sm:$0xff]  }
   0x3   :  { %v1178_v3 = vld [vmem:[%s1472_s2 + $0xb8] sm:$0xff]   ;;  %832 = vmatpush3.bf16.msra.mxu0 %v1172_v2  ;;  %v1197_v6 = vld [vmem:[%s1472_s2 + $0xb0] sm:$0xff]   ;;  %v1073_v9 = vld [vmem:[%s1472_s2 + $0xa8] sm:$0xff]  }
   0x4   :  { %936 = vmatpush3.bf16.msra.mxu1 %v1178_v3  ;;  %833 = vmatprep.subr.bf16.mxu0 %v1184_v4  ;;  %v1074_v10 = vld [vmem:[%s1472_s2 + $0x60] sm:$0xff]   ;;  %v1077_v13 = vld [vmem:[%s1472_s2 + $0x58] sm:$0xff]   ;;  %v1080_v16 = vld [vmem:[%s1472_s2 + $0x50] sm:$0xff]  }
   0x5   :  { %937 = vmatprep.subr.bf16.mxu1 %v1099_v1  ;;  %v1075_v11 = vld [vmem:[%s1472_s2 + $0x20] sm:$0xff]   ;;  %v1078_v14 = vld [vmem:[%s1472_s2 + $0x18] sm:$0xff]   ;;  %v1081_v17 = vld [vmem:[%s1472_s2 + $0x10] sm:$0xff]  }
   0x6   :  { %v1076_v12 = vld [vmem:[%s1472_s2 + $0xa0] sm:$0xff]   ;;  %v1079_v15 = vld [vmem:[%s1472_s2 + $0x98] sm:$0xff]   ;;  %v1082_v18 = vld [vmem:[%s1472_s2 + $0x90] sm:$0xff]  }
   0x7   :  { %834 = vmatpush3.bf16.msra.mxu0 %v1190_v5  ;;  %v1083_v19 = vld [vmem:[%s1472_s2 + $0x48] sm:$0xff]   ;;  %v1086_v22 = vld [vmem:[%s1472_s2 + $0x40] sm:$0xff]   ;;  %v447_v33 = vld [vmem:[%s1475_s4 + $0x78] sm:$0xff] }
   0x8   :  { %938 = vmatpush3.bf16.msra.mxu1 %v1197_v6  ;;  %835 = vmatprep.subr.bf16.mxu0 %v1202_v7  ;;  %v1084_v20 = vld [vmem:[%s1472_s2 + $0x8] sm:$0xff]   ;;  %v89_v23 = vld [vmem:[%s1473_s0] sm:$0xff]  ;;  %v446_v34 = vld [vmem:[%s1475_s4 + $0x70] sm:$0xff] }
   0x9   :  { %939 = vmatprep.subr.bf16.mxu1 %v1099_v1  ;;  %v1085_v21 = vld [vmem:[%s1472_s2 + $0x88] sm:$0xff]   ;;  %v796_v24 = vcombine.high %v89_v23, %v89_v23  ;;  %v1087_v25 = vld [vmem:[%s1472_s2] sm:$0xff]   ;;  %v795_v27 = vcombine.low %v89_v23, %v89_v23  ;;  %v443_v37 = vld [vmem:[%s1475_s4 + $0x58] sm:$0xff] }
   0xa   :  { %v1088_v26 = vld [vmem:[%s1472_s2 + $0x80] sm:$0xff]   ;;  %v1091_v29 = vld [vmem:[%s1473_s0 + $0x8] ss:$0 sps:$4 sm:$0xff]   ;;  %v442_v38 = vld [vmem:[%s1475_s4 + $0x50] sm:$0xff] }
   0xb   :  { %836 = vmatpush3.bf16.msra.mxu0 %v1208_v8  ;;  %285 = vmatprep.mubr.bf16.mxu0 %v796_v24  ;;  %v333_v28 = vld [vmem:[%s1474_s1] sm:$0xff]  ;;  %v1094_v32 = vld [vmem:[%s1474_s1 + $0x8] ss:$0 sps:$4 sm:$0xff]   ;;  %v439_v41 = vld [vmem:[%s1475_s4 + $0x38] sm:$0xff] }
   0xc   :  { %940 = vmatpush3.bf16.msra.mxu1 %v1073_v9  ;;  %837 = vmatprep.subr.bf16.mxu0 %v1074_v10  ;;  %v823_v30 = vcombine.high %v333_v28, %v333_v28  ;;  %v822_v31 = vcombine.low %v333_v28, %v333_v28  ;;  %v445_v35 = vld [vmem:[%s1475_s4 + $0x68] sm:$0xff]  ;;  %v444_v36 = vld [vmem:[%s1475_s4 + $0x60] sm:$0xff]  ;;  %v438_v42 = vld [vmem:[%s1475_s4 + $0x30] sm:$0xff] }
   0xd   :  { %941 = vmatprep.subr.bf16.mxu1 %v1099_v1  ;;  %v441_v39 = vld [vmem:[%s1475_s4 + $0x48] sm:$0xff]  ;;  %v440_v40 = vld [vmem:[%s1475_s4 + $0x40] sm:$0xff]  ;;  %v435_v45 = vld [vmem:[%s1475_s4 + $0x18] sm:$0xff] }
   0xe   :  { %v437_v43 = vld [vmem:[%s1475_s4 + $0x28] sm:$0xff]  ;;  %v436_v44 = vld [vmem:[%s1475_s4 + $0x20] sm:$0xff]  ;;  %v434_v46 = vld [vmem:[%s1475_s4 + $0x10] sm:$0xff] }
   0xf   :  { %838 = vmatpush3.bf16.msra.mxu0 %v1075_v11  ;;  %v433_v47 = vld [vmem:[%s1475_s4 + $0x8] sm:$0xff]  ;;  %v432_v48 = vld [vmem:[%s1475_s4] sm:$0xff]  ;;  %v463_v49 = vld [vmem:[%s1476_s5 + $0x78] sm:$0xff] }
  0x10   :  { %942 = vmatpush3.bf16.msra.mxu1 %v1076_v12  ;;  %839 = vmatprep.subr.bf16.mxu0 %v1077_v13  ;;  %v462_v50 = vld [vmem:[%s1476_s5 + $0x70] sm:$0xff]  ;;  %v461_v51 = vld [vmem:[%s1476_s5 + $0x68] sm:$0xff]  ;;  %v460_v52 = vld [vmem:[%s1476_s5 + $0x60] sm:$0xff] }
  0x11   :  { %943 = vmatprep.subr.bf16.mxu1 %v1099_v1  ;;  %v459_v53 = vld [vmem:[%s1476_s5 + $0x58] sm:$0xff]  ;;  %v458_v54 = vld [vmem:[%s1476_s5 + $0x50] sm:$0xff]  ;;  %v457_v55 = vld [vmem:[%s1476_s5 + $0x48] sm:$0xff] }
  0x12   :  { %v456_v56 = vld [vmem:[%s1476_s5 + $0x40] sm:$0xff]  ;;  %v455_v57 = vld [vmem:[%s1476_s5 + $0x38] sm:$0xff]  ;;  %v454_v58 = vld [vmem:[%s1476_s5 + $0x30] sm:$0xff] }
  0x13   :  { %840 = vmatpush3.bf16.msra.mxu0 %v1078_v14  ;;  %v453_v59 = vld [vmem:[%s1476_s5 + $0x28] sm:$0xff]  ;;  %v452_v60 = vld [vmem:[%s1476_s5 + $0x20] sm:$0xff]  ;;  %v451_v61 = vld [vmem:[%s1476_s5 + $0x18] sm:$0xff] }
  0x14   :  { %944 = vmatpush3.bf16.msra.mxu1 %v1079_v15  ;;  %841 = vmatprep.subr.bf16.mxu0 %v1080_v16  ;;  %v450_v62 = vld [vmem:[%s1476_s5 + $0x10] sm:$0xff]  ;;  %v449_v63 = vld [vmem:[%s1476_s5 + $0x8] sm:$0xff] }
  0x15   :  { %945 = vmatprep.subr.bf16.mxu1 %v1099_v1 }
  0x17   :  { %842 = vmatpush3.bf16.msra.mxu0 %v1081_v17 }
  0x18   :  { %946 = vmatpush3.bf16.msra.mxu1 %v1082_v18  ;;  %843 = vmatprep.subr.bf16.mxu0 %v1083_v19 }
  0x19   :  { %947 = vmatprep.subr.bf16.mxu1 %v1099_v1 }
  0x1b   :  { %844 = vmatpush3.bf16.msra.mxu0 %v1084_v20 }
  0x1c   :  { %948 = vmatpush3.bf16.msra.mxu1 %v1085_v21  ;;  %845 = vmatprep.subr.bf16.mxu0 %v1086_v22 }
  0x1d   :  { %949 = vmatprep.subr.bf16.mxu1 %v1099_v1 }
  0x1f   :  { %846 = vmatpush3.bf16.msra.mxu0 %v1087_v25 }
  0x20   :  { %950 = vmatpush3.bf16.msra.mxu1 %v1088_v26  ;;  %862 = vmatprep.subr.bf16.mxu0 %v1164_v0  ;;  %v448_v0 = vld [vmem:[%s1476_s5] sm:$0xff] }
  0x21   :  { %955 = vmatprep.subr.bf16.mxu1 %v1099_v1 }
  0x22   :  { %286 = vmatmul.mubr.bf16.vlgmr.msra.gmra.mxu0 %v795_v27 }
  0x23   :  { %952 = vmatmul.mubr.bf16.vlgmr.msra.gmra.mxu1 %v1091_v29  ;;  %863 = vmatpush3.bf16.msra.mxu0 %v1172_v2  ;;  %v616_v29 = vld [vmem:[%s1478_s7 + $0x18] sm:$0xff] }
  0x24   :  { %956 = vmatpush3.bf16.msra.mxu1 %v1178_v3  ;;  %864 = vmatprep.subr.bf16.mxu0 %v1184_v4  ;;  %v794_v4 = vld [vmem:[%s1477_s3] ss:$0 sm:$0xff] }
  0x25   :  { %957 = vmatprep.subr.bf16.mxu1 %v1099_v1  ;;  %378 = vmatprep.mubr.bf16.mxu0 %v823_v30  ;;  %v615_v30 = vld [vmem:[%s1478_s7 + $0x10] sm:$0xff] }
  0x26   :  { %971 = vmatprep.mubr.msk.bf16.mxu1 %vm1100_vm0, %v1099_v1 }
  0x27   :  { %865 = vmatpush3.bf16.msra.mxu0 %v1190_v5 }
  0x28   :  { %958 = vmatpush3.bf16.msra.mxu1 %v1197_v6  ;;  %866 = vmatprep.subr.bf16.mxu0 %v1202_v7 }
  0x29   :  { %959 = vmatprep.subr.bf16.mxu1 %v1099_v1 }
  0x2b   :  { %867 = vmatpush3.bf16.msra.mxu0 %v1208_v8 }
  0x2c   :  { %960 = vmatpush3.bf16.msra.mxu1 %v1073_v9  ;;  %868 = vmatprep.subr.bf16.mxu0 %v1074_v10 }
  0x2d   :  { %961 = vmatprep.subr.bf16.mxu1 %v1099_v1 }
  0x2f   :  { %869 = vmatpush3.bf16.msra.mxu0 %v1075_v11 }
  0x30   :  { %962 = vmatpush3.bf16.msra.mxu1 %v1076_v12  ;;  %870 = vmatprep.subr.bf16.mxu0 %v1077_v13 }
  0x31   :  { %963 = vmatprep.subr.bf16.mxu1 %v1099_v1 }
  0x33   :  { %871 = vmatpush3.bf16.msra.mxu0 %v1078_v14 }
  0x34   :  { %964 = vmatpush3.bf16.msra.mxu1 %v1079_v15  ;;  %872 = vmatprep.subr.bf16.mxu0 %v1080_v16 }
  0x35   :  { %965 = vmatprep.subr.bf16.mxu1 %v1099_v1 }
  0x37   :  { %873 = vmatpush3.bf16.msra.mxu0 %v1081_v17 }
  0x38   :  { %966 = vmatpush3.bf16.msra.mxu1 %v1082_v18  ;;  %874 = vmatprep.subr.bf16.mxu0 %v1083_v19 }
  0x39   :  { %967 = vmatprep.subr.bf16.mxu1 %v1099_v1 }
  0x3b   :  { %875 = vmatpush3.bf16.msra.mxu0 %v1084_v20 }
  0x3c   :  { %968 = vmatpush3.bf16.msra.mxu1 %v1085_v21  ;;  %876 = vmatprep.subr.bf16.mxu0 %v1086_v22 }
  0x3d   :  { %969 = vmatprep.subr.bf16.mxu1 %v1099_v1 }
  0x3f   :  { %877 = vmatpush3.bf16.msra.mxu0 %v1087_v25 }
  0x40   :  { %970 = vmatpush3.bf16.msra.mxu1 %v1088_v26  ;;  %975 = vmatprep.subr.mxu0 %v1099_v1 }
  0x41   :  { %1010 = vmatprep.subr.mxu1 %v1099_v1 }
  0x42   :  { %379 = vmatmul.mubr.bf16.vlgmr.msra.gmra.mxu0 %v822_v31  ;;  %v614_v31 = vld [vmem:[%s1478_s7 + $0x8] sm:$0xff] }
  0x43   :  { %972 = vmatmul.mubr.bf16.vlgmr.msra.gmra.mxu1 %v1094_v32  ;;  %1007 = vmatprep.mubr.msk.f32.mxu0 %vm1100_vm0, %v1099_v1  ;;  %v613_v32 = vld [vmem:[%s1478_s7] sm:$0xff] }
  0x44   :  { %1011 = vmatpush3.msra.mxu1 %v447_v33  ;;  %1042 = vmatprep.mubr.msk.f32.mxu1 %vm1100_vm0, %v1099_v1 }
  0x45   :  { %1012 = vmatprep.subr.mxu1 %v1099_v1  ;;  %976 = vmatpush3.msra.mxu0 %v463_v49 }
  0x46   :  { %1013 = vmatpush3.msra.mxu1 %v446_v34  ;;  %977 = vmatprep.subr.mxu0 %v1099_v1 }
  0x47   :  { %1014 = vmatprep.subr.mxu1 %v1099_v1  ;;  %978 = vmatpush3.msra.mxu0 %v462_v50 }
  0x48   :  { %1015 = vmatpush3.msra.mxu1 %v445_v35  ;;  %979 = vmatprep.subr.mxu0 %v1099_v1 }
  0x49   :  { %1016 = vmatprep.subr.mxu1 %v1099_v1  ;;  %980 = vmatpush3.msra.mxu0 %v461_v51 }
  0x4a   :  { %1017 = vmatpush3.msra.mxu1 %v444_v36  ;;  %981 = vmatprep.subr.mxu0 %v1099_v1  ;;  %v825_v36 = vld [vmem:[%s1479_s6] ss:$0 sm:$0xff] }
  0x4b   :  { %1018 = vmatprep.subr.mxu1 %v1099_v1  ;;  %982 = vmatpush3.msra.mxu0 %v460_v52 }
  0x4c   :  { %1019 = vmatpush3.msra.mxu1 %v443_v37  ;;  %983 = vmatprep.subr.mxu0 %v1099_v1 }
  0x4d   :  { %1020 = vmatprep.subr.mxu1 %v1099_v1  ;;  %984 = vmatpush3.msra.mxu0 %v459_v53 }
  0x4e   :  { %1021 = vmatpush3.msra.mxu1 %v442_v38  ;;  %985 = vmatprep.subr.mxu0 %v1099_v1 }
  0x4f   :  { %1022 = vmatprep.subr.mxu1 %v1099_v1  ;;  %986 = vmatpush3.msra.mxu0 %v458_v54 }
  0x50   :  { %1023 = vmatpush3.msra.mxu1 %v441_v39  ;;  %987 = vmatprep.subr.mxu0 %v1099_v1 }
  0x51   :  { %1024 = vmatprep.subr.mxu1 %v1099_v1  ;;  %988 = vmatpush3.msra.mxu0 %v457_v55 }
  0x52   :  { %1025 = vmatpush3.msra.mxu1 %v440_v40  ;;  %989 = vmatprep.subr.mxu0 %v1099_v1 }
  0x53   :  { %1026 = vmatprep.subr.mxu1 %v1099_v1  ;;  %990 = vmatpush3.msra.mxu0 %v456_v56 }
  0x54   :  { %1027 = vmatpush3.msra.mxu1 %v439_v41  ;;  %991 = vmatprep.subr.mxu0 %v1099_v1  ;;  %v700_v41 = vld [vmem:[%s1480_s9 + $0x8] sm:$0xff] }
  0x55   :  { %1028 = vmatprep.subr.mxu1 %v1099_v1  ;;  %992 = vmatpush3.msra.mxu0 %v455_v57 }
  0x56   :  { %1029 = vmatpush3.msra.mxu1 %v438_v42  ;;  %993 = vmatprep.subr.mxu0 %v1099_v1  ;;  %v699_v42 = vld [vmem:[%s1480_s9] sm:$0xff] }
  0x57   :  { %1030 = vmatprep.subr.mxu1 %v1099_v1  ;;  %994 = vmatpush3.msra.mxu0 %v454_v58 }
  0x58   :  { %1031 = vmatpush3.msra.mxu1 %v437_v43  ;;  %995 = vmatprep.subr.mxu0 %v1099_v1  ;;  %v16_v43 = vstv %s1481_s10 }
  0x59   :  { %1032 = vmatprep.subr.mxu1 %v1099_v1  ;;  %996 = vmatpush3.msra.mxu0 %v453_v59  ;;  %17 = vst [vmem:[#allocation2] sm:$0x1] %v16_v43 }
  0x5a   :  { %1033 = vmatpush3.msra.mxu1 %v436_v44  ;;  %997 = vmatprep.subr.mxu0 %v1099_v1  ;;  %v826_v44 = vld [vmem:[%s1482_s8] ss:$0 sm:$0xff] }
  0x5b   :  { %1034 = vmatprep.subr.mxu1 %v1099_v1  ;;  %998 = vmatpush3.msra.mxu0 %v452_v60 }
  0x5c   :  { %1035 = vmatpush3.msra.mxu1 %v435_v45  ;;  %999 = vmatprep.subr.mxu0 %v1099_v1 }
  0x5d   :  { %1036 = vmatprep.subr.mxu1 %v1099_v1  ;;  %1000 = vmatpush3.msra.mxu0 %v451_v61 }
  0x5e   :  { %1037 = vmatpush3.msra.mxu1 %v434_v46  ;;  %1001 = vmatprep.subr.mxu0 %v1099_v1 }
  0x5f   :  { %1038 = vmatprep.subr.mxu1 %v1099_v1  ;;  %1002 = vmatpush3.msra.mxu0 %v450_v62 }
  0x60   :  { %1039 = vmatpush3.msra.mxu1 %v433_v47  ;;  %1003 = vmatprep.subr.mxu0 %v1099_v1  ;;  %v828_v49 = vld [vmem:[#allocation2] ss:$0 sm:$0xff] }
  0x61   :  { %1040 = vmatprep.subr.mxu1 %v1099_v1  ;;  %1004 = vmatpush3.msra.mxu0 %v449_v63 }
  0x62   :  { %1041 = vmatpush3.msra.mxu1 %v432_v48  ;;  %1005 = vmatprep.subr.mxu0 %v1099_v1 }
  0x63   :  { %1056 = vmatprep.subr.mxu1 %v1099_v1  ;;  %1006 = vmatpush3.msra.mxu0 %v448_v0 }
  0x64   :  { %1045 = vmatprep.subr.mxu0 %v1099_v1 }
  0xe2   :  { %v847_v2 = vpop.f32.mrf.mxu0 }
  0xe3   :  { %v327_v3 = vpop.f32.mrf.mxu1 }
  0xe4   :  { %v848_v5 = vpop.f32.mrf.mxu0 }
  0xe5   :  { %v849_v6 = vadd.f32 %v848_v5, %v847_v2  ;;  %v953_v7 = vpop.f32.mrf.mxu1 }
  0xe6   :  { %v850_v8 = vpop.f32.mrf.mxu0 }
  0xe7   :  { %v288_v9 = vadd.f32 %v849_v6, %v794_v4  ;;  %v330_v10 = vpop.f32.mrf.mxu1 }
  0xe8   :  { %v851_v11 = vpop.f32.mrf.mxu0 }
  0xe9   :  { %v328_v12 = vadd.f32 %v327_v3, %v288_v9  ;;  %v954_v13 = vpop.f32.mrf.mxu1 }
  0xeb   :  { %vm426_vm1 = vcmp.ge.f32.partialorder %v328_v12, 0.0  ;;  %v427_v14 = vmul.f32 0.01, %v328_v12 }
  0xed   :  { %v428_v15 = vsel %vm426_vm1, %v328_v12, %v427_v14 }
  0xee   :  { %1043 = vmatmul.mubr.f32.vlgmr.msra.gmra.mxu1 %v428_v15 }
  0xef   :  { %1060 = vmatprep.mubr.msk.f32.mxu1 %vm1100_vm0, %v1099_v1  ;;  %1057 = vmatpush3.msra.mxu1 %v700_v41 }
  0xf0   :  { %1058 = vmatprep.subr.mxu1 %v1099_v1 }
  0xf1   :  { %1059 = vmatpush3.msra.mxu1 %v699_v42 }
 0x102   :  { %v878_v16 = vpop.f32.mrf.mxu0 }
 0x103   :  { %v420_v17 = vpop.f32.mrf.mxu1 }
 0x104   :  { %v879_v18 = vpop.f32.mrf.mxu0 }
 0x105   :  { %v880_v19 = vadd.f32 %v879_v18, %v878_v16  ;;  %v973_v20 = vpop.f32.mrf.mxu1 }
 0x106   :  { %v881_v21 = vpop.f32.mrf.mxu0 }
 0x107   :  { %v381_v22 = vadd.f32 %v880_v19, %v794_v4  ;;  %v423_v23 = vpop.f32.mrf.mxu1 }
 0x108   :  { %v882_v24 = vpop.f32.mrf.mxu0 }
 0x109   :  { %v421_v25 = vadd.f32 %v420_v17, %v381_v22  ;;  %v974_v26 = vpop.f32.mrf.mxu1 }
 0x10b   :  { %vm429_vm2 = vcmp.ge.f32.partialorder %v421_v25, 0.0  ;;  %v430_v27 = vmul.f32 0.01, %v421_v25 }
 0x10d   :  { %v431_v28 = vsel %vm429_vm2, %v421_v25, %v430_v27 }
 0x10e   :  { %1008 = vmatmul.mubr.f32.vlgmr.msra.gmra.mxu0 %v431_v28 }
 0x10f   :  { %1053 = vmatprep.mubr.msk.f32.mxu0 %vm1100_vm0, %v1099_v1  ;;  %1046 = vmatpush3.msra.mxu0 %v616_v29 }
 0x110   :  { %1047 = vmatprep.subr.mxu0 %v1099_v1 }
 0x111   :  { %1048 = vmatpush3.msra.mxu0 %v615_v30 }
 0x112   :  { %1049 = vmatprep.subr.mxu0 %v1099_v1 }
 0x113   :  { %1050 = vmatpush3.msra.mxu0 %v614_v31 }
 0x114   :  { %1051 = vmatprep.subr.mxu0 %v1099_v1 }
 0x115   :  { %1052 = vmatpush3.msra.mxu0 %v613_v32 }
 0x1ae   :  { %v600_v33 = vpop.f32.mrf.mxu1 }
 0x1b0   :  { %v1044_v34 = vpop.f32.mrf.mxu1 }
 0x1ce   :  { %v530_v35 = vpop.f32.mrf.mxu0 }
 0x1cf   :  { %v601_v37 = vadd.f32 %v600_v33, %v530_v35 }
 0x1d0   :  { %v1009_v38 = vpop.f32.mrf.mxu0 }
 0x1d1   :  { %v611_v39 = vadd.f32 %v825_v36, %v601_v37 }
 0x1d3   :  { %v612_v40 = vmax.f32 %v611_v39, 0.0 }
 0x1d5   :  { %1054 = vmatmul.mubr.msk.f32.vlgmr.msra.gmra.mxu0 %vm624_vm3, %v612_v40 }
 0x295   :  { %v694_v45 = vpop.f32.mrf.mxu0 }
 0x296   :  { %v695_v46 = vadd.f32 %v826_v44, %v694_v45 }
 0x297   :  { %v1055_v47 = vpop.f32.mrf.mxu0 }
 0x298   :  { %v698_v48 = vmax.f32 %v695_v46, 0.0 }
 0x29a   :  { %1061 = vmatmul.mubr.msk.f32.vlgmr.msra.gmra.mxu1 %vm708_vm4, %v698_v48 }
 0x35a   :  { %v778_v50 = vpop.f32.mrf.mxu1 }
 0x35b   :  { %v779_v51 = vadd.f32 %v828_v49, %v778_v50 }
 0x35c   :  { %v1062_v1 = vpop.f32.mrf.mxu1 }
 0x35d   :  { %v830_v52 = vmul.f32 -1.442695, %v779_v51 }
 0x35f   :  { %1095 = vpow2.f32 %v830_v52 }
 0x36c   :  { %v1096_v53 = vpop.eup %1095 }
 0x36d   :  { %v785_v54 = vadd.f32 1.0, %v1096_v53 }
 0x36f   :  { %1097 = vrcp.f32 %v785_v54 }
 0x37c   :  { %v1098_v55 = vpop.eup %1097 }
 0x37d   :  { %789 = vst.msk [vmem:[%s1483_s11] sm:$0xff] %vm788_vm5, %v1098_v55 }

// kernel: literalkg_mlp_forward.3
= control target key start
LH: loop header
LB: loop body
LE: loop exit
PB: predicated region body
PF: predicated region fallthrough
CT: control target
= control target key end

     0   :  { %12 = vsyncpa [#allocation4], 0  ;;  %s5320_s21 = smov [#allocation3]   ;;  %s7222_s0 = inlined_call_operand.hbm [shape: bf16[512,512], index: 0, kind: input, shape index: {}]   ;;  %s7223_s1 = inlined_call_operand.vmem [shape: bf16[512,128], index: 1, kind: input, shape index: {}]   ;;  %s7224_s2 = inlined_call_operand.vmem [shape: f32[512,128], index: 2, kind: input, shape index: {}]   ;;  %s7225_s3 = inlined_call_operand.vmem [shape: bf16[128,128], index: 3, kind: input, shape index: {}]   ;;  %s7226_s4 = inlined_call_operand.vmem [shape: f32[1,128], index: 4, kind: input, shape index: {}]   ;;  %s7227_s5 = inlined_call_operand.vmem [shape: f32[512,128], index: 5, kind: output, shape index: {0}]   ;;  %s7228_s6 = inlined_call_operand.vmem [shape: bf16[512,128], index: 6, kind: output, shape index: {1}]  }
   0x1   :  { %s18_s22 = sshll.u32 %s5320_s21, 4  ;;  %s19_s22 = int_to_ptr.vmem [resolvable:$true] %s18_s22 }
   0x2   :  { %s5306_s23 = scalar_lea.vmem %s19_s22, 16384  ;;  %p5311_p1 = scmp.lt.s32.totalorder %s19_s22, %s19_s22 }
   0x3   :  { %p5307_p0 = scmp.ne.s32.totalorder %s19_s22, %s5306_s23  ;;  %p5312_p2 = scmp.lt.s32.totalorder %s5306_s23, %s5306_s23 }
   0x5   :  { %p5313_p3 = por %p5312_p2, %p5311_p1 }
   0x7   :  { %p5314_p4 = pnand %p5313_p3, %p5307_p0 }
   0x9   :  { %5317 = shalt.err (!%p5314_p4)
}
   0xa   :  { %s5321_s24 = smov 256   ;;  %s5322_s25 = smov 16  }
   0xb   :  { %24 = dma.hbm_to_vmem [thread:$0]  %s7222_s0, 16384, %s19_s22, [#allocation4], %s5321_s24, %s5321_s24, %s5322_s25  }
   0xc   :  { %5318 = dma.done.wait [#allocation4], 16384  }
   0xd   :  { %5319 = vsyncadd [#allocation4], 4294950912  ;;  %v5323_v0 = vmov 0   ;;  %v4804_v1 = vld [vmem:[%s7223_s1 + $0x38] sm:$0xff]   ;;  %v4805_v2 = vld [vmem:[%s7223_s1 + $0x30] sm:$0xff]  }
   0xe   :  { %4768 = vmatprep.subr.bf16.mxu1 %v5323_v0  ;;  %1193 = vmatprep.subr.bf16.mxu0 %v5323_v0  ;;  %v4806_v3 = vld [vmem:[%s7223_s1 + $0x28] sm:$0xff]   ;;  %v4807_v4 = vld [vmem:[%s7223_s1 + $0x20] sm:$0xff]   ;;  %v4808_v5 = vld [vmem:[%s7223_s1 + $0x18] sm:$0xff]  }
   0xf   :  { %4784 = vmatpush1.bf16.msra.mxu1 %v4804_v1  ;;  %1194 = vmatpush1.bf16.msra.mxu0 %v4804_v1  ;;  %v4822_v6 = vld [vmem:[#allocation3 + $0x304] ss:$16 sps:$4 sm:$0xff]   ;;  %v4810_v8 = vld [vmem:[%s7223_s1 + $0x8] sm:$0xff]   ;;  %v4812_v10 = vld [vmem:[%s7223_s1 + $0x78] sm:$0xff]  }
  0x10   :  { %4769 = vmatprep.subr.bf16.mxu1 %v5323_v0  ;;  %1195 = vmatprep.subr.bf16.mxu0 %v5323_v0  ;;  %v4809_v7 = vld [vmem:[%s7223_s1 + $0x10] sm:$0xff]   ;;  %v4811_v9 = vld [vmem:[%s7223_s1] sm:$0xff]   ;;  %v4814_v12 = vld [vmem:[%s7223_s1 + $0x68] sm:$0xff]  }
  0x11   :  { %1417 = vmatprep.mubr.bf16.mxu1 %v4822_v6  ;;  %v4813_v11 = vld [vmem:[%s7223_s1 + $0x70] sm:$0xff]   ;;  %v4815_v13 = vld [vmem:[%s7223_s1 + $0x60] sm:$0xff]   ;;  %v4816_v15 = vld [vmem:[%s7223_s1 + $0x58] sm:$0xff]  }
  0x12   :  { %v4861_v14 = vld [vmem:[#allocation3 + $0x4] ss:$16 sps:$4 sm:$0xff]   ;;  %v4818_v17 = vld [vmem:[%s7223_s1 + $0x48] sm:$0xff]   ;;  %v4883_v19 = vld [vmem:[%s7225_s3 + $0x38] sm:$0xff]  }
  0x13   :  { %4785 = vmatpush1.bf16.msra.mxu1 %v4805_v2  ;;  %1196 = vmatpush1.bf16.msra.mxu0 %v4805_v2  ;;  %v4817_v16 = vld [vmem:[%s7223_s1 + $0x50] sm:$0xff]   ;;  %v4819_v18 = vld [vmem:[%s7223_s1 + $0x40] sm:$0xff]   ;;  %v4823_v21 = vld [vmem:[%s7223_s1 + $0xb8] sm:$0xff]  }
  0x14   :  { %4770 = vmatprep.subr.bf16.mxu1 %v5323_v0  ;;  %1197 = vmatprep.subr.bf16.mxu0 %v5323_v0  ;;  %v4820_v20 = vld [vmem:[#allocation3 + $0x300] ss:$16 sps:$4 sm:$0xff]   ;;  %v4825_v23 = vld [vmem:[#allocation3 + $0x324] ss:$16 sps:$4 sm:$0xff]   ;;  %v4828_v28 = vld [vmem:[%s7223_s1 + $0xa8] sm:$0xff]  }
  0x15   :  { %1225 = vmatprep.mubr.bf16.mxu0 %v4861_v14  ;;  %v4859_v22 = vld [vmem:[#allocation3] ss:$16 sps:$4 sm:$0xff]   ;;  %v4866_v24 = vld [vmem:[#allocation3 + $0x24] ss:$16 sps:$4 sm:$0xff]   ;;  %v4921_v32 = vld [vmem:[%s7225_s3 + $0x28] sm:$0xff]  }
  0x16   :  { %v4902_v25 = vld [vmem:[%s7225_s3 + $0x30] sm:$0xff]   ;;  %v4829_v33 = vld [vmem:[%s7223_s1 + $0xa0] sm:$0xff]   ;;  %v4833_v36 = vld [vmem:[%s7223_s1 + $0x98] sm:$0xff]  }
  0x17   :  { %4786 = vmatpush1.bf16.msra.mxu1 %v4806_v3  ;;  %1198 = vmatpush1.bf16.msra.mxu0 %v4806_v3  ;;  %v4824_v26 = vld [vmem:[%s7223_s1 + $0xb0] sm:$0xff]   ;;  %v4838_v42 = vld [vmem:[%s7223_s1 + $0x88] sm:$0xff]   ;;  %v4839_v45 = vld [vmem:[%s7223_s1 + $0x80] sm:$0xff]  }
  0x18   :  { %4771 = vmatprep.subr.bf16.mxu1 %v5323_v0  ;;  %1199 = vmatprep.subr.bf16.mxu0 %v5323_v0  ;;  %v4827_v27 = vld [vmem:[#allocation3 + $0x320] ss:$16 sps:$4 sm:$0xff]   ;;  %v4830_v30 = vld [vmem:[#allocation3 + $0x344] ss:$16 sps:$4 sm:$0xff]   ;;  %v4843_v49 = vld [vmem:[%s7223_s1 + $0xf8] sm:$0xff]  }
  0x19   :  { %v4868_v29 = vld [vmem:[#allocation3 + $0x20] ss:$16 sps:$4 sm:$0xff]   ;;  %v4872_v31 = vld [vmem:[#allocation3 + $0x44] ss:$16 sps:$4 sm:$0xff]   ;;  %v4848_v55 = vld [vmem:[%s7223_s1 + $0xe8] sm:$0xff]  }
  0x1a   :  { %v4832_v34 = vld [vmem:[#allocation3 + $0x340] ss:$16 sps:$4 sm:$0xff]   ;;  %v4835_v37 = vld [vmem:[#allocation3 + $0x364] ss:$16 sps:$4 sm:$0xff]   ;;  %v4853_v61 = vld [vmem:[%s7223_s1 + $0xd8] sm:$0xff]  }
  0x1b   :  { %4787 = vmatpush1.bf16.msra.mxu1 %v4807_v4  ;;  %1200 = vmatpush1.bf16.msra.mxu0 %v4807_v4  ;;  %v4874_v35 = vld [vmem:[#allocation3 + $0x40] ss:$16 sps:$4 sm:$0xff]   ;;  %v4878_v38 = vld [vmem:[#allocation3 + $0x64] ss:$16 sps:$4 sm:$0xff]   ;;  %v4959_v2 = vld [vmem:[%s7225_s3 + $0x18] sm:$0xff]  }
  0x1c   :  { %4772 = vmatprep.subr.bf16.mxu1 %v5323_v0  ;;  %1201 = vmatprep.subr.bf16.mxu0 %v5323_v0  ;;  %v4834_v39 = vld [vmem:[%s7223_s1 + $0x90] sm:$0xff]   ;;  %v4940_v46 = vld [vmem:[%s7225_s3 + $0x20] sm:$0xff]   ;;  %v4865_v6 = vld [vmem:[#allocation3 + $0xc] ss:$16 sps:$4 sm:$0xff]  }
  0x1d   :  { %v4837_v40 = vld [vmem:[#allocation3 + $0x360] ss:$16 sps:$4 sm:$0xff]   ;;  %v4840_v43 = vld [vmem:[#allocation3 + $0x384] ss:$16 sps:$4 sm:$0xff]  }
  0x1e   :  { %v4880_v41 = vld [vmem:[#allocation3 + $0x60] ss:$16 sps:$4 sm:$0xff]   ;;  %v4885_v44 = vld [vmem:[#allocation3 + $0x84] ss:$16 sps:$4 sm:$0xff]  }
  0x1f   :  { %4788 = vmatpush1.bf16.msra.mxu1 %v4808_v5  ;;  %1202 = vmatpush1.bf16.msra.mxu0 %v4808_v5  ;;  %v4842_v47 = vld [vmem:[#allocation3 + $0x380] ss:$16 sps:$4 sm:$0xff]   ;;  %v4845_v50 = vld [vmem:[#allocation3 + $0x3a4] ss:$16 sps:$4 sm:$0xff]   ;;  %v4858_v5 = vld [vmem:[%s7223_s1 + $0xc8] sm:$0xff]  }
  0x20   :  { %4773 = vmatprep.subr.bf16.mxu1 %v5323_v0  ;;  %1203 = vmatprep.subr.bf16.mxu0 %v5323_v0  ;;  %v4887_v48 = vld [vmem:[#allocation3 + $0x80] ss:$16 sps:$4 sm:$0xff]   ;;  %v4891_v51 = vld [vmem:[#allocation3 + $0xa4] ss:$16 sps:$4 sm:$0xff]  }
  0x21   :  { %v4844_v52 = vld [vmem:[%s7223_s1 + $0xf0] sm:$0xff]   ;;  %v4849_v58 = vld [vmem:[%s7223_s1 + $0xe0] sm:$0xff]  }
  0x22   :  { %v4847_v53 = vld [vmem:[#allocation3 + $0x3a0] ss:$16 sps:$4 sm:$0xff]   ;;  %v4850_v56 = vld [vmem:[#allocation3 + $0x3c4] ss:$16 sps:$4 sm:$0xff]  }
  0x23   :  { %4789 = vmatpush1.bf16.msra.mxu1 %v4809_v7  ;;  %1204 = vmatpush1.bf16.msra.mxu0 %v4809_v7  ;;  %v4893_v54 = vld [vmem:[#allocation3 + $0xa0] ss:$16 sps:$4 sm:$0xff]   ;;  %v4897_v57 = vld [vmem:[#allocation3 + $0xc4] ss:$16 sps:$4 sm:$0xff]  }
  0x24   :  { %4774 = vmatprep.subr.bf16.mxu1 %v5323_v0  ;;  %1205 = vmatprep.subr.bf16.mxu0 %v5323_v0  ;;  %v4852_v59 = vld [vmem:[#allocation3 + $0x3c0] ss:$16 sps:$4 sm:$0xff]   ;;  %v4855_v62 = vld [vmem:[#allocation3 + $0x3e4] ss:$16 sps:$4 sm:$0xff]  }
  0x25   :  { %v4899_v60 = vld [vmem:[#allocation3 + $0xc0] ss:$16 sps:$4 sm:$0xff]   ;;  %v4904_v63 = vld [vmem:[#allocation3 + $0xe4] ss:$16 sps:$4 sm:$0xff]  }
  0x26   :  { %v4854_v1 = vld [vmem:[%s7223_s1 + $0xd0] sm:$0xff]  }
  0x27   :  { %4790 = vmatpush1.bf16.msra.mxu1 %v4810_v8  ;;  %1206 = vmatpush1.bf16.msra.mxu0 %v4810_v8  ;;  %v4857_v3 = vld [vmem:[#allocation3 + $0x3e0] ss:$16 sps:$4 sm:$0xff]   ;;  %v4910_v7 = vld [vmem:[#allocation3 + $0x104] ss:$16 sps:$4 sm:$0xff]  }
  0x28   :  { %4775 = vmatprep.subr.bf16.mxu1 %v5323_v0  ;;  %1207 = vmatprep.subr.bf16.mxu0 %v5323_v0  ;;  %v4906_v4 = vld [vmem:[#allocation3 + $0xe0] ss:$16 sps:$4 sm:$0xff]  }
  0x29   :  { %v4862_v8 = vld [vmem:[%s7223_s1 + $0xc0] sm:$0xff]  }
  0x2a   :  { %v4918_v14 = vld [vmem:[#allocation3 + $0x120] ss:$16 sps:$4 sm:$0xff]  }
  0x2b   :  { %4791 = vmatpush1.bf16.msra.mxu1 %v4811_v9  ;;  %1208 = vmatpush1.bf16.msra.mxu0 %v4811_v9  ;;  %v4863_v9 = vld [vmem:[#allocation3 + $0x8] ss:$16 sps:$4 sm:$0xff]  }
  0x2c   :  { %4776 = vmatprep.subr.bf16.mxu1 %v5323_v0  ;;  %1209 = vmatprep.subr.bf16.mxu0 %v5323_v0 }
  0x2f   :  { %4792 = vmatpush2.bf16.msra.mxu1 %v4812_v10  ;;  %1210 = vmatpush2.bf16.msra.mxu0 %v4812_v10  ;;  %v4912_v10 = vld [vmem:[#allocation3 + $0x100] ss:$16 sps:$4 sm:$0xff]  }
  0x30   :  { %4777 = vmatprep.subr.bf16.mxu1 %v5323_v0  ;;  %1211 = vmatprep.subr.bf16.mxu0 %v5323_v0 }
  0x33   :  { %4793 = vmatpush2.bf16.msra.mxu1 %v4813_v11  ;;  %1212 = vmatpush2.bf16.msra.mxu0 %v4813_v11  ;;  %v4869_v11 = vld [vmem:[#allocation3 + $0x2c] ss:$16 sps:$4 sm:$0xff]  }
  0x34   :  { %4778 = vmatprep.subr.bf16.mxu1 %v5323_v0  ;;  %1213 = vmatprep.subr.bf16.mxu0 %v5323_v0 }
  0x37   :  { %4794 = vmatpush2.bf16.msra.mxu1 %v4814_v12  ;;  %1214 = vmatpush2.bf16.msra.mxu0 %v4814_v12  ;;  %v4916_v12 = vld [vmem:[#allocation3 + $0x124] ss:$16 sps:$4 sm:$0xff]  }
  0x38   :  { %4779 = vmatprep.subr.bf16.mxu1 %v5323_v0  ;;  %1215 = vmatprep.subr.bf16.mxu0 %v5323_v0 }
  0x3b   :  { %4795 = vmatpush2.bf16.msra.mxu1 %v4815_v13  ;;  %1216 = vmatpush2.bf16.msra.mxu0 %v4815_v13  ;;  %v4871_v13 = vld [vmem:[#allocation3 + $0x28] ss:$16 sps:$4 sm:$0xff]  }
  0x3c   :  { %4780 = vmatprep.subr.bf16.mxu1 %v5323_v0  ;;  %1217 = vmatprep.subr.bf16.mxu0 %v5323_v0 }
  0x3f   :  { %4796 = vmatpush2.bf16.msra.mxu1 %v4816_v15  ;;  %1218 = vmatpush2.bf16.msra.mxu0 %v4816_v15  ;;  %v4875_v15 = vld [vmem:[#allocation3 + $0x4c] ss:$16 sps:$4 sm:$0xff]  }
  0x40   :  { %4781 = vmatprep.subr.bf16.mxu1 %v5323_v0  ;;  %1219 = vmatprep.subr.bf16.mxu0 %v5323_v0 }
  0x43   :  { %4797 = vmatpush2.bf16.msra.mxu1 %v4817_v16  ;;  %1220 = vmatpush2.bf16.msra.mxu0 %v4817_v16  ;;  %v4923_v16 = vld [vmem:[#allocation3 + $0x144] ss:$16 sps:$4 sm:$0xff]  }
  0x44   :  { %4782 = vmatprep.subr.bf16.mxu1 %v5323_v0  ;;  %1221 = vmatprep.subr.bf16.mxu0 %v5323_v0 }
  0x47   :  { %4798 = vmatpush2.bf16.msra.mxu1 %v4818_v17  ;;  %1222 = vmatpush2.bf16.msra.mxu0 %v4818_v17  ;;  %v4877_v17 = vld [vmem:[#allocation3 + $0x48] ss:$16 sps:$4 sm:$0xff]  }
  0x48   :  { %4783 = vmatprep.subr.bf16.mxu1 %v5323_v0  ;;  %1223 = vmatprep.subr.bf16.mxu0 %v5323_v0 }
  0x4b   :  { %4799 = vmatpush2.bf16.msra.mxu1 %v4819_v18  ;;  %1224 = vmatpush2.bf16.msra.mxu0 %v4819_v18  ;;  %v4881_v18 = vld [vmem:[#allocation3 + $0x6c] ss:$16 sps:$4 sm:$0xff]  }
  0x4c   :  { %1482 = vmatprep.subr.bf16.mxu1 %v5323_v0  ;;  %4688 = vmatprep.subr.bf16.mxu0 %v4883_v19 }
  0x4e   :  { %1418 = vmatmul.mubr.bf16.vlgmr.msra.gmra.mxu1 %v4820_v20  ;;  %1226 = vmatmul.mubr.bf16.vlgmr.msra.gmra.mxu0 %v4859_v22  ;;  %v4978_v20 = vld [vmem:[%s7225_s3 + $0x10] sm:$0xff]  }
  0x4f   :  { %1483 = vmatpush1.bf16.msra.mxu1 %v4823_v21  ;;  %1425 = vmatprep.mubr.bf16.mxu1 %v4825_v23  ;;  %v4884_v21 = vld [vmem:[#allocation3 + $0x68] ss:$16 sps:$4 sm:$0xff]   ;;  %v4931_v22 = vld [vmem:[#allocation3 + $0x160] ss:$16 sps:$4 sm:$0xff]   ;;  %v4888_v23 = vld [vmem:[#allocation3 + $0x8c] ss:$16 sps:$4 sm:$0xff]  }
  0x50   :  { %1484 = vmatprep.subr.bf16.mxu1 %v5323_v0  ;;  %1233 = vmatprep.mubr.bf16.mxu0 %v4866_v24  ;;  %v4935_v24 = vld [vmem:[#allocation3 + $0x184] ss:$16 sps:$4 sm:$0xff]  }
  0x51   :  { %4689 = vmatpush3.bf16.msra.mxu0 %v4883_v19  ;;  %v4929_v19 = vld [vmem:[#allocation3 + $0x164] ss:$16 sps:$4 sm:$0xff]  }
  0x52   :  { %4690 = vmatprep.subr.bf16.mxu0 %v4902_v25 }
  0x53   :  { %1485 = vmatpush1.bf16.msra.mxu1 %v4824_v26  ;;  %v4937_v26 = vld [vmem:[#allocation3 + $0x180] ss:$16 sps:$4 sm:$0xff]  }
  0x54   :  { %1486 = vmatprep.subr.bf16.mxu1 %v5323_v0 }
  0x55   :  { %4691 = vmatpush3.bf16.msra.mxu0 %v4902_v25  ;;  %v4890_v25 = vld [vmem:[#allocation3 + $0x88] ss:$16 sps:$4 sm:$0xff]  }
  0x56   :  { %1426 = vmatmul.mubr.bf16.gmra.mxu1 %v4827_v27  ;;  %1234 = vmatmul.mubr.bf16.gmra.mxu0 %v4868_v29  ;;  %v4894_v27 = vld [vmem:[#allocation3 + $0xac] ss:$16 sps:$4 sm:$0xff]   ;;  %v4896_v29 = vld [vmem:[#allocation3 + $0xa8] ss:$16 sps:$4 sm:$0xff]  }
  0x57   :  { %1487 = vmatpush1.bf16.msra.mxu1 %v4828_v28  ;;  %1433 = vmatprep.mubr.bf16.mxu1 %v4830_v30  ;;  %v4942_v28 = vld [vmem:[#allocation3 + $0x1a4] ss:$16 sps:$4 sm:$0xff]   ;;  %v4944_v30 = vld [vmem:[#allocation3 + $0x1a0] ss:$16 sps:$4 sm:$0xff]  }
  0x58   :  { %1488 = vmatprep.subr.bf16.mxu1 %v5323_v0  ;;  %1241 = vmatprep.mubr.bf16.mxu0 %v4872_v31  ;;  %v4900_v31 = vld [vmem:[#allocation3 + $0xcc] ss:$16 sps:$4 sm:$0xff]  }
  0x59   :  { %4692 = vmatprep.subr.bf16.mxu0 %v4921_v32 }
  0x5a   :  { %4693 = vmatpush3.bf16.msra.mxu0 %v4921_v32  ;;  %v4948_v32 = vld [vmem:[#allocation3 + $0x1c4] ss:$16 sps:$4 sm:$0xff]  }
  0x5b   :  { %1489 = vmatpush1.bf16.msra.mxu1 %v4829_v33  ;;  %4694 = vmatprep.subr.bf16.mxu0 %v4940_v46  ;;  %v4998_v33 = vld [vmem:[%s7225_s3 + $0x8] sm:$0xff]  }
  0x5c   :  { %1490 = vmatprep.subr.bf16.mxu1 %v5323_v0 }
  0x5e   :  { %1434 = vmatmul.mubr.bf16.gmra.mxu1 %v4832_v34  ;;  %1242 = vmatmul.mubr.bf16.gmra.mxu0 %v4874_v35  ;;  %v4903_v34 = vld [vmem:[#allocation3 + $0xc8] ss:$16 sps:$4 sm:$0xff]   ;;  %v4950_v35 = vld [vmem:[#allocation3 + $0x1c0] ss:$16 sps:$4 sm:$0xff]  }
  0x5f   :  { %1491 = vmatpush1.bf16.msra.mxu1 %v4833_v36  ;;  %1441 = vmatprep.mubr.bf16.mxu1 %v4835_v37  ;;  %v4907_v36 = vld [vmem:[#allocation3 + $0xec] ss:$16 sps:$4 sm:$0xff]   ;;  %v4954_v37 = vld [vmem:[#allocation3 + $0x1e4] ss:$16 sps:$4 sm:$0xff]  }
  0x60   :  { %1492 = vmatprep.subr.bf16.mxu1 %v5323_v0  ;;  %1249 = vmatprep.mubr.bf16.mxu0 %v4878_v38  ;;  %v4909_v38 = vld [vmem:[#allocation3 + $0xe8] ss:$16 sps:$4 sm:$0xff]  }
  0x61   :  { %4695 = vmatpush3.bf16.msra.mxu0 %v4940_v46  ;;  %v5014_v46 = vld [vmem:[%s7225_s3] sm:$0xff]  }
  0x62   :  { %4696 = vmatprep.subr.bf16.mxu0 %v4959_v2 }
  0x63   :  { %1493 = vmatpush1.bf16.msra.mxu1 %v4834_v39  ;;  %v4956_v39 = vld [vmem:[#allocation3 + $0x1e0] ss:$16 sps:$4 sm:$0xff]  }
  0x64   :  { %1494 = vmatprep.subr.bf16.mxu1 %v5323_v0 }
  0x65   :  { %4697 = vmatpush3.bf16.msra.mxu0 %v4959_v2  ;;  %v4951_v2 = vld [vmem:[#allocation3 + $0x1cc] ss:$16 sps:$4 sm:$0xff]  }
  0x66   :  { %1442 = vmatmul.mubr.bf16.gmra.mxu1 %v4837_v40  ;;  %1250 = vmatmul.mubr.bf16.gmra.mxu0 %v4880_v41  ;;  %v4913_v40 = vld [vmem:[#allocation3 + $0x10c] ss:$16 sps:$4 sm:$0xff]   ;;  %v4961_v41 = vld [vmem:[#allocation3 + $0x204] ss:$16 sps:$4 sm:$0xff]  }
  0x67   :  { %1495 = vmatpush1.bf16.msra.mxu1 %v4838_v42  ;;  %1449 = vmatprep.mubr.bf16.mxu1 %v4840_v43  ;;  %v4915_v42 = vld [vmem:[#allocation3 + $0x108] ss:$16 sps:$4 sm:$0xff]   ;;  %v4963_v43 = vld [vmem:[#allocation3 + $0x200] ss:$16 sps:$4 sm:$0xff]  }
  0x68   :  { %1496 = vmatprep.subr.bf16.mxu1 %v5323_v0  ;;  %1257 = vmatprep.mubr.bf16.mxu0 %v4885_v44  ;;  %v4919_v44 = vld [vmem:[#allocation3 + $0x12c] ss:$16 sps:$4 sm:$0xff]  }
  0x69   :  { %4698 = vmatprep.subr.bf16.mxu0 %v4978_v20 }
  0x6a   :  { %4699 = vmatpush3.bf16.msra.mxu0 %v4978_v20 }
  0x6b   :  { %1497 = vmatpush1.bf16.msra.mxu1 %v4839_v45  ;;  %4700 = vmatprep.subr.bf16.mxu0 %v4998_v33  ;;  %v4967_v45 = vld [vmem:[#allocation3 + $0x224] ss:$16 sps:$4 sm:$0xff]  }
  0x6c   :  { %1498 = vmatprep.subr.bf16.mxu1 %v5323_v0 }
  0x6e   :  { %1450 = vmatmul.mubr.bf16.gmra.mxu1 %v4842_v47  ;;  %1258 = vmatmul.mubr.bf16.gmra.mxu0 %v4887_v48  ;;  %v4922_v47 = vld [vmem:[#allocation3 + $0x128] ss:$16 sps:$4 sm:$0xff]   ;;  %v4969_v48 = vld [vmem:[#allocation3 + $0x220] ss:$16 sps:$4 sm:$0xff]  }
  0x6f   :  { %1499 = vmatpush2.bf16.msra.mxu1 %v4843_v49  ;;  %1457 = vmatprep.mubr.bf16.mxu1 %v4845_v50  ;;  %v4926_v49 = vld [vmem:[#allocation3 + $0x14c] ss:$16 sps:$4 sm:$0xff]   ;;  %v4973_v50 = vld [vmem:[#allocation3 + $0x244] ss:$16 sps:$4 sm:$0xff]  }
  0x70   :  { %1500 = vmatprep.subr.bf16.mxu1 %v5323_v0  ;;  %1265 = vmatprep.mubr.bf16.mxu0 %v4891_v51  ;;  %v4928_v51 = vld [vmem:[#allocation3 + $0x148] ss:$16 sps:$4 sm:$0xff]  }
  0x71   :  { %4701 = vmatpush3.bf16.msra.mxu0 %v4998_v33 }
  0x72   :  { %4702 = vmatprep.subr.bf16.mxu0 %v5014_v46 }
  0x73   :  { %1501 = vmatpush2.bf16.msra.mxu1 %v4844_v52  ;;  %v4975_v52 = vld [vmem:[#allocation3 + $0x240] ss:$16 sps:$4 sm:$0xff]  }
  0x74   :  { %1502 = vmatprep.subr.bf16.mxu1 %v5323_v0 }
  0x75   :  { %4703 = vmatpush3.bf16.msra.mxu0 %v5014_v46 }
  0x76   :  { %1458 = vmatmul.mubr.bf16.gmra.mxu1 %v4847_v53  ;;  %1266 = vmatmul.mubr.bf16.gmra.mxu0 %v4893_v54  ;;  %v4932_v53 = vld [vmem:[#allocation3 + $0x16c] ss:$16 sps:$4 sm:$0xff]   ;;  %v4980_v54 = vld [vmem:[#allocation3 + $0x264] ss:$16 sps:$4 sm:$0xff]  }
  0x77   :  { %1503 = vmatpush2.bf16.msra.mxu1 %v4848_v55  ;;  %1465 = vmatprep.mubr.bf16.mxu1 %v4850_v56  ;;  %v4934_v55 = vld [vmem:[#allocation3 + $0x168] ss:$16 sps:$4 sm:$0xff]   ;;  %v4982_v56 = vld [vmem:[#allocation3 + $0x260] ss:$16 sps:$4 sm:$0xff]  }
  0x78   :  { %1504 = vmatprep.subr.bf16.mxu1 %v5323_v0  ;;  %1273 = vmatprep.mubr.bf16.mxu0 %v4897_v57  ;;  %v4938_v57 = vld [vmem:[#allocation3 + $0x18c] ss:$16 sps:$4 sm:$0xff]  }
  0x7b   :  { %1505 = vmatpush2.bf16.msra.mxu1 %v4849_v58  ;;  %v4986_v58 = vld [vmem:[#allocation3 + $0x284] ss:$16 sps:$4 sm:$0xff]  }
  0x7c   :  { %1506 = vmatprep.subr.bf16.mxu1 %v5323_v0 }
  0x7e   :  { %1466 = vmatmul.mubr.bf16.gmra.mxu1 %v4852_v59  ;;  %1274 = vmatmul.mubr.bf16.gmra.mxu0 %v4899_v60  ;;  %v4941_v59 = vld [vmem:[#allocation3 + $0x188] ss:$16 sps:$4 sm:$0xff]   ;;  %v4988_v60 = vld [vmem:[#allocation3 + $0x280] ss:$16 sps:$4 sm:$0xff]  }
  0x7f   :  { %1507 = vmatpush2.bf16.msra.mxu1 %v4853_v61  ;;  %1473 = vmatprep.mubr.bf16.mxu1 %v4855_v62  ;;  %v4945_v61 = vld [vmem:[#allocation3 + $0x1ac] ss:$16 sps:$4 sm:$0xff]   ;;  %v4992_v62 = vld [vmem:[#allocation3 + $0x2a4] ss:$16 sps:$4 sm:$0xff]  }
  0x80   :  { %1508 = vmatprep.subr.bf16.mxu1 %v5323_v0  ;;  %1281 = vmatprep.mubr.bf16.mxu0 %v4904_v63  ;;  %v4947_v63 = vld [vmem:[#allocation3 + $0x1a8] ss:$16 sps:$4 sm:$0xff]  }
  0x83   :  { %1509 = vmatpush2.bf16.msra.mxu1 %v4854_v1  ;;  %v4994_v1 = vld [vmem:[#allocation3 + $0x2a0] ss:$16 sps:$4 sm:$0xff]  }
  0x84   :  { %1510 = vmatprep.subr.bf16.mxu1 %v5323_v0 }
  0x86   :  { %1474 = vmatmul.mubr.bf16.gmra.mxu1 %v4857_v3  ;;  %1282 = vmatmul.mubr.bf16.gmra.mxu0 %v4906_v4  ;;  %v4999_v3 = vld [vmem:[#allocation3 + $0x2c4] ss:$16 sps:$4 sm:$0xff]   ;;  %v4953_v4 = vld [vmem:[#allocation3 + $0x1c8] ss:$16 sps:$4 sm:$0xff]  }
  0x87   :  { %1511 = vmatpush2.bf16.msra.mxu1 %v4858_v5  ;;  %1514 = vmatprep.mubr.bf16.mxu1 %v4865_v6  ;;  %v5001_v5 = vld [vmem:[#allocation3 + $0x2c0] ss:$16 sps:$4 sm:$0xff]   ;;  %v4957_v6 = vld [vmem:[#allocation3 + $0x1ec] ss:$16 sps:$4 sm:$0xff]  }
  0x88   :  { %1512 = vmatprep.subr.bf16.mxu1 %v5323_v0  ;;  %1289 = vmatprep.mubr.bf16.mxu0 %v4910_v7  ;;  %v4925_v0 = vld [vmem:[#allocation3 + $0x140] ss:$16 sps:$4 sm:$0xff]   ;;  %v5005_v7 = vld [vmem:[#allocation3 + $0x2e4] ss:$16 sps:$4 sm:$0xff]  }
  0x8b   :  { %1513 = vmatpush2.bf16.msra.mxu1 %v4862_v8  ;;  %v4960_v8 = vld [vmem:[#allocation3 + $0x1e8] ss:$16 sps:$4 sm:$0xff]  }
  0x8e   :  { %1515 = vmatmul.mubr.bf16.vlgmr.msra.gmra.mxu1 %v4863_v9  ;;  %1290 = vmatmul.mubr.bf16.gmra.mxu0 %v4912_v10  ;;  %v5007_v9 = vld [vmem:[#allocation3 + $0x2e0] ss:$16 sps:$4 sm:$0xff]   ;;  %v4964_v10 = vld [vmem:[#allocation3 + $0x20c] ss:$16 sps:$4 sm:$0xff]  }
  0x8f   :  { %1522 = vmatprep.mubr.bf16.mxu1 %v4869_v11  ;;  %1297 = vmatprep.mubr.bf16.mxu0 %v4916_v12  ;;  %v4966_v11 = vld [vmem:[#allocation3 + $0x208] ss:$16 sps:$4 sm:$0xff]   ;;  %v4970_v12 = vld [vmem:[#allocation3 + $0x22c] ss:$16 sps:$4 sm:$0xff]  }
  0x96   :  { %1523 = vmatmul.mubr.bf16.gmra.mxu1 %v4871_v13  ;;  %1298 = vmatmul.mubr.bf16.gmra.mxu0 %v4918_v14 }
  0x97   :  { %1530 = vmatprep.mubr.bf16.mxu1 %v4875_v15  ;;  %1305 = vmatprep.mubr.bf16.mxu0 %v4923_v16 }
  0x9e   :  { %1531 = vmatmul.mubr.bf16.gmra.mxu1 %v4877_v17  ;;  %1306 = vmatmul.mubr.bf16.gmra.mxu0 %v4925_v0  ;;  %v4972_v0 = vld [vmem:[#allocation3 + $0x228] ss:$16 sps:$4 sm:$0xff]  }
  0x9f   :  { %1538 = vmatprep.mubr.bf16.mxu1 %v4881_v18  ;;  %1313 = vmatprep.mubr.bf16.mxu0 %v4929_v19  ;;  %v4976_v19 = vld [vmem:[#allocation3 + $0x24c] ss:$16 sps:$4 sm:$0xff]  }
  0xa6   :  { %1539 = vmatmul.mubr.bf16.gmra.mxu1 %v4884_v21  ;;  %1314 = vmatmul.mubr.bf16.gmra.mxu0 %v4931_v22 }
  0xa7   :  { %1546 = vmatprep.mubr.bf16.mxu1 %v4888_v23  ;;  %1321 = vmatprep.mubr.bf16.mxu0 %v4935_v24 }
  0xae   :  { %1547 = vmatmul.mubr.bf16.gmra.mxu1 %v4890_v25  ;;  %1322 = vmatmul.mubr.bf16.gmra.mxu0 %v4937_v26 }
  0xaf   :  { %1554 = vmatprep.mubr.bf16.mxu1 %v4894_v27  ;;  %1329 = vmatprep.mubr.bf16.mxu0 %v4942_v28  ;;  %v4979_v27 = vld [vmem:[#allocation3 + $0x248] ss:$16 sps:$4 sm:$0xff]  }
  0xb6   :  { %1555 = vmatmul.mubr.bf16.gmra.mxu1 %v4896_v29  ;;  %1330 = vmatmul.mubr.bf16.gmra.mxu0 %v4944_v30  ;;  %v4983_v29 = vld [vmem:[#allocation3 + $0x26c] ss:$16 sps:$4 sm:$0xff]  }
  0xb7   :  { %1562 = vmatprep.mubr.bf16.mxu1 %v4900_v31  ;;  %1337 = vmatprep.mubr.bf16.mxu0 %v4948_v32 }
  0xbe   :  { %1563 = vmatmul.mubr.bf16.gmra.mxu1 %v4903_v34  ;;  %1338 = vmatmul.mubr.bf16.gmra.mxu0 %v4950_v35 }
  0xbf   :  { %1570 = vmatprep.mubr.bf16.mxu1 %v4907_v36  ;;  %1345 = vmatprep.mubr.bf16.mxu0 %v4954_v37  ;;  %v4985_v37 = vld [vmem:[#allocation3 + $0x268] ss:$16 sps:$4 sm:$0xff]  }
  0xc6   :  { %1571 = vmatmul.mubr.bf16.gmra.mxu1 %v4909_v38  ;;  %1346 = vmatmul.mubr.bf16.gmra.mxu0 %v4956_v39  ;;  %v4991_v39 = vld [vmem:[#allocation3 + $0x28c] ss:$16 sps:$4 sm:$0xff]  }
  0xc7   :  { %1578 = vmatprep.mubr.bf16.mxu1 %v4913_v40  ;;  %1353 = vmatprep.mubr.bf16.mxu0 %v4961_v41 }
  0xce   :  { %1579 = vmatmul.mubr.bf16.gmra.mxu1 %v4915_v42  ;;  %1354 = vmatmul.mubr.bf16.gmra.mxu0 %v4963_v43 }
  0xcf   :  { %1586 = vmatprep.mubr.bf16.mxu1 %v4919_v44  ;;  %1361 = vmatprep.mubr.bf16.mxu0 %v4967_v45 }
  0xd6   :  { %1587 = vmatmul.mubr.bf16.gmra.mxu1 %v4922_v47  ;;  %1362 = vmatmul.mubr.bf16.gmra.mxu0 %v4969_v48  ;;  %v4989_v47 = vld [vmem:[#allocation3 + $0x288] ss:$16 sps:$4 sm:$0xff]  }
  0xd7   :  { %1594 = vmatprep.mubr.bf16.mxu1 %v4926_v49  ;;  %1369 = vmatprep.mubr.bf16.mxu0 %v4973_v50  ;;  %v4997_v49 = vld [vmem:[#allocation3 + $0x2ac] ss:$16 sps:$4 sm:$0xff]  }
  0xde   :  { %1595 = vmatmul.mubr.bf16.gmra.mxu1 %v4928_v51  ;;  %1370 = vmatmul.mubr.bf16.gmra.mxu0 %v4975_v52 }
  0xdf   :  { %1602 = vmatprep.mubr.bf16.mxu1 %v4932_v53  ;;  %1377 = vmatprep.mubr.bf16.mxu0 %v4980_v54 }
  0xe6   :  { %1603 = vmatmul.mubr.bf16.gmra.mxu1 %v4934_v55  ;;  %1378 = vmatmul.mubr.bf16.gmra.mxu0 %v4982_v56 }
  0xe7   :  { %1610 = vmatprep.mubr.bf16.mxu1 %v4938_v57  ;;  %1385 = vmatprep.mubr.bf16.mxu0 %v4986_v58  ;;  %v4995_v57 = vld [vmem:[#allocation3 + $0x2a8] ss:$16 sps:$4 sm:$0xff]  }
  0xee   :  { %1611 = vmatmul.mubr.bf16.gmra.mxu1 %v4941_v59  ;;  %1386 = vmatmul.mubr.bf16.gmra.mxu0 %v4988_v60  ;;  %v5004_v59 = vld [vmem:[#allocation3 + $0x2cc] ss:$16 sps:$4 sm:$0xff]  }
  0xef   :  { %1618 = vmatprep.mubr.bf16.mxu1 %v4945_v61  ;;  %1393 = vmatprep.mubr.bf16.mxu0 %v4992_v62 }
  0xf6   :  { %1619 = vmatmul.mubr.bf16.gmra.mxu1 %v4947_v63  ;;  %1394 = vmatmul.mubr.bf16.gmra.mxu0 %v4994_v1 }
  0xf7   :  { %1626 = vmatprep.mubr.bf16.mxu1 %v4951_v2  ;;  %1401 = vmatprep.mubr.bf16.mxu0 %v4999_v3 }
  0xfe   :  { %1627 = vmatmul.mubr.bf16.gmra.mxu1 %v4953_v4  ;;  %1402 = vmatmul.mubr.bf16.gmra.mxu0 %v5001_v5  ;;  %v5002_v4 = vld [vmem:[#allocation3 + $0x2c8] ss:$16 sps:$4 sm:$0xff]  }
  0xff   :  { %1634 = vmatprep.mubr.bf16.mxu1 %v4957_v6  ;;  %1409 = vmatprep.mubr.bf16.mxu0 %v5005_v7  ;;  %v5010_v6 = vld [vmem:[#allocation3 + $0x2ec] ss:$16 sps:$4 sm:$0xff]  }
 0x106   :  { %1635 = vmatmul.mubr.bf16.gmra.mxu1 %v4960_v8  ;;  %1410 = vmatmul.mubr.bf16.gmra.mxu0 %v5007_v9 }
 0x107   :  { %1642 = vmatprep.mubr.bf16.mxu1 %v4964_v10 }
 0x10e   :  { %v5530_v13 = vpop.f32.mrf.mxu1  ;;  %1643 = vmatmul.mubr.bf16.gmra.mxu1 %v4966_v11  ;;  %v5532_v14 = vpop.f32.mrf.mxu0 }
 0x10f   :  { %1650 = vmatprep.mubr.bf16.mxu1 %v4970_v12 }
 0x110   :  { %v1421_v15 = vpop.f32.mrf.mxu1  ;;  %v1229_v16 = vpop.f32.mrf.mxu0 }
 0x111   :  { %v5008_v16 = vld [vmem:[#allocation3 + $0x2e8] ss:$16 sps:$4 sm:$0xff]  }
 0x112   :  { %v5534_v17 = vpop.f32.mrf.mxu1  ;;  %v5536_v18 = vpop.f32.mrf.mxu0 }
 0x114   :  { %v1424_v20 = vpop.f32.mrf.mxu1  ;;  %v1232_v21 = vpop.f32.mrf.mxu0 }
 0x116   :  { %v5538_v22 = vpop.f32.mrf.mxu1  ;;  %1651 = vmatmul.mubr.bf16.gmra.mxu1 %v4972_v0  ;;  %v5540_v23 = vpop.f32.mrf.mxu0 }
 0x117   :  { %1658 = vmatprep.mubr.bf16.mxu1 %v4976_v19  ;;  %v5013_v19 = vld [vmem:[#allocation3 + $0x30c] ss:$16 sps:$4 sm:$0xff]  }
 0x118   :  { %v1429_v24 = vpop.f32.mrf.mxu1  ;;  %v1237_v25 = vpop.f32.mrf.mxu0 }
 0x11a   :  { %v5542_v26 = vpop.f32.mrf.mxu1  ;;  %v5544_v28 = vpop.f32.mrf.mxu0 }
 0x11c   :  { %v1432_v30 = vpop.f32.mrf.mxu1  ;;  %v1240_v31 = vpop.f32.mrf.mxu0 }
 0x11d   :  { %v5011_v31 = vld [vmem:[#allocation3 + $0x308] ss:$16 sps:$4 sm:$0xff]  }
 0x11e   :  { %v5546_v32 = vpop.f32.mrf.mxu1  ;;  %1659 = vmatmul.mubr.bf16.gmra.mxu1 %v4979_v27  ;;  %v5548_v33 = vpop.f32.mrf.mxu0 }
 0x11f   :  { %1666 = vmatprep.mubr.bf16.mxu1 %v4983_v29 }
 0x120   :  { %v1437_v34 = vpop.f32.mrf.mxu1  ;;  %v1245_v35 = vpop.f32.mrf.mxu0 }
 0x121   :  { %v5017_v35 = vld [vmem:[#allocation3 + $0x32c] ss:$16 sps:$4 sm:$0xff]  }
 0x122   :  { %v5550_v36 = vpop.f32.mrf.mxu1  ;;  %v5552_v38 = vpop.f32.mrf.mxu0 }
 0x124   :  { %v1440_v40 = vpop.f32.mrf.mxu1  ;;  %v1248_v41 = vpop.f32.mrf.mxu0 }
 0x126   :  { %v5554_v42 = vpop.f32.mrf.mxu1  ;;  %1667 = vmatmul.mubr.bf16.gmra.mxu1 %v4985_v37  ;;  %v5556_v43 = vpop.f32.mrf.mxu0 }
 0x127   :  { %1674 = vmatprep.mubr.bf16.mxu1 %v4991_v39 }
 0x128   :  { %v1445_v44 = vpop.f32.mrf.mxu1  ;;  %v1253_v45 = vpop.f32.mrf.mxu0 }
 0x12a   :  { %v5558_v46 = vpop.f32.mrf.mxu1  ;;  %v5560_v48 = vpop.f32.mrf.mxu0 }
 0x12c   :  { %v1448_v50 = vpop.f32.mrf.mxu1  ;;  %v1256_v51 = vpop.f32.mrf.mxu0 }
 0x12d   :  { %v1903_v51 = vld [vmem:[%s7224_s2 + $0x8] sm:$0xff] }
 0x12e   :  { %v5562_v52 = vpop.f32.mrf.mxu1  ;;  %1675 = vmatmul.mubr.bf16.gmra.mxu1 %v4989_v47  ;;  %v5564_v53 = vpop.f32.mrf.mxu0 }
 0x12f   :  { %1682 = vmatprep.mubr.bf16.mxu1 %v4997_v49  ;;  %v1902_v49 = vld [vmem:[%s7224_s2] sm:$0xff] }
 0x130   :  { %v1453_v54 = vpop.f32.mrf.mxu1  ;;  %v1261_v55 = vpop.f32.mrf.mxu0 }
 0x131   :  { %v5015_v54 = vld [vmem:[#allocation3 + $0x328] ss:$16 sps:$4 sm:$0xff]  }
 0x132   :  { %v5566_v56 = vpop.f32.mrf.mxu1  ;;  %v5568_v58 = vpop.f32.mrf.mxu0 }
 0x134   :  { %v1456_v60 = vpop.f32.mrf.mxu1  ;;  %v1264_v61 = vpop.f32.mrf.mxu0 }
 0x136   :  { %v5570_v62 = vpop.f32.mrf.mxu1  ;;  %1683 = vmatmul.mubr.bf16.gmra.mxu1 %v4995_v57  ;;  %v5572_v63 = vpop.f32.mrf.mxu0 }
 0x137   :  { %1690 = vmatprep.mubr.bf16.mxu1 %v5004_v59  ;;  %v5020_v59 = vld [vmem:[#allocation3 + $0x34c] ss:$16 sps:$4 sm:$0xff]  }
 0x138   :  { %v1461_v1 = vpop.f32.mrf.mxu1  ;;  %v1269_v2 = vpop.f32.mrf.mxu0 }
 0x13a   :  { %v5574_v3 = vpop.f32.mrf.mxu1  ;;  %v5576_v5 = vpop.f32.mrf.mxu0 }
 0x13c   :  { %v1464_v7 = vpop.f32.mrf.mxu1  ;;  %v1272_v8 = vpop.f32.mrf.mxu0 }
 0x13e   :  { %v5578_v9 = vpop.f32.mrf.mxu1  ;;  %1691 = vmatmul.mubr.bf16.gmra.mxu1 %v5002_v4  ;;  %v5580_v10 = vpop.f32.mrf.mxu0 }
 0x13f   :  { %1698 = vmatprep.mubr.bf16.mxu1 %v5010_v6 }
 0x140   :  { %v1469_v11 = vpop.f32.mrf.mxu1  ;;  %v1277_v12 = vpop.f32.mrf.mxu0 }
 0x142   :  { %v5582_v15 = vpop.f32.mrf.mxu1  ;;  %v5584_v0 = vpop.f32.mrf.mxu0 }
 0x144   :  { %v1472_v20 = vpop.f32.mrf.mxu1  ;;  %v1280_v21 = vpop.f32.mrf.mxu0 }
 0x146   :  { %v5586_v24 = vpop.f32.mrf.mxu1  ;;  %1699 = vmatmul.mubr.bf16.gmra.mxu1 %v5008_v16  ;;  %v5588_v25 = vpop.f32.mrf.mxu0  ;;  %v1905_v16 = vld [vmem:[%s7224_s2 + $0x18] sm:$0xff] }
 0x147   :  { %1706 = vmatprep.mubr.bf16.mxu1 %v5013_v19  ;;  %v5018_v19 = vld [vmem:[#allocation3 + $0x348] ss:$16 sps:$4 sm:$0xff]  }
 0x148   :  { %v1477_v27 = vpop.f32.mrf.mxu1  ;;  %v1285_v29 = vpop.f32.mrf.mxu0 }
 0x149   :  { %v5023_v27 = vld [vmem:[#allocation3 + $0x36c] ss:$16 sps:$4 sm:$0xff]  }
 0x14a   :  { %v5590_v30 = vpop.f32.mrf.mxu1  ;;  %v5592_v34 = vpop.f32.mrf.mxu0 }
 0x14c   :  { %v1480_v37 = vpop.f32.mrf.mxu1  ;;  %v1288_v39 = vpop.f32.mrf.mxu0 }
 0x14e   :  { %v1516_v40 = vpop.f32.mrf.mxu1  ;;  %1707 = vmatmul.mubr.bf16.gmra.mxu1 %v5011_v31  ;;  %v5594_v41 = vpop.f32.mrf.mxu0 }
 0x14f   :  { %1714 = vmatprep.mubr.bf16.mxu1 %v5017_v35  ;;  %v1517_v47 = vadd.f32 %v1516_v40, %v5532_v14 }
 0x150   :  { %v1518_v44 = vpop.f32.mrf.mxu1  ;;  %v1293_v45 = vpop.f32.mrf.mxu0 }
 0x151   :  { %v2030_v1 = vadd.f32 %v1902_v49, %v1517_v47 }
 0x152   :  { %v1519_v50 = vpop.f32.mrf.mxu1  ;;  %v5603_v55 = vpop.f32.mrf.mxu0 }
 0x153   :  { %v1520_v57 = vadd.f32 %v1519_v50, %v5536_v18  ;;  %v1904_v18 = vld [vmem:[%s7224_s2 + $0x10] sm:$0xff]  ;;  %v1907_v50 = vld [vmem:[%s7224_s2 + $0x28] sm:$0xff] }
 0x154   :  { %v1521_v60 = vpop.f32.mrf.mxu1  ;;  %v1296_v61 = vpop.f32.mrf.mxu0 }
 0x155   :  { %v2031_v2 = vadd.f32 %v1903_v51, %v1520_v57  ;;  %v5021_v51 = vld [vmem:[#allocation3 + $0x368] ss:$16 sps:$4 sm:$0xff]  }
 0x156   :  { %v1524_v14 = vpop.f32.mrf.mxu1  ;;  %1715 = vmatmul.mubr.bf16.gmra.mxu1 %v5015_v54  ;;  %v5606_v4 = vpop.f32.mrf.mxu0 }
 0x157   :  { %v2094_v6 = vpack.c.bf16 %v2031_v2, %v2030_v1  ;;  %1722 = vmatprep.mubr.bf16.mxu1 %v5020_v59  ;;  %v1525_v11 = vadd.f32 %v1524_v14, %v5540_v23  ;;  %v5026_v59 = vld [vmem:[#allocation3 + $0x38c] ss:$16 sps:$4 sm:$0xff]  }
 0x158   :  { %v1526_v7 = vpop.f32.mrf.mxu1  ;;  %v1301_v8 = vpop.f32.mrf.mxu0 }
 0x159   :  { %4704 = vmatprep.mubr.bf16.mxu0 %v2094_v6  ;;  %v2032_v35 = vadd.f32 %v1904_v18, %v1525_v11 }
 0x15a   :  { %v1527_v12 = vpop.f32.mrf.mxu1  ;;  %v5615_v20 = vpop.f32.mrf.mxu0 }
 0x15b   :  { %v1528_v21 = vadd.f32 %v1527_v12, %v5544_v28  ;;  %v1906_v28 = vld [vmem:[%s7224_s2 + $0x20] sm:$0xff]  ;;  %v1909_v12 = vld [vmem:[%s7224_s2 + $0x38] sm:$0xff] }
 0x15c   :  { %v1529_v29 = vpop.f32.mrf.mxu1  ;;  %v1304_v31 = vpop.f32.mrf.mxu0 }
 0x15d   :  { %v2033_v23 = vadd.f32 %v1905_v16, %v1528_v21  ;;  %v5024_v16 = vld [vmem:[#allocation3 + $0x388] ss:$16 sps:$4 sm:$0xff]  }
 0x15e   :  { %v1532_v37 = vpop.f32.mrf.mxu1  ;;  %1723 = vmatmul.mubr.bf16.gmra.mxu1 %v5018_v19  ;;  %v5618_v39 = vpop.f32.mrf.mxu0 }
 0x15f   :  { %v2095_v40 = vpack.c.bf16 %v2033_v23, %v2032_v35  ;;  %1730 = vmatprep.mubr.bf16.mxu1 %v5023_v27  ;;  %v1533_v47 = vadd.f32 %v1532_v37, %v5548_v33  ;;  %v5029_v27 = vld [vmem:[#allocation3 + $0x3ac] ss:$16 sps:$4 sm:$0xff]  }
 0x160   :  { %v1534_v44 = vpop.f32.mrf.mxu1  ;;  %v1309_v45 = vpop.f32.mrf.mxu0 }
 0x161   :  { %4705 = vmatmul.mubr.bf16.vlgmr.msra.gmra.mxu0 %v2095_v40  ;;  %v2034_v1 = vadd.f32 %v1906_v28, %v1533_v47 }
 0x162   :  { %v1535_v49 = vpop.f32.mrf.mxu1  ;;  %v5627_v54 = vpop.f32.mrf.mxu0 }
 0x163   :  { %v1536_v57 = vadd.f32 %v1535_v49, %v5552_v38  ;;  %v1908_v38 = vld [vmem:[%s7224_s2 + $0x30] sm:$0xff]  ;;  %v1911_v49 = vld [vmem:[%s7224_s2 + $0x48] sm:$0xff] }
 0x164   :  { %v1537_v60 = vpop.f32.mrf.mxu1  ;;  %v1312_v61 = vpop.f32.mrf.mxu0 }
 0x165   :  { %v2035_v33 = vadd.f32 %v1907_v50, %v1536_v57  ;;  %v5027_v50 = vld [vmem:[#allocation3 + $0x3a8] ss:$16 sps:$4 sm:$0xff]  }
 0x166   :  { %v1540_v2 = vpop.f32.mrf.mxu1  ;;  %1731 = vmatmul.mubr.bf16.gmra.mxu1 %v5021_v51  ;;  %v5630_v14 = vpop.f32.mrf.mxu0 }
 0x167   :  { %v2096_v6 = vpack.c.bf16 %v2035_v33, %v2034_v1  ;;  %1738 = vmatprep.mubr.bf16.mxu1 %v5026_v59  ;;  %v1541_v11 = vadd.f32 %v1540_v2, %v5556_v43  ;;  %v5032_v59 = vld [vmem:[#allocation3 + $0x3cc] ss:$16 sps:$4 sm:$0xff]  }
 0x168   :  { %v1542_v7 = vpop.f32.mrf.mxu1  ;;  %v1317_v8 = vpop.f32.mrf.mxu0 }
 0x169   :  { %4708 = vmatprep.mubr.bf16.mxu0 %v2096_v6  ;;  %v2036_v35 = vadd.f32 %v1908_v38, %v1541_v11 }
 0x16a   :  { %v1543_v18 = vpop.f32.mrf.mxu1  ;;  %v5639_v19 = vpop.f32.mrf.mxu0 }
 0x16b   :  { %v1544_v21 = vadd.f32 %v1543_v18, %v5560_v48  ;;  %v1910_v48 = vld [vmem:[%s7224_s2 + $0x40] sm:$0xff]  ;;  %v1913_v18 = vld [vmem:[%s7224_s2 + $0x58] sm:$0xff] }
 0x16c   :  { %v1545_v29 = vpop.f32.mrf.mxu1  ;;  %v1320_v31 = vpop.f32.mrf.mxu0 }
 0x16d   :  { %v2037_v43 = vadd.f32 %v1909_v12, %v1544_v21  ;;  %v5030_v12 = vld [vmem:[#allocation3 + $0x3c8] ss:$16 sps:$4 sm:$0xff]  }
 0x16e   :  { %v1548_v23 = vpop.f32.mrf.mxu1  ;;  %1739 = vmatmul.mubr.bf16.gmra.mxu1 %v5024_v16  ;;  %v5642_v37 = vpop.f32.mrf.mxu0 }
 0x16f   :  { %v2097_v40 = vpack.c.bf16 %v2037_v43, %v2036_v35  ;;  %1746 = vmatprep.mubr.bf16.mxu1 %v5029_v27  ;;  %v1549_v47 = vadd.f32 %v1548_v23, %v5564_v53  ;;  %v5035_v27 = vld [vmem:[#allocation3 + $0x3ec] ss:$16 sps:$4 sm:$0xff]  }
 0x170   :  { %v1550_v44 = vpop.f32.mrf.mxu1  ;;  %v1325_v45 = vpop.f32.mrf.mxu0 }
 0x171   :  { %4709 = vmatmul.mubr.bf16.gmra.mxu0 %v2097_v40  ;;  %v2038_v1 = vadd.f32 %v1910_v48, %v1549_v47 }
 0x172   :  { %v1551_v28 = vpop.f32.mrf.mxu1  ;;  %v5651_v51 = vpop.f32.mrf.mxu0 }
 0x173   :  { %v1552_v57 = vadd.f32 %v1551_v28, %v5568_v58  ;;  %v1912_v58 = vld [vmem:[%s7224_s2 + $0x50] sm:$0xff]  ;;  %v1915_v28 = vld [vmem:[%s7224_s2 + $0x68] sm:$0xff] }
 0x174   :  { %v1553_v60 = vpop.f32.mrf.mxu1  ;;  %v1328_v61 = vpop.f32.mrf.mxu0 }
 0x175   :  { %v2039_v53 = vadd.f32 %v1911_v49, %v1552_v57  ;;  %v5033_v49 = vld [vmem:[#allocation3 + $0x3e8] ss:$16 sps:$4 sm:$0xff]  }
 0x176   :  { %v1556_v33 = vpop.f32.mrf.mxu1  ;;  %1747 = vmatmul.mubr.bf16.gmra.mxu1 %v5027_v50  ;;  %v5654_v2 = vpop.f32.mrf.mxu0 }
 0x177   :  { %v2098_v6 = vpack.c.bf16 %v2039_v53, %v2038_v1  ;;  %1754 = vmatprep.mubr.bf16.mxu1 %v5032_v59  ;;  %v1557_v11 = vadd.f32 %v1556_v33, %v5572_v63 }
 0x178   :  { %v1558_v7 = vpop.f32.mrf.mxu1  ;;  %v1333_v8 = vpop.f32.mrf.mxu0 }
 0x179   :  { %4712 = vmatprep.mubr.bf16.mxu0 %v2098_v6  ;;  %v2040_v35 = vadd.f32 %v1912_v58, %v1557_v11  ;;  %v1916_v11 = vld [vmem:[%s7224_s2 + $0x70] sm:$0xff] }
 0x17a   :  { %v1559_v38 = vpop.f32.mrf.mxu1  ;;  %v5663_v16 = vpop.f32.mrf.mxu0 }
 0x17b   :  { %v1560_v21 = vadd.f32 %v1559_v38, %v5576_v5  ;;  %v1914_v5 = vld [vmem:[%s7224_s2 + $0x60] sm:$0xff] }
 0x17c   :  { %v1561_v29 = vpop.f32.mrf.mxu1  ;;  %v1336_v31 = vpop.f32.mrf.mxu0 }
 0x17d   :  { %v2041_v63 = vadd.f32 %v1913_v18, %v1560_v21 }
 0x17e   :  { %v1564_v43 = vpop.f32.mrf.mxu1  ;;  %1755 = vmatmul.mubr.bf16.gmra.mxu1 %v5030_v12  ;;  %v5666_v23 = vpop.f32.mrf.mxu0 }
 0x17f   :  { %v2099_v40 = vpack.c.bf16 %v2041_v63, %v2040_v35  ;;  %1762 = vmatprep.mubr.bf16.mxu1 %v5035_v27  ;;  %v1565_v47 = vadd.f32 %v1564_v43, %v5580_v10 }
 0x180   :  { %v1566_v44 = vpop.f32.mrf.mxu1  ;;  %v1341_v45 = vpop.f32.mrf.mxu0 }
 0x181   :  { %4713 = vmatmul.mubr.bf16.gmra.mxu0 %v2099_v40  ;;  %v2042_v61 = vadd.f32 %v1914_v5, %v1565_v47  ;;  %v1918_v44 = vld [vmem:[%s7224_s2 + $0x80] sm:$0xff] }
 0x182   :  { %v1567_v48 = vpop.f32.mrf.mxu1  ;;  %v5675_v50 = vpop.f32.mrf.mxu0 }
 0x183   :  { %v1568_v57 = vadd.f32 %v1567_v48, %v5584_v0  ;;  %v1917_v0 = vld [vmem:[%s7224_s2 + $0x78] sm:$0xff] }
 0x184   :  { %v1569_v59 = vpop.f32.mrf.mxu1  ;;  %v1344_v60 = vpop.f32.mrf.mxu0 }
 0x185   :  { %v2043_v1 = vadd.f32 %v1915_v28, %v1568_v57 }
 0x186   :  { %v1572_v10 = vpop.f32.mrf.mxu1  ;;  %1763 = vmatmul.mubr.bf16.gmra.mxu1 %v5033_v49  ;;  %v5678_v53 = vpop.f32.mrf.mxu0 }
 0x187   :  { %v2100_v33 = vpack.c.bf16 %v2043_v1, %v2042_v61  ;;  %v1573_v8 = vadd.f32 %v1572_v10, %v5588_v25 }
 0x188   :  { %v1574_v6 = vpop.f32.mrf.mxu1  ;;  %v1349_v7 = vpop.f32.mrf.mxu0 }
 0x189   :  { %4716 = vmatprep.mubr.bf16.mxu0 %v2100_v33  ;;  %v2044_v27 = vadd.f32 %v1916_v11, %v1573_v8  ;;  %v1920_v33 = vld [vmem:[%s7224_s2 + $0x90] sm:$0xff] }
 0x18a   :  { %v1575_v58 = vpop.f32.mrf.mxu1  ;;  %v5687_v38 = vpop.f32.mrf.mxu0 }
 0x18b   :  { %v1576_v18 = vadd.f32 %v1575_v58, %v5592_v34  ;;  %v1919_v34 = vld [vmem:[%s7224_s2 + $0x88] sm:$0xff] }
 0x18c   :  { %v1577_v12 = vpop.f32.mrf.mxu1  ;;  %v1352_v21 = vpop.f32.mrf.mxu0 }
 0x18d   :  { %v2045_v29 = vadd.f32 %v1917_v0, %v1576_v18 }
 0x18e   :  { %v1580_v31 = vpop.f32.mrf.mxu1  ;;  %v5690_v25 = vpop.f32.mrf.mxu0 }
 0x18f   :  { %v2101_v35 = vpack.c.bf16 %v2045_v29, %v2044_v27  ;;  %v1581_v40 = vadd.f32 %v1580_v31, %v5594_v41 }
 0x190   :  { %v1582_v63 = vpop.f32.mrf.mxu1  ;;  %v1357_v43 = vpop.f32.mrf.mxu0 }
 0x191   :  { %4717 = vmatmul.mubr.bf16.gmra.mxu0 %v2101_v35  ;;  %v2046_v49 = vadd.f32 %v1918_v44, %v1581_v40  ;;  %v1922_v35 = vld [vmem:[%s7224_s2 + $0xa0] sm:$0xff] }
 0x192   :  { %v1583_v45 = vpop.f32.mrf.mxu1  ;;  %v5699_v47 = vpop.f32.mrf.mxu0 }
 0x193   :  { %v1584_v5 = vadd.f32 %v1583_v45, %v5603_v55  ;;  %v1921_v55 = vld [vmem:[%s7224_s2 + $0x98] sm:$0xff] }
 0x194   :  { %v1585_v48 = vpop.f32.mrf.mxu1  ;;  %v1360_v28 = vpop.f32.mrf.mxu0 }
 0x195   :  { %v2047_v57 = vadd.f32 %v1919_v34, %v1584_v5 }
 0x196   :  { %v1588_v59 = vpop.f32.mrf.mxu1  ;;  %v5702_v41 = vpop.f32.mrf.mxu0 }
 0x197   :  { %v2102_v60 = vpack.c.bf16 %v2047_v57, %v2046_v49  ;;  %v1589_v10 = vadd.f32 %v1588_v59, %v5606_v4 }
 0x198   :  { %v1590_v61 = vpop.f32.mrf.mxu1  ;;  %v1365_v1 = vpop.f32.mrf.mxu0 }
 0x199   :  { %4720 = vmatprep.mubr.bf16.mxu0 %v2102_v60  ;;  %v2048_v0 = vadd.f32 %v1920_v33, %v1589_v10  ;;  %v1924_v60 = vld [vmem:[%s7224_s2 + $0xb0] sm:$0xff] }
 0x19a   :  { %v1591_v6 = vpop.f32.mrf.mxu1  ;;  %v5711_v7 = vpop.f32.mrf.mxu0 }
 0x19b   :  { %v1592_v8 = vadd.f32 %v1591_v6, %v5615_v20  ;;  %v1923_v20 = vld [vmem:[%s7224_s2 + $0xa8] sm:$0xff] }
 0x19c   :  { %v1593_v11 = vpop.f32.mrf.mxu1  ;;  %v1368_v58 = vpop.f32.mrf.mxu0 }
 0x19d   :  { %v2049_v18 = vadd.f32 %v1921_v55, %v1592_v8 }
 0x19e   :  { %v1596_v12 = vpop.f32.mrf.mxu1  ;;  %v5714_v4 = vpop.f32.mrf.mxu0 }
 0x19f   :  { %v2103_v21 = vpack.c.bf16 %v2049_v18, %v2048_v0  ;;  %v1597_v31 = vadd.f32 %v1596_v12, %v5618_v39 }
 0x1a0   :  { %v1598_v27 = vpop.f32.mrf.mxu1  ;;  %v1373_v29 = vpop.f32.mrf.mxu0 }
 0x1a1   :  { %4721 = vmatmul.mubr.bf16.gmra.mxu0 %v2103_v21  ;;  %v2050_v34 = vadd.f32 %v1922_v35, %v1597_v31  ;;  %v1926_v21 = vld [vmem:[%s7224_s2 + $0xc0] sm:$0xff] }
 0x1a2   :  { %v1599_v63 = vpop.f32.mrf.mxu1  ;;  %v5723_v43 = vpop.f32.mrf.mxu0 }
 0x1a3   :  { %v1600_v40 = vadd.f32 %v1599_v63, %v5627_v54  ;;  %v1925_v54 = vld [vmem:[%s7224_s2 + $0xb8] sm:$0xff] }
 0x1a4   :  { %v1601_v44 = vpop.f32.mrf.mxu1  ;;  %v1376_v45 = vpop.f32.mrf.mxu0 }
 0x1a5   :  { %v2051_v5 = vadd.f32 %v1923_v20, %v1600_v40 }
 0x1a6   :  { %v1604_v48 = vpop.f32.mrf.mxu1  ;;  %v5726_v39 = vpop.f32.mrf.mxu0 }
 0x1a7   :  { %v2104_v28 = vpack.c.bf16 %v2051_v5, %v2050_v34  ;;  %v1605_v59 = vadd.f32 %v1604_v48, %v5630_v14 }
 0x1a8   :  { %v1606_v49 = vpop.f32.mrf.mxu1  ;;  %v1381_v57 = vpop.f32.mrf.mxu0 }
 0x1a9   :  { %4724 = vmatprep.mubr.bf16.mxu0 %v2104_v28  ;;  %v2052_v55 = vadd.f32 %v1924_v60, %v1605_v59  ;;  %v1928_v28 = vld [vmem:[%s7224_s2 + $0xd0] sm:$0xff] }
 0x1aa   :  { %v1607_v61 = vpop.f32.mrf.mxu1  ;;  %v5735_v1 = vpop.f32.mrf.mxu0 }
 0x1ab   :  { %v1608_v10 = vadd.f32 %v1607_v61, %v5639_v19  ;;  %v1927_v19 = vld [vmem:[%s7224_s2 + $0xc8] sm:$0xff] }
 0x1ac   :  { %v1609_v33 = vpop.f32.mrf.mxu1  ;;  %v1384_v6 = vpop.f32.mrf.mxu0 }
 0x1ad   :  { %v2053_v8 = vadd.f32 %v1925_v54, %v1608_v10 }
 0x1ae   :  { %v1612_v11 = vpop.f32.mrf.mxu1  ;;  %v5738_v14 = vpop.f32.mrf.mxu0 }
 0x1af   :  { %v2105_v58 = vpack.c.bf16 %v2053_v8, %v2052_v55  ;;  %v1613_v12 = vadd.f32 %v1612_v11, %v5642_v37 }
 0x1b0   :  { %v1614_v0 = vpop.f32.mrf.mxu1  ;;  %v1389_v18 = vpop.f32.mrf.mxu0 }
 0x1b1   :  { %4725 = vmatmul.mubr.bf16.gmra.mxu0 %v2105_v58  ;;  %v2054_v20 = vadd.f32 %v1926_v21, %v1613_v12  ;;  %v1930_v58 = vld [vmem:[%s7224_s2 + $0xe0] sm:$0xff] }
 0x1b2   :  { %v1615_v27 = vpop.f32.mrf.mxu1  ;;  %v5747_v29 = vpop.f32.mrf.mxu0 }
 0x1b3   :  { %v1616_v31 = vadd.f32 %v1615_v27, %v5651_v51  ;;  %v1929_v51 = vld [vmem:[%s7224_s2 + $0xd8] sm:$0xff] }
 0x1b4   :  { %v1617_v35 = vpop.f32.mrf.mxu1  ;;  %v1392_v63 = vpop.f32.mrf.mxu0 }
 0x1b5   :  { %v2055_v40 = vadd.f32 %v1927_v19, %v1616_v31 }
 0x1b6   :  { %v1620_v44 = vpop.f32.mrf.mxu1  ;;  %v5750_v37 = vpop.f32.mrf.mxu0 }
 0x1b7   :  { %v2106_v45 = vpack.c.bf16 %v2055_v40, %v2054_v20  ;;  %v1621_v48 = vadd.f32 %v1620_v44, %v5654_v2 }
 0x1b8   :  { %v1622_v34 = vpop.f32.mrf.mxu1  ;;  %v1397_v5 = vpop.f32.mrf.mxu0 }
 0x1b9   :  { %4728 = vmatprep.mubr.bf16.mxu0 %v2106_v45  ;;  %v2056_v54 = vadd.f32 %v1928_v28, %v1621_v48  ;;  %v1932_v45 = vld [vmem:[%s7224_s2 + $0xf0] sm:$0xff] }
 0x1ba   :  { %v1623_v49 = vpop.f32.mrf.mxu1  ;;  %v5759_v57 = vpop.f32.mrf.mxu0 }
 0x1bb   :  { %v1624_v59 = vadd.f32 %v1623_v49, %v5663_v16  ;;  %v1931_v16 = vld [vmem:[%s7224_s2 + $0xe8] sm:$0xff] }
 0x1bc   :  { %v1625_v60 = vpop.f32.mrf.mxu1  ;;  %v1400_v61 = vpop.f32.mrf.mxu0 }
 0x1bd   :  { %v2057_v10 = vadd.f32 %v1929_v51, %v1624_v59 }
 0x1be   :  { %v1628_v33 = vpop.f32.mrf.mxu1  ;;  %v5762_v2 = vpop.f32.mrf.mxu0 }
 0x1bf   :  { %v2107_v6 = vpack.c.bf16 %v2057_v10, %v2056_v54  ;;  %v1629_v11 = vadd.f32 %v1628_v33, %v5666_v23  ;;  %v1934_v10 = vld [vmem:[%s7224_s2 + $0x100] sm:$0xff] }
 0x1c0   :  { %v1630_v55 = vpop.f32.mrf.mxu1  ;;  %v1405_v8 = vpop.f32.mrf.mxu0 }
 0x1c1   :  { %4729 = vmatmul.mubr.bf16.gmra.mxu0 %v2107_v6  ;;  %v2058_v19 = vadd.f32 %v1930_v58, %v1629_v11  ;;  %v1935_v6 = vld [vmem:[%s7224_s2 + $0x108] sm:$0xff] }
 0x1c2   :  { %v1631_v0 = vpop.f32.mrf.mxu1  ;;  %v5771_v18 = vpop.f32.mrf.mxu0 }
 0x1c3   :  { %v1632_v12 = vadd.f32 %v1631_v0, %v5675_v50  ;;  %v1933_v50 = vld [vmem:[%s7224_s2 + $0xf8] sm:$0xff] }
 0x1c4   :  { %v1633_v21 = vpop.f32.mrf.mxu1  ;;  %v1408_v27 = vpop.f32.mrf.mxu0 }
 0x1c5   :  { %v2059_v31 = vadd.f32 %v1931_v16, %v1632_v12  ;;  %v1936_v12 = vld [vmem:[%s7224_s2 + $0x110] sm:$0xff]  ;;  %v1937_v27 = vld [vmem:[%s7224_s2 + $0x118] sm:$0xff] }
 0x1c6   :  { %v1636_v35 = vpop.f32.mrf.mxu1  ;;  %v5774_v23 = vpop.f32.mrf.mxu0 }
 0x1c7   :  { %v2108_v63 = vpack.c.bf16 %v2059_v31, %v2058_v19  ;;  %v1637_v44 = vadd.f32 %v1636_v35, %v5678_v53 }
 0x1c8   :  { %v1638_v20 = vpop.f32.mrf.mxu1  ;;  %v1413_v40 = vpop.f32.mrf.mxu0 }
 0x1c9   :  { %4732 = vmatprep.mubr.bf16.mxu0 %v2108_v63  ;;  %v2060_v51 = vadd.f32 %v1932_v45, %v1637_v44  ;;  %v1938_v44 = vld [vmem:[%s7224_s2 + $0x120] sm:$0xff] }
 0x1ca   :  { %v1639_v34 = vpop.f32.mrf.mxu1  ;;  %v5783_v5 = vpop.f32.mrf.mxu0 }
 0x1cb   :  { %v1640_v48 = vadd.f32 %v1639_v34, %v5687_v38  ;;  %v1939_v34 = vld [vmem:[%s7224_s2 + $0x128] sm:$0xff] }
 0x1cc   :  { %v1641_v28 = vpop.f32.mrf.mxu1  ;;  %v1416_v49 = vpop.f32.mrf.mxu0 }
 0x1cd   :  { %v2061_v59 = vadd.f32 %v1933_v50, %v1640_v48 }
 0x1ce   :  { %v1644_v60 = vpop.f32.mrf.mxu1 }
 0x1cf   :  { %v2109_v53 = vpack.c.bf16 %v2061_v59, %v2060_v51  ;;  %v1645_v54 = vadd.f32 %v1644_v60, %v5690_v25  ;;  %v1940_v60 = vld [vmem:[%s7224_s2 + $0x130] sm:$0xff] }
 0x1d0   :  { %v1646_v61 = vpop.f32.mrf.mxu1 }
 0x1d1   :  { %4733 = vmatmul.mubr.bf16.gmra.mxu0 %v2109_v53  ;;  %v2062_v8 = vadd.f32 %v1934_v10, %v1645_v54  ;;  %v1941_v61 = vld [vmem:[%s7224_s2 + $0x138] sm:$0xff] }
 0x1d2   :  { %v1647_v33 = vpop.f32.mrf.mxu1 }
 0x1d3   :  { %v1648_v38 = vadd.f32 %v1647_v33, %v5699_v47 }
 0x1d4   :  { %v1649_v55 = vpop.f32.mrf.mxu1 }
 0x1d5   :  { %v2063_v11 = vadd.f32 %v1935_v6, %v1648_v38 }
 0x1d6   :  { %v1652_v58 = vpop.f32.mrf.mxu1 }
 0x1d7   :  { %v2110_v0 = vpack.c.bf16 %v2063_v11, %v2062_v8  ;;  %v1653_v25 = vadd.f32 %v1652_v58, %v5702_v41  ;;  %v1942_v8 = vld [vmem:[%s7224_s2 + $0x140] sm:$0xff]  ;;  %v1943_v58 = vld [vmem:[%s7224_s2 + $0x148] sm:$0xff] }
 0x1d8   :  { %v1654_v16 = vpop.f32.mrf.mxu1 }
 0x1d9   :  { %4736 = vmatprep.mubr.bf16.mxu0 %v2110_v0  ;;  %v2064_v31 = vadd.f32 %v1936_v12, %v1653_v25 }
 0x1da   :  { %v1655_v21 = vpop.f32.mrf.mxu1 }
 0x1db   :  { %v1656_v47 = vadd.f32 %v1655_v21, %v5711_v7 }
 0x1dc   :  { %v1657_v19 = vpop.f32.mrf.mxu1 }
 0x1dd   :  { %v2065_v35 = vadd.f32 %v1937_v27, %v1656_v47  ;;  %v1944_v47 = vld [vmem:[%s7224_s2 + $0x150] sm:$0xff] }
 0x1de   :  { %v1660_v63 = vpop.f32.mrf.mxu1 }
 0x1df   :  { %v2111_v20 = vpack.c.bf16 %v2065_v35, %v2064_v31  ;;  %v1661_v41 = vadd.f32 %v1660_v63, %v5714_v4  ;;  %v1945_v31 = vld [vmem:[%s7224_s2 + $0x158] sm:$0xff] }
 0x1e0   :  { %v1662_v40 = vpop.f32.mrf.mxu1 }
 0x1e1   :  { %4737 = vmatmul.mubr.bf16.gmra.mxu0 %v2111_v20  ;;  %v2066_v48 = vadd.f32 %v1938_v44, %v1661_v41 }
 0x1e2   :  { %v1663_v45 = vpop.f32.mrf.mxu1 }
 0x1e3   :  { %v1664_v7 = vadd.f32 %v1663_v45, %v5723_v43  ;;  %v1946_v45 = vld [vmem:[%s7224_s2 + $0x160] sm:$0xff] }
 0x1e4   :  { %v1665_v50 = vpop.f32.mrf.mxu1 }
 0x1e5   :  { %v2067_v28 = vadd.f32 %v1939_v34, %v1664_v7  ;;  %v1947_v7 = vld [vmem:[%s7224_s2 + $0x168] sm:$0xff] }
 0x1e6   :  { %v1668_v49 = vpop.f32.mrf.mxu1 }
 0x1e7   :  { %v2112_v51 = vpack.c.bf16 %v2067_v28, %v2066_v48  ;;  %v1669_v4 = vadd.f32 %v1668_v49, %v5726_v39 }
 0x1e8   :  { %v1670_v59 = vpop.f32.mrf.mxu1 }
 0x1e9   :  { %4740 = vmatprep.mubr.bf16.mxu0 %v2112_v51  ;;  %v2068_v10 = vadd.f32 %v1940_v60, %v1669_v4  ;;  %v1948_v4 = vld [vmem:[%s7224_s2 + $0x170] sm:$0xff] }
 0x1ea   :  { %v1671_v53 = vpop.f32.mrf.mxu1 }
 0x1eb   :  { %v1672_v43 = vadd.f32 %v1671_v53, %v5735_v1  ;;  %v1949_v53 = vld [vmem:[%s7224_s2 + $0x178] sm:$0xff] }
 0x1ec   :  { %v1673_v54 = vpop.f32.mrf.mxu1 }
 0x1ed   :  { %v2069_v33 = vadd.f32 %v1941_v61, %v1672_v43 }
 0x1ee   :  { %v1676_v6 = vpop.f32.mrf.mxu1 }
 0x1ef   :  { %v2113_v38 = vpack.c.bf16 %v2069_v33, %v2068_v10  ;;  %v1677_v39 = vadd.f32 %v1676_v6, %v5738_v14 }
 0x1f0   :  { %v1678_v55 = vpop.f32.mrf.mxu1 }
 0x1f1   :  { %4741 = vmatmul.mubr.bf16.gmra.mxu0 %v2113_v38  ;;  %v2070_v16 = vadd.f32 %v1942_v8, %v1677_v39  ;;  %v1950_v38 = vld [vmem:[%s7224_s2 + $0x180] sm:$0xff]  ;;  %v1951_v39 = vld [vmem:[%s7224_s2 + $0x188] sm:$0xff] }
 0x1f2   :  { %v1679_v11 = vpop.f32.mrf.mxu1 }
 0x1f3   :  { %v1680_v1 = vadd.f32 %v1679_v11, %v5747_v29 }
 0x1f4   :  { %v1681_v0 = vpop.f32.mrf.mxu1 }
 0x1f5   :  { %v2071_v25 = vadd.f32 %v1943_v58, %v1680_v1 }
 0x1f6   :  { %v1684_v12 = vpop.f32.mrf.mxu1 }
 0x1f7   :  { %v2114_v21 = vpack.c.bf16 %v2071_v25, %v2070_v16  ;;  %v1685_v14 = vadd.f32 %v1684_v12, %v5750_v37  ;;  %v1952_v25 = vld [vmem:[%s7224_s2 + $0x190] sm:$0xff] }
 0x1f8   :  { %v1686_v27 = vpop.f32.mrf.mxu1 }
 0x1f9   :  { %4744 = vmatprep.mubr.bf16.mxu0 %v2114_v21  ;;  %v2072_v63 = vadd.f32 %v1944_v47, %v1685_v14  ;;  %v1953_v21 = vld [vmem:[%s7224_s2 + $0x198] sm:$0xff] }
 0x1fa   :  { %v1687_v19 = vpop.f32.mrf.mxu1 }
 0x1fb   :  { %v1688_v29 = vadd.f32 %v1687_v19, %v5759_v57 }
 0x1fc   :  { %v1689_v35 = vpop.f32.mrf.mxu1 }
 0x1fd   :  { %v2073_v20 = vadd.f32 %v1945_v31, %v1688_v29 }
 0x1fe   :  { %v1692_v40 = vpop.f32.mrf.mxu1 }
 0x1ff   :  { %v2115_v41 = vpack.c.bf16 %v2073_v20, %v2072_v63  ;;  %v1693_v37 = vadd.f32 %v1692_v40, %v5762_v2  ;;  %v1954_v20 = vld [vmem:[%s7224_s2 + $0x1a0] sm:$0xff] }
 0x200   :  { %v1694_v44 = vpop.f32.mrf.mxu1 }
 0x201   :  { %4745 = vmatmul.mubr.bf16.gmra.mxu0 %v2115_v41  ;;  %v2074_v48 = vadd.f32 %v1946_v45, %v1693_v37  ;;  %v1955_v41 = vld [vmem:[%s7224_s2 + $0x1a8] sm:$0xff] }
 0x202   :  { %v1695_v34 = vpop.f32.mrf.mxu1 }
 0x203   :  { %v1696_v57 = vadd.f32 %v1695_v34, %v5771_v18 }
 0x204   :  { %v1697_v50 = vpop.f32.mrf.mxu1 }
 0x205   :  { %v2075_v28 = vadd.f32 %v1947_v7, %v1696_v57 }
 0x206   :  { %v1700_v49 = vpop.f32.mrf.mxu1 }
 0x207   :  { %v2116_v51 = vpack.c.bf16 %v2075_v28, %v2074_v48  ;;  %v1701_v2 = vadd.f32 %v1700_v49, %v5774_v23 }
 0x208   :  { %v1702_v59 = vpop.f32.mrf.mxu1 }
 0x209   :  { %4748 = vmatprep.mubr.bf16.mxu0 %v2116_v51  ;;  %v2076_v43 = vadd.f32 %v1948_v4, %v1701_v2 }
 0x20a   :  { %v1703_v60 = vpop.f32.mrf.mxu1 }
 0x20b   :  { %v1704_v18 = vadd.f32 %v1703_v60, %v5783_v5 }
 0x20c   :  { %v1705_v61 = vpop.f32.mrf.mxu1 }
 0x20d   :  { %v2077_v54 = vadd.f32 %v1949_v53, %v1704_v18  ;;  %v1956_v61 = vld [vmem:[%s7224_s2 + $0x1b0] sm:$0xff] }
 0x20e   :  { %v1708_v10 = vpop.f32.mrf.mxu1 }
 0x20f   :  { %v2117_v33 = vpack.c.bf16 %v2077_v54, %v2076_v43  ;;  %v1709_v23 = vadd.f32 %v1708_v10, %v5530_v13  ;;  %v1957_v54 = vld [vmem:[%s7224_s2 + $0x1b8] sm:$0xff] }
 0x210   :  { %v1710_v6 = vpop.f32.mrf.mxu1 }
 0x211   :  { %4749 = vmatmul.mubr.bf16.gmra.mxu0 %v2117_v33  ;;  %v2078_v11 = vadd.f32 %v1950_v38, %v1709_v23 }
 0x212   :  { %v1711_v55 = vpop.f32.mrf.mxu1 }
 0x213   :  { %v1712_v5 = vadd.f32 %v1711_v55, %v5534_v17 }
 0x214   :  { %v1713_v8 = vpop.f32.mrf.mxu1 }
 0x215   :  { %v2079_v58 = vadd.f32 %v1951_v39, %v1712_v5 }
 0x216   :  { %v1716_v1 = vpop.f32.mrf.mxu1 }
 0x217   :  { %v2118_v0 = vpack.c.bf16 %v2079_v58, %v2078_v11  ;;  %v1717_v13 = vadd.f32 %v1716_v1, %v5538_v22  ;;  %v5869_v22 = vld [vmem:[%s7226_s4] ss:$0 sm:$0xff] }
 0x218   :  { %v1718_v16 = vpop.f32.mrf.mxu1 }
 0x219   :  { %4752 = vmatprep.mubr.bf16.mxu0 %v2118_v0  ;;  %v2080_v14 = vadd.f32 %v1952_v25, %v1717_v13  ;;  %v1959_v16 = vld [vmem:[%s7224_s2 + $0x1c8] sm:$0xff] }
 0x21a   :  { %v1719_v12 = vpop.f32.mrf.mxu1 }
 0x21b   :  { %v1720_v17 = vadd.f32 %v1719_v12, %v5542_v26 }
 0x21c   :  { %v1721_v27 = vpop.f32.mrf.mxu1 }
 0x21d   :  { %v2081_v47 = vadd.f32 %v1953_v21, %v1720_v17 }
 0x21e   :  { %v1724_v19 = vpop.f32.mrf.mxu1 }
 0x21f   :  { %v2119_v31 = vpack.c.bf16 %v2081_v47, %v2080_v14  ;;  %v1725_v35 = vadd.f32 %v1724_v19, %v5546_v32 }
 0x220   :  { %v1726_v29 = vpop.f32.mrf.mxu1 }
 0x221   :  { %v4706_v63 = vpop.f32.mrf.mxu0  ;;  %4753 = vmatmul.mubr.bf16.gmra.mxu0 %v2119_v31  ;;  %v2082_v7 = vadd.f32 %v1954_v20, %v1725_v35 }
 0x222   :  { %v2240_v26 = vadd.f32 %v4706_v63, %v5869_v22  ;;  %v1727_v40 = vpop.f32.mrf.mxu1 }
 0x223   :  { %v1728_v44 = vadd.f32 %v1727_v40, %v5550_v36  ;;  %v2231_v37 = vpop.f32.mrf.mxu0 }
 0x224   :  { %v2232_v45 = vadd.f32 %v5869_v22, %v2231_v37  ;;  %v1729_v34 = vpop.f32.mrf.mxu1  ;;  %vm2488_vm0 = vcmp.ge.f32.partialorder %v2240_v26, 0.0  ;;  %v2552_v32 = vmul.f32 0.01, %v2240_v26  ;;  %v1961_v37 = vld [vmem:[%s7224_s2 + $0x1d8] sm:$0xff] }
 0x225   :  { %v2083_v57 = vadd.f32 %v1955_v41, %v1728_v44  ;;  %v4707_v50 = vpop.f32.mrf.mxu0  ;;  %v1960_v41 = vld [vmem:[%s7224_s2 + $0x1d0] sm:$0xff] }
 0x226   :  { %v2243_v48 = vadd.f32 %v4707_v50, %v5869_v22  ;;  %v1732_v28 = vpop.f32.mrf.mxu1  ;;  %v5882_v49 = vsel %vm2488_vm0, %v2240_v26, %v2552_v32  ;;  %vm2486_vm1 = vcmp.ge.f32.partialorder %v2232_v45, 0.0  ;;  %v2550_v51 = vmul.f32 0.01, %v2232_v45 }
 0x227   :  { %2682 = vadd.xlane.f32.xlu1 %v5882_v49  ;;  %v2234_v59 = vpop.f32.mrf.mxu0  ;;  %v2120_v36 = vpack.c.bf16 %v2083_v57, %v2082_v7  ;;  %v1733_v18 = vadd.f32 %v1732_v28, %v5554_v42 }
 0x228   :  { %v2235_v2 = vadd.f32 %v5869_v22, %v2234_v59  ;;  %v1734_v4 = vpop.f32.mrf.mxu1  ;;  %v5886_v60 = vsel %vm2486_vm1, %v2232_v45, %v2550_v51  ;;  %vm2489_vm2 = vcmp.ge.f32.partialorder %v2243_v48, 0.0  ;;  %v2553_v53 = vmul.f32 0.01, %v2243_v48 }
 0x229   :  { %4756 = vmatprep.mubr.bf16.mxu0 %v2120_v36  ;;  %2678 = vadd.xlane.f32.xlu0 %v5886_v60  ;;  %v2084_v38 = vadd.f32 %v1956_v61, %v1733_v18  ;;  %v1963_v18 = vld [vmem:[%s7224_s2 + $0x1e8] sm:$0xff] }
 0x22a   :  { %v1735_v43 = vpop.f32.mrf.mxu1  ;;  %v5896_v10 = vsel %vm2489_vm2, %v2243_v48, %v2553_v53  ;;  %vm2487_vm3 = vcmp.ge.f32.partialorder %v2235_v2, 0.0  ;;  %v2551_v33 = vmul.f32 0.01, %v2235_v2 }
 0x22b   :  { %v1736_v6 = vadd.f32 %v1735_v43, %v5558_v46  ;;  %2684 = vadd.xlane.f32.xlu1 %v5896_v10  ;;  %v1958_v46 = vld [vmem:[%s7224_s2 + $0x1c0] sm:$0xff] }
 0x22c   :  { %v1737_v42 = vpop.f32.mrf.mxu1  ;;  %v5900_v23 = vsel %vm2487_vm3, %v2235_v2, %v2551_v33 }
 0x22d   :  { %v2085_v55 = vadd.f32 %v1957_v54, %v1736_v6  ;;  %2680 = vadd.xlane.f32.xlu0 %v5900_v23 }
 0x22e   :  { %v1740_v39 = vpop.f32.mrf.mxu1 }
 0x22f   :  { %v2121_v5 = vpack.c.bf16 %v2085_v55, %v2084_v38  ;;  %v1741_v11 = vadd.f32 %v1740_v39, %v5562_v52 }
 0x230   :  { %v1742_v8 = vpop.f32.mrf.mxu1 }
 0x231   :  { %v4710_v58 = vpop.f32.mrf.mxu0  ;;  %4757 = vmatmul.mubr.bf16.gmra.mxu0 %v2121_v5  ;;  %v2086_v17 = vadd.f32 %v1958_v46, %v1741_v11 }
 0x232   :  { %v2256_v1 = vadd.f32 %v4710_v58, %v5869_v22  ;;  %v1743_v0 = vpop.f32.mrf.mxu1 }
 0x233   :  { %v1744_v13 = vadd.f32 %v1743_v0, %v5566_v56  ;;  %v2247_v25 = vpop.f32.mrf.mxu0 }
 0x234   :  { %v2248_v12 = vadd.f32 %v5869_v22, %v2247_v25  ;;  %v1745_v21 = vpop.f32.mrf.mxu1  ;;  %vm2492_vm4 = vcmp.ge.f32.partialorder %v2256_v1, 0.0  ;;  %v2556_v52 = vmul.f32 0.01, %v2256_v1  ;;  %v1965_v25 = vld [vmem:[%s7224_s2 + $0x1f8] sm:$0xff] }
 0x235   :  { %v2087_v27 = vadd.f32 %v1959_v16, %v1744_v13  ;;  %v4711_v14 = vpop.f32.mrf.mxu0  ;;  %v1964_v16 = vld [vmem:[%s7224_s2 + $0x1f0] sm:$0xff] }
 0x236   :  { %v2259_v47 = vadd.f32 %v4711_v14, %v5869_v22  ;;  %v1748_v19 = vpop.f32.mrf.mxu1  ;;  %v5914_v31 = vsel %vm2492_vm4, %v2256_v1, %v2556_v52  ;;  %v2554_v29 = vmul.f32 0.01, %v2248_v12  ;;  %vm2490_vm5 = vcmp.ge.f32.partialorder %v2248_v12, 0.0 }
 0x237   :  { %v2250_v35 = vpop.f32.mrf.mxu0  ;;  %2690 = vadd.xlane.f32.xlu0 %v5914_v31  ;;  %v2122_v63 = vpack.c.bf16 %v2087_v27, %v2086_v17  ;;  %v1749_v40 = vadd.f32 %v1748_v19, %v5570_v62 }
 0x238   :  { %v2251_v56 = vadd.f32 %v5869_v22, %v2250_v35  ;;  %v1750_v20 = vpop.f32.mrf.mxu1  ;;  %vm2493_vm6 = vcmp.ge.f32.partialorder %v2259_v47, 0.0  ;;  %v2557_v26 = vmul.f32 0.01, %v2259_v47  ;;  %v5927_v34 = vsel %vm2490_vm5, %v2248_v12, %v2554_v29 }
 0x239   :  { %4760 = vmatprep.mubr.bf16.mxu0 %v2122_v63  ;;  %v2088_v57 = vadd.f32 %v1960_v41, %v1749_v40 }
 0x23a   :  { %v1751_v44 = vpop.f32.mrf.mxu1  ;;  %v5925_v45 = vsel %vm2493_vm6, %v2259_v47, %v2557_v26  ;;  %v2555_v32 = vmul.f32 0.01, %v2251_v56  ;;  %vm2491_vm7 = vcmp.ge.f32.partialorder %v2251_v56, 0.0 }
 0x23b   :  { %v1752_v7 = vadd.f32 %v1751_v44, %v5574_v3  ;;  %2692 = vadd.xlane.f32.xlu1 %v5925_v45  ;;  %2686 = vadd.xlane.f32.xlu0 %v5927_v34  ;;  %v1962_v3 = vld [vmem:[%s7224_s2 + $0x1e0] sm:$0xff] }
 0x23c   :  { %v1753_v62 = vpop.f32.mrf.mxu1  ;;  %v5932_v28 = vsel %vm2491_vm7, %v2251_v56, %v2555_v32 }
 0x23d   :  { %v2089_v50 = vadd.f32 %v1961_v37, %v1752_v7 }
 0x23e   :  { %v1756_v48 = vpop.f32.mrf.mxu1 }
 0x23f   :  { %v2123_v51 = vpack.c.bf16 %v2089_v50, %v2088_v57  ;;  %2688 = vadd.xlane.f32.xlu1 %v5932_v28  ;;  %v1757_v36 = vadd.f32 %v1756_v48, %v5578_v9 }
 0x240   :  { %v1758_v59 = vpop.f32.mrf.mxu1 }
 0x241   :  { %v4714_v2 = vpop.f32.mrf.mxu0  ;;  %4761 = vmatmul.mubr.bf16.gmra.mxu0 %v2123_v51  ;;  %v2090_v6 = vadd.f32 %v1962_v3, %v1757_v36 }
 0x242   :  { %v2272_v4 = vadd.f32 %v4714_v2, %v5869_v22  ;;  %v1759_v53 = vpop.f32.mrf.mxu1 }
 0x243   :  { %v1760_v61 = vadd.f32 %v1759_v53, %v5582_v15  ;;  %v2263_v43 = vpop.f32.mrf.mxu0 }
 0x244   :  { %v2264_v54 = vadd.f32 %v5869_v22, %v2263_v43  ;;  %v1761_v33 = vpop.f32.mrf.mxu1  ;;  %vm2496_vm8 = vcmp.ge.f32.partialorder %v2272_v4, 0.0  ;;  %v2560_v9 = vmul.f32 0.01, %v2272_v4 }
 0x245   :  { %v2091_v42 = vadd.f32 %v1963_v18, %v1760_v61  ;;  %v4715_v38 = vpop.f32.mrf.mxu0 }
 0x246   :  { %v2275_v55 = vadd.f32 %v4715_v38, %v5869_v22  ;;  %v1764_v39 = vpop.f32.mrf.mxu1  ;;  %v5946_v5 = vsel %vm2496_vm8, %v2272_v4, %v2560_v9  ;;  %v2558_v8 = vmul.f32 0.01, %v2264_v54  ;;  %vm2494_vm9 = vcmp.ge.f32.partialorder %v2264_v54, 0.0 }
 0x247   :  { %v2266_v11 = vpop.f32.mrf.mxu0  ;;  %2698 = vadd.xlane.f32.xlu0 %v5946_v5  ;;  %v2124_v58 = vpack.c.bf16 %v2091_v42, %v2090_v6  ;;  %v1765_v0 = vadd.f32 %v1764_v39, %v5586_v24 }
 0x248   :  { %v2267_v15 = vadd.f32 %v5869_v22, %v2266_v11  ;;  %v1766_v46 = vpop.f32.mrf.mxu1  ;;  %vm2497_vm10 = vcmp.ge.f32.partialorder %v2275_v55, 0.0  ;;  %v2561_v1 = vmul.f32 0.01, %v2275_v55  ;;  %v5959_v21 = vsel %vm2494_vm9, %v2264_v54, %v2558_v8 }
 0x249   :  { %4764 = vmatprep.mubr.bf16.mxu0 %v2124_v58  ;;  %v2092_v27 = vadd.f32 %v1964_v16, %v1765_v0 }
 0x24a   :  { %v1767_v13 = vpop.f32.mrf.mxu1  ;;  %v5957_v12 = vsel %vm2497_vm10, %v2275_v55, %v2561_v1  ;;  %v2559_v52 = vmul.f32 0.01, %v2267_v15  ;;  %vm2495_vm11 = vcmp.ge.f32.partialorder %v2267_v15, 0.0 }
 0x24b   :  { %v1768_v17 = vadd.f32 %v1767_v13, %v5590_v30  ;;  %2700 = vadd.xlane.f32.xlu1 %v5957_v12  ;;  %2694 = vadd.xlane.f32.xlu0 %v5959_v21 }
 0x24c   :  { %v1769_v24 = vpop.f32.mrf.mxu1  ;;  %v5964_v47 = vsel %vm2495_vm11, %v2267_v15, %v2559_v52 }
 0x24d   :  { %v2093_v14 = vadd.f32 %v1965_v25, %v1768_v17 }
 0x24f   :  { %v2125_v19 = vpack.c.bf16 %v2093_v14, %v2092_v27  ;;  %2696 = vadd.xlane.f32.xlu1 %v5964_v47 }
 0x251   :  { %v4718_v29 = vpop.f32.mrf.mxu0  ;;  %4765 = vmatmul.mubr.bf16.gmra.mxu0 %v2125_v19 }
 0x252   :  { %v2288_v35 = vadd.f32 %v4718_v29, %v5869_v22 }
 0x253   :  { %v2279_v63 = vpop.f32.mrf.mxu0 }
 0x254   :  { %v2280_v30 = vadd.f32 %v5869_v22, %v2279_v63  ;;  %vm2500_vm12 = vcmp.ge.f32.partialorder %v2288_v35, 0.0  ;;  %v2564_v56 = vmul.f32 0.01, %v2288_v35 }
 0x255   :  { %v4719_v20 = vpop.f32.mrf.mxu0 }
 0x256   :  { %v2291_v26 = vadd.f32 %v4719_v20, %v5869_v22  ;;  %v5970_v40 = vsel %vm2500_vm12, %v2288_v35, %v2564_v56  ;;  %v2562_v41 = vmul.f32 0.01, %v2280_v30  ;;  %vm2498_vm13 = vcmp.ge.f32.partialorder %v2280_v30, 0.0 }
 0x257   :  { %v2282_v44 = vpop.f32.mrf.mxu0  ;;  %2706 = vadd.xlane.f32.xlu0 %v5970_v40 }
 0x258   :  { %v2283_v37 = vadd.f32 %v5869_v22, %v2282_v44  ;;  %vm2501_vm14 = vcmp.ge.f32.partialorder %v2291_v26, 0.0  ;;  %v2565_v32 = vmul.f32 0.01, %v2291_v26  ;;  %v5976_v62 = vsel %vm2498_vm13, %v2280_v30, %v2562_v41 }
 0x25a   :  { %v5974_v7 = vsel %vm2501_vm14, %v2291_v26, %v2565_v32  ;;  %v2563_v57 = vmul.f32 0.01, %v2283_v37  ;;  %vm2499_vm15 = vcmp.ge.f32.partialorder %v2283_v37, 0.0 }
 0x25b   :  { %2708 = vadd.xlane.f32.xlu1 %v5974_v7  ;;  %2702 = vadd.xlane.f32.xlu0 %v5976_v62 }
 0x25c   :  { %v5980_v50 = vsel %vm2499_vm15, %v2283_v37, %v2563_v57 }
 0x25f   :  { %2704 = vadd.xlane.f32.xlu1 %v5980_v50 }
 0x261   :  { %v4722_v48 = vpop.f32.mrf.mxu0 }
 0x262   :  { %v2304_v51 = vadd.f32 %v4722_v48, %v5869_v22 }
 0x263   :  { %v2295_v59 = vpop.f32.mrf.mxu0 }
 0x264   :  { %v2296_v36 = vadd.f32 %v5869_v22, %v2295_v59  ;;  %vm2504_vm0 = vcmp.ge.f32.partialorder %v2304_v51, 0.0  ;;  %v2568_v2 = vmul.f32 0.01, %v2304_v51 }
 0x265   :  { %v4723_v3 = vpop.f32.mrf.mxu0 }
 0x266   :  { %v2307_v4 = vadd.f32 %v4723_v3, %v5869_v22  ;;  %v5986_v53 = vsel %vm2504_vm0, %v2304_v51, %v2568_v2  ;;  %v2566_v18 = vmul.f32 0.01, %v2296_v36  ;;  %vm2502_vm1 = vcmp.ge.f32.partialorder %v2296_v36, 0.0 }
 0x267   :  { %v2298_v61 = vpop.f32.mrf.mxu0  ;;  %2714 = vadd.xlane.f32.xlu0 %v5986_v53 }
 0x268   :  { %v2299_v43 = vadd.f32 %v5869_v22, %v2298_v61  ;;  %vm2505_vm2 = vcmp.ge.f32.partialorder %v2307_v4, 0.0  ;;  %v2569_v54 = vmul.f32 0.01, %v2307_v4  ;;  %v5992_v9 = vsel %vm2502_vm1, %v2296_v36, %v2566_v18 }
 0x26a   :  { %v5990_v33 = vsel %vm2505_vm2, %v2307_v4, %v2569_v54  ;;  %v2567_v6 = vmul.f32 0.01, %v2299_v43  ;;  %vm2503_vm3 = vcmp.ge.f32.partialorder %v2299_v43, 0.0 }
 0x26b   :  { %2716 = vadd.xlane.f32.xlu1 %v5990_v33  ;;  %2710 = vadd.xlane.f32.xlu0 %v5992_v9 }
 0x26c   :  { %v5996_v42 = vsel %vm2503_vm3, %v2299_v43, %v2567_v6 }
 0x26f   :  { %2712 = vadd.xlane.f32.xlu1 %v5996_v42 }
 0x271   :  { %v4726_v38 = vpop.f32.mrf.mxu0 }
 0x272   :  { %v2320_v55 = vadd.f32 %v4726_v38, %v5869_v22 }
 0x273   :  { %v2311_v39 = vpop.f32.mrf.mxu0 }
 0x274   :  { %v2312_v8 = vadd.f32 %v5869_v22, %v2311_v39  ;;  %vm2508_vm4 = vcmp.ge.f32.partialorder %v2320_v55, 0.0  ;;  %v2572_v11 = vmul.f32 0.01, %v2320_v55 }
 0x275   :  { %v4727_v58 = vpop.f32.mrf.mxu0 }
 0x276   :  { %v2323_v15 = vadd.f32 %v4727_v58, %v5869_v22  ;;  %v6002_v46 = vsel %vm2508_vm4, %v2320_v55, %v2572_v11  ;;  %v2570_v1 = vmul.f32 0.01, %v2312_v8  ;;  %vm2506_vm5 = vcmp.ge.f32.partialorder %v2312_v8, 0.0 }
 0x277   :  { %v2314_v0 = vpop.f32.mrf.mxu0  ;;  %2722 = vadd.xlane.f32.xlu0 %v6002_v46 }
 0x278   :  { %v2315_v16 = vadd.f32 %v5869_v22, %v2314_v0  ;;  %vm2509_vm6 = vcmp.ge.f32.partialorder %v2323_v15, 0.0  ;;  %v2573_v13 = vmul.f32 0.01, %v2323_v15  ;;  %v6008_v52 = vsel %vm2506_vm5, %v2312_v8, %v2570_v1 }
 0x27a   :  { %v6006_v25 = vsel %vm2509_vm6, %v2323_v15, %v2573_v13  ;;  %v2571_v17 = vmul.f32 0.01, %v2315_v16  ;;  %vm2507_vm7 = vcmp.ge.f32.partialorder %v2315_v16, 0.0 }
 0x27b   :  { %2724 = vadd.xlane.f32.xlu1 %v6006_v25  ;;  %2718 = vadd.xlane.f32.xlu0 %v6008_v52 }
 0x27c   :  { %v6012_v24 = vsel %vm2507_vm7, %v2315_v16, %v2571_v17 }
 0x27f   :  { %2720 = vadd.xlane.f32.xlu1 %v6012_v24 }
 0x281   :  { %v4730_v27 = vpop.f32.mrf.mxu0 }
 0x282   :  { %v2336_v14 = vadd.f32 %v4730_v27, %v5869_v22 }
 0x283   :  { %v2327_v19 = vpop.f32.mrf.mxu0 }
 0x284   :  { %v2328_v29 = vadd.f32 %v5869_v22, %v2327_v19  ;;  %vm2512_vm8 = vcmp.ge.f32.partialorder %v2336_v14, 0.0  ;;  %v2576_v35 = vmul.f32 0.01, %v2336_v14 }
 0x285   :  { %v4731_v63 = vpop.f32.mrf.mxu0 }
 0x286   :  { %v2339_v30 = vadd.f32 %v4731_v63, %v5869_v22  ;;  %v6018_v56 = vsel %vm2512_vm8, %v2336_v14, %v2576_v35  ;;  %v2574_v20 = vmul.f32 0.01, %v2328_v29  ;;  %vm2510_vm9 = vcmp.ge.f32.partialorder %v2328_v29, 0.0 }
 0x287   :  { %v2330_v26 = vpop.f32.mrf.mxu0  ;;  %2730 = vadd.xlane.f32.xlu0 %v6018_v56 }
 0x288   :  { %v2331_v41 = vadd.f32 %v5869_v22, %v2330_v26  ;;  %vm2513_vm10 = vcmp.ge.f32.partialorder %v2339_v30, 0.0  ;;  %v2577_v44 = vmul.f32 0.01, %v2339_v30  ;;  %v6024_v32 = vsel %vm2510_vm9, %v2328_v29, %v2574_v20 }
 0x28a   :  { %v6022_v37 = vsel %vm2513_vm10, %v2339_v30, %v2577_v44  ;;  %v2575_v57 = vmul.f32 0.01, %v2331_v41  ;;  %vm2511_vm11 = vcmp.ge.f32.partialorder %v2331_v41, 0.0 }
 0x28b   :  { %2732 = vadd.xlane.f32.xlu1 %v6022_v37  ;;  %2726 = vadd.xlane.f32.xlu0 %v6024_v32 }
 0x28c   :  { %v6028_v48 = vsel %vm2511_vm11, %v2331_v41, %v2575_v57 }
 0x28f   :  { %2728 = vadd.xlane.f32.xlu1 %v6028_v48 }
 0x291   :  { %v4734_v51 = vpop.f32.mrf.mxu0 }
 0x292   :  { %v2352_v59 = vadd.f32 %v4734_v51, %v5869_v22 }
 0x293   :  { %v2343_v36 = vpop.f32.mrf.mxu0 }
 0x294   :  { %v2344_v2 = vadd.f32 %v5869_v22, %v2343_v36  ;;  %vm2516_vm12 = vcmp.ge.f32.partialorder %v2352_v59, 0.0  ;;  %v2580_v3 = vmul.f32 0.01, %v2352_v59 }
 0x295   :  { %v4735_v4 = vpop.f32.mrf.mxu0 }
 0x296   :  { %v2355_v18 = vadd.f32 %v4735_v4, %v5869_v22  ;;  %v6034_v61 = vsel %vm2516_vm12, %v2352_v59, %v2580_v3  ;;  %v2578_v43 = vmul.f32 0.01, %v2344_v2  ;;  %vm2514_vm13 = vcmp.ge.f32.partialorder %v2344_v2, 0.0 }
 0x297   :  { %v2346_v54 = vpop.f32.mrf.mxu0  ;;  %2738 = vadd.xlane.f32.xlu0 %v6034_v61 }
 0x298   :  { %v2347_v6 = vadd.f32 %v5869_v22, %v2346_v54  ;;  %vm2517_vm14 = vcmp.ge.f32.partialorder %v2355_v18, 0.0  ;;  %v2581_v38 = vmul.f32 0.01, %v2355_v18  ;;  %v6040_v39 = vsel %vm2514_vm13, %v2344_v2, %v2578_v43 }
 0x29a   :  { %v6038_v55 = vsel %vm2517_vm14, %v2355_v18, %v2581_v38  ;;  %v2579_v8 = vmul.f32 0.01, %v2347_v6  ;;  %vm2515_vm15 = vcmp.ge.f32.partialorder %v2347_v6, 0.0 }
 0x29b   :  { %2740 = vadd.xlane.f32.xlu1 %v6038_v55  ;;  %2734 = vadd.xlane.f32.xlu0 %v6040_v39 }
 0x29c   :  { %v6044_v11 = vsel %vm2515_vm15, %v2347_v6, %v2579_v8 }
 0x29f   :  { %2736 = vadd.xlane.f32.xlu1 %v6044_v11 }
 0x2a1   :  { %v4738_v58 = vpop.f32.mrf.mxu0 }
 0x2a2   :  { %v2368_v15 = vadd.f32 %v4738_v58, %v5869_v22 }
 0x2a3   :  { %v2359_v1 = vpop.f32.mrf.mxu0 }
 0x2a4   :  { %v2360_v0 = vadd.f32 %v5869_v22, %v2359_v1  ;;  %vm2520_vm0 = vcmp.ge.f32.partialorder %v2368_v15, 0.0  ;;  %v2584_v16 = vmul.f32 0.01, %v2368_v15 }
 0x2a5   :  { %v4739_v13 = vpop.f32.mrf.mxu0 }
 0x2a6   :  { %v2371_v17 = vadd.f32 %v4739_v13, %v5869_v22  ;;  %v6050_v27 = vsel %vm2520_vm0, %v2368_v15, %v2584_v16  ;;  %v2582_v14 = vmul.f32 0.01, %v2360_v0  ;;  %vm2518_vm1 = vcmp.ge.f32.partialorder %v2360_v0, 0.0 }
 0x2a7   :  { %v2362_v19 = vpop.f32.mrf.mxu0  ;;  %2746 = vadd.xlane.f32.xlu0 %v6050_v27 }
 0x2a8   :  { %v2363_v29 = vadd.f32 %v5869_v22, %v2362_v19  ;;  %vm2521_vm2 = vcmp.ge.f32.partialorder %v2371_v17, 0.0  ;;  %v2585_v35 = vmul.f32 0.01, %v2371_v17  ;;  %v6056_v30 = vsel %vm2518_vm1, %v2360_v0, %v2582_v14 }
 0x2aa   :  { %v6054_v63 = vsel %vm2521_vm2, %v2371_v17, %v2585_v35  ;;  %v2583_v20 = vmul.f32 0.01, %v2363_v29  ;;  %vm2519_vm3 = vcmp.ge.f32.partialorder %v2363_v29, 0.0 }
 0x2ab   :  { %2748 = vadd.xlane.f32.xlu1 %v6054_v63  ;;  %2742 = vadd.xlane.f32.xlu0 %v6056_v30 }
 0x2ac   :  { %v6060_v26 = vsel %vm2519_vm3, %v2363_v29, %v2583_v20 }
 0x2af   :  { %2744 = vadd.xlane.f32.xlu1 %v6060_v26 }
 0x2b0   :  { %v2683_v41 = vpop.xlane.xlu1 %2682 }
 0x2b1   :  { %v2809_v44 = vmul.f32 0.0078125, %v2683_v41  ;;  %v4742_v57 = vpop.f32.mrf.mxu0 }
 0x2b2   :  { %v2384_v51 = vadd.f32 %v4742_v57, %v5869_v22  ;;  %v2679_v36 = vpop.xlane.xlu0 %2678 }
 0x2b3   :  { %v2375_v59 = vpop.f32.mrf.mxu0  ;;  %v6065_v43 = vsub.f32 %v5882_v49, %v2809_v44  ;;  %v2807_v15 = vmul.f32 0.0078125, %v2679_v36 }
 0x2b4   :  { %v2685_v2 = vpop.xlane.xlu1 %2684  ;;  %vm2524_vm4 = vcmp.ge.f32.partialorder %v2384_v51, 0.0  ;;  %v2588_v3 = vmul.f32 0.01, %v2384_v51  ;;  %v2376_v54 = vadd.f32 %v5869_v22, %v2375_v59 }
 0x2b5   :  { %v2810_v4 = vmul.f32 0.0078125, %v2685_v2  ;;  %v4743_v18 = vpop.f32.mrf.mxu0  ;;  %v2937_v1 = vmul.f32 %v6065_v43, %v6065_v43  ;;  %v6084_v29 = vsub.f32 %v5886_v60, %v2807_v15 }
 0x2b6   :  { %v2387_v6 = vadd.f32 %v4743_v18, %v5869_v22  ;;  %v6069_v38 = vsel %vm2524_vm4, %v2384_v51, %v2588_v3  ;;  %v2681_v49 = vpop.xlane.xlu0 %2680  ;;  %v2586_v17 = vmul.f32 0.01, %v2376_v54  ;;  %vm2522_vm6 = vcmp.ge.f32.partialorder %v2376_v54, 0.0 }
 0x2b7   :  { %v2378_v8 = vpop.f32.mrf.mxu0  ;;  %2754 = vadd.xlane.f32.xlu0 %v6069_v38  ;;  %v6075_v0 = vsub.f32 %v5896_v10, %v2810_v4  ;;  %v2808_v14 = vmul.f32 0.0078125, %v2681_v49  ;;  %v2935_v57 = vmul.f32 %v6084_v29, %v6084_v29 }
 0x2b8   :  { %vm2525_vm5 = vcmp.ge.f32.partialorder %v2387_v6, 0.0  ;;  %v2589_v58 = vmul.f32 0.01, %v2387_v6  ;;  %v2379_v16 = vadd.f32 %v5869_v22, %v2378_v8  ;;  %v6086_v35 = vsel %vm2522_vm6, %v2376_v54, %v2586_v17 }
 0x2b9   :  { %v2938_v19 = vmul.f32 %v6075_v0, %v6075_v0  ;;  %v6092_v51 = vsub.f32 %v5900_v23, %v2808_v14 }
 0x2ba   :  { %v6078_v13 = vsel %vm2525_vm5, %v2387_v6, %v2589_v58  ;;  %v2587_v10 = vmul.f32 0.01, %v2379_v16  ;;  %vm2523_vm7 = vcmp.ge.f32.partialorder %v2379_v16, 0.0 }
 0x2bb   :  { %2756 = vadd.xlane.f32.xlu1 %v6078_v13  ;;  %3003 = vadd.xlane.f32.xlu0 %v2937_v1  ;;  %v2936_v54 = vmul.f32 %v6092_v51, %v6092_v51 }
 0x2bc   :  { %v6095_v60 = vsel %vm2523_vm7, %v2379_v16, %v2587_v10 }
 0x2bf   :  { %3005 = vadd.xlane.f32.xlu1 %v2938_v19  ;;  %2750 = vadd.xlane.f32.xlu0 %v6086_v35 }
 0x2c0   :  { %v2691_v20 = vpop.xlane.xlu0 %2690 }
 0x2c1   :  { %v2813_v41 = vmul.f32 0.0078125, %v2691_v20  ;;  %v4746_v44 = vpop.f32.mrf.mxu0 }
 0x2c2   :  { %v2400_v59 = vadd.f32 %v4746_v44, %v5869_v22 }
 0x2c3   :  { %v2391_v36 = vpop.f32.mrf.mxu0  ;;  %2752 = vadd.xlane.f32.xlu1 %v6095_v60  ;;  %2999 = vadd.xlane.f32.xlu0 %v2935_v57  ;;  %v6101_v6 = vsub.f32 %v5914_v31, %v2813_v41 }
 0x2c4   :  { %v2693_v2 = vpop.xlane.xlu1 %2692  ;;  %vm2528_vm8 = vcmp.ge.f32.partialorder %v2400_v59, 0.0  ;;  %v2592_v3 = vmul.f32 0.01, %v2400_v59  ;;  %v2392_v23 = vadd.f32 %v5869_v22, %v2391_v36  ;;  %v2687_v8 = vpop.xlane.xlu0 %2686 }
 0x2c5   :  { %v2814_v4 = vmul.f32 0.0078125, %v2693_v2  ;;  %v4747_v18 = vpop.f32.mrf.mxu0  ;;  %v2811_v16 = vmul.f32 0.0078125, %v2687_v8  ;;  %v2941_v17 = vmul.f32 %v6101_v6, %v6101_v6 }
 0x2c6   :  { %v2403_v58 = vadd.f32 %v4747_v18, %v5869_v22  ;;  %v6105_v15 = vsel %vm2528_vm8, %v2400_v59, %v2592_v3  ;;  %v2590_v20 = vmul.f32 0.01, %v2392_v23  ;;  %vm2526_vm10 = vcmp.ge.f32.partialorder %v2392_v23, 0.0 }
 0x2c7   :  { %v2394_v1 = vpop.f32.mrf.mxu0  ;;  %2762 = vadd.xlane.f32.xlu0 %v6105_v15  ;;  %3001 = vadd.xlane.f32.xlu1 %v2936_v54  ;;  %v6111_v31 = vsub.f32 %v5925_v45, %v2814_v4  ;;  %v6120_v57 = vsub.f32 %v5927_v34, %v2811_v16 }
 0x2c8   :  { %vm2529_vm9 = vcmp.ge.f32.partialorder %v2403_v58, 0.0  ;;  %v2593_v49 = vmul.f32 0.01, %v2403_v58  ;;  %v2395_v14 = vadd.f32 %v5869_v22, %v2394_v1  ;;  %v2689_v19 = vpop.xlane.xlu1 %2688  ;;  %v6122_v59 = vsel %vm2526_vm10, %v2392_v23, %v2590_v20 }
 0x2c9   :  { %v2812_v41 = vmul.f32 0.0078125, %v2689_v19  ;;  %v2942_v44 = vmul.f32 %v6111_v31, %v6111_v31  ;;  %v2939_v4 = vmul.f32 %v6120_v57, %v6120_v57 }
 0x2ca   :  { %v6114_v10 = vsel %vm2529_vm9, %v2403_v58, %v2593_v49  ;;  %v2591_v45 = vmul.f32 0.01, %v2395_v14  ;;  %vm2527_vm11 = vcmp.ge.f32.partialorder %v2395_v14, 0.0 }
 0x2cb   :  { %2764 = vadd.xlane.f32.xlu1 %v6114_v10  ;;  %3011 = vadd.xlane.f32.xlu0 %v2941_v17  ;;  %v6128_v18 = vsub.f32 %v5932_v28, %v2812_v41 }
 0x2cc   :  { %v6131_v34 = vsel %vm2527_vm11, %v2395_v14, %v2591_v45 }
 0x2cd   :  { %v2940_v16 = vmul.f32 %v6128_v18, %v6128_v18 }
 0x2cf   :  { %3013 = vadd.xlane.f32.xlu1 %v2942_v44  ;;  %2758 = vadd.xlane.f32.xlu0 %v6122_v59 }
 0x2d0   :  { %v2699_v36 = vpop.xlane.xlu0 %2698 }
 0x2d1   :  { %v2817_v2 = vmul.f32 0.0078125, %v2699_v36  ;;  %v4750_v3 = vpop.f32.mrf.mxu0 }
 0x2d2   :  { %v2416_v54 = vadd.f32 %v4750_v3, %v5869_v22 }
 0x2d3   :  { %v2407_v23 = vpop.f32.mrf.mxu0  ;;  %2760 = vadd.xlane.f32.xlu1 %v6131_v34  ;;  %3007 = vadd.xlane.f32.xlu0 %v2939_v4  ;;  %v6137_v17 = vsub.f32 %v5946_v5, %v2817_v2 }
 0x2d4   :  { %v2701_v8 = vpop.xlane.xlu1 %2700  ;;  %vm2532_vm12 = vcmp.ge.f32.partialorder %v2416_v54, 0.0  ;;  %v2596_v58 = vmul.f32 0.01, %v2416_v54  ;;  %v2408_v28 = vadd.f32 %v5869_v22, %v2407_v23  ;;  %v2695_v19 = vpop.xlane.xlu0 %2694 }
 0x2d5   :  { %v2818_v1 = vmul.f32 0.0078125, %v2701_v8  ;;  %v4751_v49 = vpop.f32.mrf.mxu0  ;;  %v2815_v45 = vmul.f32 0.0078125, %v2695_v19  ;;  %v2945_v36 = vmul.f32 %v6137_v17, %v6137_v17 }
 0x2d6   :  { %v2419_v14 = vadd.f32 %v4751_v49, %v5869_v22  ;;  %v6141_v20 = vsel %vm2532_vm12, %v2416_v54, %v2596_v58  ;;  %v2594_v54 = vmul.f32 0.01, %v2408_v28  ;;  %vm2530_vm14 = vcmp.ge.f32.partialorder %v2408_v28, 0.0 }
 0x2d7   :  { %v2410_v41 = vpop.f32.mrf.mxu0  ;;  %3009 = vadd.xlane.f32.xlu1 %v2940_v16  ;;  %2770 = vadd.xlane.f32.xlu0 %v6141_v20  ;;  %v6147_v5 = vsub.f32 %v5957_v12, %v2818_v1  ;;  %v6156_v58 = vsub.f32 %v5959_v21, %v2815_v45 }
 0x2d8   :  { %vm2533_vm13 = vcmp.ge.f32.partialorder %v2419_v14, 0.0  ;;  %v2597_v44 = vmul.f32 0.01, %v2419_v14  ;;  %v2411_v2 = vadd.f32 %v5869_v22, %v2410_v41  ;;  %v2697_v3 = vpop.xlane.xlu1 %2696  ;;  %v6158_v49 = vsel %vm2530_vm14, %v2408_v28, %v2594_v54 }
 0x2d9   :  { %v2816_v23 = vmul.f32 0.0078125, %v2697_v3  ;;  %v2946_v8 = vmul.f32 %v6147_v5, %v6147_v5  ;;  %7256 = vst [vmem:[#allocation6_spill] sm:$0xff] %v6156_v58 }
 0x2da   :  { %v6150_v4 = vsel %vm2533_vm13, %v2419_v14, %v2597_v44  ;;  %v2595_v12 = vmul.f32 0.01, %v2411_v2  ;;  %vm2531_vm15 = vcmp.ge.f32.partialorder %v2411_v2, 0.0  ;;  %v2943_v14 = vmul.f32 %v6156_v58, %v6156_v58 }
 0x2db   :  { %2772 = vadd.xlane.f32.xlu1 %v6150_v4  ;;  %3019 = vadd.xlane.f32.xlu0 %v2945_v36  ;;  %v6164_v41 = vsub.f32 %v5964_v47, %v2816_v23 }
 0x2dc   :  { %v6167_v21 = vsel %vm2531_vm15, %v2411_v2, %v2595_v12 }
 0x2dd   :  { %7257 = vst [vmem:[#allocation7_spill] sm:$0xff] %v6164_v41 }
 0x2df   :  { %3021 = vadd.xlane.f32.xlu1 %v2946_v8  ;;  %2766 = vadd.xlane.f32.xlu0 %v6158_v49  ;;  %v2944_v8 = vmul.f32 %v6164_v41, %v6164_v41 }
 0x2e0   :  { %v2707_v1 = vpop.xlane.xlu0 %2706 }
 0x2e1   :  { %v2821_v16 = vmul.f32 0.0078125, %v2707_v1  ;;  %v4754_v19 = vpop.f32.mrf.mxu0 }
 0x2e2   :  { %v2432_v44 = vadd.f32 %v4754_v19, %v5869_v22 }
 0x2e3   :  { %v2423_v28 = vpop.f32.mrf.mxu0  ;;  %2768 = vadd.xlane.f32.xlu1 %v6167_v21  ;;  %3015 = vadd.xlane.f32.xlu0 %v2943_v14  ;;  %v6173_v1 = vsub.f32 %v5970_v40, %v2821_v16 }
 0x2e4   :  { %v2709_v45 = vpop.xlane.xlu1 %2708  ;;  %vm2536_vm0 = vcmp.ge.f32.partialorder %v2432_v44, 0.0  ;;  %v2600_v36 = vmul.f32 0.01, %v2432_v44  ;;  %v2424_v47 = vadd.f32 %v5869_v22, %v2423_v28  ;;  %v2703_v23 = vpop.xlane.xlu0 %2702 }
 0x2e5   :  { %v2822_v3 = vmul.f32 0.0078125, %v2709_v45  ;;  %v4755_v54 = vpop.f32.mrf.mxu0  ;;  %7258 = vst [vmem:[#allocation8_spill] sm:$0xff] %v6173_v1  ;;  %v2819_v45 = vmul.f32 0.0078125, %v2703_v23  ;;  %v2949_v41 = vmul.f32 %v6173_v1, %v6173_v1 }
 0x2e6   :  { %v2435_v2 = vadd.f32 %v4755_v54, %v5869_v22  ;;  %v6177_v12 = vsel %vm2536_vm0, %v2432_v44, %v2600_v36  ;;  %v2598_v44 = vmul.f32 0.01, %v2424_v47  ;;  %vm2534_vm2 = vcmp.ge.f32.partialorder %v2424_v47, 0.0 }
 0x2e7   :  { %v2426_v19 = vpop.f32.mrf.mxu0  ;;  %3017 = vadd.xlane.f32.xlu1 %v2944_v8  ;;  %2778 = vadd.xlane.f32.xlu0 %v6177_v12  ;;  %v6183_v40 = vsub.f32 %v5974_v7, %v2822_v3  ;;  %v6192_v8 = vsub.f32 %v5976_v62, %v2819_v45 }
 0x2e8   :  { %vm2537_vm1 = vcmp.ge.f32.partialorder %v2435_v2, 0.0  ;;  %v2601_v14 = vmul.f32 0.01, %v2435_v2  ;;  %v2427_v16 = vadd.f32 %v5869_v22, %v2426_v19  ;;  %v2705_v28 = vpop.xlane.xlu1 %2704  ;;  %v6194_v23 = vsel %vm2534_vm2, %v2424_v47, %v2598_v44 }
 0x2e9   :  { %7259 = vst [vmem:[#allocation9_spill] sm:$0xff] %v6183_v40  ;;  %v2820_v36 = vmul.f32 0.0078125, %v2705_v28  ;;  %v2950_v54 = vmul.f32 %v6183_v40, %v6183_v40  ;;  %7260 = vst [vmem:[#allocation10_spill] sm:$0xff] %v6192_v8 }
 0x2ea   :  { %v6186_v58 = vsel %vm2537_vm1, %v2435_v2, %v2601_v14  ;;  %v2599_v7 = vmul.f32 0.01, %v2427_v16  ;;  %vm2535_vm3 = vcmp.ge.f32.partialorder %v2427_v16, 0.0 }
 0x2eb   :  { %2780 = vadd.xlane.f32.xlu1 %v6186_v58  ;;  %3027 = vadd.xlane.f32.xlu0 %v2949_v41  ;;  %v2947_v41 = vmul.f32 %v6192_v8, %v6192_v8  ;;  %v6200_v14 = vsub.f32 %v5980_v50, %v2820_v36 }
 0x2ec   :  { %v6203_v62 = vsel %vm2535_vm3, %v2427_v16, %v2599_v7 }
 0x2ed   :  { %7261 = vst [vmem:[#allocation11_spill] sm:$0xff] %v6200_v14  ;;  %v2948_v40 = vmul.f32 %v6200_v14, %v6200_v14 }
 0x2ef   :  { %3029 = vadd.xlane.f32.xlu1 %v2950_v54  ;;  %2774 = vadd.xlane.f32.xlu0 %v6194_v23 }
 0x2f0   :  { %v2715_v3 = vpop.xlane.xlu0 %2714 }
 0x2f1   :  { %v2825_v2 = vmul.f32 0.0078125, %v2715_v3  ;;  %v4758_v19 = vpop.f32.mrf.mxu0 }
 0x2f2   :  { %v2448_v28 = vadd.f32 %v4758_v19, %v5869_v22 }
 0x2f3   :  { %v2439_v47 = vpop.f32.mrf.mxu0  ;;  %2776 = vadd.xlane.f32.xlu1 %v6203_v62  ;;  %3023 = vadd.xlane.f32.xlu0 %v2947_v41  ;;  %v6209_v8 = vsub.f32 %v5986_v53, %v2825_v2 }
 0x2f4   :  { %v2717_v45 = vpop.xlane.xlu1 %2716  ;;  %vm2540_vm4 = vcmp.ge.f32.partialorder %v2448_v28, 0.0  ;;  %v2604_v44 = vmul.f32 0.01, %v2448_v28  ;;  %v2440_v50 = vadd.f32 %v5869_v22, %v2439_v47  ;;  %v2711_v36 = vpop.xlane.xlu0 %2710 }
 0x2f5   :  { %v2826_v54 = vmul.f32 0.0078125, %v2717_v45  ;;  %v4759_v3 = vpop.f32.mrf.mxu0  ;;  %7262 = vst [vmem:[#allocation12_spill] sm:$0xff] %v6209_v8  ;;  %v2823_v45 = vmul.f32 0.0078125, %v2711_v36  ;;  %v2953_v14 = vmul.f32 %v6209_v8, %v6209_v8 }
 0x2f6   :  { %v2451_v16 = vadd.f32 %v4759_v3, %v5869_v22  ;;  %v6213_v7 = vsel %vm2540_vm4, %v2448_v28, %v2604_v44  ;;  %v2602_v28 = vmul.f32 0.01, %v2440_v50  ;;  %vm2538_vm6 = vcmp.ge.f32.partialorder %v2440_v50, 0.0 }
 0x2f7   :  { %v2442_v19 = vpop.f32.mrf.mxu0  ;;  %3025 = vadd.xlane.f32.xlu1 %v2948_v40  ;;  %2786 = vadd.xlane.f32.xlu0 %v6213_v7  ;;  %v6219_v53 = vsub.f32 %v5990_v33, %v2826_v54  ;;  %v6228_v3 = vsub.f32 %v5992_v9, %v2823_v45 }
 0x2f8   :  { %vm2541_vm5 = vcmp.ge.f32.partialorder %v2451_v16, 0.0  ;;  %v2605_v41 = vmul.f32 0.01, %v2451_v16  ;;  %v2443_v2 = vadd.f32 %v5869_v22, %v2442_v19  ;;  %v2713_v47 = vpop.xlane.xlu1 %2712  ;;  %v6230_v36 = vsel %vm2538_vm6, %v2440_v50, %v2602_v28 }
 0x2f9   :  { %7263 = vst [vmem:[#allocation13_spill] sm:$0xff] %v6219_v53  ;;  %v2824_v40 = vmul.f32 0.0078125, %v2713_v47  ;;  %v2954_v44 = vmul.f32 %v6219_v53, %v6219_v53  ;;  %7264 = vst [vmem:[#allocation14_spill] sm:$0xff] %v6228_v3 }
 0x2fa   :  { %v6222_v1 = vsel %vm2541_vm5, %v2451_v16, %v2605_v41  ;;  %v2603_v33 = vmul.f32 0.01, %v2443_v2  ;;  %vm2539_vm7 = vcmp.ge.f32.partialorder %v2443_v2, 0.0 }
 0x2fb   :  { %2788 = vadd.xlane.f32.xlu1 %v6222_v1  ;;  %3035 = vadd.xlane.f32.xlu0 %v2953_v14  ;;  %v2951_v14 = vmul.f32 %v6228_v3, %v6228_v3  ;;  %v6236_v41 = vsub.f32 %v5996_v42, %v2824_v40 }
 0x2fc   :  { %v6239_v9 = vsel %vm2539_vm7, %v2443_v2, %v2603_v33 }
 0x2fd   :  { %7265 = vst [vmem:[#allocation15_spill] sm:$0xff] %v6236_v41  ;;  %v2952_v53 = vmul.f32 %v6236_v41, %v6236_v41 }
 0x2ff   :  { %3037 = vadd.xlane.f32.xlu1 %v2954_v44  ;;  %2782 = vadd.xlane.f32.xlu0 %v6230_v36 }
 0x300   :  { %v2723_v54 = vpop.xlane.xlu0 %2722 }
 0x301   :  { %v2829_v16 = vmul.f32 0.0078125, %v2723_v54  ;;  %v4762_v19 = vpop.f32.mrf.mxu0 }
 0x302   :  { %v2464_v47 = vadd.f32 %v4762_v19, %v5869_v22  ;;  %v5292_v22 = vld [vmem:[%s7226_s4] ss:$0 sm:$0xff] }
 0x303   :  { %v2455_v50 = vpop.f32.mrf.mxu0  ;;  %2784 = vadd.xlane.f32.xlu1 %v6239_v9  ;;  %3031 = vadd.xlane.f32.xlu0 %v2951_v14  ;;  %v6245_v3 = vsub.f32 %v6002_v46, %v2829_v16 }
 0x304   :  { %v2725_v45 = vpop.xlane.xlu1 %2724  ;;  %vm2544_vm8 = vcmp.ge.f32.partialorder %v2464_v47, 0.0  ;;  %v2608_v28 = vmul.f32 0.01, %v2464_v47  ;;  %v2456_v42 = vadd.f32 %v5292_v22, %v2455_v50  ;;  %v2719_v2 = vpop.xlane.xlu0 %2718 }
 0x305   :  { %v2830_v44 = vmul.f32 0.0078125, %v2725_v45  ;;  %v4763_v54 = vpop.f32.mrf.mxu0  ;;  %7266 = vst [vmem:[#allocation16_spill] sm:$0xff] %v6245_v3  ;;  %v2827_v45 = vmul.f32 0.0078125, %v2719_v2  ;;  %v2957_v46 = vmul.f32 %v6245_v3, %v6245_v3 }
 0x306   :  { %v2467_v40 = vadd.f32 %v5292_v22, %v4763_v54  ;;  %v6250_v33 = vsel %vm2544_vm8, %v2464_v47, %v2608_v28  ;;  %v2606_v54 = vmul.f32 0.01, %v2456_v42  ;;  %vm2542_vm10 = vcmp.ge.f32.partialorder %v2456_v42, 0.0 }
 0x307   :  { %v2458_v19 = vpop.f32.mrf.mxu0  ;;  %3033 = vadd.xlane.f32.xlu1 %v2952_v53  ;;  %2794 = vadd.xlane.f32.xlu0 %v6250_v33  ;;  %v6256_v16 = vsub.f32 %v6006_v25, %v2830_v44  ;;  %v6264_v28 = vsub.f32 %v6008_v52, %v2827_v45 }
 0x308   :  { %vm2545_vm9 = vcmp.ge.f32.partialorder %v2467_v40, 0.0  ;;  %v2609_v14 = vmul.f32 0.01, %v2467_v40  ;;  %v2459_v41 = vadd.f32 %v5292_v22, %v2458_v19  ;;  %v2721_v8 = vpop.xlane.xlu1 %2720  ;;  %v6266_v2 = vsel %vm2542_vm10, %v2456_v42, %v2606_v54 }
 0x309   :  { %7267 = vst [vmem:[#allocation17_spill] sm:$0xff] %v6256_v16  ;;  %v2828_v53 = vmul.f32 0.0078125, %v2721_v8  ;;  %v2958_v47 = vmul.f32 %v6256_v16, %v6256_v16  ;;  %7268 = vst [vmem:[#allocation18_spill] sm:$0xff] %v6264_v28 }
 0x30a   :  { %v6258_v50 = vsel %vm2545_vm9, %v2467_v40, %v2609_v14  ;;  %v2607_v25 = vmul.f32 0.01, %v2459_v41  ;;  %vm2543_vm11 = vcmp.ge.f32.partialorder %v2459_v41, 0.0  ;;  %v2955_v14 = vmul.f32 %v6264_v28, %v6264_v28 }
 0x30b   :  { %2796 = vadd.xlane.f32.xlu1 %v6258_v50  ;;  %3043 = vadd.xlane.f32.xlu0 %v2957_v46  ;;  %v6272_v8 = vsub.f32 %v6012_v24, %v2828_v53 }
 0x30c   :  { %v6274_v16 = vsel %vm2543_vm11, %v2459_v41, %v2607_v25 }
 0x30d   :  { %7269 = vst [vmem:[#allocation19_spill] sm:$0xff] %v6272_v8 }
 0x30f   :  { %3045 = vadd.xlane.f32.xlu1 %v2958_v47  ;;  %2790 = vadd.xlane.f32.xlu0 %v6266_v2 }
 0x310   :  { %v2731_v44 = vpop.xlane.xlu0 %2730 }
 0x311   :  { %v2833_v40 = vmul.f32 0.0078125, %v2731_v44  ;;  %v4766_v19 = vpop.f32.mrf.mxu0  ;;  %v2956_v44 = vmul.f32 %v6272_v8, %v6272_v8 }
 0x312   :  { %v2480_v46 = vadd.f32 %v5292_v22, %v4766_v19 }
 0x313   :  { %v2471_v52 = vpop.f32.mrf.mxu0  ;;  %2792 = vadd.xlane.f32.xlu1 %v6274_v16  ;;  %3039 = vadd.xlane.f32.xlu0 %v2955_v14  ;;  %v6280_v28 = vsub.f32 %v6018_v56, %v2833_v40 }
 0x314   :  { %v2733_v42 = vpop.xlane.xlu1 %2732  ;;  %vm2548_vm12 = vcmp.ge.f32.partialorder %v2480_v46, 0.0  ;;  %v2612_v45 = vmul.f32 0.01, %v2480_v46  ;;  %v2472_v24 = vadd.f32 %v5292_v22, %v2471_v52  ;;  %v2727_v53 = vpop.xlane.xlu0 %2726 }
 0x315   :  { %v2834_v54 = vmul.f32 0.0078125, %v2733_v42  ;;  %v4767_v47 = vpop.f32.mrf.mxu0  ;;  %v2831_v3 = vmul.f32 0.0078125, %v2727_v53  ;;  %v2961_v42 = vmul.f32 %v6280_v28, %v6280_v28 }
 0x316   :  { %v2483_v19 = vadd.f32 %v5292_v22, %v4767_v47  ;;  %v6282_v41 = vsel %vm2548_vm12, %v2480_v46, %v2612_v45  ;;  %v2610_v47 = vmul.f32 0.01, %v2472_v24  ;;  %vm2546_vm14 = vcmp.ge.f32.partialorder %v2472_v24, 0.0 }
 0x317   :  { %v2474_v25 = vpop.f32.mrf.mxu0  ;;  %3041 = vadd.xlane.f32.xlu1 %v2956_v44  ;;  %2802 = vadd.xlane.f32.xlu0 %v6282_v41  ;;  %v6288_v8 = vsub.f32 %v6022_v37, %v2834_v54  ;;  %v6296_v44 = vsub.f32 %v6024_v32, %v2831_v3 }
 0x318   :  { %vm2549_vm13 = vcmp.ge.f32.partialorder %v2483_v19, 0.0  ;;  %v2613_v14 = vmul.f32 0.01, %v2483_v19  ;;  %v2475_v56 = vadd.f32 %v5292_v22, %v2474_v25  ;;  %v2729_v40 = vpop.xlane.xlu1 %2728  ;;  %v6298_v53 = vsel %vm2546_vm14, %v2472_v24, %v2610_v47 }
 0x319   :  { %v2832_v46 = vmul.f32 0.0078125, %v2729_v40  ;;  %v2962_v45 = vmul.f32 %v6288_v8, %v6288_v8 }
 0x31a   :  { %v6290_v52 = vsel %vm2549_vm13, %v2483_v19, %v2613_v14  ;;  %v2611_v37 = vmul.f32 0.01, %v2475_v56  ;;  %vm2547_vm15 = vcmp.ge.f32.partialorder %v2475_v56, 0.0  ;;  %v2959_v19 = vmul.f32 %v6296_v44, %v6296_v44 }
 0x31b   :  { %2804 = vadd.xlane.f32.xlu1 %v6290_v52  ;;  %3051 = vadd.xlane.f32.xlu0 %v2961_v42  ;;  %v6304_v25 = vsub.f32 %v6028_v48, %v2832_v46 }
 0x31c   :  { %v6306_v14 = vsel %vm2547_vm15, %v2475_v56, %v2611_v37 }
 0x31d   :  { %v2960_v47 = vmul.f32 %v6304_v25, %v6304_v25 }
 0x31f   :  { %3053 = vadd.xlane.f32.xlu1 %v2962_v45  ;;  %2798 = vadd.xlane.f32.xlu0 %v6298_v53 }
 0x320   :  { %v2739_v22 = vpop.xlane.xlu0 %2738 }
 0x321   :  { %v2837_v54 = vmul.f32 0.0078125, %v2739_v22 }
 0x323   :  { %2800 = vadd.xlane.f32.xlu1 %v6306_v14  ;;  %3047 = vadd.xlane.f32.xlu0 %v2959_v19  ;;  %v6310_v32 = vsub.f32 %v6034_v61, %v2837_v54 }
 0x324   :  { %v2741_v3 = vpop.xlane.xlu1 %2740  ;;  %v2735_v24 = vpop.xlane.xlu0 %2734 }
 0x325   :  { %v2838_v42 = vmul.f32 0.0078125, %v2741_v3  ;;  %v2835_v40 = vmul.f32 0.0078125, %v2735_v24  ;;  %v2965_v45 = vmul.f32 %v6310_v32, %v6310_v32 }
 0x327   :  { %3049 = vadd.xlane.f32.xlu1 %v2960_v47  ;;  %3059 = vadd.xlane.f32.xlu0 %v2965_v45  ;;  %v6317_v48 = vsub.f32 %v6038_v55, %v2838_v42  ;;  %v6320_v56 = vsub.f32 %v6040_v39, %v2835_v40 }
 0x328   :  { %v2737_v61 = vpop.xlane.xlu1 %2736 }
 0x329   :  { %v2836_v46 = vmul.f32 0.0078125, %v2737_v61  ;;  %v2966_v37 = vmul.f32 %v6317_v48, %v6317_v48  ;;  %v2963_v22 = vmul.f32 %v6320_v56, %v6320_v56 }
 0x32b   :  { %3061 = vadd.xlane.f32.xlu1 %v2966_v37  ;;  %3055 = vadd.xlane.f32.xlu0 %v2963_v22  ;;  %v6327_v54 = vsub.f32 %v6044_v11, %v2836_v46 }
 0x32d   :  { %v2964_v55 = vmul.f32 %v6327_v54, %v6327_v54 }
 0x32f   :  { %3057 = vadd.xlane.f32.xlu1 %v2964_v55 }
 0x330   :  { %v2747_v19 = vpop.xlane.xlu0 %2746 }
 0x331   :  { %v2841_v39 = vmul.f32 0.0078125, %v2747_v19 }
 0x333   :  { %v6332_v3 = vsub.f32 %v6050_v27, %v2841_v39 }
 0x334   :  { %v2749_v24 = vpop.xlane.xlu1 %2748  ;;  %v2743_v42 = vpop.xlane.xlu0 %2742 }
 0x335   :  { %v2842_v40 = vmul.f32 0.0078125, %v2749_v24  ;;  %v2839_v47 = vmul.f32 0.0078125, %v2743_v42  ;;  %v2969_v45 = vmul.f32 %v6332_v3, %v6332_v3 }
 0x337   :  { %v6337_v61 = vsub.f32 %v6056_v30, %v2839_v47  ;;  %3067 = vadd.xlane.f32.xlu0 %v2969_v45  ;;  %v6340_v11 = vsub.f32 %v6054_v63, %v2842_v40 }
 0x338   :  { %v2745_v46 = vpop.xlane.xlu1 %2744 }
 0x339   :  { %v2840_v37 = vmul.f32 0.0078125, %v2745_v46  ;;  %v2970_v27 = vmul.f32 %v6340_v11, %v6340_v11  ;;  %v2967_v22 = vmul.f32 %v6337_v61, %v6337_v61 }
 0x33b   :  { %v6347_v55 = vsub.f32 %v6060_v26, %v2840_v37  ;;  %3069 = vadd.xlane.f32.xlu1 %v2970_v27  ;;  %3063 = vadd.xlane.f32.xlu0 %v2967_v22 }
 0x33d   :  { %v2968_v30 = vmul.f32 %v6347_v55, %v6347_v55 }
 0x33f   :  { %3065 = vadd.xlane.f32.xlu1 %v2968_v30 }
 0x340   :  { %v2755_v19 = vpop.xlane.xlu0 %2754 }
 0x341   :  { %v2845_v63 = vmul.f32 0.0078125, %v2755_v19 }
 0x343   :  { %v6352_v39 = vsub.f32 %v6069_v38, %v2845_v63 }
 0x344   :  { %v2757_v24 = vpop.xlane.xlu1 %2756  ;;  %v3004_v42 = vpop.xlane.xlu0 %3003 }
 0x345   :  { %v2846_v40 = vmul.f32 0.0078125, %v2757_v24  ;;  %v3129_v47 = vmul.f32 0.0078125, %v3004_v42  ;;  %v2973_v45 = vmul.f32 %v6352_v39, %v6352_v39 }
 0x347   :  { %v6357_v26 = vsub.f32 %v6078_v13, %v2846_v40  ;;  %v3193_v46 = vadd.f32 1e-05, %v3129_v47  ;;  %3075 = vadd.xlane.f32.xlu0 %v2973_v45 }
 0x348   :  { %v3006_v37 = vpop.xlane.xlu1 %3005  ;;  %v2751_v27 = vpop.xlane.xlu0 %2750 }
 0x349   :  { %5036 = vrsqrt.f32 %v3193_v46  ;;  %v3130_v22 = vmul.f32 0.0078125, %v3006_v37  ;;  %v2843_v30 = vmul.f32 0.0078125, %v2751_v27  ;;  %v2974_v38 = vmul.f32 %v6357_v26, %v6357_v26 }
 0x34b   :  { %v3194_v19 = vadd.f32 1e-05, %v3130_v22  ;;  %v6362_v63 = vsub.f32 %v6086_v35, %v2843_v30  ;;  %3077 = vadd.xlane.f32.xlu1 %v2974_v38 }
 0x34c   :  { %v2753_v24 = vpop.xlane.xlu1 %2752  ;;  %v3000_v42 = vpop.xlane.xlu0 %2999 }
 0x34d   :  { %5038 = vrsqrt.f32 %v3194_v19  ;;  %v2844_v13 = vmul.f32 0.0078125, %v2753_v24  ;;  %v3127_v40 = vmul.f32 0.0078125, %v3000_v42  ;;  %v2971_v47 = vmul.f32 %v6362_v63, %v6362_v63 }
 0x34f   :  { %v6367_v45 = vsub.f32 %v6095_v60, %v2844_v13  ;;  %v3191_v46 = vadd.f32 1e-05, %v3127_v40  ;;  %3071 = vadd.xlane.f32.xlu0 %v2971_v47 }
 0x350   :  { %v3002_v37 = vpop.xlane.xlu1 %3001  ;;  %v2763_v27 = vpop.xlane.xlu0 %2762 }
 0x351   :  { %5040 = vrsqrt.f32 %v3191_v46  ;;  %v3128_v22 = vmul.f32 0.0078125, %v3002_v37  ;;  %v2849_v35 = vmul.f32 0.0078125, %v2763_v27  ;;  %v2972_v30 = vmul.f32 %v6367_v45, %v6367_v45 }
 0x353   :  { %v3192_v38 = vadd.f32 1e-05, %v3128_v22  ;;  %v6372_v19 = vsub.f32 %v6105_v15, %v2849_v35  ;;  %3073 = vadd.xlane.f32.xlu1 %v2972_v30 }
 0x354   :  { %v2765_v24 = vpop.xlane.xlu1 %2764  ;;  %v3012_v42 = vpop.xlane.xlu0 %3011 }
 0x355   :  { %5042 = vrsqrt.f32 %v3192_v38  ;;  %v2850_v60 = vmul.f32 0.0078125, %v2765_v24  ;;  %v3133_v13 = vmul.f32 0.0078125, %v3012_v42  ;;  %v2977_v40 = vmul.f32 %v6372_v19, %v6372_v19 }
 0x356   :  { %v5037_v47 = vpop.eup %5036 }
 0x357   :  { %v6377_v46 = vsub.f32 %v6114_v10, %v2850_v60  ;;  %v3197_v37 = vadd.f32 1e-05, %v3133_v13  ;;  %3083 = vadd.xlane.f32.xlu0 %v2977_v40  ;;  %v6380_v27 = vmul.f32 %v5037_v47, %v6065_v43 }
 0x358   :  { %v3014_v15 = vpop.xlane.xlu1 %3013  ;;  %v2759_v22 = vpop.xlane.xlu0 %2758 }
 0x359   :  { %5044 = vrsqrt.f32 %v3197_v37  ;;  %v3134_v35 = vmul.f32 0.0078125, %v3014_v15  ;;  %v2847_v30 = vmul.f32 0.0078125, %v2759_v22  ;;  %v2978_v38 = vmul.f32 %v6377_v46, %v6377_v46  ;;  %3385 = vst [vmem:[%s7227_s5 + $0x10] sm:$0xff] %v6380_v27 }
 0x35a   :  { %v5039_v10 = vpop.eup %5038  ;;  %v3449_v24 = vmul.f32 %v6380_v27, %v6380_v27 }
 0x35b   :  { %v3198_v42 = vadd.f32 1e-05, %v3134_v35  ;;  %v6391_v43 = vsub.f32 %v6122_v59, %v2847_v30  ;;  %3085 = vadd.xlane.f32.xlu1 %v2978_v38  ;;  %v6394_v60 = vmul.f32 %v5039_v10, %v6075_v0 }
 0x35c   :  { %3515 = vadd.xlane.f32.xlu0 %v3449_v24  ;;  %v2761_v13 = vpop.xlane.xlu1 %2760  ;;  %v3008_v40 = vpop.xlane.xlu0 %3007 }
 0x35d   :  { %5046 = vrsqrt.f32 %v3198_v42  ;;  %v2848_v47 = vmul.f32 0.0078125, %v2761_v13  ;;  %v3131_v37 = vmul.f32 0.0078125, %v3008_v40  ;;  %3386 = vst [vmem:[%s7227_s5 + $0x18] sm:$0xff] %v6394_v60  ;;  %v3450_v15 = vmul.f32 %v6394_v60, %v6394_v60 }
 0x35e   :  { %v5041_v59 = vpop.eup %5040  ;;  %v2975_v22 = vmul.f32 %v6391_v43, %v6391_v43 }
 0x35f   :  { %v6405_v0 = vsub.f32 %v6131_v34, %v2848_v47  ;;  %v3195_v35 = vadd.f32 1e-05, %v3131_v37  ;;  %3517 = vadd.xlane.f32.xlu1 %v3450_v15  ;;  %v6408_v30 = vmul.f32 %v5041_v59, %v6084_v29 }
 0x360   :  { %3079 = vadd.xlane.f32.xlu0 %v2975_v22  ;;  %v3010_v38 = vpop.xlane.xlu1 %3009  ;;  %v2771_v10 = vpop.xlane.xlu0 %2770 }
 0x361   :  { %5048 = vrsqrt.f32 %v3195_v35  ;;  %v3132_v24 = vmul.f32 0.0078125, %v3010_v38  ;;  %v2853_v42 = vmul.f32 0.0078125, %v2771_v10  ;;  %v2976_v13 = vmul.f32 %v6405_v0, %v6405_v0  ;;  %3383 = vst [vmem:[%s7227_s5] sm:$0xff] %v6408_v30 }
 0x362   :  { %v5043_v34 = vpop.eup %5042  ;;  %v3447_v40 = vmul.f32 %v6408_v30, %v6408_v30 }
 0x363   :  { %v3196_v29 = vadd.f32 1e-05, %v3132_v24  ;;  %v6419_v47 = vsub.f32 %v6141_v20, %v2853_v42  ;;  %3081 = vadd.xlane.f32.xlu1 %v2976_v13  ;;  %v6422_v37 = vmul.f32 %v5043_v34, %v6092_v51 }
 0x364   :  { %3511 = vadd.xlane.f32.xlu0 %v3447_v40  ;;  %v2773_v15 = vpop.xlane.xlu1 %2772  ;;  %v3020_v59 = vpop.xlane.xlu0 %3019 }
 0x365   :  { %5050 = vrsqrt.f32 %v3196_v29  ;;  %v2854_v22 = vmul.f32 0.0078125, %v2773_v15  ;;  %v3137_v35 = vmul.f32 0.0078125, %v3020_v59  ;;  %3384 = vst [vmem:[%s7227_s5 + $0x8] sm:$0xff] %v6422_v37  ;;  %v3448_v38 = vmul.f32 %v6422_v37, %v6422_v37 }
 0x366   :  { %v5045_v20 = vpop.eup %5044  ;;  %v2981_v10 = vmul.f32 %v6419_v47, %v6419_v47 }
 0x367   :  { %v6433_v51 = vsub.f32 %v6150_v4, %v2854_v22  ;;  %v3201_v24 = vadd.f32 1e-05, %v3137_v35  ;;  %3513 = vadd.xlane.f32.xlu1 %v3448_v38  ;;  %v6436_v42 = vmul.f32 %v5045_v20, %v6101_v6 }
 0x368   :  { %3091 = vadd.xlane.f32.xlu0 %v2981_v10  ;;  %v3022_v13 = vpop.xlane.xlu1 %3021  ;;  %v2767_v34 = vpop.xlane.xlu0 %2766 }
 0x369   :  { %5052 = vrsqrt.f32 %v3201_v24  ;;  %v3138_v40 = vmul.f32 0.0078125, %v3022_v13  ;;  %v2851_v29 = vmul.f32 0.0078125, %v2767_v34  ;;  %v2982_v15 = vmul.f32 %v6433_v51, %v6433_v51  ;;  %3389 = vst [vmem:[%s7227_s5 + $0x30] sm:$0xff] %v6436_v42 }
 0x36a   :  { %v5047_v4 = vpop.eup %5046  ;;  %v3453_v59 = vmul.f32 %v6436_v42, %v6436_v42 }
 0x36b   :  { %v3202_v6 = vadd.f32 1e-05, %v3138_v40  ;;  %v6447_v22 = vsub.f32 %v6158_v49, %v2851_v29  ;;  %3093 = vadd.xlane.f32.xlu1 %v2982_v15  ;;  %v6450_v35 = vmul.f32 %v5047_v4, %v6111_v31 }
 0x36c   :  { %3523 = vadd.xlane.f32.xlu0 %v3453_v59  ;;  %v2769_v38 = vpop.xlane.xlu1 %2768  ;;  %v3016_v20 = vpop.xlane.xlu0 %3015 }
 0x36d   :  { %5054 = vrsqrt.f32 %v3202_v6  ;;  %v2852_v10 = vmul.f32 0.0078125, %v2769_v38  ;;  %v3135_v24 = vmul.f32 0.0078125, %v3016_v20  ;;  %3390 = vst [vmem:[%s7227_s5 + $0x38] sm:$0xff] %v6450_v35  ;;  %v3454_v13 = vmul.f32 %v6450_v35, %v6450_v35 }
 0x36e   :  { %v5049_v49 = vpop.eup %5048  ;;  %v2979_v34 = vmul.f32 %v6447_v22, %v6447_v22 }
 0x36f   :  { %v6461_v31 = vsub.f32 %v6167_v21, %v2852_v10  ;;  %v3199_v40 = vadd.f32 1e-05, %v3135_v24  ;;  %3525 = vadd.xlane.f32.xlu1 %v3454_v13  ;;  %v6464_v29 = vmul.f32 %v5049_v49, %v6120_v57 }
 0x370   :  { %3087 = vadd.xlane.f32.xlu0 %v2979_v34  ;;  %v3018_v15 = vpop.xlane.xlu1 %3017  ;;  %v2779_v4 = vpop.xlane.xlu0 %2778 }
 0x371   :  { %5056 = vrsqrt.f32 %v3199_v40  ;;  %v3136_v59 = vmul.f32 0.0078125, %v3018_v15  ;;  %v2857_v6 = vmul.f32 0.0078125, %v2779_v4  ;;  %v2980_v38 = vmul.f32 %v6461_v31, %v6461_v31  ;;  %3387 = vst [vmem:[%s7227_s5 + $0x20] sm:$0xff] %v6464_v29 }
 0x372   :  { %v5051_v21 = vpop.eup %5050  ;;  %v3451_v20 = vmul.f32 %v6464_v29, %v6464_v29 }
 0x373   :  { %v3200_v57 = vadd.f32 1e-05, %v3136_v59  ;;  %v6475_v10 = vsub.f32 %v6177_v12, %v2857_v6  ;;  %3089 = vadd.xlane.f32.xlu1 %v2980_v38  ;;  %v6478_v24 = vmul.f32 %v5051_v21, %v6128_v18 }
 0x374   :  { %3519 = vadd.xlane.f32.xlu0 %v3451_v20  ;;  %v2781_v13 = vpop.xlane.xlu1 %2780  ;;  %v3028_v49 = vpop.xlane.xlu0 %3027 }
 0x375   :  { %5058 = vrsqrt.f32 %v3200_v57  ;;  %v2858_v34 = vmul.f32 0.0078125, %v2781_v13  ;;  %v3141_v40 = vmul.f32 0.0078125, %v3028_v49  ;;  %3388 = vst [vmem:[%s7227_s5 + $0x28] sm:$0xff] %v6478_v24  ;;  %v3452_v15 = vmul.f32 %v6478_v24, %v6478_v24 }
 0x376   :  { %v5053_v12 = vpop.eup %5052  ;;  %v2985_v4 = vmul.f32 %v6475_v10, %v6475_v10 }
 0x377   :  { %v6489_v18 = vsub.f32 %v6186_v58, %v2858_v34  ;;  %v3205_v59 = vadd.f32 1e-05, %v3141_v40  ;;  %3521 = vadd.xlane.f32.xlu1 %v3452_v15  ;;  %v6492_v6 = vmul.f32 %v5053_v12, %v6137_v17 }
 0x378   :  { %3099 = vadd.xlane.f32.xlu0 %v2985_v4  ;;  %v3030_v38 = vpop.xlane.xlu1 %3029  ;;  %v2775_v21 = vpop.xlane.xlu0 %2774 }
 0x379   :  { %5060 = vrsqrt.f32 %v3205_v59  ;;  %v3142_v20 = vmul.f32 0.0078125, %v3030_v38  ;;  %v2855_v57 = vmul.f32 0.0078125, %v2775_v21  ;;  %v2986_v13 = vmul.f32 %v6489_v18, %v6489_v18  ;;  %3393 = vst [vmem:[%s7227_s5 + $0x50] sm:$0xff] %v6492_v6 }
 0x37a   :  { %v5055_v58 = vpop.eup %5054  ;;  %v3457_v49 = vmul.f32 %v6492_v6, %v6492_v6 }
 0x37b   :  { %v3206_v17 = vadd.f32 1e-05, %v3142_v20  ;;  %v6503_v34 = vsub.f32 %v6194_v23, %v2855_v57  ;;  %3101 = vadd.xlane.f32.xlu1 %v2986_v13  ;;  %v6506_v40 = vmul.f32 %v5055_v58, %v6147_v5  ;;  %v7270_v57 = vld [vmem:[#allocation6_spill] sm:$0xff] }
 0x37c   :  { %3531 = vadd.xlane.f32.xlu0 %v3457_v49  ;;  %v2777_v15 = vpop.xlane.xlu1 %2776  ;;  %v3024_v12 = vpop.xlane.xlu0 %3023 }
 0x37d   :  { %5062 = vrsqrt.f32 %v3206_v17  ;;  %v2856_v4 = vmul.f32 0.0078125, %v2777_v15  ;;  %v3139_v59 = vmul.f32 0.0078125, %v3024_v12  ;;  %3394 = vst [vmem:[%s7227_s5 + $0x58] sm:$0xff] %v6506_v40  ;;  %v3458_v38 = vmul.f32 %v6506_v40, %v6506_v40 }
 0x37e   :  { %v5057_v23 = vpop.eup %5056  ;;  %v2983_v21 = vmul.f32 %v6503_v34, %v6503_v34 }
 0x37f   :  { %v6517_v5 = vsub.f32 %v6203_v62, %v2856_v4  ;;  %v3203_v20 = vadd.f32 1e-05, %v3139_v59  ;;  %3533 = vadd.xlane.f32.xlu1 %v3458_v38  ;;  %v6520_v13 = vmul.f32 %v5057_v23, %v7270_v57  ;;  %v7272_v23 = vld [vmem:[#allocation7_spill] sm:$0xff] }
 0x380   :  { %3095 = vadd.xlane.f32.xlu0 %v2983_v21  ;;  %v3026_v58 = vpop.xlane.xlu1 %3025  ;;  %v2787_v49 = vpop.xlane.xlu0 %2786 }
 0x381   :  { %7271 = vst [vmem:[#allocation6_spill] sm:$0xff] %v6520_v13  ;;  %5064 = vrsqrt.f32 %v3203_v20  ;;  %v3140_v17 = vmul.f32 0.0078125, %v3026_v58  ;;  %v2861_v15 = vmul.f32 0.0078125, %v2787_v49  ;;  %v2984_v12 = vmul.f32 %v6517_v5, %v6517_v5  ;;  %3391 = vst [vmem:[%s7227_s5 + $0x40] sm:$0xff] %v6520_v13 }
 0x382   :  { %v5059_v62 = vpop.eup %5058  ;;  %v3455_v4 = vmul.f32 %v6520_v13, %v6520_v13 }
 0x383   :  { %v3204_v59 = vadd.f32 1e-05, %v3140_v17  ;;  %v6531_v38 = vsub.f32 %v6213_v7, %v2861_v15  ;;  %3097 = vadd.xlane.f32.xlu1 %v2984_v12  ;;  %v6534_v21 = vmul.f32 %v5059_v62, %v7272_v23 }
 0x384   :  { %3527 = vadd.xlane.f32.xlu0 %v3455_v4  ;;  %v2789_v20 = vpop.xlane.xlu1 %2788  ;;  %v3036_v57 = vpop.xlane.xlu0 %3035  ;;  %v7274_v4 = vld [vmem:[#allocation8_spill] sm:$0xff] }
 0x385   :  { %7273 = vst [vmem:[#allocation7_spill] sm:$0xff] %v6534_v21  ;;  %5066 = vrsqrt.f32 %v3204_v59  ;;  %v2862_v58 = vmul.f32 0.0078125, %v2789_v20  ;;  %v3145_v49 = vmul.f32 0.0078125, %v3036_v57  ;;  %3392 = vst [vmem:[%s7227_s5 + $0x48] sm:$0xff] %v6534_v21  ;;  %v3456_v17 = vmul.f32 %v6534_v21, %v6534_v21 }
 0x386   :  { %v5061_v7 = vpop.eup %5060  ;;  %v2989_v15 = vmul.f32 %v6531_v38, %v6531_v38 }
 0x387   :  { %v6545_v12 = vsub.f32 %v6222_v1, %v2862_v58  ;;  %v3209_v62 = vadd.f32 1e-05, %v3145_v49  ;;  %3529 = vadd.xlane.f32.xlu1 %v3456_v17  ;;  %v6548_v59 = vmul.f32 %v5061_v7, %v7274_v4  ;;  %v7276_v7 = vld [vmem:[#allocation9_spill] sm:$0xff] }
 0x388   :  { %3107 = vadd.xlane.f32.xlu0 %v2989_v15  ;;  %v3038_v23 = vpop.xlane.xlu1 %3037  ;;  %v2783_v20 = vpop.xlane.xlu0 %2782 }
 0x389   :  { %7275 = vst [vmem:[#allocation8_spill] sm:$0xff] %v6548_v59  ;;  %5068 = vrsqrt.f32 %v3209_v62  ;;  %v3146_v57 = vmul.f32 0.0078125, %v3038_v23  ;;  %v2859_v13 = vmul.f32 0.0078125, %v2783_v20  ;;  %v2990_v21 = vmul.f32 %v6545_v12, %v6545_v12  ;;  %3397 = vst [vmem:[%s7227_s5 + $0x70] sm:$0xff] %v6548_v59 }
 0x38a   :  { %v5063_v1 = vpop.eup %5062  ;;  %v3461_v58 = vmul.f32 %v6548_v59, %v6548_v59 }
 0x38b   :  { %v3210_v49 = vadd.f32 1e-05, %v3146_v57  ;;  %v6559_v17 = vsub.f32 %v6230_v36, %v2859_v13  ;;  %3109 = vadd.xlane.f32.xlu1 %v2990_v21  ;;  %v6562_v15 = vmul.f32 %v5063_v1, %v7276_v7 }
 0x38c   :  { %3539 = vadd.xlane.f32.xlu0 %v3461_v58  ;;  %v2785_v62 = vpop.xlane.xlu1 %2784  ;;  %v3032_v4 = vpop.xlane.xlu0 %3031  ;;  %v7278_v58 = vld [vmem:[#allocation10_spill] sm:$0xff] }
 0x38d   :  { %7277 = vst [vmem:[#allocation9_spill] sm:$0xff] %v6562_v15  ;;  %5070 = vrsqrt.f32 %v3210_v49  ;;  %v2860_v23 = vmul.f32 0.0078125, %v2785_v62  ;;  %v3143_v20 = vmul.f32 0.0078125, %v3032_v4  ;;  %3398 = vst [vmem:[%s7227_s5 + $0x78] sm:$0xff] %v6562_v15  ;;  %v3462_v57 = vmul.f32 %v6562_v15, %v6562_v15 }
 0x38e   :  { %v5065_v36 = vpop.eup %5064  ;;  %v2987_v13 = vmul.f32 %v6559_v17, %v6559_v17 }
 0x38f   :  { %v6573_v21 = vsub.f32 %v6239_v9, %v2860_v23  ;;  %v3207_v1 = vadd.f32 1e-05, %v3143_v20  ;;  %3541 = vadd.xlane.f32.xlu1 %v3462_v57  ;;  %v6576_v49 = vmul.f32 %v5065_v36, %v7278_v58  ;;  %v7280_v36 = vld [vmem:[#allocation11_spill] sm:$0xff] }
 0x390   :  { %3103 = vadd.xlane.f32.xlu0 %v2987_v13  ;;  %v3034_v7 = vpop.xlane.xlu1 %3033  ;;  %v2795_v62 = vpop.xlane.xlu0 %2794 }
 0x391   :  { %7279 = vst [vmem:[#allocation10_spill] sm:$0xff] %v6576_v49  ;;  %5072 = vrsqrt.f32 %v3207_v1  ;;  %v3144_v4 = vmul.f32 0.0078125, %v3034_v7  ;;  %v2865_v59 = vmul.f32 0.0078125, %v2795_v62  ;;  %v2988_v15 = vmul.f32 %v6573_v21, %v6573_v21  ;;  %3395 = vst [vmem:[%s7227_s5 + $0x60] sm:$0xff] %v6576_v49 }
 0x392   :  { %v5067_v9 = vpop.eup %5066  ;;  %v3459_v23 = vmul.f32 %v6576_v49, %v6576_v49 }
 0x393   :  { %v3208_v20 = vadd.f32 1e-05, %v3144_v4  ;;  %v6587_v57 = vsub.f32 %v6250_v33, %v2865_v59  ;;  %3105 = vadd.xlane.f32.xlu1 %v2988_v15  ;;  %v6590_v13 = vmul.f32 %v5067_v9, %v7280_v36 }
 0x394   :  { %3535 = vadd.xlane.f32.xlu0 %v3459_v23  ;;  %v2797_v1 = vpop.xlane.xlu1 %2796  ;;  %v3044_v58 = vpop.xlane.xlu0 %3043  ;;  %v7282_v23 = vld [vmem:[#allocation12_spill] sm:$0xff] }
 0x395   :  { %7281 = vst [vmem:[#allocation11_spill] sm:$0xff] %v6590_v13  ;;  %5074 = vrsqrt.f32 %v3208_v20  ;;  %v2866_v7 = vmul.f32 0.0078125, %v2797_v1  ;;  %v3149_v62 = vmul.f32 0.0078125, %v3044_v58  ;;  %3396 = vst [vmem:[%s7227_s5 + $0x68] sm:$0xff] %v6590_v13  ;;  %v3460_v4 = vmul.f32 %v6590_v13, %v6590_v13 }
 0x396   :  { %v5069_v33 = vpop.eup %5068  ;;  %v2993_v59 = vmul.f32 %v6587_v57, %v6587_v57 }
 0x397   :  { %v6601_v15 = vsub.f32 %v6258_v50, %v2866_v7  ;;  %v3213_v9 = vadd.f32 1e-05, %v3149_v62  ;;  %3537 = vadd.xlane.f32.xlu1 %v3460_v4  ;;  %v6604_v20 = vmul.f32 %v5069_v33, %v7282_v23  ;;  %v7284_v4 = vld [vmem:[#allocation13_spill] sm:$0xff] }
 0x398   :  { %3115 = vadd.xlane.f32.xlu0 %v2993_v59  ;;  %v3046_v36 = vpop.xlane.xlu1 %3045  ;;  %v2791_v1 = vpop.xlane.xlu0 %2790 }
 0x399   :  { %5076 = vrsqrt.f32 %v3213_v9  ;;  %v3150_v58 = vmul.f32 0.0078125, %v3046_v36  ;;  %v2863_v49 = vmul.f32 0.0078125, %v2791_v1  ;;  %v2994_v13 = vmul.f32 %v6601_v15, %v6601_v15  ;;  %3401 = vst [vmem:[%s7227_s5 + $0x90] sm:$0xff] %v6604_v20 }
 0x39a   :  { %v5071_v50 = vpop.eup %5070 }
 0x39b   :  { %v3214_v7 = vadd.f32 1e-05, %v3150_v58  ;;  %v6613_v62 = vsub.f32 %v6266_v2, %v2863_v49  ;;  %3117 = vadd.xlane.f32.xlu1 %v2994_v13  ;;  %v6616_v33 = vmul.f32 %v5071_v50, %v7284_v4  ;;  %v7286_v13 = vld [vmem:[#allocation14_spill] sm:$0xff] }
 0x39c   :  { %v2793_v59 = vpop.xlane.xlu1 %2792  ;;  %v3040_v9 = vpop.xlane.xlu0 %3039 }
 0x39d   :  { %7283 = vst [vmem:[#allocation12_spill] sm:$0xff] %v6613_v62  ;;  %5078 = vrsqrt.f32 %v3214_v7  ;;  %v2864_v23 = vmul.f32 0.0078125, %v2793_v59  ;;  %v3147_v36 = vmul.f32 0.0078125, %v3040_v9  ;;  %v2991_v1 = vmul.f32 %v6613_v62, %v6613_v62  ;;  %3402 = vst [vmem:[%s7227_s5 + $0x98] sm:$0xff] %v6616_v33 }
 0x39e   :  { %v5073_v58 = vpop.eup %5072 }
 0x39f   :  { %v6625_v2 = vsub.f32 %v6274_v16, %v2864_v23  ;;  %v3211_v49 = vadd.f32 1e-05, %v3147_v36  ;;  %3111 = vadd.xlane.f32.xlu0 %v2991_v1  ;;  %v6628_v50 = vmul.f32 %v5073_v58, %v7286_v13  ;;  %v7289_v58 = vld [vmem:[#allocation15_spill] sm:$0xff] }
 0x3a0   :  { %v3042_v7 = vpop.xlane.xlu1 %3041  ;;  %v2803_v4 = vpop.xlane.xlu0 %2802 }
 0x3a1   :  { %7285 = vst [vmem:[#allocation13_spill] sm:$0xff] %v6625_v2  ;;  %7287 = vst [vmem:[#allocation14_spill] sm:$0xff] %v6628_v50  ;;  %5080 = vrsqrt.f32 %v3211_v49  ;;  %v3148_v59 = vmul.f32 0.0078125, %v3042_v7  ;;  %v2869_v9 = vmul.f32 0.0078125, %v2803_v4  ;;  %v2992_v62 = vmul.f32 %v6625_v2, %v6625_v2 }
 0x3a2   :  { %3399 = vst [vmem:[%s7227_s5 + $0x80] sm:$0xff] %v6628_v50  ;;  %v5075_v16 = vpop.eup %5074  ;;  %v3463_v23 = vmul.f32 %v6628_v50, %v6628_v50 }
 0x3a3   :  { %v3212_v36 = vadd.f32 1e-05, %v3148_v59  ;;  %v6639_v1 = vsub.f32 %v6282_v41, %v2869_v9  ;;  %3113 = vadd.xlane.f32.xlu1 %v2992_v62  ;;  %v6642_v49 = vmul.f32 %v5075_v16, %v7289_v58 }
 0x3a4   :  { %3543 = vadd.xlane.f32.xlu0 %v3463_v23  ;;  %v2805_v13 = vpop.xlane.xlu1 %2804  ;;  %v3052_v7 = vpop.xlane.xlu0 %3051  ;;  %v7291_v23 = vld [vmem:[#allocation16_spill] sm:$0xff] }
 0x3a5   :  { %7288 = vst [vmem:[#allocation20_spill] sm:$0xff] %v6639_v1  ;;  %7290 = vst [vmem:[#allocation15_spill] sm:$0xff] %v6642_v49  ;;  %5082 = vrsqrt.f32 %v3212_v36  ;;  %v2870_v4 = vmul.f32 0.0078125, %v2805_v13  ;;  %v3153_v2 = vmul.f32 0.0078125, %v3052_v7  ;;  %v3464_v59 = vmul.f32 %v6642_v49, %v6642_v49 }
 0x3a6   :  { %3400 = vst [vmem:[%s7227_s5 + $0x88] sm:$0xff] %v6642_v49  ;;  %v5077_v41 = vpop.eup %5076  ;;  %v2997_v62 = vmul.f32 %v6639_v1, %v6639_v1 }
 0x3a7   :  { %v6653_v9 = vsub.f32 %v6290_v52, %v2870_v4  ;;  %v3217_v16 = vadd.f32 1e-05, %v3153_v2  ;;  %3545 = vadd.xlane.f32.xlu1 %v3464_v59  ;;  %v3341_v36 = vmul.f32 %v5077_v41, %v7291_v23  ;;  %v7293_v4 = vld [vmem:[#allocation17_spill] sm:$0xff] }
 0x3a8   :  { %3123 = vadd.xlane.f32.xlu0 %v2997_v62  ;;  %v3054_v58 = vpop.xlane.xlu1 %3053  ;;  %v2799_v13 = vpop.xlane.xlu0 %2798 }
 0x3a9   :  { %5084 = vrsqrt.f32 %v3217_v16  ;;  %v3154_v7 = vmul.f32 0.0078125, %v3054_v58  ;;  %v2867_v50 = vmul.f32 0.0078125, %v2799_v13  ;;  %v2998_v49 = vmul.f32 %v6653_v9, %v6653_v9  ;;  %3405 = vst [vmem:[%s7227_s5 + $0xb0] sm:$0xff] %v3341_v36 }
 0x3aa   :  { %v5079_v1 = vpop.eup %5078 }
 0x3ab   :  { %v3218_v52 = vadd.f32 1e-05, %v3154_v7  ;;  %v6662_v2 = vsub.f32 %v6298_v53, %v2867_v50  ;;  %3125 = vadd.xlane.f32.xlu1 %v2998_v49  ;;  %v3342_v59 = vmul.f32 %v5079_v1, %v7293_v4  ;;  %v7295_v50 = vld [vmem:[#allocation18_spill] sm:$0xff] }
 0x3ac   :  { %v2801_v41 = vpop.xlane.xlu1 %2800  ;;  %v3048_v62 = vpop.xlane.xlu0 %3047 }
 0x3ad   :  { %7292 = vst [vmem:[#allocation16_spill] sm:$0xff] %v6662_v2  ;;  %5086 = vrsqrt.f32 %v3218_v52  ;;  %v2868_v16 = vmul.f32 0.0078125, %v2801_v41  ;;  %v3151_v23 = vmul.f32 0.0078125, %v3048_v62  ;;  %v2995_v58 = vmul.f32 %v6662_v2, %v6662_v2  ;;  %3406 = vst [vmem:[%s7227_s5 + $0xb8] sm:$0xff] %v3342_v59 }
 0x3ae   :  { %v5081_v13 = vpop.eup %5080  ;;  %v3465_v52 = vmul.f32 %v6604_v20, %v6604_v20 }
 0x3af   :  { %v6671_v7 = vsub.f32 %v6306_v14, %v2868_v16  ;;  %v3215_v53 = vadd.f32 1e-05, %v3151_v23  ;;  %3119 = vadd.xlane.f32.xlu0 %v2995_v58  ;;  %v3339_v1 = vmul.f32 %v5081_v13, %v7295_v50  ;;  %v7296_v58 = vld [vmem:[#allocation19_spill] sm:$0xff] }
 0x3b0   :  { %v3050_v49 = vpop.xlane.xlu1 %3049  ;;  %v3060_v4 = vpop.xlane.xlu0 %3059 }
 0x3b1   :  { %7294 = vst [vmem:[#allocation17_spill] sm:$0xff] %v6671_v7  ;;  %5088 = vrsqrt.f32 %v3215_v53  ;;  %v3152_v41 = vmul.f32 0.0078125, %v3050_v49  ;;  %v3157_v62 = vmul.f32 0.0078125, %v3060_v4  ;;  %v2996_v2 = vmul.f32 %v6671_v7, %v6671_v7  ;;  %3403 = vst [vmem:[%s7227_s5 + $0xa0] sm:$0xff] %v3339_v1 }
 0x3b2   :  { %v5083_v14 = vpop.eup %5082  ;;  %v3466_v53 = vmul.f32 %v6616_v33, %v6616_v33  ;;  %v3467_v7 = vmul.f32 %v3339_v1, %v3339_v1 }
 0x3b3   :  { %v3216_v16 = vadd.f32 1e-05, %v3152_v41  ;;  %v3221_v23 = vadd.f32 1e-05, %v3157_v62  ;;  %3121 = vadd.xlane.f32.xlu1 %v2996_v2  ;;  %3547 = vadd.xlane.f32.xlu0 %v3465_v52  ;;  %v6682_v13 = vmul.f32 %v5083_v14, %v7296_v58  ;;  %v3469_v58 = vmul.f32 %v3341_v36, %v3341_v36 }
 0x3b4   :  { %v3062_v50 = vpop.xlane.xlu1 %3061  ;;  %v3056_v20 = vpop.xlane.xlu0 %3055 }
 0x3b5   :  { %5090 = vrsqrt.f32 %v3216_v16  ;;  %v3158_v49 = vmul.f32 0.0078125, %v3062_v50  ;;  %v3155_v4 = vmul.f32 0.0078125, %v3056_v20  ;;  %3404 = vst [vmem:[%s7227_s5 + $0xa8] sm:$0xff] %v6682_v13  ;;  %v3470_v16 = vmul.f32 %v3342_v59, %v3342_v59 }
 0x3b6   :  { %v5085_v41 = vpop.eup %5084  ;;  %5092 = vrsqrt.f32 %v3221_v23 }
 0x3b7   :  { %v3222_v2 = vadd.f32 1e-05, %v3158_v49  ;;  %v3219_v52 = vadd.f32 1e-05, %v3155_v4  ;;  %3549 = vadd.xlane.f32.xlu1 %v3466_v53  ;;  %3551 = vadd.xlane.f32.xlu0 %v3467_v7  ;;  %v6691_v62 = vmul.f32 %v5085_v41, %v6280_v28  ;;  %v3468_v28 = vmul.f32 %v6682_v13, %v6682_v13 }
 0x3b8   :  { %v3058_v14 = vpop.xlane.xlu1 %3057 }
 0x3b9   :  { %5094 = vrsqrt.f32 %v3222_v2  ;;  %v3156_v33 = vmul.f32 0.0078125, %v3058_v14  ;;  %3409 = vst [vmem:[%s7227_s5 + $0xd0] sm:$0xff] %v6691_v62  ;;  %v3473_v36 = vmul.f32 %v6691_v62, %v6691_v62 }
 0x3ba   :  { %v5087_v1 = vpop.eup %5086  ;;  %5096 = vrsqrt.f32 %v3219_v52 }
 0x3bb   :  { %v3220_v23 = vadd.f32 1e-05, %v3156_v33  ;;  %3557 = vadd.xlane.f32.xlu1 %v3470_v16  ;;  %3555 = vadd.xlane.f32.xlu0 %v3469_v58  ;;  %v6698_v7 = vmul.f32 %v5087_v1, %v6288_v8 }
 0x3bd   :  { %5098 = vrsqrt.f32 %v3220_v23  ;;  %3410 = vst [vmem:[%s7227_s5 + $0xd8] sm:$0xff] %v6698_v7  ;;  %v3474_v53 = vmul.f32 %v6698_v7, %v6698_v7 }
 0x3be   :  { %v5089_v59 = vpop.eup %5088 }
 0x3bf   :  { %3553 = vadd.xlane.f32.xlu1 %v3468_v28  ;;  %3563 = vadd.xlane.f32.xlu0 %v3473_v36  ;;  %v6709_v50 = vmul.f32 %v5089_v59, %v6296_v44 }
 0x3c0   :  { %v3068_v8 = vpop.xlane.xlu0 %3067 }
 0x3c1   :  { %v3161_v20 = vmul.f32 0.0078125, %v3068_v8  ;;  %v3471_v49 = vmul.f32 %v6709_v50, %v6709_v50  ;;  %3407 = vst [vmem:[%s7227_s5 + $0xc0] sm:$0xff] %v6709_v50 }
 0x3c2   :  { %v5091_v4 = vpop.eup %5090 }
 0x3c3   :  { %v5093_v41 = vpop.eup %5092  ;;  %v3225_v2 = vadd.f32 1e-05, %v3161_v20  ;;  %3565 = vadd.xlane.f32.xlu1 %v3474_v53  ;;  %3559 = vadd.xlane.f32.xlu0 %v3471_v49  ;;  %v6720_v44 = vmul.f32 %v5091_v4, %v6304_v25 }
 0x3c4   :  { %v3070_v52 = vpop.xlane.xlu1 %3069  ;;  %v3064_v14 = vpop.xlane.xlu0 %3063  ;;  %v6723_v33 = vmul.f32 %v5093_v41, %v6310_v32 }
 0x3c5   :  { %5100 = vrsqrt.f32 %v3225_v2  ;;  %v3162_v16 = vmul.f32 0.0078125, %v3070_v52  ;;  %v3159_v58 = vmul.f32 0.0078125, %v3064_v14  ;;  %v3472_v1 = vmul.f32 %v6720_v44, %v6720_v44  ;;  %3408 = vst [vmem:[%s7227_s5 + $0xc8] sm:$0xff] %v6720_v44 }
 0x3c6   :  { %v5095_v23 = vpop.eup %5094  ;;  %v3477_v25 = vmul.f32 %v6723_v33, %v6723_v33  ;;  %3413 = vst [vmem:[%s7227_s5 + $0xf0] sm:$0xff] %v6723_v33 }
 0x3c7   :  { %v5097_v32 = vpop.eup %5096  ;;  %v3226_v28 = vadd.f32 1e-05, %v3162_v16  ;;  %v3223_v36 = vadd.f32 1e-05, %v3159_v58  ;;  %3561 = vadd.xlane.f32.xlu1 %v3472_v1  ;;  %v6738_v59 = vmul.f32 %v5095_v23, %v6317_v48 }
 0x3c8   :  { %3571 = vadd.xlane.f32.xlu0 %v3477_v25  ;;  %v3066_v8 = vpop.xlane.xlu1 %3065  ;;  %v6741_v20 = vmul.f32 %v5097_v32, %v6320_v56 }
 0x3c9   :  { %5102 = vrsqrt.f32 %v3226_v28  ;;  %v3160_v53 = vmul.f32 0.0078125, %v3066_v8  ;;  %v3478_v49 = vmul.f32 %v6738_v59, %v6738_v59  ;;  %3414 = vst [vmem:[%s7227_s5 + $0xf8] sm:$0xff] %v6738_v59 }
 0x3ca   :  { %v5099_v4 = vpop.eup %5098  ;;  %5104 = vrsqrt.f32 %v3223_v36  ;;  %v3475_v48 = vmul.f32 %v6741_v20, %v6741_v20  ;;  %3411 = vst [vmem:[%s7227_s5 + $0xe0] sm:$0xff] %v6741_v20 }
 0x3cb   :  { %v3224_v56 = vadd.f32 1e-05, %v3160_v53  ;;  %3573 = vadd.xlane.f32.xlu1 %v3478_v49  ;;  %v6756_v41 = vmul.f32 %v5099_v4, %v6327_v54 }
 0x3cc   :  { %3567 = vadd.xlane.f32.xlu0 %v3475_v48 }
 0x3cd   :  { %5106 = vrsqrt.f32 %v3224_v56  ;;  %v3476_v2 = vmul.f32 %v6756_v41, %v6756_v41  ;;  %3412 = vst [vmem:[%s7227_s5 + $0xe8] sm:$0xff] %v6756_v41 }
 0x3cf   :  { %3569 = vadd.xlane.f32.xlu1 %v3476_v2 }
 0x3d0   :  { %v3076_v52 = vpop.xlane.xlu0 %3075 }
 0x3d1   :  { %v3165_v14 = vmul.f32 0.0078125, %v3076_v52 }
 0x3d2   :  { %v5101_v16 = vpop.eup %5100 }
 0x3d3   :  { %v3229_v58 = vadd.f32 1e-05, %v3165_v14  ;;  %v6765_v1 = vmul.f32 %v5101_v16, %v6332_v3 }
 0x3d4   :  { %v3078_v54 = vpop.xlane.xlu1 %3077 }
 0x3d5   :  { %5108 = vrsqrt.f32 %v3229_v58  ;;  %v3166_v23 = vmul.f32 0.0078125, %v3078_v54  ;;  %v3481_v25 = vmul.f32 %v6765_v1, %v6765_v1  ;;  %3417 = vst [vmem:[%s7227_s5 + $0x110] sm:$0xff] %v6765_v1 }
 0x3d6   :  { %v5103_v32 = vpop.eup %5102 }
 0x3d7   :  { %v5105_v28 = vpop.eup %5104  ;;  %v3230_v36 = vadd.f32 1e-05, %v3166_v23  ;;  %3579 = vadd.xlane.f32.xlu0 %v3481_v25  ;;  %v6774_v8 = vmul.f32 %v5103_v32, %v6340_v11 }
 0x3d8   :  { %v3072_v3 = vpop.xlane.xlu0 %3071  ;;  %v6777_v53 = vmul.f32 %v5105_v28, %v6337_v61 }
 0x3d9   :  { %5110 = vrsqrt.f32 %v3230_v36  ;;  %v3163_v49 = vmul.f32 0.0078125, %v3072_v3  ;;  %v3482_v4 = vmul.f32 %v6774_v8, %v6774_v8  ;;  %3418 = vst [vmem:[%s7227_s5 + $0x118] sm:$0xff] %v6774_v8 }
 0x3da   :  { %v5107_v48 = vpop.eup %5106  ;;  %v3479_v56 = vmul.f32 %v6777_v53, %v6777_v53  ;;  %3415 = vst [vmem:[%s7227_s5 + $0x100] sm:$0xff] %v6777_v53 }
 0x3db   :  { %v3227_v61 = vadd.f32 1e-05, %v3163_v49  ;;  %3581 = vadd.xlane.f32.xlu1 %v3482_v4  ;;  %v6792_v11 = vmul.f32 %v5107_v48, %v6347_v55 }
 0x3dc   :  { %3575 = vadd.xlane.f32.xlu0 %v3479_v56  ;;  %v3074_v2 = vpop.xlane.xlu1 %3073 }
 0x3dd   :  { %5112 = vrsqrt.f32 %v3227_v61  ;;  %v3164_v52 = vmul.f32 0.0078125, %v3074_v2  ;;  %v3480_v14 = vmul.f32 %v6792_v11, %v6792_v11  ;;  %3416 = vst [vmem:[%s7227_s5 + $0x108] sm:$0xff] %v6792_v11 }
 0x3df   :  { %v3228_v16 = vadd.f32 1e-05, %v3164_v52  ;;  %3577 = vadd.xlane.f32.xlu1 %v3480_v14 }
 0x3e0   :  { %v3084_v58 = vpop.xlane.xlu0 %3083 }
 0x3e1   :  { %5114 = vrsqrt.f32 %v3228_v16  ;;  %v3169_v54 = vmul.f32 0.0078125, %v3084_v58 }
 0x3e2   :  { %v5109_v23 = vpop.eup %5108 }
 0x3e3   :  { %v3233_v55 = vadd.f32 1e-05, %v3169_v54  ;;  %v6801_v25 = vmul.f32 %v5109_v23, %v6352_v39 }
 0x3e4   :  { %v3086_v32 = vpop.xlane.xlu1 %3085 }
 0x3e5   :  { %5116 = vrsqrt.f32 %v3233_v55  ;;  %v3170_v28 = vmul.f32 0.0078125, %v3086_v32  ;;  %v3516_v36 = vpop.xlane.xlu0 %3515  ;;  %v3485_v3 = vmul.f32 %v6801_v25, %v6801_v25  ;;  %3421 = vst [vmem:[%s7227_s5 + $0x130] sm:$0xff] %v6801_v25 }
 0x3e6   :  { %v5111_v49 = vpop.eup %5110  ;;  %v3641_v4 = vmax.f32 %v3516_v36, 1e-24 }
 0x3e7   :  { %v3234_v48 = vadd.f32 1e-05, %v3170_v28  ;;  %3587 = vadd.xlane.f32.xlu0 %v3485_v3  ;;  %v6810_v56 = vmul.f32 %v5111_v49, %v6357_v26 }
 0x3e8   :  { %5118 = vrsqrt.f32 %v3641_v4  ;;  %v3518_v39 = vpop.xlane.xlu1 %3517 }
 0x3e9   :  { %5120 = vrsqrt.f32 %v3234_v48  ;;  %v3642_v61 = vmax.f32 %v3518_v39, 1e-24  ;;  %v3080_v2 = vpop.xlane.xlu0 %3079  ;;  %v3486_v52 = vmul.f32 %v6810_v56, %v6810_v56  ;;  %3422 = vst [vmem:[%s7227_s5 + $0x138] sm:$0xff] %v6810_v56 }
 0x3ea   :  { %v5113_v14 = vpop.eup %5112  ;;  %v3167_v16 = vmul.f32 0.0078125, %v3080_v2 }
 0x3eb   :  { %5122 = vrsqrt.f32 %v3642_v61  ;;  %3589 = vadd.xlane.f32.xlu1 %v3486_v52  ;;  %v6819_v26 = vmul.f32 %v5113_v14, %v6362_v63 }
 0x3ec   :  { %v3231_v58 = vadd.f32 1e-05, %v3167_v16  ;;  %v3082_v54 = vpop.xlane.xlu1 %3081 }
 0x3ed   :  { %v3168_v23 = vmul.f32 0.0078125, %v3082_v54  ;;  %v3512_v55 = vpop.xlane.xlu0 %3511  ;;  %v3483_v32 = vmul.f32 %v6819_v26, %v6819_v26  ;;  %3419 = vst [vmem:[%s7227_s5 + $0x120] sm:$0xff] %v6819_v26 }
 0x3ee   :  { %v5115_v28 = vpop.eup %5114  ;;  %5124 = vrsqrt.f32 %v3231_v58  ;;  %v3639_v36 = vmax.f32 %v3512_v55, 1e-24 }
 0x3ef   :  { %v3232_v3 = vadd.f32 1e-05, %v3168_v23  ;;  %3583 = vadd.xlane.f32.xlu0 %v3483_v32  ;;  %v6828_v63 = vmul.f32 %v5115_v28, %v6367_v45 }
 0x3f0   :  { %5126 = vrsqrt.f32 %v3639_v36  ;;  %v3514_v49 = vpop.xlane.xlu1 %3513 }
 0x3f1   :  { %5128 = vrsqrt.f32 %v3232_v3  ;;  %v3640_v4 = vmax.f32 %v3514_v49, 1e-24  ;;  %v3092_v48 = vpop.xlane.xlu0 %3091  ;;  %v3484_v39 = vmul.f32 %v6828_v63, %v6828_v63  ;;  %3420 = vst [vmem:[%s7227_s5 + $0x128] sm:$0xff] %v6828_v63 }
 0x3f2   :  { %v5117_v61 = vpop.eup %5116  ;;  %v3173_v2 = vmul.f32 0.0078125, %v3092_v48 }
 0x3f3   :  { %5130 = vrsqrt.f32 %v3640_v4  ;;  %3585 = vadd.xlane.f32.xlu1 %v3484_v39  ;;  %v6837_v45 = vmul.f32 %v5117_v61, %v6372_v19 }
 0x3f4   :  { %v3237_v52 = vadd.f32 1e-05, %v3173_v2  ;;  %v3094_v14 = vpop.xlane.xlu1 %3093 }
 0x3f5   :  { %v5119_v16 = vpop.eup %5118  ;;  %v3174_v58 = vmul.f32 0.0078125, %v3094_v14  ;;  %v3524_v54 = vpop.xlane.xlu0 %3523  ;;  %v3489_v23 = vmul.f32 %v6837_v45, %v6837_v45  ;;  %3425 = vst [vmem:[%s7227_s5 + $0x150] sm:$0xff] %v6837_v45 }
 0x3f6   :  { %v5121_v55 = vpop.eup %5120  ;;  %5132 = vrsqrt.f32 %v3237_v52  ;;  %v3645_v32 = vmax.f32 %v3524_v54, 1e-24  ;;  %v3769_v3 = vmul.f32 %v5119_v16, %v6380_v27 }
 0x3f7   :  { %v3238_v28 = vadd.f32 1e-05, %v3174_v58  ;;  %3595 = vadd.xlane.f32.xlu0 %v3489_v23  ;;  %v6846_v19 = vmul.f32 %v5121_v55, %v6377_v46 }
 0x3f8   :  { %v5123_v36 = vpop.eup %5122  ;;  %5134 = vrsqrt.f32 %v3645_v32  ;;  %v3526_v49 = vpop.xlane.xlu1 %3525 }
 0x3f9   :  { %v3770_v4 = vmul.f32 %v5123_v36, %v6394_v60  ;;  %5136 = vrsqrt.f32 %v3238_v28  ;;  %v3646_v48 = vmax.f32 %v3526_v49, 1e-24  ;;  %v3088_v39 = vpop.xlane.xlu0 %3087  ;;  %v3490_v61 = vmul.f32 %v6846_v19, %v6846_v19  ;;  %3426 = vst [vmem:[%s7227_s5 + $0x158] sm:$0xff] %v6846_v19 }
 0x3fa   :  { %v3171_v46 = vmul.f32 0.0078125, %v3088_v39 }
 0x3fb   :  { %v5125_v2 = vpop.eup %5124  ;;  %v4465_v52 = vpack.c.bf16 %v3770_v4, %v3769_v3  ;;  %5138 = vrsqrt.f32 %v3646_v48  ;;  %3597 = vadd.xlane.f32.xlu1 %v3490_v61 }
 0x3fc   :  { %v3235_v27 = vadd.f32 1e-05, %v3171_v46  ;;  %v3090_v14 = vpop.xlane.xlu1 %3089  ;;  %v6857_v60 = vmul.f32 %v5125_v2, %v6391_v43 }
 0x3fd   :  { %v5127_v16 = vpop.eup %5126  ;;  %4617 = vst [vmem:[%s7228_s6 + $0x8] sm:$0xff] %v4465_v52   ;;  %v3172_v58 = vmul.f32 0.0078125, %v3090_v14  ;;  %v3520_v54 = vpop.xlane.xlu0 %3519 }
 0x3fe   :  { %v5129_v23 = vpop.eup %5128  ;;  %5140 = vrsqrt.f32 %v3235_v27  ;;  %v3643_v55 = vmax.f32 %v3520_v54, 1e-24  ;;  %v3487_v32 = vmul.f32 %v6857_v60, %v6857_v60  ;;  %3423 = vst [vmem:[%s7227_s5 + $0x140] sm:$0xff] %v6857_v60  ;;  %v3767_v3 = vmul.f32 %v5127_v16, %v6408_v30 }
 0x3ff   :  { %v3236_v43 = vadd.f32 1e-05, %v3172_v58  ;;  %v6869_v28 = vmul.f32 %v5129_v23, %v6405_v0 }
 0x400   :  { %v5131_v36 = vpop.eup %5130  ;;  %5142 = vrsqrt.f32 %v3643_v55  ;;  %3591 = vadd.xlane.f32.xlu0 %v3487_v32  ;;  %v3522_v49 = vpop.xlane.xlu1 %3521 }
 0x401   :  { %v3768_v4 = vmul.f32 %v5131_v36, %v6422_v37  ;;  %5144 = vrsqrt.f32 %v3236_v43  ;;  %v3644_v48 = vmax.f32 %v3522_v49, 1e-24  ;;  %v3100_v39 = vpop.xlane.xlu0 %3099  ;;  %v3488_v61 = vmul.f32 %v6869_v28, %v6869_v28  ;;  %3424 = vst [vmem:[%s7227_s5 + $0x148] sm:$0xff] %v6869_v28 }
 0x402   :  { %v3177_v0 = vmul.f32 0.0078125, %v3100_v39 }
 0x403   :  { %v5133_v46 = vpop.eup %5132  ;;  %v4460_v2 = vpack.c.bf16 %v3768_v4, %v3767_v3  ;;  %5146 = vrsqrt.f32 %v3644_v48  ;;  %3593 = vadd.xlane.f32.xlu1 %v3488_v61 }
 0x404   :  { %v3241_v30 = vadd.f32 1e-05, %v3177_v0  ;;  %v3102_v52 = vpop.xlane.xlu1 %3101  ;;  %v6880_v37 = vmul.f32 %v5133_v46, %v6419_v47 }
 0x405   :  { %v5135_v27 = vpop.eup %5134  ;;  %4461 = vst [vmem:[%s7228_s6] sm:$0xff] %v4460_v2   ;;  %v3178_v14 = vmul.f32 0.0078125, %v3102_v52  ;;  %v3532_v16 = vpop.xlane.xlu0 %3531 }
 0x406   :  { %v5137_v58 = vpop.eup %5136  ;;  %5148 = vrsqrt.f32 %v3241_v30  ;;  %v3649_v54 = vmax.f32 %v3532_v16, 1e-24  ;;  %v3493_v23 = vmul.f32 %v6880_v37, %v6880_v37  ;;  %3429 = vst [vmem:[%s7227_s5 + $0x170] sm:$0xff] %v6880_v37  ;;  %v3773_v43 = vmul.f32 %v5135_v27, %v6436_v42 }
 0x407   :  { %v3242_v47 = vadd.f32 1e-05, %v3178_v14  ;;  %v6892_v55 = vmul.f32 %v5137_v58, %v6433_v51 }
 0x408   :  { %v5139_v32 = vpop.eup %5138  ;;  %5150 = vrsqrt.f32 %v3649_v54  ;;  %3603 = vadd.xlane.f32.xlu0 %v3493_v23  ;;  %v3534_v36 = vpop.xlane.xlu1 %3533 }
 0x409   :  { %v3774_v3 = vmul.f32 %v5139_v32, %v6450_v35  ;;  %5152 = vrsqrt.f32 %v3242_v47  ;;  %v3650_v49 = vmax.f32 %v3534_v36, 1e-24  ;;  %v3096_v4 = vpop.xlane.xlu0 %3095  ;;  %v3494_v48 = vmul.f32 %v6892_v55, %v6892_v55  ;;  %3430 = vst [vmem:[%s7227_s5 + $0x178] sm:$0xff] %v6892_v55 }
 0x40a   :  { %v3175_v51 = vmul.f32 0.0078125, %v3096_v4 }
 0x40b   :  { %v5141_v39 = vpop.eup %5140  ;;  %v4475_v61 = vpack.c.bf16 %v3774_v3, %v3773_v43  ;;  %5154 = vrsqrt.f32 %v3650_v49  ;;  %3605 = vadd.xlane.f32.xlu1 %v3494_v48 }
 0x40c   :  { %v3239_v42 = vadd.f32 1e-05, %v3175_v51  ;;  %v3098_v0 = vpop.xlane.xlu1 %3097  ;;  %v6903_v35 = vmul.f32 %v5141_v39, %v6447_v22 }
 0x40d   :  { %v5143_v46 = vpop.eup %5142  ;;  %4619 = vst [vmem:[%s7228_s6 + $0x18] sm:$0xff] %v4475_v61   ;;  %v3176_v2 = vmul.f32 0.0078125, %v3098_v0  ;;  %v3528_v30 = vpop.xlane.xlu0 %3527 }
 0x40e   :  { %v5145_v52 = vpop.eup %5144  ;;  %5156 = vrsqrt.f32 %v3239_v42  ;;  %v3647_v27 = vmax.f32 %v3528_v30, 1e-24  ;;  %v3491_v14 = vmul.f32 %v6903_v35, %v6903_v35  ;;  %3427 = vst [vmem:[%s7227_s5 + $0x160] sm:$0xff] %v6903_v35  ;;  %v3771_v54 = vmul.f32 %v5143_v46, %v6464_v29 }
 0x40f   :  { %v3240_v22 = vadd.f32 1e-05, %v3176_v2  ;;  %v6915_v16 = vmul.f32 %v5145_v52, %v6461_v31 }
 0x410   :  { %v5147_v58 = vpop.eup %5146  ;;  %5158 = vrsqrt.f32 %v3647_v27  ;;  %3599 = vadd.xlane.f32.xlu0 %v3491_v14  ;;  %v3530_v23 = vpop.xlane.xlu1 %3529 }
 0x411   :  { %v3772_v47 = vmul.f32 %v5147_v58, %v6478_v24  ;;  %5160 = vrsqrt.f32 %v3240_v22  ;;  %v3648_v32 = vmax.f32 %v3530_v23, 1e-24  ;;  %v3108_v43 = vpop.xlane.xlu0 %3107  ;;  %v3492_v36 = vmul.f32 %v6915_v16, %v6915_v16  ;;  %3428 = vst [vmem:[%s7227_s5 + $0x168] sm:$0xff] %v6915_v16 }
 0x412   :  { %v3181_v31 = vmul.f32 0.0078125, %v3108_v43 }
 0x413   :  { %v5149_v3 = vpop.eup %5148  ;;  %v4470_v49 = vpack.c.bf16 %v3772_v47, %v3771_v54  ;;  %5162 = vrsqrt.f32 %v3648_v32  ;;  %3601 = vadd.xlane.f32.xlu1 %v3492_v36 }
 0x414   :  { %v3245_v29 = vadd.f32 1e-05, %v3181_v31  ;;  %v3110_v4 = vpop.xlane.xlu1 %3109  ;;  %v6926_v24 = vmul.f32 %v5149_v3, %v6475_v10 }
 0x415   :  { %v5151_v48 = vpop.eup %5150  ;;  %4618 = vst [vmem:[%s7228_s6 + $0x10] sm:$0xff] %v4470_v49   ;;  %v3182_v51 = vmul.f32 0.0078125, %v3110_v4  ;;  %v3540_v39 = vpop.xlane.xlu0 %3539 }
 0x416   :  { %v5153_v61 = vpop.eup %5152  ;;  %5164 = vrsqrt.f32 %v3245_v29  ;;  %v3653_v42 = vmax.f32 %v3540_v39, 1e-24  ;;  %v3497_v0 = vmul.f32 %v6926_v24, %v6926_v24  ;;  %3433 = vst [vmem:[%s7227_s5 + $0x190] sm:$0xff] %v6926_v24  ;;  %v3777_v30 = vmul.f32 %v5151_v48, %v6492_v6  ;;  %v7297_v48 = vld [vmem:[#allocation6_spill] sm:$0xff] }
 0x417   :  { %v3246_v10 = vadd.f32 1e-05, %v3182_v51  ;;  %v6938_v46 = vmul.f32 %v5153_v61, %v6489_v18  ;;  %v7298_v61 = vld [vmem:[#allocation7_spill] sm:$0xff] }
 0x418   :  { %v5155_v2 = vpop.eup %5154  ;;  %5166 = vrsqrt.f32 %v3653_v42  ;;  %3611 = vadd.xlane.f32.xlu0 %v3497_v0  ;;  %v3542_v52 = vpop.xlane.xlu1 %3541 }
 0x419   :  { %v3778_v27 = vmul.f32 %v5155_v2, %v6506_v40  ;;  %5168 = vrsqrt.f32 %v3246_v10  ;;  %v3654_v14 = vmax.f32 %v3542_v52, 1e-24  ;;  %v3104_v22 = vpop.xlane.xlu0 %3103  ;;  %v3498_v58 = vmul.f32 %v6938_v46, %v6938_v46  ;;  %3434 = vst [vmem:[%s7227_s5 + $0x198] sm:$0xff] %v6938_v46 }
 0x41a   :  { %v3179_v18 = vmul.f32 0.0078125, %v3104_v22 }
 0x41b   :  { %v5157_v54 = vpop.eup %5156  ;;  %v4485_v23 = vpack.c.bf16 %v3778_v27, %v3777_v30  ;;  %5170 = vrsqrt.f32 %v3654_v14  ;;  %3613 = vadd.xlane.f32.xlu1 %v3498_v58 }
 0x41c   :  { %v3243_v6 = vadd.f32 1e-05, %v3179_v18  ;;  %v3106_v47 = vpop.xlane.xlu1 %3105  ;;  %v6949_v40 = vmul.f32 %v5157_v54, %v6503_v34 }
 0x41d   :  { %v5159_v32 = vpop.eup %5158  ;;  %4621 = vst [vmem:[%s7228_s6 + $0x28] sm:$0xff] %v4485_v23   ;;  %v3180_v43 = vmul.f32 0.0078125, %v3106_v47  ;;  %v3536_v36 = vpop.xlane.xlu0 %3535 }
 0x41e   :  { %v5161_v31 = vpop.eup %5160  ;;  %5172 = vrsqrt.f32 %v3243_v6  ;;  %v3651_v3 = vmax.f32 %v3536_v36, 1e-24  ;;  %v3495_v49 = vmul.f32 %v6949_v40, %v6949_v40  ;;  %3431 = vst [vmem:[%s7227_s5 + $0x180] sm:$0xff] %v6949_v40  ;;  %v3775_v51 = vmul.f32 %v5159_v32, %v7297_v48  ;;  %v7299_v32 = vld [vmem:[#allocation8_spill] sm:$0xff] }
 0x41f   :  { %v3244_v34 = vadd.f32 1e-05, %v3180_v43  ;;  %v6961_v29 = vmul.f32 %v5161_v31, %v6517_v5  ;;  %v7300_v31 = vld [vmem:[#allocation9_spill] sm:$0xff] }
 0x420   :  { %v5163_v4 = vpop.eup %5162  ;;  %5174 = vrsqrt.f32 %v3651_v3  ;;  %3607 = vadd.xlane.f32.xlu0 %v3495_v49  ;;  %v3538_v39 = vpop.xlane.xlu1 %3537 }
 0x421   :  { %v3776_v42 = vmul.f32 %v5163_v4, %v7298_v61  ;;  %5176 = vrsqrt.f32 %v3244_v34  ;;  %v3652_v0 = vmax.f32 %v3538_v39, 1e-24  ;;  %v3116_v10 = vpop.xlane.xlu0 %3115  ;;  %v3496_v2 = vmul.f32 %v6961_v29, %v6961_v29  ;;  %3432 = vst [vmem:[%s7227_s5 + $0x188] sm:$0xff] %v6961_v29 }
 0x422   :  { %v3185_v5 = vmul.f32 0.0078125, %v3116_v10 }
 0x423   :  { %v5165_v30 = vpop.eup %5164  ;;  %v4480_v52 = vpack.c.bf16 %v3776_v42, %v3775_v51  ;;  %5178 = vrsqrt.f32 %v3652_v0  ;;  %3609 = vadd.xlane.f32.xlu1 %v3496_v2 }
 0x424   :  { %v3249_v27 = vadd.f32 1e-05, %v3185_v5  ;;  %v3118_v14 = vpop.xlane.xlu1 %3117  ;;  %v6972_v22 = vmul.f32 %v5165_v30, %v6531_v38 }
 0x425   :  { %v5167_v58 = vpop.eup %5166  ;;  %4620 = vst [vmem:[%s7228_s6 + $0x20] sm:$0xff] %v4480_v52   ;;  %v3186_v18 = vmul.f32 0.0078125, %v3118_v14 }
 0x426   :  { %v5169_v54 = vpop.eup %5168  ;;  %5180 = vrsqrt.f32 %v3249_v27  ;;  %v3501_v23 = vmul.f32 %v6972_v22, %v6972_v22  ;;  %3437 = vst [vmem:[%s7227_s5 + $0x1b0] sm:$0xff] %v6972_v22  ;;  %v3781_v43 = vmul.f32 %v5167_v58, %v7299_v32  ;;  %v7301_v27 = vld [vmem:[#allocation10_spill] sm:$0xff] }
 0x427   :  { %v3250_v6 = vadd.f32 1e-05, %v3186_v18  ;;  %v6984_v38 = vmul.f32 %v5169_v54, %v6545_v12  ;;  %v7302_v18 = vld [vmem:[#allocation11_spill] sm:$0xff] }
 0x428   :  { %v5171_v47 = vpop.eup %5170  ;;  %3619 = vadd.xlane.f32.xlu0 %v3501_v23  ;;  %v3112_v36 = vpop.xlane.xlu0 %3111 }
 0x429   :  { %v3782_v3 = vmul.f32 %v5171_v47, %v7300_v31  ;;  %5182 = vrsqrt.f32 %v3250_v6  ;;  %v3183_v49 = vmul.f32 0.0078125, %v3112_v36  ;;  %v3502_v34 = vmul.f32 %v6984_v38, %v6984_v38  ;;  %3438 = vst [vmem:[%s7227_s5 + $0x1b8] sm:$0xff] %v6984_v38 }
 0x42b   :  { %v5173_v4 = vpop.eup %5172  ;;  %v4495_v12 = vpack.c.bf16 %v3782_v3, %v3781_v43  ;;  %v3247_v48 = vadd.f32 1e-05, %v3183_v49  ;;  %3621 = vadd.xlane.f32.xlu1 %v3502_v34 }
 0x42c   :  { %v3114_v51 = vpop.xlane.xlu1 %3113  ;;  %v6995_v39 = vmul.f32 %v5173_v4, %v6559_v17 }
 0x42d   :  { %v5175_v61 = vpop.eup %5174  ;;  %4623 = vst [vmem:[%s7228_s6 + $0x38] sm:$0xff] %v4495_v12   ;;  %5184 = vrsqrt.f32 %v3247_v48  ;;  %v3184_v42 = vmul.f32 0.0078125, %v3114_v51  ;;  %v3544_v0 = vpop.xlane.xlu0 %3543 }
 0x42e   :  { %v5177_v10 = vpop.eup %5176  ;;  %v3655_v2 = vmax.f32 %v3544_v0, 1e-24  ;;  %v3499_v5 = vmul.f32 %v6995_v39, %v6995_v39  ;;  %3435 = vst [vmem:[%s7227_s5 + $0x1a0] sm:$0xff] %v6995_v39  ;;  %v3779_v14 = vmul.f32 %v5175_v61, %v7301_v27 }
 0x42f   :  { %v3248_v17 = vadd.f32 1e-05, %v3184_v42  ;;  %v7007_v30 = vmul.f32 %v5177_v10, %v6573_v21  ;;  %v7303_v10 = vld [vmem:[#allocation12_spill] sm:$0xff] }
 0x430   :  { %v5179_v52 = vpop.eup %5178  ;;  %5186 = vrsqrt.f32 %v3655_v2  ;;  %3615 = vadd.xlane.f32.xlu0 %v3499_v5  ;;  %v3546_v58 = vpop.xlane.xlu1 %3545 }
 0x431   :  { %v3780_v54 = vmul.f32 %v5179_v52, %v7302_v18  ;;  %5188 = vrsqrt.f32 %v3248_v17  ;;  %v3656_v23 = vmax.f32 %v3546_v58, 1e-24  ;;  %v3124_v6 = vpop.xlane.xlu0 %3123  ;;  %v3500_v47 = vmul.f32 %v7007_v30, %v7007_v30  ;;  %3436 = vst [vmem:[%s7227_s5 + $0x1a8] sm:$0xff] %v7007_v30 }
 0x432   :  { %v3189_v21 = vmul.f32 0.0078125, %v3124_v6 }
 0x433   :  { %v5181_v32 = vpop.eup %5180  ;;  %v4490_v43 = vpack.c.bf16 %v3780_v54, %v3779_v14  ;;  %5190 = vrsqrt.f32 %v3656_v23  ;;  %3617 = vadd.xlane.f32.xlu1 %v3500_v47  ;;  %v7304_v54 = vld [vmem:[#allocation13_spill] sm:$0xff] }
 0x434   :  { %v3253_v36 = vadd.f32 1e-05, %v3189_v21  ;;  %v3126_v31 = vpop.xlane.xlu1 %3125  ;;  %v7018_v3 = vmul.f32 %v5181_v32, %v6587_v57  ;;  %v7305_v32 = vld [vmem:[#allocation14_spill] sm:$0xff] }
 0x435   :  { %4622 = vst [vmem:[%s7228_s6 + $0x30] sm:$0xff] %v4490_v43   ;;  %v3190_v49 = vmul.f32 0.0078125, %v3126_v31 }
 0x436   :  { %v5183_v34 = vpop.eup %5182  ;;  %5192 = vrsqrt.f32 %v3253_v36  ;;  %v3505_v4 = vmul.f32 %v7018_v3, %v7018_v3  ;;  %3441 = vst [vmem:[%s7227_s5 + $0x1d0] sm:$0xff] %v7018_v3  ;;  %v7306_v36 = vld [vmem:[#allocation15_spill] sm:$0xff] }
 0x437   :  { %v3254_v12 = vadd.f32 1e-05, %v3190_v49  ;;  %v7030_v48 = vmul.f32 %v5183_v34, %v6601_v15 }
 0x438   :  { %3627 = vadd.xlane.f32.xlu0 %v3505_v4  ;;  %v3120_v57 = vpop.xlane.xlu0 %3119 }
 0x439   :  { %5194 = vrsqrt.f32 %v3254_v12  ;;  %v3187_v51 = vmul.f32 0.0078125, %v3120_v57  ;;  %v3506_v61 = vmul.f32 %v7030_v48, %v7030_v48  ;;  %3442 = vst [vmem:[%s7227_s5 + $0x1d8] sm:$0xff] %v7030_v48 }
 0x43a   :  { %v5185_v42 = vpop.eup %5184 }
 0x43b   :  { %v3251_v0 = vadd.f32 1e-05, %v3187_v51  ;;  %3629 = vadd.xlane.f32.xlu1 %v3506_v61  ;;  %v7039_v2 = vmul.f32 %v5185_v42, %v7303_v10  ;;  %v7307_v61 = vld [vmem:[#allocation20_spill] sm:$0xff] }
 0x43c   :  { %v3122_v15 = vpop.xlane.xlu1 %3121  ;;  %v3548_v5 = vpop.xlane.xlu0 %3547 }
 0x43d   :  { %v5187_v17 = vpop.eup %5186  ;;  %5196 = vrsqrt.f32 %v3251_v0  ;;  %v3188_v52 = vmul.f32 0.0078125, %v3122_v15  ;;  %v3657_v27 = vmax.f32 %v3548_v5, 1e-24  ;;  %v3503_v14 = vmul.f32 %v7039_v2, %v7039_v2  ;;  %3439 = vst [vmem:[%s7227_s5 + $0x1c0] sm:$0xff] %v7039_v2 }
 0x43e   :  { %v5189_v58 = vpop.eup %5188  ;;  %v3783_v43 = vmul.f32 %v5187_v17, %v7305_v32 }
 0x43f   :  { %v3252_v18 = vadd.f32 1e-05, %v3188_v52  ;;  %3623 = vadd.xlane.f32.xlu0 %v3503_v14  ;;  %v7048_v23 = vmul.f32 %v5189_v58, %v7304_v54  ;;  %5198 = vrsqrt.f32 %v3657_v27  ;;  %v7308_v54 = vld [vmem:[#allocation16_spill] sm:$0xff] }
 0x440   :  { %v5191_v6 = vpop.eup %5190  ;;  %v3550_v47 = vpop.xlane.xlu1 %3549 }
 0x441   :  { %v3552_v21 = vpop.xlane.xlu0 %3551  ;;  %v3784_v31 = vmul.f32 %v5191_v6, %v7306_v36  ;;  %5200 = vrsqrt.f32 %v3252_v18  ;;  %v3658_v49 = vmax.f32 %v3550_v47, 1e-24  ;;  %3440 = vst [vmem:[%s7227_s5 + $0x1c8] sm:$0xff] %v7048_v23  ;;  %v3504_v34 = vmul.f32 %v7048_v23, %v7048_v23 }
 0x442   :  { %v3659_v0 = vmax.f32 %v3552_v21, 1e-24 }
 0x443   :  { %v5193_v4 = vpop.eup %5192  ;;  %v4500_v12 = vpack.c.bf16 %v3784_v31, %v3783_v43  ;;  %5202 = vrsqrt.f32 %v3658_v49  ;;  %3625 = vadd.xlane.f32.xlu1 %v3504_v34  ;;  %v7309_v49 = vld [vmem:[#allocation17_spill] sm:$0xff] }
 0x444   :  { %v3558_v57 = vpop.xlane.xlu1 %3557  ;;  %v7059_v42 = vmul.f32 %v5193_v4, %v7307_v61 }
 0x445   :  { %v3556_v51 = vpop.xlane.xlu0 %3555  ;;  %4624 = vst [vmem:[%s7228_s6 + $0x40] sm:$0xff] %v4500_v12   ;;  %v3662_v10 = vmax.f32 %v3558_v57, 1e-24  ;;  %v5293_v12 = vld [vmem:[%s7227_s5 + $0x90] sm:$0xff] }
 0x446   :  { %v3661_v15 = vmax.f32 %v3556_v51, 1e-24  ;;  %v5195_v5 = vpop.eup %5194  ;;  %3445 = vst [vmem:[%s7227_s5 + $0x1f0] sm:$0xff] %v7059_v42  ;;  %v3509_v61 = vmul.f32 %v7059_v42, %v7059_v42 }
 0x447   :  { %5204 = vrsqrt.f32 %v3662_v10  ;;  %v7069_v17 = vmul.f32 %v5195_v5, %v6653_v9 }
 0x448   :  { %5206 = vrsqrt.f32 %v3661_v15  ;;  %v3554_v52 = vpop.xlane.xlu1 %3553 }
 0x449   :  { %v3564_v27 = vpop.xlane.xlu0 %3563  ;;  %5208 = vrsqrt.f32 %v3659_v0  ;;  %v3660_v14 = vmax.f32 %v3554_v52, 1e-24  ;;  %3446 = vst [vmem:[%s7227_s5 + $0x1f8] sm:$0xff] %v7069_v17  ;;  %v5294_v0 = vld [vmem:[%s7227_s5 + $0x98] sm:$0xff] }
 0x44a   :  { %v3665_v58 = vmax.f32 %v3564_v27, 1e-24  ;;  %v5197_v18 = vpop.eup %5196 }
 0x44b   :  { %5210 = vrsqrt.f32 %v3660_v14  ;;  %v7076_v6 = vmul.f32 %v5197_v18, %v7308_v54 }
 0x44c   :  { %v3566_v47 = vpop.xlane.xlu1 %3565  ;;  %v5199_v9 = vpop.eup %5198  ;;  %5212 = vrsqrt.f32 %v3665_v58 }
 0x44d   :  { %v3560_v21 = vpop.xlane.xlu0 %3559  ;;  %v3666_v32 = vmax.f32 %v3566_v47, 1e-24  ;;  %v3507_v36 = vmul.f32 %v7076_v6, %v7076_v6  ;;  %3443 = vst [vmem:[%s7227_s5 + $0x1e0] sm:$0xff] %v7076_v6  ;;  %v3785_v57 = vmul.f32 %v5293_v12, %v5199_v9  ;;  %v5295_v47 = vld [vmem:[%s7227_s5 + $0xb8] sm:$0xff] }
 0x44e   :  { %v3663_v43 = vmax.f32 %v3560_v21, 1e-24  ;;  %v5201_v31 = vpop.eup %5200 }
 0x44f   :  { %5214 = vrsqrt.f32 %v3666_v32  ;;  %3631 = vadd.xlane.f32.xlu0 %v3507_v36  ;;  %v7085_v34 = vmul.f32 %v5201_v31, %v7309_v49  ;;  %v5296_v31 = vld [vmem:[%s7227_s5 + $0xb0] sm:$0xff] }
 0x450   :  { %v5203_v4 = vpop.eup %5202  ;;  %v3562_v51 = vpop.xlane.xlu1 %3561  ;;  %5216 = vrsqrt.f32 %v3663_v43  ;;  %v3510_v43 = vmul.f32 %v7069_v17, %v7069_v17 }
 0x451   :  { %v3786_v10 = vmul.f32 %v5294_v0, %v5203_v4  ;;  %v3664_v15 = vmax.f32 %v3562_v51, 1e-24  ;;  %v3572_v5 = vpop.xlane.xlu0 %3571  ;;  %v3508_v52 = vmul.f32 %v7085_v34, %v7085_v34  ;;  %3444 = vst [vmem:[%s7227_s5 + $0x1e8] sm:$0xff] %v7085_v34 }
 0x452   :  { %v3669_v27 = vmax.f32 %v3572_v5, 1e-24 }
 0x453   :  { %v4505_v14 = vpack.c.bf16 %v3786_v10, %v3785_v57  ;;  %5218 = vrsqrt.f32 %v3664_v15  ;;  %3633 = vadd.xlane.f32.xlu1 %v3508_v52  ;;  %3635 = vadd.xlane.f32.xlu0 %v3509_v61  ;;  %v5297_v61 = vld [vmem:[%s7227_s5 + $0xa0] sm:$0xff] }
 0x454   :  { %v5205_v58 = vpop.eup %5204  ;;  %v3574_v18 = vpop.xlane.xlu1 %3573  ;;  %5220 = vrsqrt.f32 %v3669_v27 }
 0x455   :  { %v5207_v54 = vpop.eup %5206  ;;  %4625 = vst [vmem:[%s7228_s6 + $0x48] sm:$0xff] %v4505_v14   ;;  %v3790_v21 = vmul.f32 %v5295_v47, %v5205_v58  ;;  %v3670_v9 = vmax.f32 %v3574_v18, 1e-24  ;;  %v3568_v32 = vpop.xlane.xlu0 %3567 }
 0x456   :  { %v5209_v36 = vpop.eup %5208  ;;  %v3789_v49 = vmul.f32 %v5296_v31, %v5207_v54  ;;  %v3667_v4 = vmax.f32 %v3568_v32, 1e-24 }
 0x457   :  { %5222 = vrsqrt.f32 %v3670_v9  ;;  %3637 = vadd.xlane.f32.xlu1 %v3510_v43  ;;  %v3787_v0 = vmul.f32 %v5297_v61, %v5209_v36 }
 0x458   :  { %v5211_v12 = vpop.eup %5210  ;;  %v4515_v57 = vpack.c.bf16 %v3790_v21, %v3789_v49  ;;  %v3570_v51 = vpop.xlane.xlu1 %3569  ;;  %5224 = vrsqrt.f32 %v3667_v4 }
 0x459   :  { %v3788_v10 = vmul.f32 %v5211_v12, %v6682_v13  ;;  %v3668_v15 = vmax.f32 %v3570_v51, 1e-24  ;;  %v5213_v5 = vpop.eup %5212 }
 0x45a   :  { %4627 = vst [vmem:[%s7228_s6 + $0x58] sm:$0xff] %v4515_v57   ;;  %v3793_v14 = vmul.f32 %v5213_v5, %v6691_v62 }
 0x45b   :  { %v4510_v52 = vpack.c.bf16 %v3788_v10, %v3787_v0  ;;  %5226 = vrsqrt.f32 %v3668_v15 }
 0x45c   :  { %v5215_v27 = vpop.eup %5214 }
 0x45d   :  { %4626 = vst [vmem:[%s7228_s6 + $0x50] sm:$0xff] %v4510_v52   ;;  %v3794_v58 = vmul.f32 %v5215_v27, %v6698_v7  ;;  %v5217_v18 = vpop.eup %5216 }
 0x45e   :  { %v3791_v21 = vmul.f32 %v5217_v18, %v6709_v50 }
 0x45f   :  { %v4525_v13 = vpack.c.bf16 %v3794_v58, %v3793_v14 }
 0x460   :  { %v5219_v54 = vpop.eup %5218  ;;  %v3580_v47 = vpop.xlane.xlu0 %3579 }
 0x461   :  { %4629 = vst [vmem:[%s7228_s6 + $0x68] sm:$0xff] %v4525_v13   ;;  %v3792_v9 = vmul.f32 %v5219_v54, %v6720_v44  ;;  %v3673_v32 = vmax.f32 %v3580_v47, 1e-24  ;;  %v5221_v43 = vpop.eup %5220 }
 0x462   :  { %v3797_v62 = vmul.f32 %v5221_v43, %v6723_v33 }
 0x463   :  { %v4520_v36 = vpack.c.bf16 %v3792_v9, %v3791_v21  ;;  %5228 = vrsqrt.f32 %v3673_v32 }
 0x464   :  { %v5223_v31 = vpop.eup %5222  ;;  %v3582_v49 = vpop.xlane.xlu1 %3581 }
 0x465   :  { %4628 = vst [vmem:[%s7228_s6 + $0x60] sm:$0xff] %v4520_v36   ;;  %v3798_v7 = vmul.f32 %v5223_v31, %v6738_v59  ;;  %v3674_v4 = vmax.f32 %v3582_v49, 1e-24  ;;  %v3576_v12 = vpop.xlane.xlu0 %3575  ;;  %v5225_v57 = vpop.eup %5224 }
 0x466   :  { %v3671_v50 = vmax.f32 %v3576_v12, 1e-24  ;;  %v3795_v0 = vmul.f32 %v5225_v57, %v6741_v20 }
 0x467   :  { %v4535_v51 = vpack.c.bf16 %v3798_v7, %v3797_v62  ;;  %5230 = vrsqrt.f32 %v3674_v4 }
 0x468   :  { %v5227_v44 = vpop.eup %5226  ;;  %v3578_v61 = vpop.xlane.xlu1 %3577  ;;  %5232 = vrsqrt.f32 %v3671_v50 }
 0x469   :  { %4631 = vst [vmem:[%s7228_s6 + $0x78] sm:$0xff] %v4535_v51   ;;  %v3796_v10 = vmul.f32 %v5227_v44, %v6756_v41  ;;  %v3672_v33 = vmax.f32 %v3578_v61, 1e-24 }
 0x46b   :  { %v4530_v59 = vpack.c.bf16 %v3796_v10, %v3795_v0  ;;  %5234 = vrsqrt.f32 %v3672_v33 }
 0x46d   :  { %4630 = vst [vmem:[%s7228_s6 + $0x70] sm:$0xff] %v4530_v59  }
 0x470   :  { %v3588_v15 = vpop.xlane.xlu0 %3587  ;;  %v5229_v52 = vpop.eup %5228 }
 0x471   :  { %v3677_v5 = vmax.f32 %v3588_v15, 1e-24  ;;  %v3801_v58 = vmul.f32 %v5229_v52, %v6765_v1 }
 0x473   :  { %5236 = vrsqrt.f32 %v3677_v5 }
 0x474   :  { %v5231_v27 = vpop.eup %5230  ;;  %v3590_v14 = vpop.xlane.xlu1 %3589 }
 0x475   :  { %v3802_v18 = vmul.f32 %v5231_v27, %v6774_v8  ;;  %v3678_v20 = vmax.f32 %v3590_v14, 1e-24  ;;  %v5233_v41 = vpop.eup %5232 }
 0x476   :  { %v3799_v21 = vmul.f32 %v5233_v41, %v6777_v53 }
 0x477   :  { %v4545_v13 = vpack.c.bf16 %v3802_v18, %v3801_v58  ;;  %5238 = vrsqrt.f32 %v3678_v20 }
 0x478   :  { %v5235_v54 = vpop.eup %5234  ;;  %v3584_v47 = vpop.xlane.xlu0 %3583 }
 0x479   :  { %4633 = vst [vmem:[%s7228_s6 + $0x88] sm:$0xff] %v4545_v13   ;;  %v3800_v9 = vmul.f32 %v5235_v54, %v6792_v11  ;;  %v3675_v32 = vmax.f32 %v3584_v47, 1e-24 }
 0x47b   :  { %v4540_v43 = vpack.c.bf16 %v3800_v9, %v3799_v21  ;;  %5240 = vrsqrt.f32 %v3675_v32 }
 0x47c   :  { %v3586_v1 = vpop.xlane.xlu1 %3585 }
 0x47d   :  { %4632 = vst [vmem:[%s7228_s6 + $0x80] sm:$0xff] %v4540_v43   ;;  %v3676_v8 = vmax.f32 %v3586_v1, 1e-24 }
 0x47f   :  { %5242 = vrsqrt.f32 %v3676_v8 }
 0x480   :  { %v3596_v36 = vpop.xlane.xlu0 %3595  ;;  %v5237_v49 = vpop.eup %5236 }
 0x481   :  { %v3681_v31 = vmax.f32 %v3596_v36, 1e-24  ;;  %v3805_v4 = vmul.f32 %v5237_v49, %v6801_v25 }
 0x483   :  { %5244 = vrsqrt.f32 %v3681_v31 }
 0x484   :  { %v5239_v62 = vpop.eup %5238  ;;  %v3598_v7 = vpop.xlane.xlu1 %3597 }
 0x485   :  { %v3806_v53 = vmul.f32 %v5239_v62, %v6810_v56  ;;  %v3682_v11 = vmax.f32 %v3598_v7, 1e-24 }
 0x487   :  { %v4555_v12 = vpack.c.bf16 %v3806_v53, %v3805_v4  ;;  %5246 = vrsqrt.f32 %v3682_v11 }
 0x488   :  { %v5241_v50 = vpop.eup %5240 }
 0x489   :  { %4635 = vst [vmem:[%s7228_s6 + $0x98] sm:$0xff] %v4555_v12   ;;  %v3592_v57 = vpop.xlane.xlu0 %3591  ;;  %v3803_v0 = vmul.f32 %v5241_v50, %v6819_v26 }
 0x48a   :  { %v3679_v51 = vmax.f32 %v3592_v57, 1e-24 }
 0x48c   :  { %v5243_v44 = vpop.eup %5242  ;;  %v3594_v61 = vpop.xlane.xlu1 %3593  ;;  %5248 = vrsqrt.f32 %v3679_v51 }
 0x48d   :  { %v3804_v10 = vmul.f32 %v5243_v44, %v6828_v63  ;;  %v3680_v25 = vmax.f32 %v3594_v61, 1e-24 }
 0x48f   :  { %v4550_v56 = vpack.c.bf16 %v3804_v10, %v3803_v0  ;;  %5250 = vrsqrt.f32 %v3680_v25 }
 0x490   :  { %v5245_v59 = vpop.eup %5244 }
 0x491   :  { %4634 = vst [vmem:[%s7228_s6 + $0x90] sm:$0xff] %v4550_v56   ;;  %v3604_v33 = vpop.xlane.xlu0 %3603  ;;  %v3809_v27 = vmul.f32 %v5245_v59, %v6837_v45 }
 0x492   :  { %v3685_v15 = vmax.f32 %v3604_v33, 1e-24 }
 0x494   :  { %v5247_v5 = vpop.eup %5246  ;;  %v3606_v52 = vpop.xlane.xlu1 %3605  ;;  %5252 = vrsqrt.f32 %v3685_v15 }
 0x495   :  { %v3810_v14 = vmul.f32 %v5247_v5, %v6846_v19  ;;  %v3686_v26 = vmax.f32 %v3606_v52, 1e-24 }
 0x497   :  { %v4565_v63 = vpack.c.bf16 %v3810_v14, %v3809_v27  ;;  %5254 = vrsqrt.f32 %v3686_v26 }
 0x499   :  { %4637 = vst [vmem:[%s7228_s6 + $0xa8] sm:$0xff] %v4565_v63   ;;  %v3600_v58 = vpop.xlane.xlu0 %3599  ;;  %v5249_v18 = vpop.eup %5248 }
 0x49a   :  { %v3683_v20 = vmax.f32 %v3600_v58, 1e-24  ;;  %v3807_v54 = vmul.f32 %v5249_v18, %v6857_v60 }
 0x49c   :  { %v5251_v41 = vpop.eup %5250  ;;  %v3602_v13 = vpop.xlane.xlu1 %3601  ;;  %5256 = vrsqrt.f32 %v3683_v20 }
 0x49d   :  { %v3808_v47 = vmul.f32 %v5251_v41, %v6869_v28  ;;  %v3684_v45 = vmax.f32 %v3602_v13, 1e-24 }
 0x49f   :  { %v4560_v19 = vpack.c.bf16 %v3808_v47, %v3807_v54  ;;  %5258 = vrsqrt.f32 %v3684_v45 }
 0x4a1   :  { %4636 = vst [vmem:[%s7228_s6 + $0xa0] sm:$0xff] %v4560_v19   ;;  %v3612_v21 = vpop.xlane.xlu0 %3611  ;;  %v5253_v9 = vpop.eup %5252 }
 0x4a2   :  { %v3689_v32 = vmax.f32 %v3612_v21, 1e-24  ;;  %v3813_v8 = vmul.f32 %v5253_v9, %v6880_v37 }
 0x4a4   :  { %v5255_v43 = vpop.eup %5254  ;;  %v3614_v1 = vpop.xlane.xlu1 %3613  ;;  %5260 = vrsqrt.f32 %v3689_v32 }
 0x4a5   :  { %v3814_v36 = vmul.f32 %v5255_v43, %v6892_v55  ;;  %v3690_v60 = vmax.f32 %v3614_v1, 1e-24 }
 0x4a7   :  { %v4575_v28 = vpack.c.bf16 %v3814_v36, %v3813_v8  ;;  %5262 = vrsqrt.f32 %v3690_v60 }
 0x4a9   :  { %4639 = vst [vmem:[%s7228_s6 + $0xb8] sm:$0xff] %v4575_v28   ;;  %v3608_v31 = vpop.xlane.xlu0 %3607  ;;  %v5257_v49 = vpop.eup %5256 }
 0x4aa   :  { %v3687_v62 = vmax.f32 %v3608_v31, 1e-24  ;;  %v3811_v53 = vmul.f32 %v5257_v49, %v6903_v35 }
 0x4ac   :  { %v5259_v7 = vpop.eup %5258  ;;  %v3610_v4 = vpop.xlane.xlu1 %3609  ;;  %5264 = vrsqrt.f32 %v3687_v62 }
 0x4ad   :  { %v3812_v11 = vmul.f32 %v5259_v7, %v6915_v16  ;;  %v3688_v37 = vmax.f32 %v3610_v4, 1e-24 }
 0x4af   :  { %v4570_v55 = vpack.c.bf16 %v3812_v11, %v3811_v53  ;;  %5266 = vrsqrt.f32 %v3688_v37 }
 0x4b1   :  { %4638 = vst [vmem:[%s7228_s6 + $0xb0] sm:$0xff] %v4570_v55   ;;  %v3620_v12 = vpop.xlane.xlu0 %3619  ;;  %v5261_v57 = vpop.eup %5260 }
 0x4b2   :  { %v3693_v50 = vmax.f32 %v3620_v12, 1e-24  ;;  %v3817_v61 = vmul.f32 %v5261_v57, %v6926_v24 }
 0x4b4   :  { %v5263_v51 = vpop.eup %5262  ;;  %v3622_v44 = vpop.xlane.xlu1 %3621  ;;  %5268 = vrsqrt.f32 %v3693_v50 }
 0x4b5   :  { %v3818_v0 = vmul.f32 %v5263_v51, %v6938_v46  ;;  %v3694_v35 = vmax.f32 %v3622_v44, 1e-24 }
 0x4b7   :  { %v4585_v16 = vpack.c.bf16 %v3818_v0, %v3817_v61  ;;  %5270 = vrsqrt.f32 %v3694_v35 }
 0x4b9   :  { %4641 = vst [vmem:[%s7228_s6 + $0xc8] sm:$0xff] %v4585_v16   ;;  %v3616_v10 = vpop.xlane.xlu0 %3615  ;;  %v5265_v25 = vpop.eup %5264 }
 0x4ba   :  { %v3691_v56 = vmax.f32 %v3616_v10, 1e-24  ;;  %v3815_v15 = vmul.f32 %v5265_v25, %v6949_v40 }
 0x4bc   :  { %v5267_v33 = vpop.eup %5266  ;;  %v3618_v59 = vpop.xlane.xlu1 %3617  ;;  %5272 = vrsqrt.f32 %v3691_v56 }
 0x4bd   :  { %v3816_v5 = vmul.f32 %v5267_v33, %v6961_v29  ;;  %v3692_v24 = vmax.f32 %v3618_v59, 1e-24 }
 0x4bf   :  { %v4580_v46 = vpack.c.bf16 %v3816_v5, %v3815_v15  ;;  %5274 = vrsqrt.f32 %v3692_v24 }
 0x4c1   :  { %4640 = vst [vmem:[%s7228_s6 + $0xc0] sm:$0xff] %v4580_v46   ;;  %v3628_v52 = vpop.xlane.xlu0 %3627  ;;  %v5269_v27 = vpop.eup %5268 }
 0x4c2   :  { %v3697_v14 = vmax.f32 %v3628_v52, 1e-24  ;;  %v3821_v58 = vmul.f32 %v5269_v27, %v6972_v22 }
 0x4c4   :  { %v5271_v26 = vpop.eup %5270  ;;  %v3630_v63 = vpop.xlane.xlu1 %3629  ;;  %5276 = vrsqrt.f32 %v3697_v14 }
 0x4c5   :  { %v3822_v18 = vmul.f32 %v5271_v26, %v6984_v38  ;;  %v3698_v40 = vmax.f32 %v3630_v63, 1e-24 }
 0x4c7   :  { %v4595_v29 = vpack.c.bf16 %v3822_v18, %v3821_v58  ;;  %5278 = vrsqrt.f32 %v3698_v40 }
 0x4c8   :  { %v3624_v20 = vpop.xlane.xlu0 %3623 }
 0x4c9   :  { %4643 = vst [vmem:[%s7228_s6 + $0xd8] sm:$0xff] %v4595_v29   ;;  %v5273_v41 = vpop.eup %5272  ;;  %v3695_v13 = vmax.f32 %v3624_v20, 1e-24 }
 0x4ca   :  { %v3819_v47 = vmul.f32 %v5273_v41, %v6995_v39 }
 0x4cb   :  { %5280 = vrsqrt.f32 %v3695_v13 }
 0x4cc   :  { %v5275_v54 = vpop.eup %5274  ;;  %v3626_v19 = vpop.xlane.xlu1 %3625 }
 0x4cd   :  { %v3820_v45 = vmul.f32 %v5275_v54, %v7007_v30  ;;  %v3696_v22 = vmax.f32 %v3626_v19, 1e-24 }
 0x4cf   :  { %v4590_v38 = vpack.c.bf16 %v3820_v45, %v3819_v47  ;;  %5282 = vrsqrt.f32 %v3696_v22 }
 0x4d1   :  { %4642 = vst [vmem:[%s7228_s6 + $0xd0] sm:$0xff] %v4590_v38   ;;  %v5277_v21 = vpop.eup %5276 }
 0x4d2   :  { %v3825_v32 = vmul.f32 %v5277_v21, %v7018_v3 }
 0x4d4   :  { %v5279_v9 = vpop.eup %5278 }
 0x4d5   :  { %v3826_v43 = vmul.f32 %v5279_v9, %v7030_v48 }
 0x4d7   :  { %v4605_v1 = vpack.c.bf16 %v3826_v43, %v3825_v32 }
 0x4d8   :  { %v3632_v8 = vpop.xlane.xlu0 %3631  ;;  %v5281_v30 = vpop.eup %5280 }
 0x4d9   :  { %4645 = vst [vmem:[%s7228_s6 + $0xe8] sm:$0xff] %v4605_v1   ;;  %v3699_v39 = vmax.f32 %v3632_v8, 1e-24  ;;  %v3823_v62 = vmul.f32 %v5281_v30, %v7039_v2 }
 0x4db   :  { %5284 = vrsqrt.f32 %v3699_v39 }
 0x4dc   :  { %v3634_v36 = vpop.xlane.xlu1 %3633  ;;  %v3636_v60 = vpop.xlane.xlu0 %3635 }
 0x4dd   :  { %v5283_v28 = vpop.eup %5282  ;;  %v3700_v31 = vmax.f32 %v3634_v36, 1e-24  ;;  %v3701_v49 = vmax.f32 %v3636_v60, 1e-24 }
 0x4de   :  { %v3824_v3 = vmul.f32 %v5283_v28, %v7048_v23 }
 0x4df   :  { %5286 = vrsqrt.f32 %v3700_v31 }
 0x4e0   :  { %v4600_v48 = vpack.c.bf16 %v3824_v3, %v3823_v62  ;;  %v3638_v7 = vpop.xlane.xlu1 %3637  ;;  %5288 = vrsqrt.f32 %v3701_v49 }
 0x4e1   :  { %v3702_v4 = vmax.f32 %v3638_v7, 1e-24 }
 0x4e2   :  { %4644 = vst [vmem:[%s7228_s6 + $0xe0] sm:$0xff] %v4600_v48  }
 0x4e3   :  { %5290 = vrsqrt.f32 %v3702_v4 }
 0x4e8   :  { %v5285_v53 = vpop.eup %5284 }
 0x4e9   :  { %v3827_v37 = vmul.f32 %v5285_v53, %v7076_v6 }
 0x4ec   :  { %v5287_v11 = vpop.eup %5286 }
 0x4ed   :  { %v3828_v55 = vmul.f32 %v5287_v11, %v7085_v34  ;;  %v5289_v12 = vpop.eup %5288 }
 0x4ee   :  { %v3829_v23 = vmul.f32 %v5289_v12, %v7059_v42 }
 0x4ef   :  { %v4610_v2 = vpack.c.bf16 %v3828_v55, %v3827_v37 }
 0x4f0   :  { %v5291_v57 = vpop.eup %5290 }
 0x4f1   :  { %4646 = vst [vmem:[%s7228_s6 + $0xf0] sm:$0xff] %v4610_v2   ;;  %v3830_v50 = vmul.f32 %v5291_v57, %v7069_v17 }
 0x4f3   :  { %v4615_v51 = vpack.c.bf16 %v3830_v50, %v3829_v23 }
 0x4f5   :  { %4647 = vst [vmem:[%s7228_s6 + $0xf8] sm:$0xff] %v4615_v51  }
 0x4f6   :  { %4159 = vsyncpa [#allocation4], 1 }

// kernel: literalkg_mlp_forward.4
= control target key start
LH: loop header
LB: loop body
LE: loop exit
PB: predicated region body
PF: predicated region fallthrough
CT: control target
= control target key end

     0   :  { %v5318_v1 = vmov 0   ;;  %s7397_s0 = inlined_call_operand.vmem [shape: bf16[512,512], index: 0, kind: input, shape index: {}]   ;;  %s7398_s1 = inlined_call_operand.vmem [shape: bf16[512,128], index: 1, kind: input, shape index: {}]   ;;  %s7399_s2 = inlined_call_operand.vmem [shape: f32[512,128], index: 2, kind: input, shape index: {}]   ;;  %s7400_s3 = inlined_call_operand.vmem [shape: bf16[128,128], index: 3, kind: input, shape index: {}]   ;;  %s7401_s4 = inlined_call_operand.vmem [shape: f32[1,128], index: 4, kind: input, shape index: {}]   ;;  %s7402_s5 = inlined_call_operand.hbm [shape: f32[512,128], index: 5, kind: output, shape index: {0}]   ;;  %s7403_s6 = inlined_call_operand.vmem [shape: bf16[512,128], index: 6, kind: output, shape index: {1}]  }
   0x1   :  { %v4802_v0 = vld [vmem:[%s7398_s1 + $0x38] sm:$0xff]   ;;  %4766 = vmatprep.subr.bf16.mxu1 %v5318_v1  ;;  %1180 = vmatprep.subr.bf16.mxu0 %v5318_v1  ;;  %v4803_v2 = vld [vmem:[%s7398_s1 + $0x30] sm:$0xff]   ;;  %v4804_v3 = vld [vmem:[%s7398_s1 + $0x28] sm:$0xff]  }
   0x2   :  { %4782 = vmatpush1.bf16.msra.mxu1 %v4802_v0  ;;  %1181 = vmatpush1.bf16.msra.mxu0 %v4802_v0  ;;  %v4805_v4 = vld [vmem:[%s7398_s1 + $0x20] sm:$0xff]   ;;  %v4806_v5 = vld [vmem:[%s7398_s1 + $0x18] sm:$0xff]   ;;  %v4807_v7 = vld [vmem:[%s7398_s1 + $0x10] sm:$0xff]  }
   0x3   :  { %4767 = vmatprep.subr.bf16.mxu1 %v5318_v1  ;;  %1182 = vmatprep.subr.bf16.mxu0 %v5318_v1  ;;  %v4820_v6 = vld [vmem:[%s7397_s0 + $0x304] ss:$16 sps:$4 sm:$0xff]   ;;  %v4808_v8 = vld [vmem:[%s7398_s1 + $0x8] sm:$0xff]   ;;  %v4810_v10 = vld [vmem:[%s7398_s1 + $0x78] sm:$0xff]  }
   0x4   :  { %1404 = vmatprep.mubr.bf16.mxu1 %v4820_v6  ;;  %v4809_v9 = vld [vmem:[%s7398_s1] sm:$0xff]   ;;  %v4811_v11 = vld [vmem:[%s7398_s1 + $0x70] sm:$0xff]   ;;  %v4812_v12 = vld [vmem:[%s7398_s1 + $0x68] sm:$0xff]  }
   0x5   :  { %v4813_v13 = vld [vmem:[%s7398_s1 + $0x60] sm:$0xff]   ;;  %v4814_v15 = vld [vmem:[%s7398_s1 + $0x58] sm:$0xff]   ;;  %v4815_v16 = vld [vmem:[%s7398_s1 + $0x50] sm:$0xff]  }
   0x6   :  { %4783 = vmatpush1.bf16.msra.mxu1 %v4803_v2  ;;  %1183 = vmatpush1.bf16.msra.mxu0 %v4803_v2  ;;  %v4859_v14 = vld [vmem:[%s7397_s0 + $0x4] ss:$16 sps:$4 sm:$0xff]   ;;  %v4816_v17 = vld [vmem:[%s7398_s1 + $0x48] sm:$0xff]   ;;  %v4881_v19 = vld [vmem:[%s7400_s3 + $0x38] sm:$0xff]  }
   0x7   :  { %4768 = vmatprep.subr.bf16.mxu1 %v5318_v1  ;;  %1184 = vmatprep.subr.bf16.mxu0 %v5318_v1  ;;  %v4817_v18 = vld [vmem:[%s7398_s1 + $0x40] sm:$0xff]   ;;  %v4821_v21 = vld [vmem:[%s7398_s1 + $0xb8] sm:$0xff]   ;;  %v4900_v25 = vld [vmem:[%s7400_s3 + $0x30] sm:$0xff]  }
   0x8   :  { %1212 = vmatprep.mubr.bf16.mxu0 %v4859_v14  ;;  %v4818_v20 = vld [vmem:[%s7397_s0 + $0x300] ss:$16 sps:$4 sm:$0xff]   ;;  %v4823_v23 = vld [vmem:[%s7397_s0 + $0x324] ss:$16 sps:$4 sm:$0xff]   ;;  %v4826_v28 = vld [vmem:[%s7398_s1 + $0xa8] sm:$0xff]  }
   0x9   :  { %v4857_v22 = vld [vmem:[%s7397_s0] ss:$16 sps:$4 sm:$0xff]   ;;  %v4864_v24 = vld [vmem:[%s7397_s0 + $0x24] ss:$16 sps:$4 sm:$0xff]   ;;  %v4919_v32 = vld [vmem:[%s7400_s3 + $0x28] sm:$0xff]  }
   0xa   :  { %4784 = vmatpush1.bf16.msra.mxu1 %v4804_v3  ;;  %1185 = vmatpush1.bf16.msra.mxu0 %v4804_v3  ;;  %v4822_v26 = vld [vmem:[%s7398_s1 + $0xb0] sm:$0xff]   ;;  %v4827_v33 = vld [vmem:[%s7398_s1 + $0xa0] sm:$0xff]   ;;  %v4831_v36 = vld [vmem:[%s7398_s1 + $0x98] sm:$0xff]  }
   0xb   :  { %4769 = vmatprep.subr.bf16.mxu1 %v5318_v1  ;;  %1186 = vmatprep.subr.bf16.mxu0 %v5318_v1  ;;  %v4825_v27 = vld [vmem:[%s7397_s0 + $0x320] ss:$16 sps:$4 sm:$0xff]   ;;  %v4828_v30 = vld [vmem:[%s7397_s0 + $0x344] ss:$16 sps:$4 sm:$0xff]   ;;  %v4836_v42 = vld [vmem:[%s7398_s1 + $0x88] sm:$0xff]  }
   0xc   :  { %v4866_v29 = vld [vmem:[%s7397_s0 + $0x20] ss:$16 sps:$4 sm:$0xff]   ;;  %v4870_v31 = vld [vmem:[%s7397_s0 + $0x44] ss:$16 sps:$4 sm:$0xff]   ;;  %v4841_v49 = vld [vmem:[%s7398_s1 + $0xf8] sm:$0xff]  }
   0xd   :  { %v4830_v34 = vld [vmem:[%s7397_s0 + $0x340] ss:$16 sps:$4 sm:$0xff]   ;;  %v4833_v37 = vld [vmem:[%s7397_s0 + $0x364] ss:$16 sps:$4 sm:$0xff]   ;;  %v4846_v55 = vld [vmem:[%s7398_s1 + $0xe8] sm:$0xff]  }
   0xe   :  { %4785 = vmatpush1.bf16.msra.mxu1 %v4805_v4  ;;  %1187 = vmatpush1.bf16.msra.mxu0 %v4805_v4  ;;  %v4872_v35 = vld [vmem:[%s7397_s0 + $0x40] ss:$16 sps:$4 sm:$0xff]   ;;  %v4876_v38 = vld [vmem:[%s7397_s0 + $0x64] ss:$16 sps:$4 sm:$0xff]  }
   0xf   :  { %4770 = vmatprep.subr.bf16.mxu1 %v5318_v1  ;;  %1188 = vmatprep.subr.bf16.mxu0 %v5318_v1  ;;  %v4832_v39 = vld [vmem:[%s7398_s1 + $0x90] sm:$0xff]   ;;  %v4837_v45 = vld [vmem:[%s7398_s1 + $0x80] sm:$0xff]  }
  0x10   :  { %v4835_v40 = vld [vmem:[%s7397_s0 + $0x360] ss:$16 sps:$4 sm:$0xff]   ;;  %v4838_v43 = vld [vmem:[%s7397_s0 + $0x384] ss:$16 sps:$4 sm:$0xff]  }
  0x11   :  { %v4878_v41 = vld [vmem:[%s7397_s0 + $0x60] ss:$16 sps:$4 sm:$0xff]   ;;  %v4883_v44 = vld [vmem:[%s7397_s0 + $0x84] ss:$16 sps:$4 sm:$0xff]  }
  0x12   :  { %4786 = vmatpush1.bf16.msra.mxu1 %v4806_v5  ;;  %1189 = vmatpush1.bf16.msra.mxu0 %v4806_v5  ;;  %v4938_v46 = vld [vmem:[%s7400_s3 + $0x20] sm:$0xff]   ;;  %v4842_v52 = vld [vmem:[%s7398_s1 + $0xf0] sm:$0xff]  }
  0x13   :  { %4771 = vmatprep.subr.bf16.mxu1 %v5318_v1  ;;  %1190 = vmatprep.subr.bf16.mxu0 %v5318_v1  ;;  %v4840_v47 = vld [vmem:[%s7397_s0 + $0x380] ss:$16 sps:$4 sm:$0xff]   ;;  %v4843_v50 = vld [vmem:[%s7397_s0 + $0x3a4] ss:$16 sps:$4 sm:$0xff]  }
  0x14   :  { %v4885_v48 = vld [vmem:[%s7397_s0 + $0x80] ss:$16 sps:$4 sm:$0xff]   ;;  %v4889_v51 = vld [vmem:[%s7397_s0 + $0xa4] ss:$16 sps:$4 sm:$0xff]  }
  0x15   :  { %v4845_v53 = vld [vmem:[%s7397_s0 + $0x3a0] ss:$16 sps:$4 sm:$0xff]   ;;  %v4848_v56 = vld [vmem:[%s7397_s0 + $0x3c4] ss:$16 sps:$4 sm:$0xff]  }
  0x16   :  { %4787 = vmatpush1.bf16.msra.mxu1 %v4807_v7  ;;  %1191 = vmatpush1.bf16.msra.mxu0 %v4807_v7  ;;  %v4891_v54 = vld [vmem:[%s7397_s0 + $0xa0] ss:$16 sps:$4 sm:$0xff]   ;;  %v4895_v57 = vld [vmem:[%s7397_s0 + $0xc4] ss:$16 sps:$4 sm:$0xff]  }
  0x17   :  { %4772 = vmatprep.subr.bf16.mxu1 %v5318_v1  ;;  %1192 = vmatprep.subr.bf16.mxu0 %v5318_v1  ;;  %v4847_v58 = vld [vmem:[%s7398_s1 + $0xe0] sm:$0xff]  }
  0x1a   :  { %4788 = vmatpush1.bf16.msra.mxu1 %v4808_v8  ;;  %1193 = vmatpush1.bf16.msra.mxu0 %v4808_v8 }
  0x1b   :  { %4773 = vmatprep.subr.bf16.mxu1 %v5318_v1  ;;  %1194 = vmatprep.subr.bf16.mxu0 %v5318_v1 }
  0x1e   :  { %4789 = vmatpush1.bf16.msra.mxu1 %v4809_v9  ;;  %1195 = vmatpush1.bf16.msra.mxu0 %v4809_v9 }
  0x1f   :  { %4774 = vmatprep.subr.bf16.mxu1 %v5318_v1  ;;  %1196 = vmatprep.subr.bf16.mxu0 %v5318_v1 }
  0x22   :  { %4790 = vmatpush2.bf16.msra.mxu1 %v4810_v10  ;;  %1197 = vmatpush2.bf16.msra.mxu0 %v4810_v10 }
  0x23   :  { %4775 = vmatprep.subr.bf16.mxu1 %v5318_v1  ;;  %1198 = vmatprep.subr.bf16.mxu0 %v5318_v1 }
  0x26   :  { %4791 = vmatpush2.bf16.msra.mxu1 %v4811_v11  ;;  %1199 = vmatpush2.bf16.msra.mxu0 %v4811_v11 }
  0x27   :  { %4776 = vmatprep.subr.bf16.mxu1 %v5318_v1  ;;  %1200 = vmatprep.subr.bf16.mxu0 %v5318_v1 }
  0x2a   :  { %4792 = vmatpush2.bf16.msra.mxu1 %v4812_v12  ;;  %1201 = vmatpush2.bf16.msra.mxu0 %v4812_v12 }
  0x2b   :  { %4777 = vmatprep.subr.bf16.mxu1 %v5318_v1  ;;  %1202 = vmatprep.subr.bf16.mxu0 %v5318_v1 }
  0x2e   :  { %4793 = vmatpush2.bf16.msra.mxu1 %v4813_v13  ;;  %1203 = vmatpush2.bf16.msra.mxu0 %v4813_v13 }
  0x2f   :  { %4778 = vmatprep.subr.bf16.mxu1 %v5318_v1  ;;  %1204 = vmatprep.subr.bf16.mxu0 %v5318_v1 }
  0x32   :  { %4794 = vmatpush2.bf16.msra.mxu1 %v4814_v15  ;;  %1205 = vmatpush2.bf16.msra.mxu0 %v4814_v15 }
  0x33   :  { %4779 = vmatprep.subr.bf16.mxu1 %v5318_v1  ;;  %1206 = vmatprep.subr.bf16.mxu0 %v5318_v1 }
  0x36   :  { %4795 = vmatpush2.bf16.msra.mxu1 %v4815_v16  ;;  %1207 = vmatpush2.bf16.msra.mxu0 %v4815_v16 }
  0x37   :  { %4780 = vmatprep.subr.bf16.mxu1 %v5318_v1  ;;  %1208 = vmatprep.subr.bf16.mxu0 %v5318_v1 }
  0x3a   :  { %4796 = vmatpush2.bf16.msra.mxu1 %v4816_v17  ;;  %1209 = vmatpush2.bf16.msra.mxu0 %v4816_v17 }
  0x3b   :  { %4781 = vmatprep.subr.bf16.mxu1 %v5318_v1  ;;  %1210 = vmatprep.subr.bf16.mxu0 %v5318_v1 }
  0x3e   :  { %4797 = vmatpush2.bf16.msra.mxu1 %v4817_v18  ;;  %1211 = vmatpush2.bf16.msra.mxu0 %v4817_v18 }
  0x3f   :  { %1469 = vmatprep.subr.bf16.mxu1 %v5318_v1  ;;  %4686 = vmatprep.subr.bf16.mxu0 %v4881_v19 }
  0x41   :  { %1405 = vmatmul.mubr.bf16.vlgmr.msra.gmra.mxu1 %v4818_v20  ;;  %1213 = vmatmul.mubr.bf16.vlgmr.msra.gmra.mxu0 %v4857_v22 }
  0x42   :  { %1470 = vmatpush1.bf16.msra.mxu1 %v4821_v21  ;;  %1412 = vmatprep.mubr.bf16.mxu1 %v4823_v23 }
  0x43   :  { %1471 = vmatprep.subr.bf16.mxu1 %v5318_v1  ;;  %1220 = vmatprep.mubr.bf16.mxu0 %v4864_v24 }
  0x44   :  { %4687 = vmatpush3.bf16.msra.mxu0 %v4881_v19 }
  0x45   :  { %4688 = vmatprep.subr.bf16.mxu0 %v4900_v25 }
  0x46   :  { %1472 = vmatpush1.bf16.msra.mxu1 %v4822_v26 }
  0x47   :  { %1473 = vmatprep.subr.bf16.mxu1 %v5318_v1 }
  0x48   :  { %4689 = vmatpush3.bf16.msra.mxu0 %v4900_v25 }
  0x49   :  { %1413 = vmatmul.mubr.bf16.gmra.mxu1 %v4825_v27  ;;  %1221 = vmatmul.mubr.bf16.gmra.mxu0 %v4866_v29 }
  0x4a   :  { %1474 = vmatpush1.bf16.msra.mxu1 %v4826_v28  ;;  %1420 = vmatprep.mubr.bf16.mxu1 %v4828_v30 }
  0x4b   :  { %1475 = vmatprep.subr.bf16.mxu1 %v5318_v1  ;;  %1228 = vmatprep.mubr.bf16.mxu0 %v4870_v31 }
  0x4c   :  { %4690 = vmatprep.subr.bf16.mxu0 %v4919_v32 }
  0x4d   :  { %4691 = vmatpush3.bf16.msra.mxu0 %v4919_v32 }
  0x4e   :  { %1476 = vmatpush1.bf16.msra.mxu1 %v4827_v33  ;;  %4692 = vmatprep.subr.bf16.mxu0 %v4938_v46 }
  0x4f   :  { %1477 = vmatprep.subr.bf16.mxu1 %v5318_v1 }
  0x51   :  { %1421 = vmatmul.mubr.bf16.gmra.mxu1 %v4830_v34  ;;  %1229 = vmatmul.mubr.bf16.gmra.mxu0 %v4872_v35 }
  0x52   :  { %1478 = vmatpush1.bf16.msra.mxu1 %v4831_v36  ;;  %1428 = vmatprep.mubr.bf16.mxu1 %v4833_v37 }
  0x53   :  { %1479 = vmatprep.subr.bf16.mxu1 %v5318_v1  ;;  %1236 = vmatprep.mubr.bf16.mxu0 %v4876_v38 }
  0x54   :  { %4693 = vmatpush3.bf16.msra.mxu0 %v4938_v46 }
  0x56   :  { %1480 = vmatpush1.bf16.msra.mxu1 %v4832_v39 }
  0x57   :  { %1481 = vmatprep.subr.bf16.mxu1 %v5318_v1 }
  0x59   :  { %1429 = vmatmul.mubr.bf16.gmra.mxu1 %v4835_v40  ;;  %1237 = vmatmul.mubr.bf16.gmra.mxu0 %v4878_v41 }
  0x5a   :  { %1482 = vmatpush1.bf16.msra.mxu1 %v4836_v42  ;;  %1436 = vmatprep.mubr.bf16.mxu1 %v4838_v43 }
  0x5b   :  { %1483 = vmatprep.subr.bf16.mxu1 %v5318_v1  ;;  %1244 = vmatprep.mubr.bf16.mxu0 %v4883_v44 }
  0x5e   :  { %1484 = vmatpush1.bf16.msra.mxu1 %v4837_v45 }
  0x5f   :  { %1485 = vmatprep.subr.bf16.mxu1 %v5318_v1 }
  0x61   :  { %1437 = vmatmul.mubr.bf16.gmra.mxu1 %v4840_v47  ;;  %1245 = vmatmul.mubr.bf16.gmra.mxu0 %v4885_v48 }
  0x62   :  { %1486 = vmatpush2.bf16.msra.mxu1 %v4841_v49  ;;  %1444 = vmatprep.mubr.bf16.mxu1 %v4843_v50 }
  0x63   :  { %1487 = vmatprep.subr.bf16.mxu1 %v5318_v1  ;;  %1252 = vmatprep.mubr.bf16.mxu0 %v4889_v51 }
  0x66   :  { %1488 = vmatpush2.bf16.msra.mxu1 %v4842_v52 }
  0x67   :  { %1489 = vmatprep.subr.bf16.mxu1 %v5318_v1 }
  0x69   :  { %1445 = vmatmul.mubr.bf16.gmra.mxu1 %v4845_v53  ;;  %1253 = vmatmul.mubr.bf16.gmra.mxu0 %v4891_v54 }
  0x6a   :  { %1490 = vmatpush2.bf16.msra.mxu1 %v4846_v55  ;;  %1452 = vmatprep.mubr.bf16.mxu1 %v4848_v56 }
  0x6b   :  { %12 = vsyncpa [#allocation4], 0  ;;  %1491 = vmatprep.subr.bf16.mxu1 %v5318_v1  ;;  %1260 = vmatprep.mubr.bf16.mxu0 %v4895_v57  ;;  %v4850_v59 = vld [vmem:[%s7397_s0 + $0x3c0] ss:$16 sps:$4 sm:$0xff]   ;;  %v4851_v61 = vld [vmem:[%s7398_s1 + $0xd8] sm:$0xff]   ;;  %s5319_s7 = smov [#allocation3]  }
  0x6c   :  { %v4897_v60 = vld [vmem:[%s7397_s0 + $0xc0] ss:$16 sps:$4 sm:$0xff]   ;;  %v4853_v62 = vld [vmem:[%s7397_s0 + $0x3e4] ss:$16 sps:$4 sm:$0xff]   ;;  %v4957_v2 = vld [vmem:[%s7400_s3 + $0x18] sm:$0xff]   ;;  %s4143_s8 = sshll.u32 %s5319_s7, 4  ;;  %s4144_s8 = int_to_ptr.vmem [resolvable:$true] %s4143_s8 }
  0x6d   :  { %v4902_v63 = vld [vmem:[%s7397_s0 + $0xe4] ss:$16 sps:$4 sm:$0xff]   ;;  %4694 = vmatprep.subr.bf16.mxu0 %v4957_v2  ;;  %v4855_v3 = vld [vmem:[%s7397_s0 + $0x3e0] ss:$16 sps:$4 sm:$0xff]   ;;  %v4856_v5 = vld [vmem:[%s7398_s1 + $0xc8] sm:$0xff]   ;;  %s5296_s9 = scalar_lea.vmem %s4144_s8, 8192  ;;  %p5301_p1 = scmp.lt.s32.totalorder %s4144_s8, %s4144_s8 }
  0x6e   :  { %1492 = vmatpush2.bf16.msra.mxu1 %v4847_v58  ;;  %v4852_v0 = vld [vmem:[%s7398_s1 + $0xd0] sm:$0xff]   ;;  %4695 = vmatpush3.bf16.msra.mxu0 %v4957_v2  ;;  %v4863_v6 = vld [vmem:[%s7397_s0 + $0xc] ss:$16 sps:$4 sm:$0xff]   ;;  %v4860_v8 = vld [vmem:[%s7398_s1 + $0xc0] sm:$0xff]   ;;  %p5297_p0 = scmp.ne.s32.totalorder %s4144_s8, %s5296_s9  ;;  %p5302_p2 = scmp.lt.s32.totalorder %s5296_s9, %s5296_s9 }
  0x6f   :  { %1493 = vmatprep.subr.bf16.mxu1 %v5318_v1  ;;  %v4904_v4 = vld [vmem:[%s7397_s0 + $0xe0] ss:$16 sps:$4 sm:$0xff]   ;;  %v4908_v7 = vld [vmem:[%s7397_s0 + $0x104] ss:$16 sps:$4 sm:$0xff]   ;;  %v4861_v9 = vld [vmem:[%s7397_s0 + $0x8] ss:$16 sps:$4 sm:$0xff]  }
  0x70   :  { %v4910_v10 = vld [vmem:[%s7397_s0 + $0x100] ss:$16 sps:$4 sm:$0xff]   ;;  %v4867_v11 = vld [vmem:[%s7397_s0 + $0x2c] ss:$16 sps:$4 sm:$0xff]   ;;  %v4914_v12 = vld [vmem:[%s7397_s0 + $0x124] ss:$16 sps:$4 sm:$0xff]   ;;  %p5303_p3 = por %p5302_p2, %p5301_p1 }
  0x71   :  { %1453 = vmatmul.mubr.bf16.gmra.mxu1 %v4850_v59  ;;  %1261 = vmatmul.mubr.bf16.gmra.mxu0 %v4897_v60  ;;  %v4916_v13 = vld [vmem:[%s7397_s0 + $0x120] ss:$16 sps:$4 sm:$0xff]   ;;  %v4873_v14 = vld [vmem:[%s7397_s0 + $0x4c] ss:$16 sps:$4 sm:$0xff]   ;;  %v4921_v15 = vld [vmem:[%s7397_s0 + $0x144] ss:$16 sps:$4 sm:$0xff]  }
  0x72   :  { %1494 = vmatpush2.bf16.msra.mxu1 %v4851_v61  ;;  %1460 = vmatprep.mubr.bf16.mxu1 %v4853_v62  ;;  %v4875_v16 = vld [vmem:[%s7397_s0 + $0x48] ss:$16 sps:$4 sm:$0xff]   ;;  %v4923_v17 = vld [vmem:[%s7397_s0 + $0x140] ss:$16 sps:$4 sm:$0xff]   ;;  %v4879_v18 = vld [vmem:[%s7397_s0 + $0x6c] ss:$16 sps:$4 sm:$0xff]   ;;  %p5304_p4 = pnand %p5303_p3, %p5297_p0 }
  0x73   :  { %1495 = vmatprep.subr.bf16.mxu1 %v5318_v1  ;;  %1268 = vmatprep.mubr.bf16.mxu0 %v4902_v63  ;;  %v4927_v19 = vld [vmem:[%s7397_s0 + $0x164] ss:$16 sps:$4 sm:$0xff]   ;;  %v4882_v21 = vld [vmem:[%s7397_s0 + $0x68] ss:$16 sps:$4 sm:$0xff]   ;;  %v4929_v22 = vld [vmem:[%s7397_s0 + $0x160] ss:$16 sps:$4 sm:$0xff]  }
  0x74   :  { %v4976_v20 = vld [vmem:[%s7400_s3 + $0x10] sm:$0xff]   ;;  %v4886_v23 = vld [vmem:[%s7397_s0 + $0x8c] ss:$16 sps:$4 sm:$0xff]   ;;  %v4888_v25 = vld [vmem:[%s7397_s0 + $0x88] ss:$16 sps:$4 sm:$0xff]  }
  0x75   :  { %4696 = vmatprep.subr.bf16.mxu0 %v4976_v20  ;;  %v4933_v24 = vld [vmem:[%s7397_s0 + $0x184] ss:$16 sps:$4 sm:$0xff]   ;;  %v4935_v26 = vld [vmem:[%s7397_s0 + $0x180] ss:$16 sps:$4 sm:$0xff]   ;;  %v4892_v27 = vld [vmem:[%s7397_s0 + $0xac] ss:$16 sps:$4 sm:$0xff]  }
  0x76   :  { %1496 = vmatpush2.bf16.msra.mxu1 %v4852_v0  ;;  %4697 = vmatpush3.bf16.msra.mxu0 %v4976_v20  ;;  %v4940_v28 = vld [vmem:[%s7397_s0 + $0x1a4] ss:$16 sps:$4 sm:$0xff]   ;;  %v4894_v29 = vld [vmem:[%s7397_s0 + $0xa8] ss:$16 sps:$4 sm:$0xff]   ;;  %v4942_v30 = vld [vmem:[%s7397_s0 + $0x1a0] ss:$16 sps:$4 sm:$0xff]  }
  0x77   :  { %1497 = vmatprep.subr.bf16.mxu1 %v5318_v1  ;;  %v4898_v31 = vld [vmem:[%s7397_s0 + $0xcc] ss:$16 sps:$4 sm:$0xff]   ;;  %v4946_v32 = vld [vmem:[%s7397_s0 + $0x1c4] ss:$16 sps:$4 sm:$0xff]   ;;  %v4901_v34 = vld [vmem:[%s7397_s0 + $0xc8] ss:$16 sps:$4 sm:$0xff]  }
  0x78   :  { %v4996_v33 = vld [vmem:[%s7400_s3 + $0x8] sm:$0xff]   ;;  %v4948_v35 = vld [vmem:[%s7397_s0 + $0x1c0] ss:$16 sps:$4 sm:$0xff]   ;;  %v4952_v37 = vld [vmem:[%s7397_s0 + $0x1e4] ss:$16 sps:$4 sm:$0xff]  }
  0x79   :  { %1461 = vmatmul.mubr.bf16.gmra.mxu1 %v4855_v3  ;;  %1269 = vmatmul.mubr.bf16.gmra.mxu0 %v4904_v4  ;;  %v4905_v36 = vld [vmem:[%s7397_s0 + $0xec] ss:$16 sps:$4 sm:$0xff]   ;;  %v4907_v38 = vld [vmem:[%s7397_s0 + $0xe8] ss:$16 sps:$4 sm:$0xff]   ;;  %v4954_v39 = vld [vmem:[%s7397_s0 + $0x1e0] ss:$16 sps:$4 sm:$0xff]  }
  0x7a   :  { %1498 = vmatpush2.bf16.msra.mxu1 %v4856_v5  ;;  %1501 = vmatprep.mubr.bf16.mxu1 %v4863_v6  ;;  %v4911_v40 = vld [vmem:[%s7397_s0 + $0x10c] ss:$16 sps:$4 sm:$0xff]   ;;  %v4959_v41 = vld [vmem:[%s7397_s0 + $0x204] ss:$16 sps:$4 sm:$0xff]   ;;  %v4913_v42 = vld [vmem:[%s7397_s0 + $0x108] ss:$16 sps:$4 sm:$0xff]  }
  0x7b   :  { %1499 = vmatprep.subr.bf16.mxu1 %v5318_v1  ;;  %1276 = vmatprep.mubr.bf16.mxu0 %v4908_v7  ;;  %v4869_v1 = vld [vmem:[%s7397_s0 + $0x28] ss:$16 sps:$4 sm:$0xff]   ;;  %v4961_v43 = vld [vmem:[%s7397_s0 + $0x200] ss:$16 sps:$4 sm:$0xff]   ;;  %v4917_v44 = vld [vmem:[%s7397_s0 + $0x12c] ss:$16 sps:$4 sm:$0xff]  }
  0x7c   :  { %4698 = vmatprep.subr.bf16.mxu0 %v4996_v33  ;;  %v4965_v45 = vld [vmem:[%s7397_s0 + $0x224] ss:$16 sps:$4 sm:$0xff]   ;;  %v4920_v47 = vld [vmem:[%s7397_s0 + $0x128] ss:$16 sps:$4 sm:$0xff]   ;;  %v4967_v48 = vld [vmem:[%s7397_s0 + $0x220] ss:$16 sps:$4 sm:$0xff]  }
  0x7d   :  { %4699 = vmatpush3.bf16.msra.mxu0 %v4996_v33  ;;  %v5012_v46 = vld [vmem:[%s7400_s3] sm:$0xff]   ;;  %v4924_v49 = vld [vmem:[%s7397_s0 + $0x14c] ss:$16 sps:$4 sm:$0xff]   ;;  %v4926_v51 = vld [vmem:[%s7397_s0 + $0x148] ss:$16 sps:$4 sm:$0xff]  }
  0x7e   :  { %1500 = vmatpush2.bf16.msra.mxu1 %v4860_v8  ;;  %4700 = vmatprep.subr.bf16.mxu0 %v5012_v46  ;;  %v4971_v50 = vld [vmem:[%s7397_s0 + $0x244] ss:$16 sps:$4 sm:$0xff]   ;;  %v4973_v52 = vld [vmem:[%s7397_s0 + $0x240] ss:$16 sps:$4 sm:$0xff]   ;;  %v4930_v53 = vld [vmem:[%s7397_s0 + $0x16c] ss:$16 sps:$4 sm:$0xff]  }
  0x7f   :  { %v4978_v54 = vld [vmem:[%s7397_s0 + $0x264] ss:$16 sps:$4 sm:$0xff]   ;;  %v4932_v55 = vld [vmem:[%s7397_s0 + $0x168] ss:$16 sps:$4 sm:$0xff]   ;;  %v4980_v56 = vld [vmem:[%s7397_s0 + $0x260] ss:$16 sps:$4 sm:$0xff]  }
  0x80   :  { %v4936_v57 = vld [vmem:[%s7397_s0 + $0x18c] ss:$16 sps:$4 sm:$0xff]   ;;  %v4984_v58 = vld [vmem:[%s7397_s0 + $0x284] ss:$16 sps:$4 sm:$0xff]   ;;  %v4939_v59 = vld [vmem:[%s7397_s0 + $0x188] ss:$16 sps:$4 sm:$0xff]  }
  0x81   :  { %1502 = vmatmul.mubr.bf16.vlgmr.msra.gmra.mxu1 %v4861_v9  ;;  %1277 = vmatmul.mubr.bf16.gmra.mxu0 %v4910_v10  ;;  %v4986_v60 = vld [vmem:[%s7397_s0 + $0x280] ss:$16 sps:$4 sm:$0xff]   ;;  %v4943_v61 = vld [vmem:[%s7397_s0 + $0x1ac] ss:$16 sps:$4 sm:$0xff]   ;;  %v4990_v62 = vld [vmem:[%s7397_s0 + $0x2a4] ss:$16 sps:$4 sm:$0xff]  }
  0x82   :  { %1509 = vmatprep.mubr.bf16.mxu1 %v4867_v11  ;;  %1284 = vmatprep.mubr.bf16.mxu0 %v4914_v12  ;;  %v4945_v63 = vld [vmem:[%s7397_s0 + $0x1a8] ss:$16 sps:$4 sm:$0xff]   ;;  %v4992_v0 = vld [vmem:[%s7397_s0 + $0x2a0] ss:$16 sps:$4 sm:$0xff]   ;;  %v4949_v2 = vld [vmem:[%s7397_s0 + $0x1cc] ss:$16 sps:$4 sm:$0xff]  }
  0x83   :  { %4701 = vmatpush3.bf16.msra.mxu0 %v5012_v46  ;;  %v4997_v3 = vld [vmem:[%s7397_s0 + $0x2c4] ss:$16 sps:$4 sm:$0xff]   ;;  %v4951_v4 = vld [vmem:[%s7397_s0 + $0x1c8] ss:$16 sps:$4 sm:$0xff]   ;;  %v4999_v5 = vld [vmem:[%s7397_s0 + $0x2c0] ss:$16 sps:$4 sm:$0xff]  }
  0x84   :  { %v4955_v6 = vld [vmem:[%s7397_s0 + $0x1ec] ss:$16 sps:$4 sm:$0xff]   ;;  %v5003_v7 = vld [vmem:[%s7397_s0 + $0x2e4] ss:$16 sps:$4 sm:$0xff]   ;;  %v4958_v8 = vld [vmem:[%s7397_s0 + $0x1e8] ss:$16 sps:$4 sm:$0xff]  }
  0x85   :  { %v5005_v9 = vld [vmem:[%s7397_s0 + $0x2e0] ss:$16 sps:$4 sm:$0xff]   ;;  %v4962_v10 = vld [vmem:[%s7397_s0 + $0x20c] ss:$16 sps:$4 sm:$0xff]   ;;  %v4964_v11 = vld [vmem:[%s7397_s0 + $0x208] ss:$16 sps:$4 sm:$0xff]  }
  0x86   :  { %v4968_v12 = vld [vmem:[%s7397_s0 + $0x22c] ss:$16 sps:$4 sm:$0xff]  }
  0x89   :  { %1510 = vmatmul.mubr.bf16.gmra.mxu1 %v4869_v1  ;;  %1285 = vmatmul.mubr.bf16.gmra.mxu0 %v4916_v13 }
  0x8a   :  { %1517 = vmatprep.mubr.bf16.mxu1 %v4873_v14  ;;  %1292 = vmatprep.mubr.bf16.mxu0 %v4921_v15 }
  0x91   :  { %1518 = vmatmul.mubr.bf16.gmra.mxu1 %v4875_v16  ;;  %1293 = vmatmul.mubr.bf16.gmra.mxu0 %v4923_v17  ;;  %v4970_v17 = vld [vmem:[%s7397_s0 + $0x228] ss:$16 sps:$4 sm:$0xff]  }
  0x92   :  { %1525 = vmatprep.mubr.bf16.mxu1 %v4879_v18  ;;  %1300 = vmatprep.mubr.bf16.mxu0 %v4927_v19  ;;  %v4974_v19 = vld [vmem:[%s7397_s0 + $0x24c] ss:$16 sps:$4 sm:$0xff]  }
  0x99   :  { %1526 = vmatmul.mubr.bf16.gmra.mxu1 %v4882_v21  ;;  %1301 = vmatmul.mubr.bf16.gmra.mxu0 %v4929_v22 }
  0x9a   :  { %1533 = vmatprep.mubr.bf16.mxu1 %v4886_v23  ;;  %1308 = vmatprep.mubr.bf16.mxu0 %v4933_v24 }
  0xa1   :  { %1534 = vmatmul.mubr.bf16.gmra.mxu1 %v4888_v25  ;;  %1309 = vmatmul.mubr.bf16.gmra.mxu0 %v4935_v26 }
  0xa2   :  { %1541 = vmatprep.mubr.bf16.mxu1 %v4892_v27  ;;  %1316 = vmatprep.mubr.bf16.mxu0 %v4940_v28  ;;  %v4977_v27 = vld [vmem:[%s7397_s0 + $0x248] ss:$16 sps:$4 sm:$0xff]  }
  0xa9   :  { %1542 = vmatmul.mubr.bf16.gmra.mxu1 %v4894_v29  ;;  %1317 = vmatmul.mubr.bf16.gmra.mxu0 %v4942_v30  ;;  %v4981_v29 = vld [vmem:[%s7397_s0 + $0x26c] ss:$16 sps:$4 sm:$0xff]  }
  0xaa   :  { %1549 = vmatprep.mubr.bf16.mxu1 %v4898_v31  ;;  %1324 = vmatprep.mubr.bf16.mxu0 %v4946_v32 }
  0xb1   :  { %1550 = vmatmul.mubr.bf16.gmra.mxu1 %v4901_v34  ;;  %1325 = vmatmul.mubr.bf16.gmra.mxu0 %v4948_v35 }
  0xb2   :  { %1557 = vmatprep.mubr.bf16.mxu1 %v4905_v36  ;;  %1332 = vmatprep.mubr.bf16.mxu0 %v4952_v37  ;;  %v4983_v37 = vld [vmem:[%s7397_s0 + $0x268] ss:$16 sps:$4 sm:$0xff]  }
  0xb9   :  { %1558 = vmatmul.mubr.bf16.gmra.mxu1 %v4907_v38  ;;  %1333 = vmatmul.mubr.bf16.gmra.mxu0 %v4954_v39  ;;  %v4989_v39 = vld [vmem:[%s7397_s0 + $0x28c] ss:$16 sps:$4 sm:$0xff]  }
  0xba   :  { %1565 = vmatprep.mubr.bf16.mxu1 %v4911_v40  ;;  %1340 = vmatprep.mubr.bf16.mxu0 %v4959_v41 }
  0xc1   :  { %1566 = vmatmul.mubr.bf16.gmra.mxu1 %v4913_v42  ;;  %1341 = vmatmul.mubr.bf16.gmra.mxu0 %v4961_v43 }
  0xc2   :  { %1573 = vmatprep.mubr.bf16.mxu1 %v4917_v44  ;;  %1348 = vmatprep.mubr.bf16.mxu0 %v4965_v45 }
  0xc9   :  { %1574 = vmatmul.mubr.bf16.gmra.mxu1 %v4920_v47  ;;  %1349 = vmatmul.mubr.bf16.gmra.mxu0 %v4967_v48  ;;  %v4987_v47 = vld [vmem:[%s7397_s0 + $0x288] ss:$16 sps:$4 sm:$0xff]  }
  0xca   :  { %1581 = vmatprep.mubr.bf16.mxu1 %v4924_v49  ;;  %1356 = vmatprep.mubr.bf16.mxu0 %v4971_v50  ;;  %v4995_v49 = vld [vmem:[%s7397_s0 + $0x2ac] ss:$16 sps:$4 sm:$0xff]  }
  0xd1   :  { %1582 = vmatmul.mubr.bf16.gmra.mxu1 %v4926_v51  ;;  %1357 = vmatmul.mubr.bf16.gmra.mxu0 %v4973_v52 }
  0xd2   :  { %1589 = vmatprep.mubr.bf16.mxu1 %v4930_v53  ;;  %1364 = vmatprep.mubr.bf16.mxu0 %v4978_v54 }
  0xd9   :  { %1590 = vmatmul.mubr.bf16.gmra.mxu1 %v4932_v55  ;;  %1365 = vmatmul.mubr.bf16.gmra.mxu0 %v4980_v56 }
  0xda   :  { %1597 = vmatprep.mubr.bf16.mxu1 %v4936_v57  ;;  %1372 = vmatprep.mubr.bf16.mxu0 %v4984_v58  ;;  %v4993_v57 = vld [vmem:[%s7397_s0 + $0x2a8] ss:$16 sps:$4 sm:$0xff]  }
  0xe1   :  { %1598 = vmatmul.mubr.bf16.gmra.mxu1 %v4939_v59  ;;  %1373 = vmatmul.mubr.bf16.gmra.mxu0 %v4986_v60  ;;  %v5002_v59 = vld [vmem:[%s7397_s0 + $0x2cc] ss:$16 sps:$4 sm:$0xff]  }
  0xe2   :  { %1605 = vmatprep.mubr.bf16.mxu1 %v4943_v61  ;;  %1380 = vmatprep.mubr.bf16.mxu0 %v4990_v62 }
  0xe9   :  { %1606 = vmatmul.mubr.bf16.gmra.mxu1 %v4945_v63  ;;  %1381 = vmatmul.mubr.bf16.gmra.mxu0 %v4992_v0 }
  0xea   :  { %1613 = vmatprep.mubr.bf16.mxu1 %v4949_v2  ;;  %1388 = vmatprep.mubr.bf16.mxu0 %v4997_v3 }
  0xf1   :  { %1614 = vmatmul.mubr.bf16.gmra.mxu1 %v4951_v4  ;;  %1389 = vmatmul.mubr.bf16.gmra.mxu0 %v4999_v5  ;;  %v5000_v4 = vld [vmem:[%s7397_s0 + $0x2c8] ss:$16 sps:$4 sm:$0xff]  }
  0xf2   :  { %1621 = vmatprep.mubr.bf16.mxu1 %v4955_v6  ;;  %1396 = vmatprep.mubr.bf16.mxu0 %v5003_v7  ;;  %v5008_v6 = vld [vmem:[%s7397_s0 + $0x2ec] ss:$16 sps:$4 sm:$0xff]  }
  0xf9   :  { %1622 = vmatmul.mubr.bf16.gmra.mxu1 %v4958_v8  ;;  %1397 = vmatmul.mubr.bf16.gmra.mxu0 %v5005_v9 }
  0xfa   :  { %1629 = vmatprep.mubr.bf16.mxu1 %v4962_v10 }
 0x101   :  { %v5822_v1 = vpop.f32.mrf.mxu1  ;;  %1630 = vmatmul.mubr.bf16.gmra.mxu1 %v4964_v11  ;;  %v5824_v13 = vpop.f32.mrf.mxu0 }
 0x102   :  { %1637 = vmatprep.mubr.bf16.mxu1 %v4968_v12 }
 0x103   :  { %v1408_v14 = vpop.f32.mrf.mxu1  ;;  %v1216_v15 = vpop.f32.mrf.mxu0 }
 0x104   :  { %v5006_v15 = vld [vmem:[%s7397_s0 + $0x2e8] ss:$16 sps:$4 sm:$0xff]  }
 0x105   :  { %v5826_v16 = vpop.f32.mrf.mxu1  ;;  %v5831_v18 = vpop.f32.mrf.mxu0 }
 0x107   :  { %v1411_v20 = vpop.f32.mrf.mxu1  ;;  %v1219_v21 = vpop.f32.mrf.mxu0 }
 0x109   :  { %v5836_v22 = vpop.f32.mrf.mxu1  ;;  %1638 = vmatmul.mubr.bf16.gmra.mxu1 %v4970_v17  ;;  %v5838_v23 = vpop.f32.mrf.mxu0 }
 0x10a   :  { %1645 = vmatprep.mubr.bf16.mxu1 %v4974_v19  ;;  %v5011_v19 = vld [vmem:[%s7397_s0 + $0x30c] ss:$16 sps:$4 sm:$0xff]  }
 0x10b   :  { %v1416_v24 = vpop.f32.mrf.mxu1  ;;  %v1224_v25 = vpop.f32.mrf.mxu0 }
 0x10d   :  { %v5840_v26 = vpop.f32.mrf.mxu1  ;;  %v5845_v28 = vpop.f32.mrf.mxu0 }
 0x10f   :  { %v1419_v30 = vpop.f32.mrf.mxu1  ;;  %v1227_v31 = vpop.f32.mrf.mxu0 }
 0x110   :  { %v5009_v31 = vld [vmem:[%s7397_s0 + $0x308] ss:$16 sps:$4 sm:$0xff]  }
 0x111   :  { %v5850_v32 = vpop.f32.mrf.mxu1  ;;  %1646 = vmatmul.mubr.bf16.gmra.mxu1 %v4977_v27  ;;  %v5852_v33 = vpop.f32.mrf.mxu0 }
 0x112   :  { %1653 = vmatprep.mubr.bf16.mxu1 %v4981_v29 }
 0x113   :  { %v1424_v34 = vpop.f32.mrf.mxu1  ;;  %v1232_v35 = vpop.f32.mrf.mxu0 }
 0x114   :  { %v5015_v35 = vld [vmem:[%s7397_s0 + $0x32c] ss:$16 sps:$4 sm:$0xff]  }
 0x115   :  { %v5854_v36 = vpop.f32.mrf.mxu1  ;;  %v5859_v38 = vpop.f32.mrf.mxu0 }
 0x117   :  { %v1427_v40 = vpop.f32.mrf.mxu1  ;;  %v1235_v41 = vpop.f32.mrf.mxu0 }
 0x119   :  { %v5864_v42 = vpop.f32.mrf.mxu1  ;;  %1654 = vmatmul.mubr.bf16.gmra.mxu1 %v4983_v37  ;;  %v5866_v43 = vpop.f32.mrf.mxu0 }
 0x11a   :  { %1661 = vmatprep.mubr.bf16.mxu1 %v4989_v39 }
 0x11b   :  { %v1432_v44 = vpop.f32.mrf.mxu1  ;;  %v1240_v45 = vpop.f32.mrf.mxu0 }
 0x11d   :  { %v5868_v46 = vpop.f32.mrf.mxu1  ;;  %v5873_v48 = vpop.f32.mrf.mxu0 }
 0x11f   :  { %v1435_v50 = vpop.f32.mrf.mxu1  ;;  %v1243_v51 = vpop.f32.mrf.mxu0 }
 0x120   :  { %v1890_v51 = vld [vmem:[%s7399_s2 + $0x8] sm:$0xff] }
 0x121   :  { %v5878_v52 = vpop.f32.mrf.mxu1  ;;  %1662 = vmatmul.mubr.bf16.gmra.mxu1 %v4987_v47  ;;  %v5880_v53 = vpop.f32.mrf.mxu0 }
 0x122   :  { %1669 = vmatprep.mubr.bf16.mxu1 %v4995_v49  ;;  %v1889_v49 = vld [vmem:[%s7399_s2] sm:$0xff] }
 0x123   :  { %v1440_v54 = vpop.f32.mrf.mxu1  ;;  %v1248_v55 = vpop.f32.mrf.mxu0 }
 0x124   :  { %v5013_v54 = vld [vmem:[%s7397_s0 + $0x328] ss:$16 sps:$4 sm:$0xff]  }
 0x125   :  { %v5882_v56 = vpop.f32.mrf.mxu1  ;;  %v5887_v58 = vpop.f32.mrf.mxu0 }
 0x127   :  { %v1443_v60 = vpop.f32.mrf.mxu1  ;;  %v1251_v61 = vpop.f32.mrf.mxu0 }
 0x129   :  { %v5892_v62 = vpop.f32.mrf.mxu1  ;;  %1670 = vmatmul.mubr.bf16.gmra.mxu1 %v4993_v57  ;;  %v5894_v63 = vpop.f32.mrf.mxu0 }
 0x12a   :  { %1677 = vmatprep.mubr.bf16.mxu1 %v5002_v59 }
 0x12b   :  { %v1448_v0 = vpop.f32.mrf.mxu1  ;;  %v1256_v2 = vpop.f32.mrf.mxu0 }
 0x12d   :  { %v5896_v3 = vpop.f32.mrf.mxu1  ;;  %v5901_v5 = vpop.f32.mrf.mxu0 }
 0x12f   :  { %v1451_v7 = vpop.f32.mrf.mxu1  ;;  %v1259_v8 = vpop.f32.mrf.mxu0 }
 0x131   :  { %v5906_v9 = vpop.f32.mrf.mxu1  ;;  %1678 = vmatmul.mubr.bf16.gmra.mxu1 %v5000_v4  ;;  %v5908_v10 = vpop.f32.mrf.mxu0 }
 0x132   :  { %1685 = vmatprep.mubr.bf16.mxu1 %v5008_v6 }
 0x133   :  { %v1456_v11 = vpop.f32.mrf.mxu1  ;;  %v1264_v12 = vpop.f32.mrf.mxu0 }
 0x135   :  { %v5910_v14 = vpop.f32.mrf.mxu1  ;;  %v5915_v17 = vpop.f32.mrf.mxu0 }
 0x137   :  { %v1459_v20 = vpop.f32.mrf.mxu1  ;;  %v1267_v21 = vpop.f32.mrf.mxu0 }
 0x139   :  { %v5920_v24 = vpop.f32.mrf.mxu1  ;;  %1686 = vmatmul.mubr.bf16.gmra.mxu1 %v5006_v15  ;;  %v5922_v25 = vpop.f32.mrf.mxu0  ;;  %v1892_v15 = vld [vmem:[%s7399_s2 + $0x18] sm:$0xff] }
 0x13a   :  { %1693 = vmatprep.mubr.bf16.mxu1 %v5011_v19  ;;  %v5016_v19 = vld [vmem:[%s7397_s0 + $0x348] ss:$16 sps:$4 sm:$0xff]  }
 0x13b   :  { %v1464_v27 = vpop.f32.mrf.mxu1  ;;  %v1272_v29 = vpop.f32.mrf.mxu0 }
 0x13d   :  { %v5924_v30 = vpop.f32.mrf.mxu1  ;;  %v5929_v34 = vpop.f32.mrf.mxu0 }
 0x13f   :  { %v1467_v37 = vpop.f32.mrf.mxu1  ;;  %v1275_v39 = vpop.f32.mrf.mxu0 }
 0x141   :  { %v1503_v40 = vpop.f32.mrf.mxu1  ;;  %1694 = vmatmul.mubr.bf16.gmra.mxu1 %v5009_v31  ;;  %v5934_v41 = vpop.f32.mrf.mxu0 }
 0x142   :  { %1701 = vmatprep.mubr.bf16.mxu1 %v5015_v35  ;;  %v1504_v47 = vadd.f32 %v1503_v40, %v5824_v13  ;;  %v5018_v13 = vld [vmem:[%s7397_s0 + $0x34c] ss:$16 sps:$4 sm:$0xff]  }
 0x143   :  { %v1505_v44 = vpop.f32.mrf.mxu1  ;;  %v1280_v45 = vpop.f32.mrf.mxu0 }
 0x144   :  { %v2017_v61 = vadd.f32 %v1889_v49, %v1504_v47 }
 0x145   :  { %v1506_v50 = vpop.f32.mrf.mxu1  ;;  %v5946_v55 = vpop.f32.mrf.mxu0 }
 0x146   :  { %v1507_v57 = vadd.f32 %v1506_v50, %v5831_v18  ;;  %v1891_v18 = vld [vmem:[%s7399_s2 + $0x10] sm:$0xff]  ;;  %v1894_v50 = vld [vmem:[%s7399_s2 + $0x28] sm:$0xff] }
 0x147   :  { %v1508_v59 = vpop.f32.mrf.mxu1  ;;  %v1283_v60 = vpop.f32.mrf.mxu0 }
 0x148   :  { %v2018_v0 = vadd.f32 %v1890_v51, %v1507_v57  ;;  %v5019_v51 = vld [vmem:[%s7397_s0 + $0x368] ss:$16 sps:$4 sm:$0xff]  }
 0x149   :  { %v1511_v2 = vpop.f32.mrf.mxu1  ;;  %1702 = vmatmul.mubr.bf16.gmra.mxu1 %v5013_v54  ;;  %v5952_v4 = vpop.f32.mrf.mxu0 }
 0x14a   :  { %v2081_v6 = vpack.c.bf16 %v2018_v0, %v2017_v61  ;;  %1709 = vmatprep.mubr.bf16.mxu1 %v5018_v13  ;;  %v1512_v11 = vadd.f32 %v1511_v2, %v5838_v23  ;;  %v5021_v23 = vld [vmem:[%s7397_s0 + $0x36c] ss:$16 sps:$4 sm:$0xff]  }
 0x14b   :  { %v1513_v7 = vpop.f32.mrf.mxu1  ;;  %v1288_v8 = vpop.f32.mrf.mxu0 }
 0x14c   :  { %4702 = vmatprep.mubr.bf16.mxu0 %v2081_v6  ;;  %v2019_v31 = vadd.f32 %v1891_v18, %v1512_v11 }
 0x14d   :  { %v1514_v12 = vpop.f32.mrf.mxu1  ;;  %v5964_v20 = vpop.f32.mrf.mxu0 }
 0x14e   :  { %v1515_v21 = vadd.f32 %v1514_v12, %v5845_v28  ;;  %v1893_v28 = vld [vmem:[%s7399_s2 + $0x20] sm:$0xff]  ;;  %v1896_v12 = vld [vmem:[%s7399_s2 + $0x38] sm:$0xff] }
 0x14f   :  { %v1516_v27 = vpop.f32.mrf.mxu1  ;;  %v1291_v29 = vpop.f32.mrf.mxu0 }
 0x150   :  { %v2020_v35 = vadd.f32 %v1892_v15, %v1515_v21  ;;  %v5022_v15 = vld [vmem:[%s7397_s0 + $0x388] ss:$16 sps:$4 sm:$0xff]  }
 0x151   :  { %v1519_v37 = vpop.f32.mrf.mxu1  ;;  %1710 = vmatmul.mubr.bf16.gmra.mxu1 %v5016_v19  ;;  %v5970_v39 = vpop.f32.mrf.mxu0 }
 0x152   :  { %v2082_v40 = vpack.c.bf16 %v2020_v35, %v2019_v31  ;;  %1717 = vmatprep.mubr.bf16.mxu1 %v5021_v23  ;;  %v1520_v47 = vadd.f32 %v1519_v37, %v5852_v33  ;;  %v5024_v33 = vld [vmem:[%s7397_s0 + $0x38c] ss:$16 sps:$4 sm:$0xff]  }
 0x153   :  { %v1521_v44 = vpop.f32.mrf.mxu1  ;;  %v1296_v45 = vpop.f32.mrf.mxu0 }
 0x154   :  { %4703 = vmatmul.mubr.bf16.vlgmr.msra.gmra.mxu0 %v2082_v40  ;;  %v2021_v60 = vadd.f32 %v1893_v28, %v1520_v47 }
 0x155   :  { %v1522_v49 = vpop.f32.mrf.mxu1  ;;  %v5982_v54 = vpop.f32.mrf.mxu0 }
 0x156   :  { %v1523_v57 = vadd.f32 %v1522_v49, %v5859_v38  ;;  %v1895_v38 = vld [vmem:[%s7399_s2 + $0x30] sm:$0xff]  ;;  %v1898_v49 = vld [vmem:[%s7399_s2 + $0x48] sm:$0xff] }
 0x157   :  { %v1524_v13 = vpop.f32.mrf.mxu1  ;;  %v1299_v59 = vpop.f32.mrf.mxu0 }
 0x158   :  { %v2022_v61 = vadd.f32 %v1894_v50, %v1523_v57  ;;  %v5025_v50 = vld [vmem:[%s7397_s0 + $0x3a8] ss:$16 sps:$4 sm:$0xff]  }
 0x159   :  { %v1527_v0 = vpop.f32.mrf.mxu1  ;;  %1718 = vmatmul.mubr.bf16.gmra.mxu1 %v5019_v51  ;;  %v5988_v2 = vpop.f32.mrf.mxu0 }
 0x15a   :  { %v2083_v6 = vpack.c.bf16 %v2022_v61, %v2021_v60  ;;  %1725 = vmatprep.mubr.bf16.mxu1 %v5024_v33  ;;  %v1528_v11 = vadd.f32 %v1527_v0, %v5866_v43  ;;  %v5027_v43 = vld [vmem:[%s7397_s0 + $0x3ac] ss:$16 sps:$4 sm:$0xff]  }
 0x15b   :  { %v1529_v7 = vpop.f32.mrf.mxu1  ;;  %v1304_v8 = vpop.f32.mrf.mxu0 }
 0x15c   :  { %4706 = vmatprep.mubr.bf16.mxu0 %v2083_v6  ;;  %v2023_v29 = vadd.f32 %v1895_v38, %v1528_v11 }
 0x15d   :  { %v1530_v18 = vpop.f32.mrf.mxu1  ;;  %v6000_v19 = vpop.f32.mrf.mxu0 }
 0x15e   :  { %v1531_v21 = vadd.f32 %v1530_v18, %v5873_v48  ;;  %v1897_v48 = vld [vmem:[%s7399_s2 + $0x40] sm:$0xff]  ;;  %v1900_v18 = vld [vmem:[%s7399_s2 + $0x58] sm:$0xff] }
 0x15f   :  { %v1532_v23 = vpop.f32.mrf.mxu1  ;;  %v1307_v27 = vpop.f32.mrf.mxu0 }
 0x160   :  { %v2024_v31 = vadd.f32 %v1896_v12, %v1531_v21  ;;  %v5028_v12 = vld [vmem:[%s7397_s0 + $0x3c8] ss:$16 sps:$4 sm:$0xff]  }
 0x161   :  { %v1535_v35 = vpop.f32.mrf.mxu1  ;;  %1726 = vmatmul.mubr.bf16.gmra.mxu1 %v5022_v15  ;;  %v6006_v37 = vpop.f32.mrf.mxu0 }
 0x162   :  { %v2084_v40 = vpack.c.bf16 %v2024_v31, %v2023_v29  ;;  %1733 = vmatprep.mubr.bf16.mxu1 %v5027_v43  ;;  %v1536_v47 = vadd.f32 %v1535_v35, %v5880_v53  ;;  %v5030_v53 = vld [vmem:[%s7397_s0 + $0x3cc] ss:$16 sps:$4 sm:$0xff]  }
 0x163   :  { %v1537_v44 = vpop.f32.mrf.mxu1  ;;  %v1312_v45 = vpop.f32.mrf.mxu0 }
 0x164   :  { %4707 = vmatmul.mubr.bf16.gmra.mxu0 %v2084_v40  ;;  %v2025_v59 = vadd.f32 %v1897_v48, %v1536_v47 }
 0x165   :  { %v1538_v28 = vpop.f32.mrf.mxu1  ;;  %v6018_v51 = vpop.f32.mrf.mxu0 }
 0x166   :  { %v1539_v57 = vadd.f32 %v1538_v28, %v5887_v58  ;;  %v1899_v58 = vld [vmem:[%s7399_s2 + $0x50] sm:$0xff]  ;;  %v1902_v28 = vld [vmem:[%s7399_s2 + $0x68] sm:$0xff] }
 0x167   :  { %v1540_v33 = vpop.f32.mrf.mxu1  ;;  %v1315_v13 = vpop.f32.mrf.mxu0 }
 0x168   :  { %v2026_v60 = vadd.f32 %v1898_v49, %v1539_v57  ;;  %v5031_v49 = vld [vmem:[%s7397_s0 + $0x3e8] ss:$16 sps:$4 sm:$0xff]  }
 0x169   :  { %v1543_v61 = vpop.f32.mrf.mxu1  ;;  %1734 = vmatmul.mubr.bf16.gmra.mxu1 %v5025_v50  ;;  %v6024_v0 = vpop.f32.mrf.mxu0 }
 0x16a   :  { %v2085_v6 = vpack.c.bf16 %v2026_v60, %v2025_v59  ;;  %1741 = vmatprep.mubr.bf16.mxu1 %v5030_v53  ;;  %v1544_v11 = vadd.f32 %v1543_v61, %v5894_v63  ;;  %v5033_v63 = vld [vmem:[%s7397_s0 + $0x3ec] ss:$16 sps:$4 sm:$0xff]  }
 0x16b   :  { %v1545_v7 = vpop.f32.mrf.mxu1  ;;  %v1320_v8 = vpop.f32.mrf.mxu0 }
 0x16c   :  { %4710 = vmatprep.mubr.bf16.mxu0 %v2085_v6  ;;  %v2027_v27 = vadd.f32 %v1899_v58, %v1544_v11  ;;  %v1903_v11 = vld [vmem:[%s7399_s2 + $0x70] sm:$0xff] }
 0x16d   :  { %v1546_v38 = vpop.f32.mrf.mxu1  ;;  %v6036_v15 = vpop.f32.mrf.mxu0 }
 0x16e   :  { %v1547_v21 = vadd.f32 %v1546_v38, %v5901_v5  ;;  %v1901_v5 = vld [vmem:[%s7399_s2 + $0x60] sm:$0xff] }
 0x16f   :  { %v1548_v43 = vpop.f32.mrf.mxu1  ;;  %v1323_v23 = vpop.f32.mrf.mxu0 }
 0x170   :  { %v2028_v29 = vadd.f32 %v1900_v18, %v1547_v21 }
 0x171   :  { %v1551_v31 = vpop.f32.mrf.mxu1  ;;  %1742 = vmatmul.mubr.bf16.gmra.mxu1 %v5028_v12  ;;  %v6042_v35 = vpop.f32.mrf.mxu0 }
 0x172   :  { %v2086_v40 = vpack.c.bf16 %v2028_v29, %v2027_v27  ;;  %1749 = vmatprep.mubr.bf16.mxu1 %v5033_v63  ;;  %v1552_v47 = vadd.f32 %v1551_v31, %v5908_v10 }
 0x173   :  { %v1553_v44 = vpop.f32.mrf.mxu1  ;;  %v1328_v45 = vpop.f32.mrf.mxu0 }
 0x174   :  { %4711 = vmatmul.mubr.bf16.gmra.mxu0 %v2086_v40  ;;  %v2029_v33 = vadd.f32 %v1901_v5, %v1552_v47  ;;  %v1905_v44 = vld [vmem:[%s7399_s2 + $0x80] sm:$0xff] }
 0x175   :  { %v1554_v48 = vpop.f32.mrf.mxu1  ;;  %v6054_v50 = vpop.f32.mrf.mxu0 }
 0x176   :  { %v1555_v57 = vadd.f32 %v1554_v48, %v5915_v17  ;;  %v1904_v17 = vld [vmem:[%s7399_s2 + $0x78] sm:$0xff] }
 0x177   :  { %v1556_v53 = vpop.f32.mrf.mxu1  ;;  %v1331_v10 = vpop.f32.mrf.mxu0 }
 0x178   :  { %v2030_v13 = vadd.f32 %v1902_v28, %v1555_v57 }
 0x179   :  { %v1559_v59 = vpop.f32.mrf.mxu1  ;;  %1750 = vmatmul.mubr.bf16.gmra.mxu1 %v5031_v49  ;;  %v6057_v60 = vpop.f32.mrf.mxu0 }
 0x17a   :  { %v2087_v61 = vpack.c.bf16 %v2030_v13, %v2029_v33  ;;  %v1560_v8 = vadd.f32 %v1559_v59, %v5922_v25 }
 0x17b   :  { %v1561_v6 = vpop.f32.mrf.mxu1  ;;  %v1336_v7 = vpop.f32.mrf.mxu0 }
 0x17c   :  { %4714 = vmatprep.mubr.bf16.mxu0 %v2087_v61  ;;  %v2031_v63 = vadd.f32 %v1903_v11, %v1560_v8  ;;  %v1907_v61 = vld [vmem:[%s7399_s2 + $0x90] sm:$0xff] }
 0x17d   :  { %v1562_v58 = vpop.f32.mrf.mxu1  ;;  %v6066_v38 = vpop.f32.mrf.mxu0 }
 0x17e   :  { %v1563_v18 = vadd.f32 %v1562_v58, %v5929_v34  ;;  %v1906_v34 = vld [vmem:[%s7399_s2 + $0x88] sm:$0xff] }
 0x17f   :  { %v1564_v12 = vpop.f32.mrf.mxu1  ;;  %v1339_v21 = vpop.f32.mrf.mxu0 }
 0x180   :  { %v2032_v43 = vadd.f32 %v1904_v17, %v1563_v18 }
 0x181   :  { %v1567_v23 = vpop.f32.mrf.mxu1  ;;  %v6069_v25 = vpop.f32.mrf.mxu0 }
 0x182   :  { %v2088_v27 = vpack.c.bf16 %v2032_v43, %v2031_v63  ;;  %v1568_v40 = vadd.f32 %v1567_v23, %v5934_v41 }
 0x183   :  { %v1569_v29 = vpop.f32.mrf.mxu1  ;;  %v1344_v31 = vpop.f32.mrf.mxu0 }
 0x184   :  { %4715 = vmatmul.mubr.bf16.gmra.mxu0 %v2088_v27  ;;  %v2033_v49 = vadd.f32 %v1905_v44, %v1568_v40  ;;  %v1909_v27 = vld [vmem:[%s7399_s2 + $0xa0] sm:$0xff] }
 0x185   :  { %v1570_v45 = vpop.f32.mrf.mxu1  ;;  %v6078_v47 = vpop.f32.mrf.mxu0 }
 0x186   :  { %v1571_v5 = vadd.f32 %v1570_v45, %v5946_v55  ;;  %v1908_v55 = vld [vmem:[%s7399_s2 + $0x98] sm:$0xff] }
 0x187   :  { %v1572_v48 = vpop.f32.mrf.mxu1  ;;  %v1347_v28 = vpop.f32.mrf.mxu0 }
 0x188   :  { %v2034_v57 = vadd.f32 %v1906_v34, %v1571_v5 }
 0x189   :  { %v1575_v53 = vpop.f32.mrf.mxu1  ;;  %v6081_v41 = vpop.f32.mrf.mxu0 }
 0x18a   :  { %v2089_v10 = vpack.c.bf16 %v2034_v57, %v2033_v49  ;;  %v1576_v59 = vadd.f32 %v1575_v53, %v5952_v4 }
 0x18b   :  { %v1577_v33 = vpop.f32.mrf.mxu1  ;;  %v1352_v13 = vpop.f32.mrf.mxu0 }
 0x18c   :  { %4718 = vmatprep.mubr.bf16.mxu0 %v2089_v10  ;;  %v2035_v17 = vadd.f32 %v1907_v61, %v1576_v59  ;;  %v1911_v10 = vld [vmem:[%s7399_s2 + $0xb0] sm:$0xff] }
 0x18d   :  { %v1578_v6 = vpop.f32.mrf.mxu1  ;;  %v6090_v7 = vpop.f32.mrf.mxu0 }
 0x18e   :  { %v1579_v8 = vadd.f32 %v1578_v6, %v5964_v20  ;;  %v1910_v20 = vld [vmem:[%s7399_s2 + $0xa8] sm:$0xff] }
 0x18f   :  { %v1580_v11 = vpop.f32.mrf.mxu1  ;;  %v1355_v58 = vpop.f32.mrf.mxu0 }
 0x190   :  { %v2036_v18 = vadd.f32 %v1908_v55, %v1579_v8 }
 0x191   :  { %v1583_v12 = vpop.f32.mrf.mxu1  ;;  %v6093_v4 = vpop.f32.mrf.mxu0 }
 0x192   :  { %v2090_v21 = vpack.c.bf16 %v2036_v18, %v2035_v17  ;;  %v1584_v23 = vadd.f32 %v1583_v12, %v5970_v39 }
 0x193   :  { %v1585_v63 = vpop.f32.mrf.mxu1  ;;  %v1360_v43 = vpop.f32.mrf.mxu0 }
 0x194   :  { %4719 = vmatmul.mubr.bf16.gmra.mxu0 %v2090_v21  ;;  %v2037_v34 = vadd.f32 %v1909_v27, %v1584_v23  ;;  %v1913_v21 = vld [vmem:[%s7399_s2 + $0xc0] sm:$0xff] }
 0x195   :  { %v1586_v29 = vpop.f32.mrf.mxu1  ;;  %v6102_v31 = vpop.f32.mrf.mxu0 }
 0x196   :  { %v1587_v40 = vadd.f32 %v1586_v29, %v5982_v54  ;;  %v1912_v54 = vld [vmem:[%s7399_s2 + $0xb8] sm:$0xff] }
 0x197   :  { %v1588_v44 = vpop.f32.mrf.mxu1  ;;  %v1363_v45 = vpop.f32.mrf.mxu0 }
 0x198   :  { %v2038_v5 = vadd.f32 %v1910_v20, %v1587_v40 }
 0x199   :  { %v1591_v48 = vpop.f32.mrf.mxu1  ;;  %v6105_v39 = vpop.f32.mrf.mxu0 }
 0x19a   :  { %v2091_v28 = vpack.c.bf16 %v2038_v5, %v2037_v34  ;;  %v1592_v53 = vadd.f32 %v1591_v48, %v5988_v2 }
 0x19b   :  { %v1593_v49 = vpop.f32.mrf.mxu1  ;;  %v1368_v57 = vpop.f32.mrf.mxu0 }
 0x19c   :  { %4722 = vmatprep.mubr.bf16.mxu0 %v2091_v28  ;;  %v2039_v55 = vadd.f32 %v1911_v10, %v1592_v53  ;;  %v1915_v28 = vld [vmem:[%s7399_s2 + $0xd0] sm:$0xff] }
 0x19d   :  { %v1594_v33 = vpop.f32.mrf.mxu1  ;;  %v6114_v13 = vpop.f32.mrf.mxu0 }
 0x19e   :  { %v1595_v59 = vadd.f32 %v1594_v33, %v6000_v19  ;;  %v1914_v19 = vld [vmem:[%s7399_s2 + $0xc8] sm:$0xff] }
 0x19f   :  { %v1596_v61 = vpop.f32.mrf.mxu1  ;;  %v1371_v6 = vpop.f32.mrf.mxu0 }
 0x1a0   :  { %v2040_v8 = vadd.f32 %v1912_v54, %v1595_v59 }
 0x1a1   :  { %v1599_v11 = vpop.f32.mrf.mxu1  ;;  %v6117_v2 = vpop.f32.mrf.mxu0 }
 0x1a2   :  { %v2092_v58 = vpack.c.bf16 %v2040_v8, %v2039_v55  ;;  %v1600_v12 = vadd.f32 %v1599_v11, %v6006_v37 }
 0x1a3   :  { %v1601_v17 = vpop.f32.mrf.mxu1  ;;  %v1376_v18 = vpop.f32.mrf.mxu0 }
 0x1a4   :  { %4723 = vmatmul.mubr.bf16.gmra.mxu0 %v2092_v58  ;;  %v2041_v20 = vadd.f32 %v1913_v21, %v1600_v12  ;;  %v1917_v58 = vld [vmem:[%s7399_s2 + $0xe0] sm:$0xff] }
 0x1a5   :  { %v1602_v63 = vpop.f32.mrf.mxu1  ;;  %v6126_v43 = vpop.f32.mrf.mxu0 }
 0x1a6   :  { %v1603_v23 = vadd.f32 %v1602_v63, %v6018_v51  ;;  %v1916_v51 = vld [vmem:[%s7399_s2 + $0xd8] sm:$0xff] }
 0x1a7   :  { %v1604_v27 = vpop.f32.mrf.mxu1  ;;  %v1379_v29 = vpop.f32.mrf.mxu0 }
 0x1a8   :  { %v2042_v40 = vadd.f32 %v1914_v19, %v1603_v23 }
 0x1a9   :  { %v1607_v44 = vpop.f32.mrf.mxu1  ;;  %v6129_v37 = vpop.f32.mrf.mxu0 }
 0x1aa   :  { %v2093_v45 = vpack.c.bf16 %v2042_v40, %v2041_v20  ;;  %v1608_v48 = vadd.f32 %v1607_v44, %v6024_v0 }
 0x1ab   :  { %v1609_v34 = vpop.f32.mrf.mxu1  ;;  %v1384_v5 = vpop.f32.mrf.mxu0 }
 0x1ac   :  { %4726 = vmatprep.mubr.bf16.mxu0 %v2093_v45  ;;  %v2043_v54 = vadd.f32 %v1915_v28, %v1608_v48  ;;  %v1919_v45 = vld [vmem:[%s7399_s2 + $0xf0] sm:$0xff] }
 0x1ad   :  { %v1610_v49 = vpop.f32.mrf.mxu1  ;;  %v6138_v57 = vpop.f32.mrf.mxu0 }
 0x1ae   :  { %v1611_v53 = vadd.f32 %v1610_v49, %v6036_v15  ;;  %v1918_v15 = vld [vmem:[%s7399_s2 + $0xe8] sm:$0xff] }
 0x1af   :  { %v1612_v10 = vpop.f32.mrf.mxu1  ;;  %v1387_v33 = vpop.f32.mrf.mxu0 }
 0x1b0   :  { %v2044_v59 = vadd.f32 %v1916_v51, %v1611_v53 }
 0x1b1   :  { %v1615_v61 = vpop.f32.mrf.mxu1  ;;  %v6141_v0 = vpop.f32.mrf.mxu0 }
 0x1b2   :  { %v2094_v6 = vpack.c.bf16 %v2044_v59, %v2043_v54  ;;  %v1616_v11 = vadd.f32 %v1615_v61, %v6042_v35  ;;  %v1921_v59 = vld [vmem:[%s7399_s2 + $0x100] sm:$0xff] }
 0x1b3   :  { %v1617_v55 = vpop.f32.mrf.mxu1  ;;  %v1392_v8 = vpop.f32.mrf.mxu0 }
 0x1b4   :  { %4727 = vmatmul.mubr.bf16.gmra.mxu0 %v2094_v6  ;;  %v2045_v19 = vadd.f32 %v1917_v58, %v1616_v11  ;;  %v1922_v6 = vld [vmem:[%s7399_s2 + $0x108] sm:$0xff] }
 0x1b5   :  { %v1618_v17 = vpop.f32.mrf.mxu1  ;;  %v6150_v18 = vpop.f32.mrf.mxu0 }
 0x1b6   :  { %v1619_v12 = vadd.f32 %v1618_v17, %v6054_v50  ;;  %v1920_v50 = vld [vmem:[%s7399_s2 + $0xf8] sm:$0xff] }
 0x1b7   :  { %v1620_v21 = vpop.f32.mrf.mxu1  ;;  %v1395_v63 = vpop.f32.mrf.mxu0 }
 0x1b8   :  { %v2046_v23 = vadd.f32 %v1918_v15, %v1619_v12  ;;  %v1923_v12 = vld [vmem:[%s7399_s2 + $0x110] sm:$0xff]  ;;  %v1924_v63 = vld [vmem:[%s7399_s2 + $0x118] sm:$0xff] }
 0x1b9   :  { %v1623_v27 = vpop.f32.mrf.mxu1  ;;  %v6153_v35 = vpop.f32.mrf.mxu0 }
 0x1ba   :  { %v2095_v29 = vpack.c.bf16 %v2046_v23, %v2045_v19  ;;  %v1624_v44 = vadd.f32 %v1623_v27, %v6057_v60 }
 0x1bb   :  { %v1625_v20 = vpop.f32.mrf.mxu1  ;;  %v1400_v40 = vpop.f32.mrf.mxu0 }
 0x1bc   :  { %4730 = vmatprep.mubr.bf16.mxu0 %v2095_v29  ;;  %v2047_v51 = vadd.f32 %v1919_v45, %v1624_v44  ;;  %v1925_v44 = vld [vmem:[%s7399_s2 + $0x120] sm:$0xff] }
 0x1bd   :  { %v1626_v34 = vpop.f32.mrf.mxu1  ;;  %v6162_v5 = vpop.f32.mrf.mxu0 }
 0x1be   :  { %v1627_v48 = vadd.f32 %v1626_v34, %v6066_v38  ;;  %v1926_v34 = vld [vmem:[%s7399_s2 + $0x128] sm:$0xff] }
 0x1bf   :  { %v1628_v28 = vpop.f32.mrf.mxu1  ;;  %v1403_v49 = vpop.f32.mrf.mxu0 }
 0x1c0   :  { %v2048_v53 = vadd.f32 %v1920_v50, %v1627_v48 }
 0x1c1   :  { %v1631_v10 = vpop.f32.mrf.mxu1 }
 0x1c2   :  { %v2096_v60 = vpack.c.bf16 %v2048_v53, %v2047_v51  ;;  %v1632_v54 = vadd.f32 %v1631_v10, %v6069_v25  ;;  %v1927_v10 = vld [vmem:[%s7399_s2 + $0x130] sm:$0xff] }
 0x1c3   :  { %v1633_v33 = vpop.f32.mrf.mxu1 }
 0x1c4   :  { %4731 = vmatmul.mubr.bf16.gmra.mxu0 %v2096_v60  ;;  %v2049_v8 = vadd.f32 %v1921_v59, %v1632_v54  ;;  %v1928_v33 = vld [vmem:[%s7399_s2 + $0x138] sm:$0xff] }
 0x1c5   :  { %v1634_v61 = vpop.f32.mrf.mxu1 }
 0x1c6   :  { %v1635_v38 = vadd.f32 %v1634_v61, %v6078_v47 }
 0x1c7   :  { %v1636_v55 = vpop.f32.mrf.mxu1 }
 0x1c8   :  { %v2050_v11 = vadd.f32 %v1922_v6, %v1635_v38 }
 0x1c9   :  { %v1639_v58 = vpop.f32.mrf.mxu1 }
 0x1ca   :  { %v2097_v17 = vpack.c.bf16 %v2050_v11, %v2049_v8  ;;  %v1640_v25 = vadd.f32 %v1639_v58, %v6081_v41  ;;  %v1929_v8 = vld [vmem:[%s7399_s2 + $0x140] sm:$0xff]  ;;  %v1930_v58 = vld [vmem:[%s7399_s2 + $0x148] sm:$0xff] }
 0x1cb   :  { %v1641_v15 = vpop.f32.mrf.mxu1 }
 0x1cc   :  { %4734 = vmatprep.mubr.bf16.mxu0 %v2097_v17  ;;  %v2051_v23 = vadd.f32 %v1923_v12, %v1640_v25 }
 0x1cd   :  { %v1642_v21 = vpop.f32.mrf.mxu1 }
 0x1ce   :  { %v1643_v47 = vadd.f32 %v1642_v21, %v6090_v7 }
 0x1cf   :  { %v1644_v19 = vpop.f32.mrf.mxu1 }
 0x1d0   :  { %v2052_v27 = vadd.f32 %v1924_v63, %v1643_v47  ;;  %v1931_v47 = vld [vmem:[%s7399_s2 + $0x150] sm:$0xff] }
 0x1d1   :  { %v1647_v29 = vpop.f32.mrf.mxu1 }
 0x1d2   :  { %v2098_v20 = vpack.c.bf16 %v2052_v27, %v2051_v23  ;;  %v1648_v41 = vadd.f32 %v1647_v29, %v6093_v4  ;;  %v1932_v23 = vld [vmem:[%s7399_s2 + $0x158] sm:$0xff] }
 0x1d3   :  { %v1649_v40 = vpop.f32.mrf.mxu1 }
 0x1d4   :  { %4735 = vmatmul.mubr.bf16.gmra.mxu0 %v2098_v20  ;;  %v2053_v48 = vadd.f32 %v1925_v44, %v1648_v41 }
 0x1d5   :  { %v1650_v45 = vpop.f32.mrf.mxu1 }
 0x1d6   :  { %v1651_v7 = vadd.f32 %v1650_v45, %v6102_v31  ;;  %v1933_v45 = vld [vmem:[%s7399_s2 + $0x160] sm:$0xff] }
 0x1d7   :  { %v1652_v50 = vpop.f32.mrf.mxu1 }
 0x1d8   :  { %v2054_v28 = vadd.f32 %v1926_v34, %v1651_v7  ;;  %v1934_v7 = vld [vmem:[%s7399_s2 + $0x168] sm:$0xff] }
 0x1d9   :  { %v1655_v49 = vpop.f32.mrf.mxu1 }
 0x1da   :  { %v2099_v51 = vpack.c.bf16 %v2054_v28, %v2053_v48  ;;  %v1656_v4 = vadd.f32 %v1655_v49, %v6105_v39 }
 0x1db   :  { %v1657_v53 = vpop.f32.mrf.mxu1 }
 0x1dc   :  { %4738 = vmatprep.mubr.bf16.mxu0 %v2099_v51  ;;  %v2055_v59 = vadd.f32 %v1927_v10, %v1656_v4  ;;  %v1935_v4 = vld [vmem:[%s7399_s2 + $0x170] sm:$0xff] }
 0x1dd   :  { %v1658_v60 = vpop.f32.mrf.mxu1 }
 0x1de   :  { %v1659_v31 = vadd.f32 %v1658_v60, %v6114_v13  ;;  %v1936_v60 = vld [vmem:[%s7399_s2 + $0x178] sm:$0xff] }
 0x1df   :  { %v1660_v54 = vpop.f32.mrf.mxu1 }
 0x1e0   :  { %v2056_v61 = vadd.f32 %v1928_v33, %v1659_v31 }
 0x1e1   :  { %v1663_v6 = vpop.f32.mrf.mxu1 }
 0x1e2   :  { %v2100_v38 = vpack.c.bf16 %v2056_v61, %v2055_v59  ;;  %v1664_v39 = vadd.f32 %v1663_v6, %v6117_v2 }
 0x1e3   :  { %v1665_v55 = vpop.f32.mrf.mxu1 }
 0x1e4   :  { %4739 = vmatmul.mubr.bf16.gmra.mxu0 %v2100_v38  ;;  %v2057_v15 = vadd.f32 %v1929_v8, %v1664_v39  ;;  %v1937_v38 = vld [vmem:[%s7399_s2 + $0x180] sm:$0xff]  ;;  %v1938_v39 = vld [vmem:[%s7399_s2 + $0x188] sm:$0xff] }
 0x1e5   :  { %v1666_v11 = vpop.f32.mrf.mxu1 }
 0x1e6   :  { %v1667_v13 = vadd.f32 %v1666_v11, %v6126_v43 }
 0x1e7   :  { %v1668_v17 = vpop.f32.mrf.mxu1 }
 0x1e8   :  { %v2058_v25 = vadd.f32 %v1930_v58, %v1667_v13 }
 0x1e9   :  { %v1671_v12 = vpop.f32.mrf.mxu1 }
 0x1ea   :  { %v2101_v21 = vpack.c.bf16 %v2058_v25, %v2057_v15  ;;  %v1672_v2 = vadd.f32 %v1671_v12, %v6129_v37  ;;  %v1939_v25 = vld [vmem:[%s7399_s2 + $0x190] sm:$0xff] }
 0x1eb   :  { %v1673_v63 = vpop.f32.mrf.mxu1 }
 0x1ec   :  { %4742 = vmatprep.mubr.bf16.mxu0 %v2101_v21  ;;  %v2059_v29 = vadd.f32 %v1931_v47, %v1672_v2  ;;  %v1940_v21 = vld [vmem:[%s7399_s2 + $0x198] sm:$0xff] }
 0x1ed   :  { %v1674_v19 = vpop.f32.mrf.mxu1 }
 0x1ee   :  { %v1675_v43 = vadd.f32 %v1674_v19, %v6138_v57 }
 0x1ef   :  { %v1676_v27 = vpop.f32.mrf.mxu1 }
 0x1f0   :  { %v2060_v20 = vadd.f32 %v1932_v23, %v1675_v43 }
 0x1f1   :  { %v1679_v40 = vpop.f32.mrf.mxu1 }
 0x1f2   :  { %v2102_v41 = vpack.c.bf16 %v2060_v20, %v2059_v29  ;;  %v1680_v37 = vadd.f32 %v1679_v40, %v6141_v0  ;;  %v1941_v20 = vld [vmem:[%s7399_s2 + $0x1a0] sm:$0xff] }
 0x1f3   :  { %v1681_v44 = vpop.f32.mrf.mxu1 }
 0x1f4   :  { %4743 = vmatmul.mubr.bf16.gmra.mxu0 %v2102_v41  ;;  %v2061_v48 = vadd.f32 %v1933_v45, %v1680_v37  ;;  %v1942_v41 = vld [vmem:[%s7399_s2 + $0x1a8] sm:$0xff] }
 0x1f5   :  { %v1682_v34 = vpop.f32.mrf.mxu1 }
 0x1f6   :  { %v1683_v57 = vadd.f32 %v1682_v34, %v6150_v18 }
 0x1f7   :  { %v1684_v50 = vpop.f32.mrf.mxu1 }
 0x1f8   :  { %v2062_v28 = vadd.f32 %v1934_v7, %v1683_v57 }
 0x1f9   :  { %v1687_v49 = vpop.f32.mrf.mxu1 }
 0x1fa   :  { %v2103_v51 = vpack.c.bf16 %v2062_v28, %v2061_v48  ;;  %v1688_v0 = vadd.f32 %v1687_v49, %v6153_v35 }
 0x1fb   :  { %v1689_v53 = vpop.f32.mrf.mxu1 }
 0x1fc   :  { %4746 = vmatprep.mubr.bf16.mxu0 %v2103_v51  ;;  %v2063_v31 = vadd.f32 %v1935_v4, %v1688_v0 }
 0x1fd   :  { %v1690_v10 = vpop.f32.mrf.mxu1 }
 0x1fe   :  { %v1691_v18 = vadd.f32 %v1690_v10, %v6162_v5 }
 0x1ff   :  { %v1692_v33 = vpop.f32.mrf.mxu1 }
 0x200   :  { %v2064_v54 = vadd.f32 %v1936_v60, %v1691_v18  ;;  %v1943_v33 = vld [vmem:[%s7399_s2 + $0x1b0] sm:$0xff] }
 0x201   :  { %v1695_v59 = vpop.f32.mrf.mxu1 }
 0x202   :  { %v2104_v61 = vpack.c.bf16 %v2064_v54, %v2063_v31  ;;  %v1696_v35 = vadd.f32 %v1695_v59, %v5822_v1  ;;  %v1944_v54 = vld [vmem:[%s7399_s2 + $0x1b8] sm:$0xff] }
 0x203   :  { %v1697_v6 = vpop.f32.mrf.mxu1 }
 0x204   :  { %4747 = vmatmul.mubr.bf16.gmra.mxu0 %v2104_v61  ;;  %v2065_v11 = vadd.f32 %v1937_v38, %v1696_v35 }
 0x205   :  { %v1698_v55 = vpop.f32.mrf.mxu1 }
 0x206   :  { %v1699_v5 = vadd.f32 %v1698_v55, %v5826_v16 }
 0x207   :  { %v1700_v8 = vpop.f32.mrf.mxu1 }
 0x208   :  { %v2066_v58 = vadd.f32 %v1938_v39, %v1699_v5 }
 0x209   :  { %v1703_v13 = vpop.f32.mrf.mxu1 }
 0x20a   :  { %v2105_v17 = vpack.c.bf16 %v2066_v58, %v2065_v11  ;;  %v1704_v1 = vadd.f32 %v1703_v13, %v5836_v22  ;;  %v6248_v22 = vld [vmem:[%s7401_s4] ss:$0 sm:$0xff] }
 0x20b   :  { %v1705_v15 = vpop.f32.mrf.mxu1 }
 0x20c   :  { %4750 = vmatprep.mubr.bf16.mxu0 %v2105_v17  ;;  %v2067_v2 = vadd.f32 %v1939_v25, %v1704_v1  ;;  %v1946_v15 = vld [vmem:[%s7399_s2 + $0x1c8] sm:$0xff] }
 0x20d   :  { %v1706_v12 = vpop.f32.mrf.mxu1 }
 0x20e   :  { %v1707_v16 = vadd.f32 %v1706_v12, %v5840_v26 }
 0x20f   :  { %v1708_v63 = vpop.f32.mrf.mxu1 }
 0x210   :  { %v2068_v47 = vadd.f32 %v1940_v21, %v1707_v16 }
 0x211   :  { %v1711_v19 = vpop.f32.mrf.mxu1 }
 0x212   :  { %v2106_v23 = vpack.c.bf16 %v2068_v47, %v2067_v2  ;;  %v1712_v27 = vadd.f32 %v1711_v19, %v5850_v32 }
 0x213   :  { %v1713_v43 = vpop.f32.mrf.mxu1 }
 0x214   :  { %v4704_v29 = vpop.f32.mrf.mxu0  ;;  %4751 = vmatmul.mubr.bf16.gmra.mxu0 %v2106_v23  ;;  %v2069_v7 = vadd.f32 %v1941_v20, %v1712_v27 }
 0x215   :  { %v2227_v26 = vadd.f32 %v4704_v29, %v6248_v22  ;;  %v1714_v40 = vpop.f32.mrf.mxu1 }
 0x216   :  { %v1715_v44 = vadd.f32 %v1714_v40, %v5854_v36  ;;  %v2218_v37 = vpop.f32.mrf.mxu0 }
 0x217   :  { %v2219_v45 = vadd.f32 %v6248_v22, %v2218_v37  ;;  %v1716_v34 = vpop.f32.mrf.mxu1  ;;  %vm2475_vm0 = vcmp.ge.f32.partialorder %v2227_v26, 0.0  ;;  %v2539_v32 = vmul.f32 0.01, %v2227_v26  ;;  %v1948_v37 = vld [vmem:[%s7399_s2 + $0x1d8] sm:$0xff] }
 0x218   :  { %v2070_v57 = vadd.f32 %v1942_v41, %v1715_v44  ;;  %v4705_v50 = vpop.f32.mrf.mxu0  ;;  %v1947_v41 = vld [vmem:[%s7399_s2 + $0x1d0] sm:$0xff] }
 0x219   :  { %v2230_v48 = vadd.f32 %v4705_v50, %v6248_v22  ;;  %v1719_v28 = vpop.f32.mrf.mxu1  ;;  %v6261_v49 = vsel %vm2475_vm0, %v2227_v26, %v2539_v32  ;;  %vm2473_vm1 = vcmp.ge.f32.partialorder %v2219_v45, 0.0  ;;  %v2537_v51 = vmul.f32 0.01, %v2219_v45 }
 0x21a   :  { %2669 = vadd.xlane.f32.xlu1 %v6261_v49  ;;  %v2221_v53 = vpop.f32.mrf.mxu0  ;;  %v2107_v36 = vpack.c.bf16 %v2070_v57, %v2069_v7  ;;  %v1720_v18 = vadd.f32 %v1719_v28, %v5864_v42 }
 0x21b   :  { %v2222_v0 = vadd.f32 %v6248_v22, %v2221_v53  ;;  %v1721_v4 = vpop.f32.mrf.mxu1  ;;  %v6265_v10 = vsel %vm2473_vm1, %v2219_v45, %v2537_v51  ;;  %vm2476_vm2 = vcmp.ge.f32.partialorder %v2230_v48, 0.0  ;;  %v2540_v60 = vmul.f32 0.01, %v2230_v48 }
 0x21c   :  { %4754 = vmatprep.mubr.bf16.mxu0 %v2107_v36  ;;  %2665 = vadd.xlane.f32.xlu0 %v6265_v10  ;;  %v2071_v38 = vadd.f32 %v1943_v33, %v1720_v18  ;;  %v1950_v18 = vld [vmem:[%s7399_s2 + $0x1e8] sm:$0xff] }
 0x21d   :  { %v1722_v31 = vpop.f32.mrf.mxu1  ;;  %v6275_v59 = vsel %vm2476_vm2, %v2230_v48, %v2540_v60  ;;  %vm2474_vm3 = vcmp.ge.f32.partialorder %v2222_v0, 0.0  ;;  %v2538_v61 = vmul.f32 0.01, %v2222_v0 }
 0x21e   :  { %v1723_v6 = vadd.f32 %v1722_v31, %v5868_v46  ;;  %2671 = vadd.xlane.f32.xlu1 %v6275_v59  ;;  %v1945_v46 = vld [vmem:[%s7399_s2 + $0x1c0] sm:$0xff] }
 0x21f   :  { %v1724_v42 = vpop.f32.mrf.mxu1  ;;  %v6279_v35 = vsel %vm2474_vm3, %v2222_v0, %v2538_v61 }
 0x220   :  { %v2072_v55 = vadd.f32 %v1944_v54, %v1723_v6  ;;  %2667 = vadd.xlane.f32.xlu0 %v6279_v35 }
 0x221   :  { %v1727_v39 = vpop.f32.mrf.mxu1 }
 0x222   :  { %v2108_v5 = vpack.c.bf16 %v2072_v55, %v2071_v38  ;;  %v1728_v11 = vadd.f32 %v1727_v39, %v5878_v52 }
 0x223   :  { %v1729_v8 = vpop.f32.mrf.mxu1 }
 0x224   :  { %v4708_v58 = vpop.f32.mrf.mxu0  ;;  %4755 = vmatmul.mubr.bf16.gmra.mxu0 %v2108_v5  ;;  %v2073_v16 = vadd.f32 %v1945_v46, %v1728_v11 }
 0x225   :  { %v2243_v13 = vadd.f32 %v4708_v58, %v6248_v22  ;;  %v1730_v17 = vpop.f32.mrf.mxu1 }
 0x226   :  { %v1731_v1 = vadd.f32 %v1730_v17, %v5882_v56  ;;  %v2234_v25 = vpop.f32.mrf.mxu0 }
 0x227   :  { %v2235_v12 = vadd.f32 %v6248_v22, %v2234_v25  ;;  %v1732_v21 = vpop.f32.mrf.mxu1  ;;  %vm2479_vm4 = vcmp.ge.f32.partialorder %v2243_v13, 0.0  ;;  %v2543_v52 = vmul.f32 0.01, %v2243_v13  ;;  %v1952_v25 = vld [vmem:[%s7399_s2 + $0x1f8] sm:$0xff] }
 0x228   :  { %v2074_v63 = vadd.f32 %v1946_v15, %v1731_v1  ;;  %v4709_v2 = vpop.f32.mrf.mxu0  ;;  %v1951_v15 = vld [vmem:[%s7399_s2 + $0x1f0] sm:$0xff] }
 0x229   :  { %v2246_v47 = vadd.f32 %v4709_v2, %v6248_v22  ;;  %v1735_v19 = vpop.f32.mrf.mxu1  ;;  %v6293_v23 = vsel %vm2479_vm4, %v2243_v13, %v2543_v52  ;;  %v2541_v43 = vmul.f32 0.01, %v2235_v12  ;;  %vm2477_vm5 = vcmp.ge.f32.partialorder %v2235_v12, 0.0 }
 0x22a   :  { %v2237_v27 = vpop.f32.mrf.mxu0  ;;  %2677 = vadd.xlane.f32.xlu0 %v6293_v23  ;;  %v2109_v29 = vpack.c.bf16 %v2074_v63, %v2073_v16  ;;  %v1736_v40 = vadd.f32 %v1735_v19, %v5892_v62 }
 0x22b   :  { %v2238_v56 = vadd.f32 %v6248_v22, %v2237_v27  ;;  %v1737_v20 = vpop.f32.mrf.mxu1  ;;  %vm2480_vm6 = vcmp.ge.f32.partialorder %v2246_v47, 0.0  ;;  %v2544_v26 = vmul.f32 0.01, %v2246_v47  ;;  %v6306_v34 = vsel %vm2477_vm5, %v2235_v12, %v2541_v43 }
 0x22c   :  { %4758 = vmatprep.mubr.bf16.mxu0 %v2109_v29  ;;  %v2075_v57 = vadd.f32 %v1947_v41, %v1736_v40 }
 0x22d   :  { %v1738_v44 = vpop.f32.mrf.mxu1  ;;  %v6304_v45 = vsel %vm2480_vm6, %v2246_v47, %v2544_v26  ;;  %v2542_v32 = vmul.f32 0.01, %v2238_v56  ;;  %vm2478_vm7 = vcmp.ge.f32.partialorder %v2238_v56, 0.0 }
 0x22e   :  { %v1739_v7 = vadd.f32 %v1738_v44, %v5896_v3  ;;  %2679 = vadd.xlane.f32.xlu1 %v6304_v45  ;;  %2673 = vadd.xlane.f32.xlu0 %v6306_v34  ;;  %v1949_v3 = vld [vmem:[%s7399_s2 + $0x1e0] sm:$0xff] }
 0x22f   :  { %v1740_v62 = vpop.f32.mrf.mxu1  ;;  %v6311_v28 = vsel %vm2478_vm7, %v2238_v56, %v2542_v32 }
 0x230   :  { %v2076_v50 = vadd.f32 %v1948_v37, %v1739_v7 }
 0x231   :  { %v1743_v48 = vpop.f32.mrf.mxu1 }
 0x232   :  { %v2110_v51 = vpack.c.bf16 %v2076_v50, %v2075_v57  ;;  %2675 = vadd.xlane.f32.xlu1 %v6311_v28  ;;  %v1744_v36 = vadd.f32 %v1743_v48, %v5906_v9 }
 0x233   :  { %v1745_v53 = vpop.f32.mrf.mxu1 }
 0x234   :  { %v4712_v0 = vpop.f32.mrf.mxu0  ;;  %4759 = vmatmul.mubr.bf16.gmra.mxu0 %v2110_v51  ;;  %v2077_v6 = vadd.f32 %v1949_v3, %v1744_v36 }
 0x235   :  { %v2259_v4 = vadd.f32 %v4712_v0, %v6248_v22  ;;  %v1746_v60 = vpop.f32.mrf.mxu1 }
 0x236   :  { %v1747_v33 = vadd.f32 %v1746_v60, %v5910_v14  ;;  %v2250_v31 = vpop.f32.mrf.mxu0 }
 0x237   :  { %v2251_v54 = vadd.f32 %v6248_v22, %v2250_v31  ;;  %v1748_v61 = vpop.f32.mrf.mxu1  ;;  %vm2483_vm8 = vcmp.ge.f32.partialorder %v2259_v4, 0.0  ;;  %v2547_v9 = vmul.f32 0.01, %v2259_v4 }
 0x238   :  { %v2078_v42 = vadd.f32 %v1950_v18, %v1747_v33  ;;  %v4713_v38 = vpop.f32.mrf.mxu0 }
 0x239   :  { %v2262_v55 = vadd.f32 %v4713_v38, %v6248_v22  ;;  %v1751_v39 = vpop.f32.mrf.mxu1  ;;  %v6325_v5 = vsel %vm2483_vm8, %v2259_v4, %v2547_v9  ;;  %v2545_v8 = vmul.f32 0.01, %v2251_v54  ;;  %vm2481_vm9 = vcmp.ge.f32.partialorder %v2251_v54, 0.0 }
 0x23a   :  { %v2253_v11 = vpop.f32.mrf.mxu0  ;;  %2685 = vadd.xlane.f32.xlu0 %v6325_v5  ;;  %v2111_v58 = vpack.c.bf16 %v2078_v42, %v2077_v6  ;;  %v1752_v17 = vadd.f32 %v1751_v39, %v5920_v24 }
 0x23b   :  { %v2254_v14 = vadd.f32 %v6248_v22, %v2253_v11  ;;  %v1753_v46 = vpop.f32.mrf.mxu1  ;;  %vm2484_vm10 = vcmp.ge.f32.partialorder %v2262_v55, 0.0  ;;  %v2548_v13 = vmul.f32 0.01, %v2262_v55  ;;  %v6338_v21 = vsel %vm2481_vm9, %v2251_v54, %v2545_v8 }
 0x23c   :  { %4762 = vmatprep.mubr.bf16.mxu0 %v2111_v58  ;;  %v2079_v63 = vadd.f32 %v1951_v15, %v1752_v17 }
 0x23d   :  { %v1754_v1 = vpop.f32.mrf.mxu1  ;;  %v6336_v12 = vsel %vm2484_vm10, %v2262_v55, %v2548_v13  ;;  %v2546_v52 = vmul.f32 0.01, %v2254_v14  ;;  %vm2482_vm11 = vcmp.ge.f32.partialorder %v2254_v14, 0.0 }
 0x23e   :  { %v1755_v16 = vadd.f32 %v1754_v1, %v5924_v30  ;;  %2687 = vadd.xlane.f32.xlu1 %v6336_v12  ;;  %2681 = vadd.xlane.f32.xlu0 %v6338_v21 }
 0x23f   :  { %v1756_v24 = vpop.f32.mrf.mxu1  ;;  %v6343_v47 = vsel %vm2482_vm11, %v2254_v14, %v2546_v52 }
 0x240   :  { %v2080_v2 = vadd.f32 %v1952_v25, %v1755_v16 }
 0x242   :  { %v2112_v19 = vpack.c.bf16 %v2080_v2, %v2079_v63  ;;  %2683 = vadd.xlane.f32.xlu1 %v6343_v47 }
 0x244   :  { %v4716_v43 = vpop.f32.mrf.mxu0  ;;  %4763 = vmatmul.mubr.bf16.gmra.mxu0 %v2112_v19 }
 0x245   :  { %v2275_v27 = vadd.f32 %v4716_v43, %v6248_v22 }
 0x246   :  { %v2266_v29 = vpop.f32.mrf.mxu0 }
 0x247   :  { %v2267_v30 = vadd.f32 %v6248_v22, %v2266_v29  ;;  %vm2487_vm12 = vcmp.ge.f32.partialorder %v2275_v27, 0.0  ;;  %v2551_v56 = vmul.f32 0.01, %v2275_v27 }
 0x248   :  { %v4717_v20 = vpop.f32.mrf.mxu0 }
 0x249   :  { %v2278_v26 = vadd.f32 %v4717_v20, %v6248_v22  ;;  %v6349_v40 = vsel %vm2487_vm12, %v2275_v27, %v2551_v56  ;;  %v2549_v41 = vmul.f32 0.01, %v2267_v30  ;;  %vm2485_vm13 = vcmp.ge.f32.partialorder %v2267_v30, 0.0 }
 0x24a   :  { %v2269_v44 = vpop.f32.mrf.mxu0  ;;  %2693 = vadd.xlane.f32.xlu0 %v6349_v40 }
 0x24b   :  { %v2270_v37 = vadd.f32 %v6248_v22, %v2269_v44  ;;  %vm2488_vm14 = vcmp.ge.f32.partialorder %v2278_v26, 0.0  ;;  %v2552_v32 = vmul.f32 0.01, %v2278_v26  ;;  %v6355_v62 = vsel %vm2485_vm13, %v2267_v30, %v2549_v41 }
 0x24d   :  { %v6353_v7 = vsel %vm2488_vm14, %v2278_v26, %v2552_v32  ;;  %v2550_v57 = vmul.f32 0.01, %v2270_v37  ;;  %vm2486_vm15 = vcmp.ge.f32.partialorder %v2270_v37, 0.0 }
 0x24e   :  { %2695 = vadd.xlane.f32.xlu1 %v6353_v7  ;;  %2689 = vadd.xlane.f32.xlu0 %v6355_v62 }
 0x24f   :  { %v6359_v50 = vsel %vm2486_vm15, %v2270_v37, %v2550_v57 }
 0x252   :  { %2691 = vadd.xlane.f32.xlu1 %v6359_v50 }
 0x254   :  { %v4720_v48 = vpop.f32.mrf.mxu0 }
 0x255   :  { %v2291_v51 = vadd.f32 %v4720_v48, %v6248_v22 }
 0x256   :  { %v2282_v53 = vpop.f32.mrf.mxu0 }
 0x257   :  { %v2283_v36 = vadd.f32 %v6248_v22, %v2282_v53  ;;  %vm2491_vm0 = vcmp.ge.f32.partialorder %v2291_v51, 0.0  ;;  %v2555_v0 = vmul.f32 0.01, %v2291_v51 }
 0x258   :  { %v4721_v3 = vpop.f32.mrf.mxu0 }
 0x259   :  { %v2294_v4 = vadd.f32 %v4721_v3, %v6248_v22  ;;  %v6365_v60 = vsel %vm2491_vm0, %v2291_v51, %v2555_v0  ;;  %v2553_v18 = vmul.f32 0.01, %v2283_v36  ;;  %vm2489_vm1 = vcmp.ge.f32.partialorder %v2283_v36, 0.0 }
 0x25a   :  { %v2285_v33 = vpop.f32.mrf.mxu0  ;;  %2701 = vadd.xlane.f32.xlu0 %v6365_v60 }
 0x25b   :  { %v2286_v31 = vadd.f32 %v6248_v22, %v2285_v33  ;;  %vm2492_vm2 = vcmp.ge.f32.partialorder %v2294_v4, 0.0  ;;  %v2556_v54 = vmul.f32 0.01, %v2294_v4  ;;  %v6371_v9 = vsel %vm2489_vm1, %v2283_v36, %v2553_v18 }
 0x25d   :  { %v6369_v61 = vsel %vm2492_vm2, %v2294_v4, %v2556_v54  ;;  %v2554_v6 = vmul.f32 0.01, %v2286_v31  ;;  %vm2490_vm3 = vcmp.ge.f32.partialorder %v2286_v31, 0.0 }
 0x25e   :  { %2703 = vadd.xlane.f32.xlu1 %v6369_v61  ;;  %2697 = vadd.xlane.f32.xlu0 %v6371_v9 }
 0x25f   :  { %v6375_v42 = vsel %vm2490_vm3, %v2286_v31, %v2554_v6 }
 0x262   :  { %2699 = vadd.xlane.f32.xlu1 %v6375_v42 }
 0x264   :  { %v4724_v38 = vpop.f32.mrf.mxu0 }
 0x265   :  { %v2307_v55 = vadd.f32 %v4724_v38, %v6248_v22 }
 0x266   :  { %v2298_v39 = vpop.f32.mrf.mxu0 }
 0x267   :  { %v2299_v8 = vadd.f32 %v6248_v22, %v2298_v39  ;;  %vm2495_vm4 = vcmp.ge.f32.partialorder %v2307_v55, 0.0  ;;  %v2559_v11 = vmul.f32 0.01, %v2307_v55 }
 0x268   :  { %v4725_v58 = vpop.f32.mrf.mxu0 }
 0x269   :  { %v2310_v14 = vadd.f32 %v4725_v58, %v6248_v22  ;;  %v6381_v46 = vsel %vm2495_vm4, %v2307_v55, %v2559_v11  ;;  %v2557_v13 = vmul.f32 0.01, %v2299_v8  ;;  %vm2493_vm5 = vcmp.ge.f32.partialorder %v2299_v8, 0.0 }
 0x26a   :  { %v2301_v17 = vpop.f32.mrf.mxu0  ;;  %2709 = vadd.xlane.f32.xlu0 %v6381_v46 }
 0x26b   :  { %v2302_v15 = vadd.f32 %v6248_v22, %v2301_v17  ;;  %vm2496_vm6 = vcmp.ge.f32.partialorder %v2310_v14, 0.0  ;;  %v2560_v1 = vmul.f32 0.01, %v2310_v14  ;;  %v6387_v52 = vsel %vm2493_vm5, %v2299_v8, %v2557_v13 }
 0x26d   :  { %v6385_v25 = vsel %vm2496_vm6, %v2310_v14, %v2560_v1  ;;  %v2558_v16 = vmul.f32 0.01, %v2302_v15  ;;  %vm2494_vm7 = vcmp.ge.f32.partialorder %v2302_v15, 0.0 }
 0x26e   :  { %2711 = vadd.xlane.f32.xlu1 %v6385_v25  ;;  %2705 = vadd.xlane.f32.xlu0 %v6387_v52 }
 0x26f   :  { %v6391_v24 = vsel %vm2494_vm7, %v2302_v15, %v2558_v16 }
 0x272   :  { %2707 = vadd.xlane.f32.xlu1 %v6391_v24 }
 0x274   :  { %v4728_v63 = vpop.f32.mrf.mxu0 }
 0x275   :  { %v2323_v2 = vadd.f32 %v4728_v63, %v6248_v22 }
 0x276   :  { %v2314_v19 = vpop.f32.mrf.mxu0 }
 0x277   :  { %v2315_v43 = vadd.f32 %v6248_v22, %v2314_v19  ;;  %vm2499_vm8 = vcmp.ge.f32.partialorder %v2323_v2, 0.0  ;;  %v2563_v27 = vmul.f32 0.01, %v2323_v2 }
 0x278   :  { %v4729_v29 = vpop.f32.mrf.mxu0 }
 0x279   :  { %v2326_v30 = vadd.f32 %v4729_v29, %v6248_v22  ;;  %v6397_v56 = vsel %vm2499_vm8, %v2323_v2, %v2563_v27  ;;  %v2561_v20 = vmul.f32 0.01, %v2315_v43  ;;  %vm2497_vm9 = vcmp.ge.f32.partialorder %v2315_v43, 0.0 }
 0x27a   :  { %v2317_v26 = vpop.f32.mrf.mxu0  ;;  %2717 = vadd.xlane.f32.xlu0 %v6397_v56 }
 0x27b   :  { %v2318_v41 = vadd.f32 %v6248_v22, %v2317_v26  ;;  %vm2500_vm10 = vcmp.ge.f32.partialorder %v2326_v30, 0.0  ;;  %v2564_v44 = vmul.f32 0.01, %v2326_v30  ;;  %v6403_v32 = vsel %vm2497_vm9, %v2315_v43, %v2561_v20 }
 0x27d   :  { %v6401_v37 = vsel %vm2500_vm10, %v2326_v30, %v2564_v44  ;;  %v2562_v57 = vmul.f32 0.01, %v2318_v41  ;;  %vm2498_vm11 = vcmp.ge.f32.partialorder %v2318_v41, 0.0 }
 0x27e   :  { %2719 = vadd.xlane.f32.xlu1 %v6401_v37  ;;  %2713 = vadd.xlane.f32.xlu0 %v6403_v32 }
 0x27f   :  { %v6407_v48 = vsel %vm2498_vm11, %v2318_v41, %v2562_v57 }
 0x282   :  { %2715 = vadd.xlane.f32.xlu1 %v6407_v48 }
 0x284   :  { %v4732_v51 = vpop.f32.mrf.mxu0 }
 0x285   :  { %v2339_v53 = vadd.f32 %v4732_v51, %v6248_v22 }
 0x286   :  { %v2330_v36 = vpop.f32.mrf.mxu0 }
 0x287   :  { %v2331_v0 = vadd.f32 %v6248_v22, %v2330_v36  ;;  %vm2503_vm12 = vcmp.ge.f32.partialorder %v2339_v53, 0.0  ;;  %v2567_v3 = vmul.f32 0.01, %v2339_v53 }
 0x288   :  { %v4733_v4 = vpop.f32.mrf.mxu0 }
 0x289   :  { %v2342_v18 = vadd.f32 %v4733_v4, %v6248_v22  ;;  %v6413_v33 = vsel %vm2503_vm12, %v2339_v53, %v2567_v3  ;;  %v2565_v31 = vmul.f32 0.01, %v2331_v0  ;;  %vm2501_vm13 = vcmp.ge.f32.partialorder %v2331_v0, 0.0 }
 0x28a   :  { %v2333_v54 = vpop.f32.mrf.mxu0  ;;  %2725 = vadd.xlane.f32.xlu0 %v6413_v33 }
 0x28b   :  { %v2334_v6 = vadd.f32 %v6248_v22, %v2333_v54  ;;  %vm2504_vm14 = vcmp.ge.f32.partialorder %v2342_v18, 0.0  ;;  %v2568_v38 = vmul.f32 0.01, %v2342_v18  ;;  %v6419_v39 = vsel %vm2501_vm13, %v2331_v0, %v2565_v31 }
 0x28d   :  { %v6417_v55 = vsel %vm2504_vm14, %v2342_v18, %v2568_v38  ;;  %v2566_v8 = vmul.f32 0.01, %v2334_v6  ;;  %vm2502_vm15 = vcmp.ge.f32.partialorder %v2334_v6, 0.0 }
 0x28e   :  { %2727 = vadd.xlane.f32.xlu1 %v6417_v55  ;;  %2721 = vadd.xlane.f32.xlu0 %v6419_v39 }
 0x28f   :  { %v6423_v11 = vsel %vm2502_vm15, %v2334_v6, %v2566_v8 }
 0x292   :  { %2723 = vadd.xlane.f32.xlu1 %v6423_v11 }
 0x294   :  { %v4736_v58 = vpop.f32.mrf.mxu0 }
 0x295   :  { %v2355_v14 = vadd.f32 %v4736_v58, %v6248_v22 }
 0x296   :  { %v2346_v13 = vpop.f32.mrf.mxu0 }
 0x297   :  { %v2347_v17 = vadd.f32 %v6248_v22, %v2346_v13  ;;  %vm2507_vm0 = vcmp.ge.f32.partialorder %v2355_v14, 0.0  ;;  %v2571_v15 = vmul.f32 0.01, %v2355_v14 }
 0x298   :  { %v4737_v1 = vpop.f32.mrf.mxu0 }
 0x299   :  { %v2358_v16 = vadd.f32 %v4737_v1, %v6248_v22  ;;  %v6429_v63 = vsel %vm2507_vm0, %v2355_v14, %v2571_v15  ;;  %v2569_v2 = vmul.f32 0.01, %v2347_v17  ;;  %vm2505_vm1 = vcmp.ge.f32.partialorder %v2347_v17, 0.0 }
 0x29a   :  { %v2349_v19 = vpop.f32.mrf.mxu0  ;;  %2733 = vadd.xlane.f32.xlu0 %v6429_v63 }
 0x29b   :  { %v2350_v43 = vadd.f32 %v6248_v22, %v2349_v19  ;;  %vm2508_vm2 = vcmp.ge.f32.partialorder %v2358_v16, 0.0  ;;  %v2572_v27 = vmul.f32 0.01, %v2358_v16  ;;  %v6435_v30 = vsel %vm2505_vm1, %v2347_v17, %v2569_v2 }
 0x29d   :  { %v6433_v29 = vsel %vm2508_vm2, %v2358_v16, %v2572_v27  ;;  %v2570_v20 = vmul.f32 0.01, %v2350_v43  ;;  %vm2506_vm3 = vcmp.ge.f32.partialorder %v2350_v43, 0.0 }
 0x29e   :  { %2735 = vadd.xlane.f32.xlu1 %v6433_v29  ;;  %2729 = vadd.xlane.f32.xlu0 %v6435_v30 }
 0x29f   :  { %v6439_v26 = vsel %vm2506_vm3, %v2350_v43, %v2570_v20 }
 0x2a2   :  { %2731 = vadd.xlane.f32.xlu1 %v6439_v26 }
 0x2a3   :  { %v2670_v41 = vpop.xlane.xlu1 %2669 }
 0x2a4   :  { %v2796_v44 = vmul.f32 0.0078125, %v2670_v41  ;;  %v4740_v57 = vpop.f32.mrf.mxu0 }
 0x2a5   :  { %v2371_v51 = vadd.f32 %v4740_v57, %v6248_v22  ;;  %v2666_v36 = vpop.xlane.xlu0 %2665 }
 0x2a6   :  { %v2362_v53 = vpop.f32.mrf.mxu0  ;;  %v6444_v31 = vsub.f32 %v6261_v49, %v2796_v44  ;;  %v2794_v14 = vmul.f32 0.0078125, %v2666_v36 }
 0x2a7   :  { %v2672_v0 = vpop.xlane.xlu1 %2671  ;;  %vm2511_vm4 = vcmp.ge.f32.partialorder %v2371_v51, 0.0  ;;  %v2575_v3 = vmul.f32 0.01, %v2371_v51  ;;  %v2363_v54 = vadd.f32 %v6248_v22, %v2362_v53 }
 0x2a8   :  { %v2797_v4 = vmul.f32 0.0078125, %v2672_v0  ;;  %v4741_v18 = vpop.f32.mrf.mxu0  ;;  %v2924_v13 = vmul.f32 %v6444_v31, %v6444_v31  ;;  %v6463_v43 = vsub.f32 %v6265_v10, %v2794_v14 }
 0x2a9   :  { %v2374_v6 = vadd.f32 %v4741_v18, %v6248_v22  ;;  %v6448_v38 = vsel %vm2511_vm4, %v2371_v51, %v2575_v3  ;;  %v2668_v49 = vpop.xlane.xlu0 %2667  ;;  %v2573_v16 = vmul.f32 0.01, %v2363_v54  ;;  %vm2509_vm6 = vcmp.ge.f32.partialorder %v2363_v54, 0.0 }
 0x2aa   :  { %v2365_v8 = vpop.f32.mrf.mxu0  ;;  %2741 = vadd.xlane.f32.xlu0 %v6448_v38  ;;  %v6454_v17 = vsub.f32 %v6275_v59, %v2797_v4  ;;  %v2795_v2 = vmul.f32 0.0078125, %v2668_v49  ;;  %v2922_v57 = vmul.f32 %v6463_v43, %v6463_v43 }
 0x2ab   :  { %vm2512_vm5 = vcmp.ge.f32.partialorder %v2374_v6, 0.0  ;;  %v2576_v58 = vmul.f32 0.01, %v2374_v6  ;;  %v2366_v15 = vadd.f32 %v6248_v22, %v2365_v8  ;;  %v6465_v27 = vsel %vm2509_vm6, %v2363_v54, %v2573_v16 }
 0x2ac   :  { %v2925_v19 = vmul.f32 %v6454_v17, %v6454_v17  ;;  %v6471_v51 = vsub.f32 %v6279_v35, %v2795_v2 }
 0x2ad   :  { %v6457_v1 = vsel %vm2512_vm5, %v2374_v6, %v2576_v58  ;;  %v2574_v59 = vmul.f32 0.01, %v2366_v15  ;;  %vm2510_vm7 = vcmp.ge.f32.partialorder %v2366_v15, 0.0 }
 0x2ae   :  { %2743 = vadd.xlane.f32.xlu1 %v6457_v1  ;;  %2990 = vadd.xlane.f32.xlu0 %v2924_v13  ;;  %v2923_v54 = vmul.f32 %v6471_v51, %v6471_v51 }
 0x2af   :  { %v6474_v10 = vsel %vm2510_vm7, %v2366_v15, %v2574_v59 }
 0x2b2   :  { %2992 = vadd.xlane.f32.xlu1 %v2925_v19  ;;  %2737 = vadd.xlane.f32.xlu0 %v6465_v27 }
 0x2b3   :  { %v2678_v20 = vpop.xlane.xlu0 %2677 }
 0x2b4   :  { %v2800_v41 = vmul.f32 0.0078125, %v2678_v20  ;;  %v4744_v44 = vpop.f32.mrf.mxu0 }
 0x2b5   :  { %v2387_v53 = vadd.f32 %v4744_v44, %v6248_v22 }
 0x2b6   :  { %v2378_v36 = vpop.f32.mrf.mxu0  ;;  %2739 = vadd.xlane.f32.xlu1 %v6474_v10  ;;  %2986 = vadd.xlane.f32.xlu0 %v2922_v57  ;;  %v6480_v6 = vsub.f32 %v6293_v23, %v2800_v41 }
 0x2b7   :  { %v2680_v0 = vpop.xlane.xlu1 %2679  ;;  %vm2515_vm8 = vcmp.ge.f32.partialorder %v2387_v53, 0.0  ;;  %v2579_v3 = vmul.f32 0.01, %v2387_v53  ;;  %v2379_v35 = vadd.f32 %v6248_v22, %v2378_v36  ;;  %v2674_v8 = vpop.xlane.xlu0 %2673 }
 0x2b8   :  { %v2801_v4 = vmul.f32 0.0078125, %v2680_v0  ;;  %v4745_v18 = vpop.f32.mrf.mxu0  ;;  %v2798_v15 = vmul.f32 0.0078125, %v2674_v8  ;;  %v2928_v16 = vmul.f32 %v6480_v6, %v6480_v6 }
 0x2b9   :  { %v2390_v58 = vadd.f32 %v4745_v18, %v6248_v22  ;;  %v6484_v14 = vsel %vm2515_vm8, %v2387_v53, %v2579_v3  ;;  %v2577_v20 = vmul.f32 0.01, %v2379_v35  ;;  %vm2513_vm10 = vcmp.ge.f32.partialorder %v2379_v35, 0.0 }
 0x2ba   :  { %v2381_v13 = vpop.f32.mrf.mxu0  ;;  %2749 = vadd.xlane.f32.xlu0 %v6484_v14  ;;  %2988 = vadd.xlane.f32.xlu1 %v2923_v54  ;;  %v6490_v23 = vsub.f32 %v6304_v45, %v2801_v4  ;;  %v6499_v57 = vsub.f32 %v6306_v34, %v2798_v15 }
 0x2bb   :  { %vm2516_vm9 = vcmp.ge.f32.partialorder %v2390_v58, 0.0  ;;  %v2580_v49 = vmul.f32 0.01, %v2390_v58  ;;  %v2382_v2 = vadd.f32 %v6248_v22, %v2381_v13  ;;  %v2676_v19 = vpop.xlane.xlu1 %2675  ;;  %v6501_v53 = vsel %vm2513_vm10, %v2379_v35, %v2577_v20 }
 0x2bc   :  { %v2799_v41 = vmul.f32 0.0078125, %v2676_v19  ;;  %v2929_v44 = vmul.f32 %v6490_v23, %v6490_v23  ;;  %v2926_v4 = vmul.f32 %v6499_v57, %v6499_v57 }
 0x2bd   :  { %v6493_v59 = vsel %vm2516_vm9, %v2390_v58, %v2580_v49  ;;  %v2578_v45 = vmul.f32 0.01, %v2382_v2  ;;  %vm2514_vm11 = vcmp.ge.f32.partialorder %v2382_v2, 0.0 }
 0x2be   :  { %2751 = vadd.xlane.f32.xlu1 %v6493_v59  ;;  %2998 = vadd.xlane.f32.xlu0 %v2928_v16  ;;  %v6507_v18 = vsub.f32 %v6311_v28, %v2799_v41 }
 0x2bf   :  { %v6510_v34 = vsel %vm2514_vm11, %v2382_v2, %v2578_v45 }
 0x2c0   :  { %v2927_v15 = vmul.f32 %v6507_v18, %v6507_v18 }
 0x2c2   :  { %3000 = vadd.xlane.f32.xlu1 %v2929_v44  ;;  %2745 = vadd.xlane.f32.xlu0 %v6501_v53 }
 0x2c3   :  { %v2686_v36 = vpop.xlane.xlu0 %2685 }
 0x2c4   :  { %v2804_v0 = vmul.f32 0.0078125, %v2686_v36  ;;  %v4748_v3 = vpop.f32.mrf.mxu0 }
 0x2c5   :  { %v2403_v54 = vadd.f32 %v4748_v3, %v6248_v22 }
 0x2c6   :  { %v2394_v35 = vpop.f32.mrf.mxu0  ;;  %2747 = vadd.xlane.f32.xlu1 %v6510_v34  ;;  %2994 = vadd.xlane.f32.xlu0 %v2926_v4  ;;  %v6516_v16 = vsub.f32 %v6325_v5, %v2804_v0 }
 0x2c7   :  { %v2688_v8 = vpop.xlane.xlu1 %2687  ;;  %vm2519_vm12 = vcmp.ge.f32.partialorder %v2403_v54, 0.0  ;;  %v2583_v58 = vmul.f32 0.01, %v2403_v54  ;;  %v2395_v28 = vadd.f32 %v6248_v22, %v2394_v35  ;;  %v2682_v19 = vpop.xlane.xlu0 %2681 }
 0x2c8   :  { %v2805_v13 = vmul.f32 0.0078125, %v2688_v8  ;;  %v4749_v49 = vpop.f32.mrf.mxu0  ;;  %v2802_v45 = vmul.f32 0.0078125, %v2682_v19  ;;  %v2932_v36 = vmul.f32 %v6516_v16, %v6516_v16 }
 0x2c9   :  { %v2406_v2 = vadd.f32 %v4749_v49, %v6248_v22  ;;  %v6520_v20 = vsel %vm2519_vm12, %v2403_v54, %v2583_v58  ;;  %v2581_v54 = vmul.f32 0.01, %v2395_v28  ;;  %vm2517_vm14 = vcmp.ge.f32.partialorder %v2395_v28, 0.0 }
 0x2ca   :  { %v2397_v41 = vpop.f32.mrf.mxu0  ;;  %2996 = vadd.xlane.f32.xlu1 %v2927_v15  ;;  %2757 = vadd.xlane.f32.xlu0 %v6520_v20  ;;  %v6526_v5 = vsub.f32 %v6336_v12, %v2805_v13  ;;  %v6535_v58 = vsub.f32 %v6338_v21, %v2802_v45 }
 0x2cb   :  { %vm2520_vm13 = vcmp.ge.f32.partialorder %v2406_v2, 0.0  ;;  %v2584_v44 = vmul.f32 0.01, %v2406_v2  ;;  %v2398_v0 = vadd.f32 %v6248_v22, %v2397_v41  ;;  %v2684_v3 = vpop.xlane.xlu1 %2683  ;;  %v6537_v49 = vsel %vm2517_vm14, %v2395_v28, %v2581_v54 }
 0x2cc   :  { %v2803_v35 = vmul.f32 0.0078125, %v2684_v3  ;;  %v2933_v8 = vmul.f32 %v6526_v5, %v6526_v5  ;;  %7432 = vst [vmem:[#allocation6_spill] sm:$0xff] %v6535_v58 }
 0x2cd   :  { %v6529_v4 = vsel %vm2520_vm13, %v2406_v2, %v2584_v44  ;;  %v2582_v12 = vmul.f32 0.01, %v2398_v0  ;;  %vm2518_vm15 = vcmp.ge.f32.partialorder %v2398_v0, 0.0  ;;  %v2930_v2 = vmul.f32 %v6535_v58, %v6535_v58 }
 0x2ce   :  { %2759 = vadd.xlane.f32.xlu1 %v6529_v4  ;;  %3006 = vadd.xlane.f32.xlu0 %v2932_v36  ;;  %v6543_v41 = vsub.f32 %v6343_v47, %v2803_v35 }
 0x2cf   :  { %v6546_v21 = vsel %vm2518_vm15, %v2398_v0, %v2582_v12 }
 0x2d0   :  { %7433 = vst [vmem:[#allocation7_spill] sm:$0xff] %v6543_v41 }
 0x2d2   :  { %3008 = vadd.xlane.f32.xlu1 %v2933_v8  ;;  %2753 = vadd.xlane.f32.xlu0 %v6537_v49  ;;  %v2931_v8 = vmul.f32 %v6543_v41, %v6543_v41 }
 0x2d3   :  { %v2694_v13 = vpop.xlane.xlu0 %2693 }
 0x2d4   :  { %v2808_v15 = vmul.f32 0.0078125, %v2694_v13  ;;  %v4752_v19 = vpop.f32.mrf.mxu0 }
 0x2d5   :  { %v2419_v44 = vadd.f32 %v4752_v19, %v6248_v22 }
 0x2d6   :  { %v2410_v28 = vpop.f32.mrf.mxu0  ;;  %2755 = vadd.xlane.f32.xlu1 %v6546_v21  ;;  %3002 = vadd.xlane.f32.xlu0 %v2930_v2  ;;  %v6552_v13 = vsub.f32 %v6349_v40, %v2808_v15 }
 0x2d7   :  { %v2696_v45 = vpop.xlane.xlu1 %2695  ;;  %vm2523_vm0 = vcmp.ge.f32.partialorder %v2419_v44, 0.0  ;;  %v2587_v36 = vmul.f32 0.01, %v2419_v44  ;;  %v2411_v47 = vadd.f32 %v6248_v22, %v2410_v28  ;;  %v2690_v35 = vpop.xlane.xlu0 %2689 }
 0x2d8   :  { %v2809_v3 = vmul.f32 0.0078125, %v2696_v45  ;;  %v4753_v54 = vpop.f32.mrf.mxu0  ;;  %7434 = vst [vmem:[#allocation8_spill] sm:$0xff] %v6552_v13  ;;  %v2806_v45 = vmul.f32 0.0078125, %v2690_v35  ;;  %v2936_v41 = vmul.f32 %v6552_v13, %v6552_v13 }
 0x2d9   :  { %v2422_v0 = vadd.f32 %v4753_v54, %v6248_v22  ;;  %v6556_v12 = vsel %vm2523_vm0, %v2419_v44, %v2587_v36  ;;  %v2585_v44 = vmul.f32 0.01, %v2411_v47  ;;  %vm2521_vm2 = vcmp.ge.f32.partialorder %v2411_v47, 0.0 }
 0x2da   :  { %v2413_v19 = vpop.f32.mrf.mxu0  ;;  %3004 = vadd.xlane.f32.xlu1 %v2931_v8  ;;  %2765 = vadd.xlane.f32.xlu0 %v6556_v12  ;;  %v6562_v40 = vsub.f32 %v6353_v7, %v2809_v3  ;;  %v6571_v8 = vsub.f32 %v6355_v62, %v2806_v45 }
 0x2db   :  { %vm2524_vm1 = vcmp.ge.f32.partialorder %v2422_v0, 0.0  ;;  %v2588_v2 = vmul.f32 0.01, %v2422_v0  ;;  %v2414_v15 = vadd.f32 %v6248_v22, %v2413_v19  ;;  %v2692_v28 = vpop.xlane.xlu1 %2691  ;;  %v6573_v35 = vsel %vm2521_vm2, %v2411_v47, %v2585_v44 }
 0x2dc   :  { %7435 = vst [vmem:[#allocation9_spill] sm:$0xff] %v6562_v40  ;;  %v2807_v36 = vmul.f32 0.0078125, %v2692_v28  ;;  %v2937_v54 = vmul.f32 %v6562_v40, %v6562_v40  ;;  %7436 = vst [vmem:[#allocation10_spill] sm:$0xff] %v6571_v8 }
 0x2dd   :  { %v6565_v58 = vsel %vm2524_vm1, %v2422_v0, %v2588_v2  ;;  %v2586_v7 = vmul.f32 0.01, %v2414_v15  ;;  %vm2522_vm3 = vcmp.ge.f32.partialorder %v2414_v15, 0.0 }
 0x2de   :  { %2767 = vadd.xlane.f32.xlu1 %v6565_v58  ;;  %3014 = vadd.xlane.f32.xlu0 %v2936_v41  ;;  %v2934_v41 = vmul.f32 %v6571_v8, %v6571_v8  ;;  %v6579_v2 = vsub.f32 %v6359_v50, %v2807_v36 }
 0x2df   :  { %v6582_v62 = vsel %vm2522_vm3, %v2414_v15, %v2586_v7 }
 0x2e0   :  { %7437 = vst [vmem:[#allocation11_spill] sm:$0xff] %v6579_v2  ;;  %v2935_v40 = vmul.f32 %v6579_v2, %v6579_v2 }
 0x2e2   :  { %3016 = vadd.xlane.f32.xlu1 %v2937_v54  ;;  %2761 = vadd.xlane.f32.xlu0 %v6573_v35 }
 0x2e3   :  { %v2702_v3 = vpop.xlane.xlu0 %2701 }
 0x2e4   :  { %v2812_v0 = vmul.f32 0.0078125, %v2702_v3  ;;  %v4756_v19 = vpop.f32.mrf.mxu0 }
 0x2e5   :  { %v2435_v28 = vadd.f32 %v4756_v19, %v6248_v22 }
 0x2e6   :  { %v2426_v47 = vpop.f32.mrf.mxu0  ;;  %2763 = vadd.xlane.f32.xlu1 %v6582_v62  ;;  %3010 = vadd.xlane.f32.xlu0 %v2934_v41  ;;  %v6588_v8 = vsub.f32 %v6365_v60, %v2812_v0 }
 0x2e7   :  { %v2704_v45 = vpop.xlane.xlu1 %2703  ;;  %vm2527_vm4 = vcmp.ge.f32.partialorder %v2435_v28, 0.0  ;;  %v2591_v44 = vmul.f32 0.01, %v2435_v28  ;;  %v2427_v50 = vadd.f32 %v6248_v22, %v2426_v47  ;;  %v2698_v36 = vpop.xlane.xlu0 %2697 }
 0x2e8   :  { %v2813_v54 = vmul.f32 0.0078125, %v2704_v45  ;;  %v4757_v3 = vpop.f32.mrf.mxu0  ;;  %7438 = vst [vmem:[#allocation12_spill] sm:$0xff] %v6588_v8  ;;  %v2810_v45 = vmul.f32 0.0078125, %v2698_v36  ;;  %v2940_v2 = vmul.f32 %v6588_v8, %v6588_v8 }
 0x2e9   :  { %v2438_v15 = vadd.f32 %v4757_v3, %v6248_v22  ;;  %v6592_v7 = vsel %vm2527_vm4, %v2435_v28, %v2591_v44  ;;  %v2589_v28 = vmul.f32 0.01, %v2427_v50  ;;  %vm2525_vm6 = vcmp.ge.f32.partialorder %v2427_v50, 0.0 }
 0x2ea   :  { %v2429_v19 = vpop.f32.mrf.mxu0  ;;  %3012 = vadd.xlane.f32.xlu1 %v2935_v40  ;;  %2773 = vadd.xlane.f32.xlu0 %v6592_v7  ;;  %v6598_v60 = vsub.f32 %v6369_v61, %v2813_v54  ;;  %v6607_v3 = vsub.f32 %v6371_v9, %v2810_v45 }
 0x2eb   :  { %vm2528_vm5 = vcmp.ge.f32.partialorder %v2438_v15, 0.0  ;;  %v2592_v41 = vmul.f32 0.01, %v2438_v15  ;;  %v2430_v0 = vadd.f32 %v6248_v22, %v2429_v19  ;;  %v2700_v47 = vpop.xlane.xlu1 %2699  ;;  %v6609_v36 = vsel %vm2525_vm6, %v2427_v50, %v2589_v28 }
 0x2ec   :  { %7439 = vst [vmem:[#allocation13_spill] sm:$0xff] %v6598_v60  ;;  %v2811_v40 = vmul.f32 0.0078125, %v2700_v47  ;;  %v2941_v44 = vmul.f32 %v6598_v60, %v6598_v60  ;;  %7440 = vst [vmem:[#allocation14_spill] sm:$0xff] %v6607_v3 }
 0x2ed   :  { %v6601_v13 = vsel %vm2528_vm5, %v2438_v15, %v2592_v41  ;;  %v2590_v61 = vmul.f32 0.01, %v2430_v0  ;;  %vm2526_vm7 = vcmp.ge.f32.partialorder %v2430_v0, 0.0 }
 0x2ee   :  { %2775 = vadd.xlane.f32.xlu1 %v6601_v13  ;;  %3022 = vadd.xlane.f32.xlu0 %v2940_v2  ;;  %v2938_v2 = vmul.f32 %v6607_v3, %v6607_v3  ;;  %v6615_v41 = vsub.f32 %v6375_v42, %v2811_v40 }
 0x2ef   :  { %v6618_v9 = vsel %vm2526_vm7, %v2430_v0, %v2590_v61 }
 0x2f0   :  { %7441 = vst [vmem:[#allocation15_spill] sm:$0xff] %v6615_v41  ;;  %v2939_v60 = vmul.f32 %v6615_v41, %v6615_v41 }
 0x2f2   :  { %3024 = vadd.xlane.f32.xlu1 %v2941_v44  ;;  %2769 = vadd.xlane.f32.xlu0 %v6609_v36 }
 0x2f3   :  { %v2710_v54 = vpop.xlane.xlu0 %2709 }
 0x2f4   :  { %v2816_v15 = vmul.f32 0.0078125, %v2710_v54  ;;  %v4760_v19 = vpop.f32.mrf.mxu0 }
 0x2f5   :  { %v2451_v47 = vadd.f32 %v4760_v19, %v6248_v22  ;;  %v5290_v22 = vld [vmem:[%s7401_s4] ss:$0 sm:$0xff] }
 0x2f6   :  { %v2442_v50 = vpop.f32.mrf.mxu0  ;;  %2771 = vadd.xlane.f32.xlu1 %v6618_v9  ;;  %3018 = vadd.xlane.f32.xlu0 %v2938_v2  ;;  %v6624_v3 = vsub.f32 %v6381_v46, %v2816_v15 }
 0x2f7   :  { %v2712_v45 = vpop.xlane.xlu1 %2711  ;;  %vm2531_vm8 = vcmp.ge.f32.partialorder %v2451_v47, 0.0  ;;  %v2595_v28 = vmul.f32 0.01, %v2451_v47  ;;  %v2443_v42 = vadd.f32 %v5290_v22, %v2442_v50  ;;  %v2706_v0 = vpop.xlane.xlu0 %2705 }
 0x2f8   :  { %v2817_v44 = vmul.f32 0.0078125, %v2712_v45  ;;  %v4761_v54 = vpop.f32.mrf.mxu0  ;;  %7442 = vst [vmem:[#allocation16_spill] sm:$0xff] %v6624_v3  ;;  %v2814_v45 = vmul.f32 0.0078125, %v2706_v0  ;;  %v2944_v46 = vmul.f32 %v6624_v3, %v6624_v3 }
 0x2f9   :  { %v2454_v40 = vadd.f32 %v5290_v22, %v4761_v54  ;;  %v6629_v61 = vsel %vm2531_vm8, %v2451_v47, %v2595_v28  ;;  %v2593_v54 = vmul.f32 0.01, %v2443_v42  ;;  %vm2529_vm10 = vcmp.ge.f32.partialorder %v2443_v42, 0.0 }
 0x2fa   :  { %v2445_v19 = vpop.f32.mrf.mxu0  ;;  %3020 = vadd.xlane.f32.xlu1 %v2939_v60  ;;  %2781 = vadd.xlane.f32.xlu0 %v6629_v61  ;;  %v6635_v15 = vsub.f32 %v6385_v25, %v2817_v44  ;;  %v6643_v28 = vsub.f32 %v6387_v52, %v2814_v45 }
 0x2fb   :  { %vm2532_vm9 = vcmp.ge.f32.partialorder %v2454_v40, 0.0  ;;  %v2596_v2 = vmul.f32 0.01, %v2454_v40  ;;  %v2446_v41 = vadd.f32 %v5290_v22, %v2445_v19  ;;  %v2708_v8 = vpop.xlane.xlu1 %2707  ;;  %v6645_v0 = vsel %vm2529_vm10, %v2443_v42, %v2593_v54 }
 0x2fc   :  { %7443 = vst [vmem:[#allocation17_spill] sm:$0xff] %v6635_v15  ;;  %v2815_v60 = vmul.f32 0.0078125, %v2708_v8  ;;  %v2945_v47 = vmul.f32 %v6635_v15, %v6635_v15  ;;  %7444 = vst [vmem:[#allocation18_spill] sm:$0xff] %v6643_v28 }
 0x2fd   :  { %v6637_v50 = vsel %vm2532_vm9, %v2454_v40, %v2596_v2  ;;  %v2594_v25 = vmul.f32 0.01, %v2446_v41  ;;  %vm2530_vm11 = vcmp.ge.f32.partialorder %v2446_v41, 0.0  ;;  %v2942_v2 = vmul.f32 %v6643_v28, %v6643_v28 }
 0x2fe   :  { %2783 = vadd.xlane.f32.xlu1 %v6637_v50  ;;  %3030 = vadd.xlane.f32.xlu0 %v2944_v46  ;;  %v6651_v8 = vsub.f32 %v6391_v24, %v2815_v60 }
 0x2ff   :  { %v6653_v15 = vsel %vm2530_vm11, %v2446_v41, %v2594_v25 }
 0x300   :  { %7445 = vst [vmem:[#allocation19_spill] sm:$0xff] %v6651_v8 }
 0x302   :  { %3032 = vadd.xlane.f32.xlu1 %v2945_v47  ;;  %2777 = vadd.xlane.f32.xlu0 %v6645_v0 }
 0x303   :  { %v2718_v44 = vpop.xlane.xlu0 %2717 }
 0x304   :  { %v2820_v40 = vmul.f32 0.0078125, %v2718_v44  ;;  %v4764_v19 = vpop.f32.mrf.mxu0  ;;  %v2943_v44 = vmul.f32 %v6651_v8, %v6651_v8 }
 0x305   :  { %v2467_v46 = vadd.f32 %v5290_v22, %v4764_v19 }
 0x306   :  { %v2458_v52 = vpop.f32.mrf.mxu0  ;;  %2779 = vadd.xlane.f32.xlu1 %v6653_v15  ;;  %3026 = vadd.xlane.f32.xlu0 %v2942_v2  ;;  %v6659_v28 = vsub.f32 %v6397_v56, %v2820_v40 }
 0x307   :  { %v2720_v42 = vpop.xlane.xlu1 %2719  ;;  %vm2535_vm12 = vcmp.ge.f32.partialorder %v2467_v46, 0.0  ;;  %v2599_v45 = vmul.f32 0.01, %v2467_v46  ;;  %v2459_v24 = vadd.f32 %v5290_v22, %v2458_v52  ;;  %v2714_v60 = vpop.xlane.xlu0 %2713 }
 0x308   :  { %v2821_v54 = vmul.f32 0.0078125, %v2720_v42  ;;  %v4765_v47 = vpop.f32.mrf.mxu0  ;;  %v2818_v3 = vmul.f32 0.0078125, %v2714_v60  ;;  %v2948_v42 = vmul.f32 %v6659_v28, %v6659_v28 }
 0x309   :  { %v2470_v19 = vadd.f32 %v5290_v22, %v4765_v47  ;;  %v6661_v41 = vsel %vm2535_vm12, %v2467_v46, %v2599_v45  ;;  %v2597_v47 = vmul.f32 0.01, %v2459_v24  ;;  %vm2533_vm14 = vcmp.ge.f32.partialorder %v2459_v24, 0.0 }
 0x30a   :  { %v2461_v25 = vpop.f32.mrf.mxu0  ;;  %3028 = vadd.xlane.f32.xlu1 %v2943_v44  ;;  %2789 = vadd.xlane.f32.xlu0 %v6661_v41  ;;  %v6667_v8 = vsub.f32 %v6401_v37, %v2821_v54  ;;  %v6675_v44 = vsub.f32 %v6403_v32, %v2818_v3 }
 0x30b   :  { %vm2536_vm13 = vcmp.ge.f32.partialorder %v2470_v19, 0.0  ;;  %v2600_v2 = vmul.f32 0.01, %v2470_v19  ;;  %v2462_v56 = vadd.f32 %v5290_v22, %v2461_v25  ;;  %v2716_v40 = vpop.xlane.xlu1 %2715  ;;  %v6677_v60 = vsel %vm2533_vm14, %v2459_v24, %v2597_v47 }
 0x30c   :  { %v2819_v46 = vmul.f32 0.0078125, %v2716_v40  ;;  %v2949_v45 = vmul.f32 %v6667_v8, %v6667_v8 }
 0x30d   :  { %v6669_v52 = vsel %vm2536_vm13, %v2470_v19, %v2600_v2  ;;  %v2598_v37 = vmul.f32 0.01, %v2462_v56  ;;  %vm2534_vm15 = vcmp.ge.f32.partialorder %v2462_v56, 0.0  ;;  %v2946_v19 = vmul.f32 %v6675_v44, %v6675_v44 }
 0x30e   :  { %2791 = vadd.xlane.f32.xlu1 %v6669_v52  ;;  %3038 = vadd.xlane.f32.xlu0 %v2948_v42  ;;  %v6683_v25 = vsub.f32 %v6407_v48, %v2819_v46 }
 0x30f   :  { %v6685_v2 = vsel %vm2534_vm15, %v2462_v56, %v2598_v37 }
 0x310   :  { %v2947_v47 = vmul.f32 %v6683_v25, %v6683_v25 }
 0x312   :  { %3040 = vadd.xlane.f32.xlu1 %v2949_v45  ;;  %2785 = vadd.xlane.f32.xlu0 %v6677_v60 }
 0x313   :  { %v2726_v22 = vpop.xlane.xlu0 %2725 }
 0x314   :  { %v2824_v54 = vmul.f32 0.0078125, %v2726_v22 }
 0x316   :  { %2787 = vadd.xlane.f32.xlu1 %v6685_v2  ;;  %3034 = vadd.xlane.f32.xlu0 %v2946_v19  ;;  %v6689_v32 = vsub.f32 %v6413_v33, %v2824_v54 }
 0x317   :  { %v2728_v3 = vpop.xlane.xlu1 %2727  ;;  %v2722_v24 = vpop.xlane.xlu0 %2721 }
 0x318   :  { %v2825_v42 = vmul.f32 0.0078125, %v2728_v3  ;;  %v2822_v40 = vmul.f32 0.0078125, %v2722_v24  ;;  %v2952_v45 = vmul.f32 %v6689_v32, %v6689_v32 }
 0x31a   :  { %3036 = vadd.xlane.f32.xlu1 %v2947_v47  ;;  %3046 = vadd.xlane.f32.xlu0 %v2952_v45  ;;  %v6696_v48 = vsub.f32 %v6417_v55, %v2825_v42  ;;  %v6699_v56 = vsub.f32 %v6419_v39, %v2822_v40 }
 0x31b   :  { %v2724_v33 = vpop.xlane.xlu1 %2723 }
 0x31c   :  { %v2823_v46 = vmul.f32 0.0078125, %v2724_v33  ;;  %v2953_v37 = vmul.f32 %v6696_v48, %v6696_v48  ;;  %v2950_v22 = vmul.f32 %v6699_v56, %v6699_v56 }
 0x31e   :  { %3048 = vadd.xlane.f32.xlu1 %v2953_v37  ;;  %3042 = vadd.xlane.f32.xlu0 %v2950_v22  ;;  %v6706_v54 = vsub.f32 %v6423_v11, %v2823_v46 }
 0x320   :  { %v2951_v55 = vmul.f32 %v6706_v54, %v6706_v54 }
 0x322   :  { %3044 = vadd.xlane.f32.xlu1 %v2951_v55 }
 0x323   :  { %v2734_v19 = vpop.xlane.xlu0 %2733 }
 0x324   :  { %v2828_v39 = vmul.f32 0.0078125, %v2734_v19 }
 0x326   :  { %v6711_v3 = vsub.f32 %v6429_v63, %v2828_v39 }
 0x327   :  { %v2736_v24 = vpop.xlane.xlu1 %2735  ;;  %v2730_v42 = vpop.xlane.xlu0 %2729 }
 0x328   :  { %v2829_v40 = vmul.f32 0.0078125, %v2736_v24  ;;  %v2826_v47 = vmul.f32 0.0078125, %v2730_v42  ;;  %v2956_v45 = vmul.f32 %v6711_v3, %v6711_v3 }
 0x32a   :  { %v6716_v33 = vsub.f32 %v6435_v30, %v2826_v47  ;;  %3054 = vadd.xlane.f32.xlu0 %v2956_v45  ;;  %v6719_v11 = vsub.f32 %v6433_v29, %v2829_v40 }
 0x32b   :  { %v2732_v46 = vpop.xlane.xlu1 %2731 }
 0x32c   :  { %v2827_v37 = vmul.f32 0.0078125, %v2732_v46  ;;  %v2957_v63 = vmul.f32 %v6719_v11, %v6719_v11  ;;  %v2954_v22 = vmul.f32 %v6716_v33, %v6716_v33 }
 0x32e   :  { %v6726_v55 = vsub.f32 %v6439_v26, %v2827_v37  ;;  %3056 = vadd.xlane.f32.xlu1 %v2957_v63  ;;  %3050 = vadd.xlane.f32.xlu0 %v2954_v22 }
 0x330   :  { %v2955_v30 = vmul.f32 %v6726_v55, %v6726_v55 }
 0x332   :  { %3052 = vadd.xlane.f32.xlu1 %v2955_v30 }
 0x333   :  { %v2742_v19 = vpop.xlane.xlu0 %2741 }
 0x334   :  { %v2832_v29 = vmul.f32 0.0078125, %v2742_v19 }
 0x336   :  { %v6731_v39 = vsub.f32 %v6448_v38, %v2832_v29 }
 0x337   :  { %v2744_v24 = vpop.xlane.xlu1 %2743  ;;  %v2991_v42 = vpop.xlane.xlu0 %2990 }
 0x338   :  { %v2833_v40 = vmul.f32 0.0078125, %v2744_v24  ;;  %v3116_v47 = vmul.f32 0.0078125, %v2991_v42  ;;  %v2960_v45 = vmul.f32 %v6731_v39, %v6731_v39 }
 0x33a   :  { %v6736_v26 = vsub.f32 %v6457_v1, %v2833_v40  ;;  %v3180_v46 = vadd.f32 1e-05, %v3116_v47  ;;  %3062 = vadd.xlane.f32.xlu0 %v2960_v45 }
 0x33b   :  { %v2993_v37 = vpop.xlane.xlu1 %2992  ;;  %v2738_v63 = vpop.xlane.xlu0 %2737 }
 0x33c   :  { %5034 = vrsqrt.f32 %v3180_v46  ;;  %v3117_v22 = vmul.f32 0.0078125, %v2993_v37  ;;  %v2830_v30 = vmul.f32 0.0078125, %v2738_v63  ;;  %v2961_v38 = vmul.f32 %v6736_v26, %v6736_v26 }
 0x33e   :  { %v3181_v19 = vadd.f32 1e-05, %v3117_v22  ;;  %v6741_v29 = vsub.f32 %v6465_v27, %v2830_v30  ;;  %3064 = vadd.xlane.f32.xlu1 %v2961_v38 }
 0x33f   :  { %v2740_v24 = vpop.xlane.xlu1 %2739  ;;  %v2987_v42 = vpop.xlane.xlu0 %2986 }
 0x340   :  { %5036 = vrsqrt.f32 %v3181_v19  ;;  %v2831_v1 = vmul.f32 0.0078125, %v2740_v24  ;;  %v3114_v40 = vmul.f32 0.0078125, %v2987_v42  ;;  %v2958_v47 = vmul.f32 %v6741_v29, %v6741_v29 }
 0x342   :  { %v6746_v45 = vsub.f32 %v6474_v10, %v2831_v1  ;;  %v3178_v46 = vadd.f32 1e-05, %v3114_v40  ;;  %3058 = vadd.xlane.f32.xlu0 %v2958_v47 }
 0x343   :  { %v2989_v37 = vpop.xlane.xlu1 %2988  ;;  %v2750_v63 = vpop.xlane.xlu0 %2749 }
 0x344   :  { %5038 = vrsqrt.f32 %v3178_v46  ;;  %v3115_v22 = vmul.f32 0.0078125, %v2989_v37  ;;  %v2836_v27 = vmul.f32 0.0078125, %v2750_v63  ;;  %v2959_v30 = vmul.f32 %v6746_v45, %v6746_v45 }
 0x346   :  { %v3179_v38 = vadd.f32 1e-05, %v3115_v22  ;;  %v6751_v19 = vsub.f32 %v6484_v14, %v2836_v27  ;;  %3060 = vadd.xlane.f32.xlu1 %v2959_v30 }
 0x347   :  { %v2752_v24 = vpop.xlane.xlu1 %2751  ;;  %v2999_v42 = vpop.xlane.xlu0 %2998 }
 0x348   :  { %5040 = vrsqrt.f32 %v3179_v38  ;;  %v2837_v10 = vmul.f32 0.0078125, %v2752_v24  ;;  %v3120_v1 = vmul.f32 0.0078125, %v2999_v42  ;;  %v2964_v40 = vmul.f32 %v6751_v19, %v6751_v19 }
 0x349   :  { %v5035_v47 = vpop.eup %5034 }
 0x34a   :  { %v6756_v46 = vsub.f32 %v6493_v59, %v2837_v10  ;;  %v3184_v37 = vadd.f32 1e-05, %v3120_v1  ;;  %3070 = vadd.xlane.f32.xlu0 %v2964_v40  ;;  %v6759_v63 = vmul.f32 %v5035_v47, %v6444_v31 }
 0x34b   :  { %v3001_v14 = vpop.xlane.xlu1 %3000  ;;  %v2746_v22 = vpop.xlane.xlu0 %2745 }
 0x34c   :  { %5042 = vrsqrt.f32 %v3184_v37  ;;  %v3121_v27 = vmul.f32 0.0078125, %v3001_v14  ;;  %v2834_v30 = vmul.f32 0.0078125, %v2746_v22  ;;  %v2965_v38 = vmul.f32 %v6756_v46, %v6756_v46  ;;  %3372 = vst [vmem:[#allocation3 + $0x10] sm:$0xff] %v6759_v63 }
 0x34d   :  { %v5037_v24 = vpop.eup %5036  ;;  %v3436_v59 = vmul.f32 %v6759_v63, %v6759_v63 }
 0x34e   :  { %v3185_v42 = vadd.f32 1e-05, %v3121_v27  ;;  %v6767_v10 = vsub.f32 %v6501_v53, %v2834_v30  ;;  %3072 = vadd.xlane.f32.xlu1 %v2965_v38  ;;  %v6770_v31 = vmul.f32 %v5037_v24, %v6454_v17 }
 0x34f   :  { %3502 = vadd.xlane.f32.xlu0 %v3436_v59  ;;  %v2748_v1 = vpop.xlane.xlu1 %2747  ;;  %v2995_v40 = vpop.xlane.xlu0 %2994 }
 0x350   :  { %5044 = vrsqrt.f32 %v3185_v42  ;;  %v2835_v47 = vmul.f32 0.0078125, %v2748_v1  ;;  %v3118_v37 = vmul.f32 0.0078125, %v2995_v40  ;;  %3373 = vst [vmem:[#allocation3 + $0x18] sm:$0xff] %v6770_v31  ;;  %v3437_v14 = vmul.f32 %v6770_v31, %v6770_v31 }
 0x351   :  { %v5039_v22 = vpop.eup %5038  ;;  %v2962_v53 = vmul.f32 %v6767_v10, %v6767_v10 }
 0x352   :  { %v6778_v27 = vsub.f32 %v6510_v34, %v2835_v47  ;;  %v3182_v17 = vadd.f32 1e-05, %v3118_v37  ;;  %3504 = vadd.xlane.f32.xlu1 %v3437_v14  ;;  %v6781_v30 = vmul.f32 %v5039_v22, %v6463_v43 }
 0x353   :  { %3066 = vadd.xlane.f32.xlu0 %v2962_v53  ;;  %v2997_v38 = vpop.xlane.xlu1 %2996  ;;  %v2758_v24 = vpop.xlane.xlu0 %2757 }
 0x354   :  { %5046 = vrsqrt.f32 %v3182_v17  ;;  %v3119_v59 = vmul.f32 0.0078125, %v2997_v38  ;;  %v2840_v42 = vmul.f32 0.0078125, %v2758_v24  ;;  %v2963_v1 = vmul.f32 %v6778_v27, %v6778_v27  ;;  %3370 = vst [vmem:[#allocation3] sm:$0xff] %v6781_v30 }
 0x355   :  { %v5041_v40 = vpop.eup %5040  ;;  %v3434_v34 = vmul.f32 %v6781_v30, %v6781_v30 }
 0x356   :  { %v3183_v47 = vadd.f32 1e-05, %v3119_v59  ;;  %v6789_v37 = vsub.f32 %v6520_v20, %v2840_v42  ;;  %3068 = vadd.xlane.f32.xlu1 %v2963_v1  ;;  %v6792_v43 = vmul.f32 %v5041_v40, %v6471_v51 }
 0x357   :  { %3498 = vadd.xlane.f32.xlu0 %v3434_v34  ;;  %v2760_v14 = vpop.xlane.xlu1 %2759  ;;  %v3007_v22 = vpop.xlane.xlu0 %3006 }
 0x358   :  { %5048 = vrsqrt.f32 %v3183_v47  ;;  %v2841_v53 = vmul.f32 0.0078125, %v2760_v14  ;;  %v3124_v17 = vmul.f32 0.0078125, %v3007_v22  ;;  %3371 = vst [vmem:[#allocation3 + $0x8] sm:$0xff] %v6792_v43  ;;  %v3435_v38 = vmul.f32 %v6792_v43, %v6792_v43 }
 0x359   :  { %v5043_v24 = vpop.eup %5042  ;;  %v2968_v20 = vmul.f32 %v6789_v37, %v6789_v37 }
 0x35a   :  { %v6800_v59 = vsub.f32 %v6529_v4, %v2841_v53  ;;  %v3188_v51 = vadd.f32 1e-05, %v3124_v17  ;;  %3500 = vadd.xlane.f32.xlu1 %v3435_v38  ;;  %v6803_v42 = vmul.f32 %v5043_v24, %v6480_v6 }
 0x35b   :  { %3078 = vadd.xlane.f32.xlu0 %v2968_v20  ;;  %v3009_v1 = vpop.xlane.xlu1 %3008  ;;  %v2754_v40 = vpop.xlane.xlu0 %2753 }
 0x35c   :  { %5050 = vrsqrt.f32 %v3188_v51  ;;  %v3125_v34 = vmul.f32 0.0078125, %v3009_v1  ;;  %v2838_v47 = vmul.f32 0.0078125, %v2754_v40  ;;  %v2969_v14 = vmul.f32 %v6800_v59, %v6800_v59  ;;  %3376 = vst [vmem:[#allocation3 + $0x30] sm:$0xff] %v6803_v42 }
 0x35d   :  { %v5045_v22 = vpop.eup %5044  ;;  %v3440_v4 = vmul.f32 %v6803_v42, %v6803_v42 }
 0x35e   :  { %v3189_v53 = vadd.f32 1e-05, %v3125_v34  ;;  %v6811_v17 = vsub.f32 %v6537_v49, %v2838_v47  ;;  %3080 = vadd.xlane.f32.xlu1 %v2969_v14  ;;  %v6814_v6 = vmul.f32 %v5045_v22, %v6490_v23 }
 0x35f   :  { %3510 = vadd.xlane.f32.xlu0 %v3440_v4  ;;  %v2756_v38 = vpop.xlane.xlu1 %2755  ;;  %v3003_v24 = vpop.xlane.xlu0 %3002 }
 0x360   :  { %5052 = vrsqrt.f32 %v3189_v53  ;;  %v2839_v20 = vmul.f32 0.0078125, %v2756_v38  ;;  %v3122_v51 = vmul.f32 0.0078125, %v3003_v24  ;;  %3377 = vst [vmem:[#allocation3 + $0x38] sm:$0xff] %v6814_v6  ;;  %v3441_v1 = vmul.f32 %v6814_v6, %v6814_v6 }
 0x361   :  { %v5047_v40 = vpop.eup %5046  ;;  %v2966_v49 = vmul.f32 %v6811_v17, %v6811_v17 }
 0x362   :  { %v6822_v34 = vsub.f32 %v6546_v21, %v2839_v20  ;;  %v3186_v23 = vadd.f32 1e-05, %v3122_v51  ;;  %3512 = vadd.xlane.f32.xlu1 %v3441_v1  ;;  %v6825_v47 = vmul.f32 %v5047_v40, %v6499_v57 }
 0x363   :  { %3074 = vadd.xlane.f32.xlu0 %v2966_v49  ;;  %v3005_v14 = vpop.xlane.xlu1 %3004  ;;  %v2766_v22 = vpop.xlane.xlu0 %2765 }
 0x364   :  { %5054 = vrsqrt.f32 %v3186_v23  ;;  %v3123_v4 = vmul.f32 0.0078125, %v3005_v14  ;;  %v2844_v53 = vmul.f32 0.0078125, %v2766_v22  ;;  %v2967_v38 = vmul.f32 %v6822_v34, %v6822_v34  ;;  %3374 = vst [vmem:[#allocation3 + $0x20] sm:$0xff] %v6825_v47 }
 0x365   :  { %v5049_v24 = vpop.eup %5048  ;;  %v3438_v21 = vmul.f32 %v6825_v47, %v6825_v47 }
 0x366   :  { %v3187_v20 = vadd.f32 1e-05, %v3123_v4  ;;  %v6833_v51 = vsub.f32 %v6556_v12, %v2844_v53  ;;  %3076 = vadd.xlane.f32.xlu1 %v2967_v38  ;;  %v6836_v57 = vmul.f32 %v5049_v24, %v6507_v18 }
 0x367   :  { %3506 = vadd.xlane.f32.xlu0 %v3438_v21  ;;  %v2768_v1 = vpop.xlane.xlu1 %2767  ;;  %v3015_v40 = vpop.xlane.xlu0 %3014 }
 0x368   :  { %5056 = vrsqrt.f32 %v3187_v20  ;;  %v2845_v49 = vmul.f32 0.0078125, %v2768_v1  ;;  %v3128_v23 = vmul.f32 0.0078125, %v3015_v40  ;;  %3375 = vst [vmem:[#allocation3 + $0x28] sm:$0xff] %v6836_v57  ;;  %v3439_v14 = vmul.f32 %v6836_v57, %v6836_v57 }
 0x369   :  { %v5051_v22 = vpop.eup %5050  ;;  %v2972_v12 = vmul.f32 %v6833_v51, %v6833_v51 }
 0x36a   :  { %v6844_v4 = vsub.f32 %v6565_v58, %v2845_v49  ;;  %v3192_v18 = vadd.f32 1e-05, %v3128_v23  ;;  %3508 = vadd.xlane.f32.xlu1 %v3439_v14  ;;  %v6847_v53 = vmul.f32 %v5051_v22, %v6516_v16 }
 0x36b   :  { %3086 = vadd.xlane.f32.xlu0 %v2972_v12  ;;  %v3017_v38 = vpop.xlane.xlu1 %3016  ;;  %v2762_v24 = vpop.xlane.xlu0 %2761 }
 0x36c   :  { %5058 = vrsqrt.f32 %v3192_v18  ;;  %v3129_v21 = vmul.f32 0.0078125, %v3017_v38  ;;  %v2842_v20 = vmul.f32 0.0078125, %v2762_v24  ;;  %v2973_v1 = vmul.f32 %v6844_v4, %v6844_v4  ;;  %3380 = vst [vmem:[#allocation3 + $0x50] sm:$0xff] %v6847_v53 }
 0x36d   :  { %v5053_v40 = vpop.eup %5052  ;;  %v3444_v58 = vmul.f32 %v6847_v53, %v6847_v53 }
 0x36e   :  { %v3193_v49 = vadd.f32 1e-05, %v3129_v21  ;;  %v6855_v23 = vsub.f32 %v6573_v35, %v2842_v20  ;;  %3088 = vadd.xlane.f32.xlu1 %v2973_v1  ;;  %v6858_v16 = vmul.f32 %v5053_v40, %v6526_v5  ;;  %v7447_v20 = vld [vmem:[#allocation6_spill] sm:$0xff] }
 0x36f   :  { %3518 = vadd.xlane.f32.xlu0 %v3444_v58  ;;  %v2764_v14 = vpop.xlane.xlu1 %2763  ;;  %v3011_v22 = vpop.xlane.xlu0 %3010 }
 0x370   :  { %7446 = vst [vmem:[#allocation20_spill] sm:$0xff] %v6855_v23  ;;  %5060 = vrsqrt.f32 %v3193_v49  ;;  %v2843_v12 = vmul.f32 0.0078125, %v2764_v14  ;;  %v3126_v18 = vmul.f32 0.0078125, %v3011_v22  ;;  %3381 = vst [vmem:[#allocation3 + $0x58] sm:$0xff] %v6858_v16  ;;  %v3445_v38 = vmul.f32 %v6858_v16, %v6858_v16 }
 0x371   :  { %v5055_v24 = vpop.eup %5054  ;;  %v2970_v35 = vmul.f32 %v6855_v23, %v6855_v23 }
 0x372   :  { %v6866_v21 = vsub.f32 %v6582_v62, %v2843_v12  ;;  %v3190_v5 = vadd.f32 1e-05, %v3126_v18  ;;  %3520 = vadd.xlane.f32.xlu1 %v3445_v38  ;;  %v6869_v1 = vmul.f32 %v5055_v24, %v7447_v20  ;;  %v7450_v38 = vld [vmem:[#allocation7_spill] sm:$0xff] }
 0x373   :  { %3082 = vadd.xlane.f32.xlu0 %v2970_v35  ;;  %v3013_v40 = vpop.xlane.xlu1 %3012  ;;  %v2774_v58 = vpop.xlane.xlu0 %2773 }
 0x374   :  { %7448 = vst [vmem:[#allocation6_spill] sm:$0xff] %v6869_v1  ;;  %5062 = vrsqrt.f32 %v3190_v5  ;;  %v3127_v49 = vmul.f32 0.0078125, %v3013_v40  ;;  %v2848_v14 = vmul.f32 0.0078125, %v2774_v58  ;;  %v2971_v22 = vmul.f32 %v6866_v21, %v6866_v21  ;;  %3378 = vst [vmem:[#allocation3 + $0x40] sm:$0xff] %v6869_v1 }
 0x375   :  { %v5057_v23 = vpop.eup %5056  ;;  %v3442_v62 = vmul.f32 %v6869_v1, %v6869_v1 }
 0x376   :  { %v3191_v12 = vadd.f32 1e-05, %v3127_v49  ;;  %v6877_v18 = vsub.f32 %v6592_v7, %v2848_v14  ;;  %3084 = vadd.xlane.f32.xlu1 %v2971_v22  ;;  %v6880_v24 = vmul.f32 %v5057_v23, %v7450_v38  ;;  %v7451_v14 = vld [vmem:[#allocation8_spill] sm:$0xff] }
 0x377   :  { %3514 = vadd.xlane.f32.xlu0 %v3442_v62  ;;  %v2776_v35 = vpop.xlane.xlu1 %2775  ;;  %v3023_v5 = vpop.xlane.xlu0 %3022 }
 0x378   :  { %7449 = vst [vmem:[#allocation21_spill] sm:$0xff] %v6877_v18  ;;  %5064 = vrsqrt.f32 %v3191_v12  ;;  %v2849_v20 = vmul.f32 0.0078125, %v2776_v35  ;;  %v3132_v40 = vmul.f32 0.0078125, %v3023_v5  ;;  %3379 = vst [vmem:[#allocation3 + $0x48] sm:$0xff] %v6880_v24  ;;  %v3443_v58 = vmul.f32 %v6880_v24, %v6880_v24 }
 0x379   :  { %v5059_v1 = vpop.eup %5058  ;;  %v2976_v7 = vmul.f32 %v6877_v18, %v6877_v18 }
 0x37a   :  { %v6888_v49 = vsub.f32 %v6601_v13, %v2849_v20  ;;  %v3196_v23 = vadd.f32 1e-05, %v3132_v40  ;;  %3516 = vadd.xlane.f32.xlu1 %v3443_v58  ;;  %v6891_v22 = vmul.f32 %v5059_v1, %v7451_v14  ;;  %v7454_v1 = vld [vmem:[#allocation9_spill] sm:$0xff] }
 0x37b   :  { %3094 = vadd.xlane.f32.xlu0 %v2976_v7  ;;  %v3025_v62 = vpop.xlane.xlu1 %3024  ;;  %v2770_v12 = vpop.xlane.xlu0 %2769 }
 0x37c   :  { %7452 = vst [vmem:[#allocation7_spill] sm:$0xff] %v6891_v22  ;;  %5066 = vrsqrt.f32 %v3196_v23  ;;  %v3133_v38 = vmul.f32 0.0078125, %v3025_v62  ;;  %v2846_v35 = vmul.f32 0.0078125, %v2770_v12  ;;  %v2977_v5 = vmul.f32 %v6888_v49, %v6888_v49  ;;  %3384 = vst [vmem:[#allocation3 + $0x70] sm:$0xff] %v6891_v22 }
 0x37d   :  { %v5061_v18 = vpop.eup %5060  ;;  %v3448_v13 = vmul.f32 %v6891_v22, %v6891_v22 }
 0x37e   :  { %v3197_v20 = vadd.f32 1e-05, %v3133_v38  ;;  %v6899_v40 = vsub.f32 %v6609_v36, %v2846_v35  ;;  %3096 = vadd.xlane.f32.xlu1 %v2977_v5  ;;  %v6902_v58 = vmul.f32 %v5061_v18, %v7454_v1  ;;  %v7455_v35 = vld [vmem:[#allocation10_spill] sm:$0xff] }
 0x37f   :  { %3526 = vadd.xlane.f32.xlu0 %v3448_v13  ;;  %v2772_v7 = vpop.xlane.xlu1 %2771  ;;  %v3019_v23 = vpop.xlane.xlu0 %3018 }
 0x380   :  { %7453 = vst [vmem:[#allocation8_spill] sm:$0xff] %v6899_v40  ;;  %5068 = vrsqrt.f32 %v3197_v20  ;;  %v2847_v14 = vmul.f32 0.0078125, %v2772_v7  ;;  %v3130_v62 = vmul.f32 0.0078125, %v3019_v23  ;;  %3385 = vst [vmem:[#allocation3 + $0x78] sm:$0xff] %v6902_v58  ;;  %v3449_v12 = vmul.f32 %v6902_v58, %v6902_v58 }
 0x381   :  { %v5063_v22 = vpop.eup %5062  ;;  %v2974_v36 = vmul.f32 %v6899_v40, %v6899_v40 }
 0x382   :  { %v6910_v38 = vsub.f32 %v6618_v9, %v2847_v14  ;;  %v3194_v18 = vadd.f32 1e-05, %v3130_v62  ;;  %3528 = vadd.xlane.f32.xlu1 %v3449_v12  ;;  %v6913_v5 = vmul.f32 %v5063_v22, %v7455_v35  ;;  %v7458_v22 = vld [vmem:[#allocation11_spill] sm:$0xff] }
 0x383   :  { %3090 = vadd.xlane.f32.xlu0 %v2974_v36  ;;  %v3021_v13 = vpop.xlane.xlu1 %3020  ;;  %v2782_v20 = vpop.xlane.xlu0 %2781 }
 0x384   :  { %7456 = vst [vmem:[#allocation9_spill] sm:$0xff] %v6913_v5  ;;  %5070 = vrsqrt.f32 %v3194_v18  ;;  %v3131_v1 = vmul.f32 0.0078125, %v3021_v13  ;;  %v2852_v7 = vmul.f32 0.0078125, %v2782_v20  ;;  %v2975_v23 = vmul.f32 %v6910_v38, %v6910_v38  ;;  %3382 = vst [vmem:[#allocation3 + $0x60] sm:$0xff] %v6913_v5 }
 0x385   :  { %v5065_v40 = vpop.eup %5064  ;;  %v3446_v9 = vmul.f32 %v6913_v5, %v6913_v5 }
 0x386   :  { %v3195_v14 = vadd.f32 1e-05, %v3131_v1  ;;  %v6921_v62 = vsub.f32 %v6629_v61, %v2852_v7  ;;  %3092 = vadd.xlane.f32.xlu1 %v2975_v23  ;;  %v6924_v12 = vmul.f32 %v5065_v40, %v7458_v22  ;;  %v7460_v7 = vld [vmem:[#allocation12_spill] sm:$0xff] }
 0x387   :  { %3522 = vadd.xlane.f32.xlu0 %v3446_v9  ;;  %v2784_v36 = vpop.xlane.xlu1 %2783  ;;  %v3031_v18 = vpop.xlane.xlu0 %3030 }
 0x388   :  { %7457 = vst [vmem:[#allocation10_spill] sm:$0xff] %v6921_v62  ;;  %7459 = vst [vmem:[#allocation11_spill] sm:$0xff] %v6924_v12  ;;  %5072 = vrsqrt.f32 %v3195_v14  ;;  %v2853_v35 = vmul.f32 0.0078125, %v2784_v36  ;;  %v3136_v13 = vmul.f32 0.0078125, %v3031_v18  ;;  %v3447_v20 = vmul.f32 %v6924_v12, %v6924_v12 }
 0x389   :  { %3383 = vst [vmem:[#allocation3 + $0x68] sm:$0xff] %v6924_v12  ;;  %v5067_v5 = vpop.eup %5066  ;;  %v2980_v61 = vmul.f32 %v6921_v62, %v6921_v62 }
 0x38a   :  { %v6932_v1 = vsub.f32 %v6637_v50, %v2853_v35  ;;  %v3200_v40 = vadd.f32 1e-05, %v3136_v13  ;;  %3524 = vadd.xlane.f32.xlu1 %v3447_v20  ;;  %v6935_v23 = vmul.f32 %v5067_v5, %v7460_v7  ;;  %v7462_v35 = vld [vmem:[#allocation13_spill] sm:$0xff] }
 0x38b   :  { %3102 = vadd.xlane.f32.xlu0 %v2980_v61  ;;  %v3033_v9 = vpop.xlane.xlu1 %3032  ;;  %v2778_v14 = vpop.xlane.xlu0 %2777 }
 0x38c   :  { %5074 = vrsqrt.f32 %v3200_v40  ;;  %v3137_v22 = vmul.f32 0.0078125, %v3033_v9  ;;  %v2850_v36 = vmul.f32 0.0078125, %v2778_v14  ;;  %v2981_v18 = vmul.f32 %v6932_v1, %v6932_v1  ;;  %3388 = vst [vmem:[#allocation3 + $0x90] sm:$0xff] %v6935_v23 }
 0x38d   :  { %v5069_v62 = vpop.eup %5068 }
 0x38e   :  { %v3201_v12 = vadd.f32 1e-05, %v3137_v22  ;;  %v6941_v50 = vsub.f32 %v6645_v0, %v2850_v36  ;;  %3104 = vadd.xlane.f32.xlu1 %v2981_v18  ;;  %v6944_v5 = vmul.f32 %v5069_v62, %v7462_v35  ;;  %v7464_v22 = vld [vmem:[#allocation14_spill] sm:$0xff] }
 0x38f   :  { %v2780_v13 = vpop.xlane.xlu1 %2779  ;;  %v3027_v20 = vpop.xlane.xlu0 %3026 }
 0x390   :  { %7461 = vst [vmem:[#allocation12_spill] sm:$0xff] %v6941_v50  ;;  %5076 = vrsqrt.f32 %v3201_v12  ;;  %v2851_v61 = vmul.f32 0.0078125, %v2780_v13  ;;  %v3134_v40 = vmul.f32 0.0078125, %v3027_v20  ;;  %v2978_v7 = vmul.f32 %v6941_v50, %v6941_v50  ;;  %3389 = vst [vmem:[#allocation3 + $0x98] sm:$0xff] %v6944_v5 }
 0x391   :  { %v5071_v9 = vpop.eup %5070 }
 0x392   :  { %v6950_v14 = vsub.f32 %v6653_v15, %v2851_v61  ;;  %v3198_v0 = vadd.f32 1e-05, %v3134_v40  ;;  %3098 = vadd.xlane.f32.xlu0 %v2978_v7  ;;  %v6953_v36 = vmul.f32 %v5071_v9, %v7464_v22  ;;  %v7467_v7 = vld [vmem:[#allocation15_spill] sm:$0xff] }
 0x393   :  { %v3029_v62 = vpop.xlane.xlu1 %3028  ;;  %v2790_v18 = vpop.xlane.xlu0 %2789 }
 0x394   :  { %7463 = vst [vmem:[#allocation13_spill] sm:$0xff] %v6950_v14  ;;  %7465 = vst [vmem:[#allocation14_spill] sm:$0xff] %v6953_v36  ;;  %5078 = vrsqrt.f32 %v3198_v0  ;;  %v3135_v12 = vmul.f32 0.0078125, %v3029_v62  ;;  %v2856_v35 = vmul.f32 0.0078125, %v2790_v18  ;;  %v2979_v13 = vmul.f32 %v6950_v14, %v6950_v14 }
 0x395   :  { %3386 = vst [vmem:[#allocation3 + $0x80] sm:$0xff] %v6953_v36  ;;  %v5073_v20 = vpop.eup %5072  ;;  %v3450_v15 = vmul.f32 %v6953_v36, %v6953_v36 }
 0x396   :  { %v3199_v61 = vadd.f32 1e-05, %v3135_v12  ;;  %v6961_v40 = vsub.f32 %v6661_v41, %v2856_v35  ;;  %3100 = vadd.xlane.f32.xlu1 %v2979_v13  ;;  %v6964_v9 = vmul.f32 %v5073_v20, %v7467_v7  ;;  %v7469_v13 = vld [vmem:[#allocation16_spill] sm:$0xff] }
 0x397   :  { %3530 = vadd.xlane.f32.xlu0 %v3450_v15  ;;  %v2792_v0 = vpop.xlane.xlu1 %2791  ;;  %v3039_v22 = vpop.xlane.xlu0 %3038 }
 0x398   :  { %7466 = vst [vmem:[#allocation22_spill] sm:$0xff] %v6961_v40  ;;  %7468 = vst [vmem:[#allocation15_spill] sm:$0xff] %v6964_v9  ;;  %5080 = vrsqrt.f32 %v3199_v61  ;;  %v2857_v62 = vmul.f32 0.0078125, %v2792_v0  ;;  %v3140_v18 = vmul.f32 0.0078125, %v3039_v22  ;;  %v3451_v14 = vmul.f32 %v6964_v9, %v6964_v9 }
 0x399   :  { %3387 = vst [vmem:[#allocation3 + $0x88] sm:$0xff] %v6964_v9  ;;  %v5075_v36 = vpop.eup %5074  ;;  %v2984_v41 = vmul.f32 %v6961_v40, %v6961_v40 }
 0x39a   :  { %v6972_v12 = vsub.f32 %v6669_v52, %v2857_v62  ;;  %v3204_v35 = vadd.f32 1e-05, %v3140_v18  ;;  %3532 = vadd.xlane.f32.xlu1 %v3451_v14  ;;  %v3328_v20 = vmul.f32 %v5075_v36, %v7469_v13  ;;  %v7471_v52 = vld [vmem:[#allocation17_spill] sm:$0xff] }
 0x39b   :  { %3110 = vadd.xlane.f32.xlu0 %v2984_v41  ;;  %v3041_v15 = vpop.xlane.xlu1 %3040  ;;  %v2786_v61 = vpop.xlane.xlu0 %2785 }
 0x39c   :  { %5082 = vrsqrt.f32 %v3204_v35  ;;  %v3141_v7 = vmul.f32 0.0078125, %v3041_v15  ;;  %v2854_v0 = vmul.f32 0.0078125, %v2786_v61  ;;  %v2985_v22 = vmul.f32 %v6972_v12, %v6972_v12  ;;  %3392 = vst [vmem:[#allocation3 + $0xb0] sm:$0xff] %v3328_v20 }
 0x39d   :  { %v5077_v9 = vpop.eup %5076 }
 0x39e   :  { %v3205_v50 = vadd.f32 1e-05, %v3141_v7  ;;  %v6978_v40 = vsub.f32 %v6677_v60, %v2854_v0  ;;  %3112 = vadd.xlane.f32.xlu1 %v2985_v22  ;;  %v3329_v14 = vmul.f32 %v5077_v9, %v7471_v52  ;;  %v7472_v60 = vld [vmem:[#allocation18_spill] sm:$0xff]  ;;  %v3452_v9 = vmul.f32 %v6935_v23, %v6935_v23 }
 0x39f   :  { %v2788_v62 = vpop.xlane.xlu1 %2787  ;;  %v3035_v36 = vpop.xlane.xlu0 %3034  ;;  %v3453_v23 = vmul.f32 %v6944_v5, %v6944_v5  ;;  %v3456_v5 = vmul.f32 %v3328_v20, %v3328_v20 }
 0x3a0   :  { %7470 = vst [vmem:[#allocation16_spill] sm:$0xff] %v6978_v40  ;;  %5084 = vrsqrt.f32 %v3205_v50  ;;  %v2855_v18 = vmul.f32 0.0078125, %v2788_v62  ;;  %v3138_v41 = vmul.f32 0.0078125, %v3035_v36  ;;  %v2982_v35 = vmul.f32 %v6978_v40, %v6978_v40  ;;  %3393 = vst [vmem:[#allocation3 + $0xb8] sm:$0xff] %v3329_v14 }
 0x3a1   :  { %v5079_v13 = vpop.eup %5078 }
 0x3a2   :  { %v6984_v15 = vsub.f32 %v6685_v2, %v2855_v18  ;;  %v3202_v61 = vadd.f32 1e-05, %v3138_v41  ;;  %3106 = vadd.xlane.f32.xlu0 %v2982_v35  ;;  %v3326_v7 = vmul.f32 %v5079_v13, %v7472_v60  ;;  %v7473_v18 = vld [vmem:[#allocation19_spill] sm:$0xff] }
 0x3a3   :  { %v3037_v0 = vpop.xlane.xlu1 %3036  ;;  %v3047_v22 = vpop.xlane.xlu0 %3046 }
 0x3a4   :  { %5086 = vrsqrt.f32 %v3202_v61  ;;  %v3139_v50 = vmul.f32 0.0078125, %v3037_v0  ;;  %v3144_v52 = vmul.f32 0.0078125, %v3047_v22  ;;  %v2983_v62 = vmul.f32 %v6984_v15, %v6984_v15  ;;  %3390 = vst [vmem:[#allocation3 + $0xa0] sm:$0xff] %v3326_v7 }
 0x3a5   :  { %v5081_v36 = vpop.eup %5080  ;;  %v3454_v0 = vmul.f32 %v3326_v7, %v3326_v7 }
 0x3a6   :  { %v3203_v40 = vadd.f32 1e-05, %v3139_v50  ;;  %v3208_v2 = vadd.f32 1e-05, %v3144_v52  ;;  %3108 = vadd.xlane.f32.xlu1 %v2983_v62  ;;  %3534 = vadd.xlane.f32.xlu0 %v3452_v9  ;;  %v6992_v41 = vmul.f32 %v5081_v36, %v7473_v18  ;;  %v3457_v18 = vmul.f32 %v3329_v14, %v3329_v14 }
 0x3a7   :  { %v3049_v35 = vpop.xlane.xlu1 %3048  ;;  %v3043_v13 = vpop.xlane.xlu0 %3042 }
 0x3a8   :  { %5088 = vrsqrt.f32 %v3203_v40  ;;  %v3145_v61 = vmul.f32 0.0078125, %v3049_v35  ;;  %v3142_v60 = vmul.f32 0.0078125, %v3043_v13  ;;  %3391 = vst [vmem:[#allocation3 + $0xa8] sm:$0xff] %v6992_v41 }
 0x3a9   :  { %v5083_v22 = vpop.eup %5082  ;;  %5090 = vrsqrt.f32 %v3208_v2 }
 0x3aa   :  { %v3209_v50 = vadd.f32 1e-05, %v3145_v61  ;;  %v3206_v52 = vadd.f32 1e-05, %v3142_v60  ;;  %3536 = vadd.xlane.f32.xlu1 %v3453_v23  ;;  %3538 = vadd.xlane.f32.xlu0 %v3454_v0  ;;  %v6998_v9 = vmul.f32 %v5083_v22, %v6659_v28  ;;  %v3455_v28 = vmul.f32 %v6992_v41, %v6992_v41 }
 0x3ab   :  { %v3045_v62 = vpop.xlane.xlu1 %3044 }
 0x3ac   :  { %5092 = vrsqrt.f32 %v3209_v50  ;;  %v3143_v36 = vmul.f32 0.0078125, %v3045_v62  ;;  %3396 = vst [vmem:[#allocation3 + $0xd0] sm:$0xff] %v6998_v9  ;;  %v3460_v35 = vmul.f32 %v6998_v9, %v6998_v9 }
 0x3ad   :  { %v5085_v40 = vpop.eup %5084  ;;  %5094 = vrsqrt.f32 %v3206_v52 }
 0x3ae   :  { %v3207_v7 = vadd.f32 1e-05, %v3143_v36  ;;  %3544 = vadd.xlane.f32.xlu1 %v3457_v18  ;;  %3542 = vadd.xlane.f32.xlu0 %v3456_v5  ;;  %v7002_v2 = vmul.f32 %v5085_v40, %v6667_v8 }
 0x3b0   :  { %5096 = vrsqrt.f32 %v3207_v7  ;;  %3397 = vst [vmem:[#allocation3 + $0xd8] sm:$0xff] %v7002_v2  ;;  %v3461_v8 = vmul.f32 %v7002_v2, %v7002_v2 }
 0x3b1   :  { %v5087_v20 = vpop.eup %5086 }
 0x3b2   :  { %3540 = vadd.xlane.f32.xlu1 %v3455_v28  ;;  %3550 = vadd.xlane.f32.xlu0 %v3460_v35  ;;  %v7010_v14 = vmul.f32 %v5087_v20, %v6675_v44 }
 0x3b3   :  { %v3055_v13 = vpop.xlane.xlu0 %3054 }
 0x3b4   :  { %v3148_v23 = vmul.f32 0.0078125, %v3055_v13  ;;  %v3458_v61 = vmul.f32 %v7010_v14, %v7010_v14  ;;  %3394 = vst [vmem:[#allocation3 + $0xc0] sm:$0xff] %v7010_v14 }
 0x3b5   :  { %v5089_v60 = vpop.eup %5088 }
 0x3b6   :  { %v5091_v0 = vpop.eup %5090  ;;  %v3212_v22 = vadd.f32 1e-05, %v3148_v23  ;;  %3552 = vadd.xlane.f32.xlu1 %v3461_v8  ;;  %3546 = vadd.xlane.f32.xlu0 %v3458_v61  ;;  %v7018_v50 = vmul.f32 %v5089_v60, %v6683_v25 }
 0x3b7   :  { %v3057_v44 = vpop.xlane.xlu1 %3056  ;;  %v3051_v52 = vpop.xlane.xlu0 %3050  ;;  %v7021_v62 = vmul.f32 %v5091_v0, %v6689_v32 }
 0x3b8   :  { %5098 = vrsqrt.f32 %v3212_v22  ;;  %v3149_v36 = vmul.f32 0.0078125, %v3057_v44  ;;  %v3146_v18 = vmul.f32 0.0078125, %v3051_v52  ;;  %v3459_v5 = vmul.f32 %v7018_v50, %v7018_v50  ;;  %3395 = vst [vmem:[#allocation3 + $0xc8] sm:$0xff] %v7018_v50 }
 0x3b9   :  { %v5093_v40 = vpop.eup %5092  ;;  %v3464_v7 = vmul.f32 %v7021_v62, %v7021_v62  ;;  %3400 = vst [vmem:[#allocation3 + $0xf0] sm:$0xff] %v7021_v62 }
 0x3ba   :  { %v5095_v25 = vpop.eup %5094  ;;  %v3213_v28 = vadd.f32 1e-05, %v3149_v36  ;;  %v3210_v35 = vadd.f32 1e-05, %v3146_v18  ;;  %3548 = vadd.xlane.f32.xlu1 %v3459_v5  ;;  %v7030_v32 = vmul.f32 %v5093_v40, %v6696_v48 }
 0x3bb   :  { %3558 = vadd.xlane.f32.xlu0 %v3464_v7  ;;  %v3053_v20 = vpop.xlane.xlu1 %3052  ;;  %v7033_v13 = vmul.f32 %v5095_v25, %v6699_v56 }
 0x3bc   :  { %5100 = vrsqrt.f32 %v3213_v28  ;;  %v3147_v23 = vmul.f32 0.0078125, %v3053_v20  ;;  %v3465_v8 = vmul.f32 %v7030_v32, %v7030_v32  ;;  %3401 = vst [vmem:[#allocation3 + $0xf8] sm:$0xff] %v7030_v32 }
 0x3bd   :  { %v5097_v61 = vpop.eup %5096  ;;  %5102 = vrsqrt.f32 %v3210_v35  ;;  %v3462_v60 = vmul.f32 %v7033_v13, %v7033_v13  ;;  %3398 = vst [vmem:[#allocation3 + $0xe0] sm:$0xff] %v7033_v13 }
 0x3be   :  { %v3211_v48 = vadd.f32 1e-05, %v3147_v23  ;;  %3560 = vadd.xlane.f32.xlu1 %v3465_v8  ;;  %v7042_v0 = vmul.f32 %v5097_v61, %v6706_v54 }
 0x3bf   :  { %3554 = vadd.xlane.f32.xlu0 %v3462_v60 }
 0x3c0   :  { %5104 = vrsqrt.f32 %v3211_v48  ;;  %v3463_v56 = vmul.f32 %v7042_v0, %v7042_v0  ;;  %3399 = vst [vmem:[#allocation3 + $0xe8] sm:$0xff] %v7042_v0 }
 0x3c2   :  { %3556 = vadd.xlane.f32.xlu1 %v3463_v56 }
 0x3c3   :  { %v3063_v22 = vpop.xlane.xlu0 %3062 }
 0x3c4   :  { %v3152_v44 = vmul.f32 0.0078125, %v3063_v22 }
 0x3c5   :  { %v5099_v52 = vpop.eup %5098 }
 0x3c6   :  { %v3216_v36 = vadd.f32 1e-05, %v3152_v44  ;;  %v7048_v18 = vmul.f32 %v5099_v52, %v6711_v3 }
 0x3c7   :  { %v3065_v5 = vpop.xlane.xlu1 %3064 }
 0x3c8   :  { %5106 = vrsqrt.f32 %v3216_v36  ;;  %v3153_v40 = vmul.f32 0.0078125, %v3065_v5  ;;  %v3468_v54 = vmul.f32 %v7048_v18, %v7048_v18  ;;  %3404 = vst [vmem:[#allocation3 + $0x110] sm:$0xff] %v7048_v18 }
 0x3c9   :  { %v5101_v7 = vpop.eup %5100 }
 0x3ca   :  { %v5103_v25 = vpop.eup %5102  ;;  %v3217_v28 = vadd.f32 1e-05, %v3153_v40  ;;  %3566 = vadd.xlane.f32.xlu0 %v3468_v54  ;;  %v7054_v35 = vmul.f32 %v5101_v7, %v6719_v11 }
 0x3cb   :  { %v3059_v20 = vpop.xlane.xlu0 %3058  ;;  %v7057_v23 = vmul.f32 %v5103_v25, %v6716_v33 }
 0x3cc   :  { %5108 = vrsqrt.f32 %v3217_v28  ;;  %v3150_v3 = vmul.f32 0.0078125, %v3059_v20  ;;  %v3469_v8 = vmul.f32 %v7054_v35, %v7054_v35  ;;  %3405 = vst [vmem:[#allocation3 + $0x118] sm:$0xff] %v7054_v35 }
 0x3cd   :  { %v5105_v61 = vpop.eup %5104  ;;  %v3466_v60 = vmul.f32 %v7057_v23, %v7057_v23  ;;  %3402 = vst [vmem:[#allocation3 + $0x100] sm:$0xff] %v7057_v23 }
 0x3ce   :  { %v3214_v48 = vadd.f32 1e-05, %v3150_v3  ;;  %3568 = vadd.xlane.f32.xlu1 %v3469_v8  ;;  %v7066_v11 = vmul.f32 %v5105_v61, %v6726_v55 }
 0x3cf   :  { %3562 = vadd.xlane.f32.xlu0 %v3466_v60  ;;  %v3061_v33 = vpop.xlane.xlu1 %3060 }
 0x3d0   :  { %5110 = vrsqrt.f32 %v3214_v48  ;;  %v3151_v56 = vmul.f32 0.0078125, %v3061_v33  ;;  %v3467_v22 = vmul.f32 %v7066_v11, %v7066_v11  ;;  %3403 = vst [vmem:[#allocation3 + $0x108] sm:$0xff] %v7066_v11 }
 0x3d2   :  { %v3215_v44 = vadd.f32 1e-05, %v3151_v56  ;;  %3564 = vadd.xlane.f32.xlu1 %v3467_v22 }
 0x3d3   :  { %v3071_v52 = vpop.xlane.xlu0 %3070 }
 0x3d4   :  { %5112 = vrsqrt.f32 %v3215_v44  ;;  %v3156_v36 = vmul.f32 0.0078125, %v3071_v52 }
 0x3d5   :  { %v5107_v5 = vpop.eup %5106 }
 0x3d6   :  { %v3220_v40 = vadd.f32 1e-05, %v3156_v36  ;;  %v7072_v54 = vmul.f32 %v5107_v5, %v6731_v39 }
 0x3d7   :  { %v3073_v55 = vpop.xlane.xlu1 %3072 }
 0x3d8   :  { %5114 = vrsqrt.f32 %v3220_v40  ;;  %v3157_v7 = vmul.f32 0.0078125, %v3073_v55  ;;  %v3503_v25 = vpop.xlane.xlu0 %3502  ;;  %v3472_v28 = vmul.f32 %v7072_v54, %v7072_v54  ;;  %3408 = vst [vmem:[#allocation3 + $0x130] sm:$0xff] %v7072_v54 }
 0x3d9   :  { %v5109_v20 = vpop.eup %5108  ;;  %v3628_v3 = vmax.f32 %v3503_v25, 1e-24 }
 0x3da   :  { %v3221_v8 = vadd.f32 1e-05, %v3157_v7  ;;  %3574 = vadd.xlane.f32.xlu0 %v3472_v28  ;;  %v7078_v61 = vmul.f32 %v5109_v20, %v6736_v26 }
 0x3db   :  { %5116 = vrsqrt.f32 %v3628_v3  ;;  %v3505_v60 = vpop.xlane.xlu1 %3504 }
 0x3dc   :  { %5118 = vrsqrt.f32 %v3221_v8  ;;  %v3629_v39 = vmax.f32 %v3505_v60, 1e-24  ;;  %v3067_v48 = vpop.xlane.xlu0 %3066  ;;  %v3473_v33 = vmul.f32 %v7078_v61, %v7078_v61  ;;  %3409 = vst [vmem:[#allocation3 + $0x138] sm:$0xff] %v7078_v61 }
 0x3dd   :  { %v5111_v56 = vpop.eup %5110  ;;  %v3154_v22 = vmul.f32 0.0078125, %v3067_v48 }
 0x3de   :  { %5120 = vrsqrt.f32 %v3629_v39  ;;  %3576 = vadd.xlane.f32.xlu1 %v3473_v33  ;;  %v7084_v44 = vmul.f32 %v5111_v56, %v6741_v29 }
 0x3df   :  { %v3218_v52 = vadd.f32 1e-05, %v3154_v22  ;;  %v3069_v26 = vpop.xlane.xlu1 %3068 }
 0x3e0   :  { %v3155_v36 = vmul.f32 0.0078125, %v3069_v26  ;;  %v3499_v5 = vpop.xlane.xlu0 %3498  ;;  %v3470_v40 = vmul.f32 %v7084_v44, %v7084_v44  ;;  %3406 = vst [vmem:[#allocation3 + $0x120] sm:$0xff] %v7084_v44 }
 0x3e1   :  { %v5113_v55 = vpop.eup %5112  ;;  %5122 = vrsqrt.f32 %v3218_v52  ;;  %v3626_v7 = vmax.f32 %v3499_v5, 1e-24 }
 0x3e2   :  { %v3219_v25 = vadd.f32 1e-05, %v3155_v36  ;;  %3570 = vadd.xlane.f32.xlu0 %v3470_v40  ;;  %v7090_v28 = vmul.f32 %v5113_v55, %v6746_v45 }
 0x3e3   :  { %5124 = vrsqrt.f32 %v3626_v7  ;;  %v3501_v29 = vpop.xlane.xlu1 %3500 }
 0x3e4   :  { %5126 = vrsqrt.f32 %v3219_v25  ;;  %v3627_v20 = vmax.f32 %v3501_v29, 1e-24  ;;  %v3079_v3 = vpop.xlane.xlu0 %3078  ;;  %v3471_v8 = vmul.f32 %v7090_v28, %v7090_v28  ;;  %3407 = vst [vmem:[#allocation3 + $0x128] sm:$0xff] %v7090_v28 }
 0x3e5   :  { %v5115_v60 = vpop.eup %5114  ;;  %v3160_v39 = vmul.f32 0.0078125, %v3079_v3 }
 0x3e6   :  { %5128 = vrsqrt.f32 %v3627_v20  ;;  %3572 = vadd.xlane.f32.xlu1 %v3471_v8  ;;  %v7096_v48 = vmul.f32 %v5115_v60, %v6751_v19 }
 0x3e7   :  { %v3224_v33 = vadd.f32 1e-05, %v3160_v39  ;;  %v3081_v45 = vpop.xlane.xlu1 %3080 }
 0x3e8   :  { %v5117_v56 = vpop.eup %5116  ;;  %v3161_v22 = vmul.f32 0.0078125, %v3081_v45  ;;  %v3511_v52 = vpop.xlane.xlu0 %3510  ;;  %v3476_v26 = vmul.f32 %v7096_v48, %v7096_v48  ;;  %3412 = vst [vmem:[#allocation3 + $0x150] sm:$0xff] %v7096_v48 }
 0x3e9   :  { %v5119_v36 = vpop.eup %5118  ;;  %5130 = vrsqrt.f32 %v3224_v33  ;;  %v3632_v5 = vmax.f32 %v3511_v52, 1e-24  ;;  %v3756_v7 = vmul.f32 %v5117_v56, %v6759_v63 }
 0x3ea   :  { %v3225_v40 = vadd.f32 1e-05, %v3161_v22  ;;  %3582 = vadd.xlane.f32.xlu0 %v3476_v26  ;;  %v7102_v55 = vmul.f32 %v5119_v36, %v6756_v46 }
 0x3eb   :  { %v5121_v19 = vpop.eup %5120  ;;  %5132 = vrsqrt.f32 %v3632_v5  ;;  %v3513_v25 = vpop.xlane.xlu1 %3512 }
 0x3ec   :  { %v3757_v29 = vmul.f32 %v5121_v19, %v6770_v31  ;;  %5134 = vrsqrt.f32 %v3225_v40  ;;  %v3633_v20 = vmax.f32 %v3513_v25, 1e-24  ;;  %v3075_v3 = vpop.xlane.xlu0 %3074  ;;  %v3477_v8 = vmul.f32 %v7102_v55, %v7102_v55  ;;  %3413 = vst [vmem:[#allocation3 + $0x158] sm:$0xff] %v7102_v55 }
 0x3ed   :  { %v3158_v60 = vmul.f32 0.0078125, %v3075_v3 }
 0x3ee   :  { %v5123_v39 = vpop.eup %5122  ;;  %v4463_v33 = vpack.c.bf16 %v3757_v29, %v3756_v7  ;;  %5136 = vrsqrt.f32 %v3633_v20  ;;  %3584 = vadd.xlane.f32.xlu1 %v3477_v8 }
 0x3ef   :  { %v3222_v46 = vadd.f32 1e-05, %v3158_v60  ;;  %v3077_v45 = vpop.xlane.xlu1 %3076  ;;  %v7110_v63 = vmul.f32 %v5123_v39, %v6767_v10 }
 0x3f0   :  { %v5125_v56 = vpop.eup %5124  ;;  %4615 = vst [vmem:[%s7403_s6 + $0x8] sm:$0xff] %v4463_v33   ;;  %v3159_v31 = vmul.f32 0.0078125, %v3077_v45  ;;  %v3507_v22 = vpop.xlane.xlu0 %3506 }
 0x3f1   :  { %v5127_v52 = vpop.eup %5126  ;;  %5138 = vrsqrt.f32 %v3222_v46  ;;  %v3630_v26 = vmax.f32 %v3507_v22, 1e-24  ;;  %v3474_v36 = vmul.f32 %v7110_v63, %v7110_v63  ;;  %3410 = vst [vmem:[#allocation3 + $0x140] sm:$0xff] %v7110_v63  ;;  %v3754_v19 = vmul.f32 %v5125_v56, %v6781_v30 }
 0x3f2   :  { %v3223_v5 = vadd.f32 1e-05, %v3159_v31  ;;  %v7119_v40 = vmul.f32 %v5127_v52, %v6778_v27 }
 0x3f3   :  { %v5129_v10 = vpop.eup %5128  ;;  %5140 = vrsqrt.f32 %v3630_v26  ;;  %3578 = vadd.xlane.f32.xlu0 %v3474_v36  ;;  %v3509_v7 = vpop.xlane.xlu1 %3508 }
 0x3f4   :  { %v3755_v25 = vmul.f32 %v5129_v10, %v6792_v43  ;;  %5142 = vrsqrt.f32 %v3223_v5  ;;  %v3631_v29 = vmax.f32 %v3509_v7, 1e-24  ;;  %v3087_v20 = vpop.xlane.xlu0 %3086  ;;  %v3475_v3 = vmul.f32 %v7119_v40, %v7119_v40  ;;  %3411 = vst [vmem:[#allocation3 + $0x148] sm:$0xff] %v7119_v40 }
 0x3f5   :  { %v3164_v8 = vmul.f32 0.0078125, %v3087_v20 }
 0x3f6   :  { %v5131_v60 = vpop.eup %5130  ;;  %v4458_v27 = vpack.c.bf16 %v3755_v25, %v3754_v19  ;;  %5144 = vrsqrt.f32 %v3631_v29  ;;  %3580 = vadd.xlane.f32.xlu1 %v3475_v3 }
 0x3f7   :  { %v3228_v39 = vadd.f32 1e-05, %v3164_v8  ;;  %v3089_v30 = vpop.xlane.xlu1 %3088  ;;  %v7127_v33 = vmul.f32 %v5131_v60, %v6789_v37 }
 0x3f8   :  { %v5133_v46 = vpop.eup %5132  ;;  %4459 = vst [vmem:[%s7403_s6] sm:$0xff] %v4458_v27   ;;  %v3165_v43 = vmul.f32 0.0078125, %v3089_v30  ;;  %v3519_v45 = vpop.xlane.xlu0 %3518 }
 0x3f9   :  { %v5135_v56 = vpop.eup %5134  ;;  %5146 = vrsqrt.f32 %v3228_v39  ;;  %v3636_v31 = vmax.f32 %v3519_v45, 1e-24  ;;  %v3480_v22 = vmul.f32 %v7127_v33, %v7127_v33  ;;  %3416 = vst [vmem:[#allocation3 + $0x170] sm:$0xff] %v7127_v33  ;;  %v3760_v36 = vmul.f32 %v5133_v46, %v6803_v42 }
 0x3fa   :  { %v3229_v52 = vadd.f32 1e-05, %v3165_v43  ;;  %v7136_v26 = vmul.f32 %v5135_v56, %v6800_v59 }
 0x3fb   :  { %v5137_v37 = vpop.eup %5136  ;;  %5148 = vrsqrt.f32 %v3636_v31  ;;  %3590 = vadd.xlane.f32.xlu0 %v3480_v22  ;;  %v3521_v5 = vpop.xlane.xlu1 %3520 }
 0x3fc   :  { %v3761_v10 = vmul.f32 %v5137_v37, %v6814_v6  ;;  %5150 = vrsqrt.f32 %v3229_v52  ;;  %v3637_v19 = vmax.f32 %v3521_v5, 1e-24  ;;  %v3083_v7 = vpop.xlane.xlu0 %3082  ;;  %v3481_v25 = vmul.f32 %v7136_v26, %v7136_v26  ;;  %3417 = vst [vmem:[#allocation3 + $0x178] sm:$0xff] %v7136_v26 }
 0x3fd   :  { %v3162_v29 = vmul.f32 0.0078125, %v3083_v7 }
 0x3fe   :  { %v5139_v20 = vpop.eup %5138  ;;  %v4473_v59 = vpack.c.bf16 %v3761_v10, %v3760_v36  ;;  %5152 = vrsqrt.f32 %v3637_v19  ;;  %3592 = vadd.xlane.f32.xlu1 %v3481_v25 }
 0x3ff   :  { %v3226_v3 = vadd.f32 1e-05, %v3162_v29  ;;  %v3085_v42 = vpop.xlane.xlu1 %3084  ;;  %v7144_v8 = vmul.f32 %v5139_v20, %v6811_v17 }
 0x400   :  { %v5141_v60 = vpop.eup %5140  ;;  %4617 = vst [vmem:[%s7403_s6 + $0x18] sm:$0xff] %v4473_v59   ;;  %v3163_v6 = vmul.f32 0.0078125, %v3085_v42  ;;  %v3515_v27 = vpop.xlane.xlu0 %3514 }
 0x401   :  { %v5143_v39 = vpop.eup %5142  ;;  %5154 = vrsqrt.f32 %v3226_v3  ;;  %v3634_v30 = vmax.f32 %v3515_v27, 1e-24  ;;  %v3478_v46 = vmul.f32 %v7144_v8, %v7144_v8  ;;  %3414 = vst [vmem:[#allocation3 + $0x160] sm:$0xff] %v7144_v8  ;;  %v3758_v56 = vmul.f32 %v5141_v60, %v6825_v47 }
 0x402   :  { %v3227_v43 = vadd.f32 1e-05, %v3163_v6  ;;  %v7153_v45 = vmul.f32 %v5143_v39, %v6822_v34 }
 0x403   :  { %v5145_v17 = vpop.eup %5144  ;;  %5156 = vrsqrt.f32 %v3634_v30  ;;  %3586 = vadd.xlane.f32.xlu0 %v3478_v46  ;;  %v3517_v31 = vpop.xlane.xlu1 %3516 }
 0x404   :  { %v3759_v22 = vmul.f32 %v5145_v17, %v6836_v57  ;;  %5158 = vrsqrt.f32 %v3227_v43  ;;  %v3635_v52 = vmax.f32 %v3517_v31, 1e-24  ;;  %v3095_v37 = vpop.xlane.xlu0 %3094  ;;  %v3479_v36 = vmul.f32 %v7153_v45, %v7153_v45  ;;  %3415 = vst [vmem:[#allocation3 + $0x168] sm:$0xff] %v7153_v45 }
 0x405   :  { %v3168_v5 = vmul.f32 0.0078125, %v3095_v37 }
 0x406   :  { %v5147_v10 = vpop.eup %5146  ;;  %v4468_v34 = vpack.c.bf16 %v3759_v22, %v3758_v56  ;;  %5160 = vrsqrt.f32 %v3635_v52  ;;  %3588 = vadd.xlane.f32.xlu1 %v3479_v36  ;;  %v7474_v22 = vld [vmem:[#allocation20_spill] sm:$0xff] }
 0x407   :  { %v3232_v19 = vadd.f32 1e-05, %v3168_v5  ;;  %v3097_v47 = vpop.xlane.xlu1 %3096  ;;  %v7161_v7 = vmul.f32 %v5147_v10, %v6833_v51 }
 0x408   :  { %v5149_v25 = vpop.eup %5148  ;;  %4616 = vst [vmem:[%s7403_s6 + $0x10] sm:$0xff] %v4468_v34   ;;  %v3169_v57 = vmul.f32 0.0078125, %v3097_v47  ;;  %v3527_v29 = vpop.xlane.xlu0 %3526 }
 0x409   :  { %v5151_v20 = vpop.eup %5150  ;;  %5162 = vrsqrt.f32 %v3232_v19  ;;  %v3640_v59 = vmax.f32 %v3527_v29, 1e-24  ;;  %v3484_v3 = vmul.f32 %v7161_v7, %v7161_v7  ;;  %3420 = vst [vmem:[#allocation3 + $0x190] sm:$0xff] %v7161_v7  ;;  %v3764_v6 = vmul.f32 %v5149_v25, %v6847_v53 }
 0x40a   :  { %v3233_v42 = vadd.f32 1e-05, %v3169_v57  ;;  %v7170_v60 = vmul.f32 %v5151_v20, %v6844_v4  ;;  %v7475_v57 = vld [vmem:[#allocation6_spill] sm:$0xff] }
 0x40b   :  { %v5153_v51 = vpop.eup %5152  ;;  %5164 = vrsqrt.f32 %v3640_v59  ;;  %3598 = vadd.xlane.f32.xlu0 %v3484_v3  ;;  %v3529_v27 = vpop.xlane.xlu1 %3528 }
 0x40c   :  { %v3765_v39 = vmul.f32 %v5153_v51, %v6858_v16  ;;  %5166 = vrsqrt.f32 %v3233_v42  ;;  %v3641_v30 = vmax.f32 %v3529_v27, 1e-24  ;;  %v3091_v46 = vpop.xlane.xlu0 %3090  ;;  %v3485_v43 = vmul.f32 %v7170_v60, %v7170_v60  ;;  %3421 = vst [vmem:[#allocation3 + $0x198] sm:$0xff] %v7170_v60 }
 0x40d   :  { %v3166_v17 = vmul.f32 0.0078125, %v3091_v46  ;;  %v7476_v46 = vld [vmem:[#allocation21_spill] sm:$0xff] }
 0x40e   :  { %v5155_v56 = vpop.eup %5154  ;;  %v4483_v4 = vpack.c.bf16 %v3765_v39, %v3764_v6  ;;  %5168 = vrsqrt.f32 %v3641_v30  ;;  %3600 = vadd.xlane.f32.xlu1 %v3485_v43 }
 0x40f   :  { %v3230_v31 = vadd.f32 1e-05, %v3166_v17  ;;  %v3093_v53 = vpop.xlane.xlu1 %3092  ;;  %v7178_v52 = vmul.f32 %v5155_v56, %v7474_v22 }
 0x410   :  { %v5157_v37 = vpop.eup %5156  ;;  %4619 = vst [vmem:[%s7403_s6 + $0x28] sm:$0xff] %v4483_v4   ;;  %v3167_v16 = vmul.f32 0.0078125, %v3093_v53  ;;  %v3523_v36 = vpop.xlane.xlu0 %3522 }
 0x411   :  { %v5159_v5 = vpop.eup %5158  ;;  %5170 = vrsqrt.f32 %v3230_v31  ;;  %v3638_v10 = vmax.f32 %v3523_v36, 1e-24  ;;  %v3482_v34 = vmul.f32 %v7178_v52, %v7178_v52  ;;  %3418 = vst [vmem:[#allocation3 + $0x180] sm:$0xff] %v7178_v52  ;;  %v3762_v29 = vmul.f32 %v5157_v37, %v7475_v57  ;;  %v7477_v37 = vld [vmem:[#allocation7_spill] sm:$0xff] }
 0x412   :  { %v3231_v19 = vadd.f32 1e-05, %v3167_v16  ;;  %v7187_v47 = vmul.f32 %v5159_v5, %v6866_v21 }
 0x413   :  { %v5161_v25 = vpop.eup %5160  ;;  %5172 = vrsqrt.f32 %v3638_v10  ;;  %3594 = vadd.xlane.f32.xlu0 %v3482_v34  ;;  %v3525_v20 = vpop.xlane.xlu1 %3524 }
 0x414   :  { %v3763_v59 = vmul.f32 %v5161_v25, %v6880_v24  ;;  %5174 = vrsqrt.f32 %v3231_v19  ;;  %v3639_v3 = vmax.f32 %v3525_v20, 1e-24  ;;  %v3103_v42 = vpop.xlane.xlu0 %3102  ;;  %v3483_v51 = vmul.f32 %v7187_v47, %v7187_v47  ;;  %3419 = vst [vmem:[#allocation3 + $0x188] sm:$0xff] %v7187_v47 }
 0x415   :  { %v3172_v6 = vmul.f32 0.0078125, %v3103_v42 }
 0x416   :  { %v5163_v27 = vpop.eup %5162  ;;  %v4478_v21 = vpack.c.bf16 %v3763_v59, %v3762_v29  ;;  %5176 = vrsqrt.f32 %v3639_v3  ;;  %3596 = vadd.xlane.f32.xlu1 %v3483_v51  ;;  %v7478_v29 = vld [vmem:[#allocation8_spill] sm:$0xff] }
 0x417   :  { %v3236_v39 = vadd.f32 1e-05, %v3172_v6  ;;  %v3105_v30 = vpop.xlane.xlu1 %3104  ;;  %v7195_v43 = vmul.f32 %v5163_v27, %v7476_v46 }
 0x418   :  { %v5165_v17 = vpop.eup %5164  ;;  %4618 = vst [vmem:[%s7403_s6 + $0x20] sm:$0xff] %v4478_v21   ;;  %v3173_v24 = vmul.f32 0.0078125, %v3105_v30  ;;  %v7479_v30 = vld [vmem:[#allocation9_spill] sm:$0xff] }
 0x419   :  { %v5167_v56 = vpop.eup %5166  ;;  %5178 = vrsqrt.f32 %v3236_v39  ;;  %v3488_v4 = vmul.f32 %v7195_v43, %v7195_v43  ;;  %3424 = vst [vmem:[#allocation3 + $0x1b0] sm:$0xff] %v7195_v43  ;;  %v3768_v16 = vmul.f32 %v5165_v17, %v7477_v37 }
 0x41a   :  { %v3237_v31 = vadd.f32 1e-05, %v3173_v24  ;;  %v7204_v53 = vmul.f32 %v5167_v56, %v6888_v49  ;;  %v7480_v24 = vld [vmem:[#allocation11_spill] sm:$0xff] }
 0x41b   :  { %v5169_v22 = vpop.eup %5168  ;;  %3606 = vadd.xlane.f32.xlu0 %v3488_v4  ;;  %v3099_v36 = vpop.xlane.xlu0 %3098 }
 0x41c   :  { %v3769_v5 = vmul.f32 %v5169_v22, %v6902_v58  ;;  %5180 = vrsqrt.f32 %v3237_v31  ;;  %v3170_v10 = vmul.f32 0.0078125, %v3099_v36  ;;  %v3489_v34 = vmul.f32 %v7204_v53, %v7204_v53  ;;  %3425 = vst [vmem:[#allocation3 + $0x1b8] sm:$0xff] %v7204_v53 }
 0x41e   :  { %v5171_v19 = vpop.eup %5170  ;;  %v4493_v25 = vpack.c.bf16 %v3769_v5, %v3768_v16  ;;  %v3234_v57 = vadd.f32 1e-05, %v3170_v10  ;;  %3608 = vadd.xlane.f32.xlu1 %v3489_v34  ;;  %v7481_v10 = vld [vmem:[#allocation10_spill] sm:$0xff] }
 0x41f   :  { %v3101_v49 = vpop.xlane.xlu1 %3100  ;;  %v7212_v20 = vmul.f32 %v5171_v19, %v7478_v29 }
 0x420   :  { %v5173_v59 = vpop.eup %5172  ;;  %4621 = vst [vmem:[%s7403_s6 + $0x38] sm:$0xff] %v4493_v25   ;;  %5182 = vrsqrt.f32 %v3234_v57  ;;  %v3171_v58 = vmul.f32 0.0078125, %v3101_v49  ;;  %v3531_v3 = vpop.xlane.xlu0 %3530 }
 0x421   :  { %v5175_v42 = vpop.eup %5174  ;;  %v3642_v51 = vmax.f32 %v3531_v3, 1e-24  ;;  %v3486_v6 = vmul.f32 %v7212_v20, %v7212_v20  ;;  %3422 = vst [vmem:[#allocation3 + $0x1a0] sm:$0xff] %v7212_v20  ;;  %v3766_v46 = vmul.f32 %v5173_v59, %v7479_v30 }
 0x422   :  { %v3235_v27 = vadd.f32 1e-05, %v3171_v58  ;;  %v7221_v21 = vmul.f32 %v5175_v42, %v6910_v38 }
 0x423   :  { %v5177_v39 = vpop.eup %5176  ;;  %5184 = vrsqrt.f32 %v3642_v51  ;;  %3602 = vadd.xlane.f32.xlu0 %v3486_v6  ;;  %v3533_v17 = vpop.xlane.xlu1 %3532  ;;  %v7482_v6 = vld [vmem:[#allocation12_spill] sm:$0xff] }
 0x424   :  { %v3767_v56 = vmul.f32 %v5177_v39, %v7480_v24  ;;  %5186 = vrsqrt.f32 %v3235_v27  ;;  %v3643_v4 = vmax.f32 %v3533_v17, 1e-24  ;;  %v3111_v31 = vpop.xlane.xlu0 %3110  ;;  %v3487_v22 = vmul.f32 %v7221_v21, %v7221_v21  ;;  %3423 = vst [vmem:[#allocation3 + $0x1a8] sm:$0xff] %v7221_v21 }
 0x425   :  { %v3176_v37 = vmul.f32 0.0078125, %v3111_v31  ;;  %v7483_v31 = vld [vmem:[#allocation13_spill] sm:$0xff] }
 0x426   :  { %v5179_v16 = vpop.eup %5178  ;;  %v4488_v38 = vpack.c.bf16 %v3767_v56, %v3766_v46  ;;  %5188 = vrsqrt.f32 %v3643_v4  ;;  %3604 = vadd.xlane.f32.xlu1 %v3487_v22 }
 0x427   :  { %v3240_v36 = vadd.f32 1e-05, %v3176_v37  ;;  %v3113_v5 = vpop.xlane.xlu1 %3112  ;;  %v7229_v34 = vmul.f32 %v5179_v16, %v7481_v10  ;;  %v7485_v10 = vld [vmem:[#allocation15_spill] sm:$0xff] }
 0x428   :  { %4620 = vst [vmem:[%s7403_s6 + $0x30] sm:$0xff] %v4488_v38   ;;  %v3177_v19 = vmul.f32 0.0078125, %v3113_v5 }
 0x429   :  { %v5181_v25 = vpop.eup %5180  ;;  %5190 = vrsqrt.f32 %v3240_v36  ;;  %v3492_v57 = vmul.f32 %v7229_v34, %v7229_v34  ;;  %3428 = vst [vmem:[#allocation3 + $0x1d0] sm:$0xff] %v7229_v34  ;;  %v7484_v36 = vld [vmem:[#allocation14_spill] sm:$0xff] }
 0x42a   :  { %v3241_v49 = vadd.f32 1e-05, %v3177_v19  ;;  %v7238_v29 = vmul.f32 %v5181_v25, %v6932_v1 }
 0x42b   :  { %3614 = vadd.xlane.f32.xlu0 %v3492_v57  ;;  %v3107_v59 = vpop.xlane.xlu0 %3106 }
 0x42c   :  { %5192 = vrsqrt.f32 %v3241_v49  ;;  %v3174_v58 = vmul.f32 0.0078125, %v3107_v59  ;;  %v3493_v3 = vmul.f32 %v7238_v29, %v7238_v29  ;;  %3429 = vst [vmem:[#allocation3 + $0x1d8] sm:$0xff] %v7238_v29 }
 0x42d   :  { %v5183_v42 = vpop.eup %5182 }
 0x42e   :  { %v3238_v51 = vadd.f32 1e-05, %v3174_v58  ;;  %3616 = vadd.xlane.f32.xlu1 %v3493_v3  ;;  %v7244_v27 = vmul.f32 %v5183_v42, %v7482_v6  ;;  %v7486_v42 = vld [vmem:[#allocation22_spill] sm:$0xff] }
 0x42f   :  { %v3109_v39 = vpop.xlane.xlu1 %3108  ;;  %v3535_v30 = vpop.xlane.xlu0 %3534 }
 0x430   :  { %v5185_v46 = vpop.eup %5184  ;;  %5194 = vrsqrt.f32 %v3238_v51  ;;  %v3175_v1 = vmul.f32 0.0078125, %v3109_v39  ;;  %v3644_v17 = vmax.f32 %v3535_v30, 1e-24  ;;  %v3490_v24 = vmul.f32 %v7244_v27, %v7244_v27  ;;  %3426 = vst [vmem:[#allocation3 + $0x1c0] sm:$0xff] %v7244_v27 }
 0x431   :  { %v5187_v56 = vpop.eup %5186  ;;  %v3770_v5 = vmul.f32 %v5185_v46, %v7484_v36 }
 0x432   :  { %v3239_v4 = vadd.f32 1e-05, %v3175_v1  ;;  %3610 = vadd.xlane.f32.xlu0 %v3490_v24  ;;  %v7250_v22 = vmul.f32 %v5187_v56, %v7483_v31  ;;  %5196 = vrsqrt.f32 %v3644_v17 }
 0x433   :  { %v5189_v37 = vpop.eup %5188  ;;  %v3537_v16 = vpop.xlane.xlu1 %3536 }
 0x434   :  { %v3539_v38 = vpop.xlane.xlu0 %3538  ;;  %v3771_v19 = vmul.f32 %v5189_v37, %v7485_v10  ;;  %5198 = vrsqrt.f32 %v3239_v4  ;;  %v3645_v25 = vmax.f32 %v3537_v16, 1e-24  ;;  %3427 = vst [vmem:[#allocation3 + $0x1c8] sm:$0xff] %v7250_v22  ;;  %v3491_v57 = vmul.f32 %v7250_v22, %v7250_v22  ;;  %v7487_v37 = vld [vmem:[#allocation16_spill] sm:$0xff] }
 0x435   :  { %v3646_v6 = vmax.f32 %v3539_v38, 1e-24 }
 0x436   :  { %v5191_v49 = vpop.eup %5190  ;;  %v4498_v59 = vpack.c.bf16 %v3771_v19, %v3770_v5  ;;  %5200 = vrsqrt.f32 %v3645_v25  ;;  %3612 = vadd.xlane.f32.xlu1 %v3491_v57 }
 0x437   :  { %v3545_v58 = vpop.xlane.xlu1 %3544  ;;  %v7258_v51 = vmul.f32 %v5191_v49, %v7486_v42 }
 0x438   :  { %v3543_v3 = vpop.xlane.xlu0 %3542  ;;  %4622 = vst [vmem:[%s7403_s6 + $0x40] sm:$0xff] %v4498_v59   ;;  %v3649_v39 = vmax.f32 %v3545_v58, 1e-24  ;;  %v5291_v59 = vld [vmem:[#allocation3 + $0x90] sm:$0xff] }
 0x439   :  { %v3648_v30 = vmax.f32 %v3543_v3, 1e-24  ;;  %v5193_v46 = vpop.eup %5192  ;;  %3432 = vst [vmem:[#allocation3 + $0x1f0] sm:$0xff] %v7258_v51  ;;  %v3496_v42 = vmul.f32 %v7258_v51, %v7258_v51 }
 0x43a   :  { %5202 = vrsqrt.f32 %v3649_v39  ;;  %v7265_v1 = vmul.f32 %v5193_v46, %v6972_v12 }
 0x43b   :  { %5204 = vrsqrt.f32 %v3648_v30  ;;  %v3541_v17 = vpop.xlane.xlu1 %3540 }
 0x43c   :  { %v3551_v24 = vpop.xlane.xlu0 %3550  ;;  %5206 = vrsqrt.f32 %v3646_v6  ;;  %v3647_v56 = vmax.f32 %v3541_v17, 1e-24  ;;  %3433 = vst [vmem:[#allocation3 + $0x1f8] sm:$0xff] %v7265_v1  ;;  %v5292_v6 = vld [vmem:[#allocation3 + $0x98] sm:$0xff] }
 0x43d   :  { %v3652_v4 = vmax.f32 %v3551_v24, 1e-24  ;;  %v5195_v31 = vpop.eup %5194 }
 0x43e   :  { %5208 = vrsqrt.f32 %v3647_v56  ;;  %v7269_v16 = vmul.f32 %v5195_v31, %v7487_v37  ;;  %v5293_v37 = vld [vmem:[#allocation3 + $0xb8] sm:$0xff] }
 0x43f   :  { %v3553_v38 = vpop.xlane.xlu1 %3552  ;;  %v5197_v5 = vpop.eup %5196  ;;  %5210 = vrsqrt.f32 %v3652_v4 }
 0x440   :  { %v3547_v36 = vpop.xlane.xlu0 %3546  ;;  %v3653_v10 = vmax.f32 %v3553_v38, 1e-24  ;;  %v3494_v19 = vmul.f32 %v7269_v16, %v7269_v16  ;;  %3430 = vst [vmem:[#allocation3 + $0x1e0] sm:$0xff] %v7269_v16  ;;  %v3772_v58 = vmul.f32 %v5291_v59, %v5197_v5 }
 0x441   :  { %v3650_v12 = vmax.f32 %v3547_v36, 1e-24  ;;  %v5199_v25 = vpop.eup %5198 }
 0x442   :  { %5212 = vrsqrt.f32 %v3653_v10  ;;  %3618 = vadd.xlane.f32.xlu0 %v3494_v19  ;;  %v7275_v57 = vmul.f32 %v5199_v25, %v6984_v15  ;;  %v3497_v10 = vmul.f32 %v7265_v1, %v7265_v1  ;;  %v5294_v19 = vld [vmem:[#allocation3 + $0xb0] sm:$0xff] }
 0x443   :  { %v5201_v49 = vpop.eup %5200  ;;  %v3549_v3 = vpop.xlane.xlu1 %3548  ;;  %5214 = vrsqrt.f32 %v3650_v12 }
 0x444   :  { %v3773_v39 = vmul.f32 %v5292_v6, %v5201_v49  ;;  %v3651_v30 = vmax.f32 %v3549_v3, 1e-24  ;;  %v3559_v46 = vpop.xlane.xlu0 %3558  ;;  %v3495_v17 = vmul.f32 %v7275_v57, %v7275_v57  ;;  %3431 = vst [vmem:[#allocation3 + $0x1e8] sm:$0xff] %v7275_v57 }
 0x445   :  { %v3656_v24 = vmax.f32 %v3559_v46, 1e-24 }
 0x446   :  { %v4503_v15 = vpack.c.bf16 %v3773_v39, %v3772_v58  ;;  %5216 = vrsqrt.f32 %v3651_v30  ;;  %3620 = vadd.xlane.f32.xlu1 %v3495_v17  ;;  %3622 = vadd.xlane.f32.xlu0 %v3496_v42  ;;  %v5295_v42 = vld [vmem:[#allocation3 + $0xa0] sm:$0xff] }
 0x447   :  { %v5203_v56 = vpop.eup %5202  ;;  %v3561_v4 = vpop.xlane.xlu1 %3560  ;;  %5218 = vrsqrt.f32 %v3656_v24 }
 0x448   :  { %v5205_v31 = vpop.eup %5204  ;;  %4623 = vst [vmem:[%s7403_s6 + $0x48] sm:$0xff] %v4503_v15   ;;  %v3777_v38 = vmul.f32 %v5293_v37, %v5203_v56  ;;  %v3657_v36 = vmax.f32 %v3561_v4, 1e-24  ;;  %v3555_v5 = vpop.xlane.xlu0 %3554 }
 0x449   :  { %v5207_v12 = vpop.eup %5206  ;;  %v3776_v25 = vmul.f32 %v5294_v19, %v5205_v31  ;;  %v3654_v49 = vmax.f32 %v3555_v5, 1e-24 }
 0x44a   :  { %5220 = vrsqrt.f32 %v3657_v36  ;;  %3624 = vadd.xlane.f32.xlu1 %v3497_v10  ;;  %v3774_v6 = vmul.f32 %v5295_v42, %v5207_v12 }
 0x44b   :  { %v5209_v59 = vpop.eup %5208  ;;  %v4513_v58 = vpack.c.bf16 %v3777_v38, %v3776_v25  ;;  %v3557_v3 = vpop.xlane.xlu1 %3556  ;;  %5222 = vrsqrt.f32 %v3654_v49 }
 0x44c   :  { %v3775_v39 = vmul.f32 %v5209_v59, %v6992_v41  ;;  %v3655_v30 = vmax.f32 %v3557_v3, 1e-24  ;;  %v5211_v46 = vpop.eup %5210 }
 0x44d   :  { %4625 = vst [vmem:[%s7403_s6 + $0x58] sm:$0xff] %v4513_v58   ;;  %v3780_v15 = vmul.f32 %v5211_v46, %v6998_v9 }
 0x44e   :  { %v4508_v17 = vpack.c.bf16 %v3775_v39, %v3774_v6  ;;  %5224 = vrsqrt.f32 %v3655_v30 }
 0x44f   :  { %v5213_v24 = vpop.eup %5212 }
 0x450   :  { %4624 = vst [vmem:[%s7403_s6 + $0x50] sm:$0xff] %v4508_v17   ;;  %v3781_v56 = vmul.f32 %v5213_v24, %v7002_v2  ;;  %v5215_v4 = vpop.eup %5214 }
 0x451   :  { %v3778_v38 = vmul.f32 %v5215_v4, %v7010_v14 }
 0x452   :  { %v4523_v41 = vpack.c.bf16 %v3781_v56, %v3780_v15 }
 0x453   :  { %v5217_v31 = vpop.eup %5216  ;;  %v3567_v37 = vpop.xlane.xlu0 %3566 }
 0x454   :  { %4627 = vst [vmem:[%s7403_s6 + $0x68] sm:$0xff] %v4523_v41   ;;  %v3779_v36 = vmul.f32 %v5217_v31, %v7018_v50  ;;  %v3660_v5 = vmax.f32 %v3567_v37, 1e-24  ;;  %v5219_v10 = vpop.eup %5218 }
 0x455   :  { %v3784_v9 = vmul.f32 %v5219_v10, %v7021_v62 }
 0x456   :  { %v4518_v12 = vpack.c.bf16 %v3779_v36, %v3778_v38  ;;  %5226 = vrsqrt.f32 %v3660_v5 }
 0x457   :  { %v5221_v19 = vpop.eup %5220  ;;  %v3569_v25 = vpop.xlane.xlu1 %3568 }
 0x458   :  { %4626 = vst [vmem:[%s7403_s6 + $0x60] sm:$0xff] %v4518_v12   ;;  %v3785_v2 = vmul.f32 %v5221_v19, %v7030_v32  ;;  %v3661_v49 = vmax.f32 %v3569_v25, 1e-24  ;;  %v3563_v59 = vpop.xlane.xlu0 %3562  ;;  %v5223_v58 = vpop.eup %5222 }
 0x459   :  { %v3658_v14 = vmax.f32 %v3563_v59, 1e-24  ;;  %v3782_v6 = vmul.f32 %v5223_v58, %v7033_v13 }
 0x45a   :  { %v4533_v3 = vpack.c.bf16 %v3785_v2, %v3784_v9  ;;  %5228 = vrsqrt.f32 %v3661_v49 }
 0x45b   :  { %v5225_v50 = vpop.eup %5224  ;;  %v3565_v42 = vpop.xlane.xlu1 %3564  ;;  %5230 = vrsqrt.f32 %v3658_v14 }
 0x45c   :  { %4629 = vst [vmem:[%s7403_s6 + $0x78] sm:$0xff] %v4533_v3   ;;  %v3783_v39 = vmul.f32 %v5225_v50, %v7042_v0  ;;  %v3659_v62 = vmax.f32 %v3565_v42, 1e-24 }
 0x45e   :  { %v4528_v32 = vpack.c.bf16 %v3783_v39, %v3782_v6  ;;  %5232 = vrsqrt.f32 %v3659_v62 }
 0x460   :  { %4628 = vst [vmem:[%s7403_s6 + $0x70] sm:$0xff] %v4528_v32  }
 0x463   :  { %v3575_v30 = vpop.xlane.xlu0 %3574  ;;  %v5227_v17 = vpop.eup %5226 }
 0x464   :  { %v3664_v46 = vmax.f32 %v3575_v30, 1e-24  ;;  %v3788_v56 = vmul.f32 %v5227_v17, %v7048_v18 }
 0x466   :  { %5234 = vrsqrt.f32 %v3664_v46 }
 0x467   :  { %v5229_v24 = vpop.eup %5228  ;;  %v3577_v15 = vpop.xlane.xlu1 %3576 }
 0x468   :  { %v3789_v13 = vmul.f32 %v5229_v24, %v7054_v35  ;;  %v3665_v0 = vmax.f32 %v3577_v15, 1e-24  ;;  %v5231_v4 = vpop.eup %5230 }
 0x46a   :  { %v4543_v41 = vpack.c.bf16 %v3789_v13, %v3788_v56  ;;  %5236 = vrsqrt.f32 %v3665_v0 }
 0x46b   :  { %5307 = shalt.err (!%p5304_p4)
}
 0x46c   :  { %s5320_s10 = smov 128   ;;  %s5321_s0 = smov 8   ;;  %v5233_v18 = vpop.eup %5232  ;;  %v3571_v35 = vpop.xlane.xlu0 %3570  ;;  %4631 = vst [vmem:[%s7403_s6 + $0x88] sm:$0xff] %v4543_v41   ;;  %v3786_v31 = vmul.f32 %v5231_v4, %v7057_v23 }
 0x46d   :  { %4149 = dma.vmem_to_hbm [thread:$0]  %s4144_s8, 8192, %s7402_s5, [#allocation4], %s5320_s10, %s5320_s10, %s5321_s0   ;;  %v3787_v37 = vmul.f32 %v5233_v18, %v7066_v11  ;;  %v3662_v38 = vmax.f32 %v3571_v35, 1e-24 }
 0x46f   :  { %v4538_v36 = vpack.c.bf16 %v3787_v37, %v3786_v31  ;;  %v3573_v5 = vpop.xlane.xlu1 %3572  ;;  %5238 = vrsqrt.f32 %v3662_v38 }
 0x470   :  { %v3663_v10 = vmax.f32 %v3573_v5, 1e-24 }
 0x471   :  { %4630 = vst [vmem:[%s7403_s6 + $0x80] sm:$0xff] %v4538_v36  }
 0x472   :  { %5240 = vrsqrt.f32 %v3663_v10 }
 0x473   :  { %v3583_v12 = vpop.xlane.xlu0 %3582  ;;  %v5235_v25 = vpop.eup %5234 }
 0x474   :  { %v3668_v19 = vmax.f32 %v3583_v12, 1e-24  ;;  %v3792_v49 = vmul.f32 %v5235_v25, %v7072_v54 }
 0x476   :  { %5242 = vrsqrt.f32 %v3668_v19 }
 0x477   :  { %v5237_v9 = vpop.eup %5236  ;;  %v3585_v2 = vpop.xlane.xlu1 %3584 }
 0x478   :  { %v3793_v23 = vmul.f32 %v5237_v9, %v7078_v61  ;;  %v3669_v11 = vmax.f32 %v3585_v2, 1e-24 }
 0x47a   :  { %v4553_v59 = vpack.c.bf16 %v3793_v23, %v3792_v49  ;;  %5244 = vrsqrt.f32 %v3669_v11 }
 0x47c   :  { %4633 = vst [vmem:[%s7403_s6 + $0x98] sm:$0xff] %v4553_v59   ;;  %v3579_v58 = vpop.xlane.xlu0 %3578  ;;  %v5239_v14 = vpop.eup %5238 }
 0x47d   :  { %v3666_v3 = vmax.f32 %v3579_v58, 1e-24  ;;  %v3790_v6 = vmul.f32 %v5239_v14, %v7084_v44 }
 0x47f   :  { %v5241_v50 = vpop.eup %5240  ;;  %v3581_v42 = vpop.xlane.xlu1 %3580  ;;  %5246 = vrsqrt.f32 %v3666_v3 }
 0x480   :  { %v3791_v39 = vmul.f32 %v5241_v50, %v7090_v28  ;;  %v3667_v54 = vmax.f32 %v3581_v42, 1e-24 }
 0x482   :  { %v4548_v61 = vpack.c.bf16 %v3791_v39, %v3790_v6  ;;  %5248 = vrsqrt.f32 %v3667_v54 }
 0x483   :  { %v5243_v32 = vpop.eup %5242 }
 0x484   :  { %4632 = vst [vmem:[%s7403_s6 + $0x90] sm:$0xff] %v4548_v61   ;;  %v3591_v62 = vpop.xlane.xlu0 %3590  ;;  %v3796_v24 = vmul.f32 %v5243_v32, %v7096_v48 }
 0x485   :  { %v3672_v30 = vmax.f32 %v3591_v62, 1e-24 }
 0x487   :  { %v5245_v46 = vpop.eup %5244  ;;  %v3593_v17 = vpop.xlane.xlu1 %3592  ;;  %5250 = vrsqrt.f32 %v3672_v30 }
 0x488   :  { %v3797_v15 = vmul.f32 %v5245_v46, %v7102_v55  ;;  %v3673_v44 = vmax.f32 %v3593_v17, 1e-24 }
 0x48a   :  { %v4563_v28 = vpack.c.bf16 %v3797_v15, %v3796_v24  ;;  %5252 = vrsqrt.f32 %v3673_v44 }
 0x48c   :  { %4635 = vst [vmem:[%s7403_s6 + $0xa8] sm:$0xff] %v4563_v28   ;;  %v3587_v56 = vpop.xlane.xlu0 %3586  ;;  %v5247_v13 = vpop.eup %5246 }
 0x48d   :  { %v3670_v0 = vmax.f32 %v3587_v56, 1e-24  ;;  %v3794_v18 = vmul.f32 %v5247_v13, %v7110_v63 }
 0x48f   :  { %v5249_v4 = vpop.eup %5248  ;;  %v3589_v41 = vpop.xlane.xlu1 %3588  ;;  %5254 = vrsqrt.f32 %v3670_v0 }
 0x490   :  { %v3795_v35 = vmul.f32 %v5249_v4, %v7119_v40  ;;  %v3671_v48 = vmax.f32 %v3589_v41, 1e-24 }
 0x492   :  { %v4558_v55 = vpack.c.bf16 %v3795_v35, %v3794_v18  ;;  %5256 = vrsqrt.f32 %v3671_v48 }
 0x494   :  { %4634 = vst [vmem:[%s7403_s6 + $0xa0] sm:$0xff] %v4558_v55   ;;  %v3599_v31 = vpop.xlane.xlu0 %3598  ;;  %v5251_v37 = vpop.eup %5250 }
 0x495   :  { %v3676_v38 = vmax.f32 %v3599_v31, 1e-24  ;;  %v3800_v10 = vmul.f32 %v5251_v37, %v7127_v33 }
 0x497   :  { %v5253_v36 = vpop.eup %5252  ;;  %v3601_v5 = vpop.xlane.xlu1 %3600  ;;  %5258 = vrsqrt.f32 %v3676_v38 }
 0x498   :  { %v3801_v12 = vmul.f32 %v5253_v36, %v7136_v26  ;;  %v3677_v63 = vmax.f32 %v3601_v5, 1e-24 }
 0x49a   :  { %v4573_v40 = vpack.c.bf16 %v3801_v12, %v3800_v10  ;;  %5260 = vrsqrt.f32 %v3677_v63 }
 0x49c   :  { %4637 = vst [vmem:[%s7403_s6 + $0xb8] sm:$0xff] %v4573_v40   ;;  %v3595_v19 = vpop.xlane.xlu0 %3594  ;;  %v5255_v25 = vpop.eup %5254 }
 0x49d   :  { %v3674_v9 = vmax.f32 %v3595_v19, 1e-24  ;;  %v3798_v23 = vmul.f32 %v5255_v25, %v7144_v8 }
 0x49f   :  { %v5257_v2 = vpop.eup %5256  ;;  %v3597_v49 = vpop.xlane.xlu1 %3596  ;;  %5262 = vrsqrt.f32 %v3674_v9 }
 0x4a0   :  { %v3799_v11 = vmul.f32 %v5257_v2, %v7153_v45  ;;  %v3675_v33 = vmax.f32 %v3597_v49, 1e-24 }
 0x4a2   :  { %v4568_v26 = vpack.c.bf16 %v3799_v11, %v3798_v23  ;;  %5264 = vrsqrt.f32 %v3675_v33 }
 0x4a4   :  { %4636 = vst [vmem:[%s7403_s6 + $0xb0] sm:$0xff] %v4568_v26   ;;  %v3607_v59 = vpop.xlane.xlu0 %3606  ;;  %v5259_v58 = vpop.eup %5258 }
 0x4a5   :  { %v3680_v14 = vmax.f32 %v3607_v59, 1e-24  ;;  %v3804_v42 = vmul.f32 %v5259_v58, %v7161_v7 }
 0x4a7   :  { %v5261_v3 = vpop.eup %5260  ;;  %v3609_v50 = vpop.xlane.xlu1 %3608  ;;  %5266 = vrsqrt.f32 %v3680_v14 }
 0x4a8   :  { %v3805_v6 = vmul.f32 %v5261_v3, %v7170_v60  ;;  %v3681_v8 = vmax.f32 %v3609_v50, 1e-24 }
 0x4aa   :  { %v4583_v45 = vpack.c.bf16 %v3805_v6, %v3804_v42  ;;  %5268 = vrsqrt.f32 %v3681_v8 }
 0x4ac   :  { %4639 = vst [vmem:[%s7403_s6 + $0xc8] sm:$0xff] %v4583_v45   ;;  %v3603_v39 = vpop.xlane.xlu0 %3602  ;;  %v5263_v54 = vpop.eup %5262 }
 0x4ad   :  { %v3678_v61 = vmax.f32 %v3603_v39, 1e-24  ;;  %v3802_v30 = vmul.f32 %v5263_v54, %v7178_v52 }
 0x4af   :  { %v5265_v62 = vpop.eup %5264  ;;  %v3605_v32 = vpop.xlane.xlu1 %3604  ;;  %5270 = vrsqrt.f32 %v3678_v61 }
 0x4b0   :  { %v3803_v46 = vmul.f32 %v5265_v62, %v7187_v47  ;;  %v3679_v7 = vmax.f32 %v3605_v32, 1e-24 }
 0x4b2   :  { %v4578_v60 = vpack.c.bf16 %v3803_v46, %v3802_v30  ;;  %5272 = vrsqrt.f32 %v3679_v7 }
 0x4b4   :  { %4638 = vst [vmem:[%s7403_s6 + $0xc0] sm:$0xff] %v4578_v60   ;;  %v3615_v17 = vpop.xlane.xlu0 %3614  ;;  %v5267_v24 = vpop.eup %5266 }
 0x4b5   :  { %v3684_v15 = vmax.f32 %v3615_v17, 1e-24  ;;  %v3808_v56 = vmul.f32 %v5267_v24, %v7195_v43 }
 0x4b7   :  { %v5269_v44 = vpop.eup %5268  ;;  %v3617_v28 = vpop.xlane.xlu1 %3616  ;;  %5274 = vrsqrt.f32 %v3684_v15 }
 0x4b8   :  { %v3809_v13 = vmul.f32 %v5269_v44, %v7204_v53  ;;  %v3685_v52 = vmax.f32 %v3617_v28, 1e-24 }
 0x4ba   :  { %v4593_v47 = vpack.c.bf16 %v3809_v13, %v3808_v56  ;;  %5276 = vrsqrt.f32 %v3685_v52 }
 0x4bb   :  { %v3611_v0 = vpop.xlane.xlu0 %3610 }
 0x4bc   :  { %4641 = vst [vmem:[%s7403_s6 + $0xd8] sm:$0xff] %v4593_v47   ;;  %v5271_v4 = vpop.eup %5270  ;;  %v3682_v41 = vmax.f32 %v3611_v0, 1e-24 }
 0x4bd   :  { %v3806_v35 = vmul.f32 %v5271_v4, %v7212_v20 }
 0x4be   :  { %5278 = vrsqrt.f32 %v3682_v41 }
 0x4bf   :  { %v5273_v18 = vpop.eup %5272  ;;  %v3613_v55 = vpop.xlane.xlu1 %3612 }
 0x4c0   :  { %v3807_v48 = vmul.f32 %v5273_v18, %v7221_v21  ;;  %v3683_v43 = vmax.f32 %v3613_v55, 1e-24 }
 0x4c2   :  { %v4588_v53 = vpack.c.bf16 %v3807_v48, %v3806_v35  ;;  %5280 = vrsqrt.f32 %v3683_v43 }
 0x4c4   :  { %4640 = vst [vmem:[%s7403_s6 + $0xd0] sm:$0xff] %v4588_v53   ;;  %v5275_v31 = vpop.eup %5274 }
 0x4c5   :  { %v3812_v38 = vmul.f32 %v5275_v31, %v7229_v34 }
 0x4c7   :  { %v5277_v37 = vpop.eup %5276 }
 0x4c8   :  { %v3813_v36 = vmul.f32 %v5277_v37, %v7238_v29 }
 0x4ca   :  { %v4603_v5 = vpack.c.bf16 %v3813_v36, %v3812_v38 }
 0x4cb   :  { %v3619_v10 = vpop.xlane.xlu0 %3618  ;;  %v5279_v21 = vpop.eup %5278 }
 0x4cc   :  { %4643 = vst [vmem:[%s7403_s6 + $0xe8] sm:$0xff] %v4603_v5   ;;  %v3686_v20 = vmax.f32 %v3619_v10, 1e-24  ;;  %v3810_v9 = vmul.f32 %v5279_v21, %v7244_v27 }
 0x4ce   :  { %5282 = vrsqrt.f32 %v3686_v20 }
 0x4cf   :  { %v3621_v12 = vpop.xlane.xlu1 %3620  ;;  %v3623_v63 = vpop.xlane.xlu0 %3622 }
 0x4d0   :  { %v5281_v40 = vpop.eup %5280  ;;  %v3687_v19 = vmax.f32 %v3621_v12, 1e-24  ;;  %v3688_v25 = vmax.f32 %v3623_v63, 1e-24 }
 0x4d1   :  { %v3811_v34 = vmul.f32 %v5281_v40, %v7250_v22 }
 0x4d2   :  { %5284 = vrsqrt.f32 %v3687_v19 }
 0x4d3   :  { %v4598_v29 = vpack.c.bf16 %v3811_v34, %v3810_v9  ;;  %v3625_v2 = vpop.xlane.xlu1 %3624  ;;  %5286 = vrsqrt.f32 %v3688_v25 }
 0x4d4   :  { %v3689_v49 = vmax.f32 %v3625_v2, 1e-24 }
 0x4d5   :  { %4642 = vst [vmem:[%s7403_s6 + $0xe0] sm:$0xff] %v4598_v29  }
 0x4d6   :  { %5288 = vrsqrt.f32 %v3689_v49 }
 0x4db   :  { %v5283_v23 = vpop.eup %5282 }
 0x4dc   :  { %v3814_v33 = vmul.f32 %v5283_v23, %v7269_v16 }
 0x4df   :  { %v5285_v11 = vpop.eup %5284 }
 0x4e0   :  { %v3815_v26 = vmul.f32 %v5285_v11, %v7275_v57  ;;  %v5287_v59 = vpop.eup %5286 }
 0x4e1   :  { %v3816_v22 = vmul.f32 %v5287_v59, %v7258_v51 }
 0x4e2   :  { %v4608_v27 = vpack.c.bf16 %v3815_v26, %v3814_v33 }
 0x4e3   :  { %v5289_v58 = vpop.eup %5288 }
 0x4e4   :  { %4644 = vst [vmem:[%s7403_s6 + $0xf0] sm:$0xff] %v4608_v27   ;;  %v3817_v14 = vmul.f32 %v5289_v58, %v7265_v1 }
 0x4e6   :  { %v4613_v3 = vpack.c.bf16 %v3817_v14, %v3816_v22 }
 0x4e8   :  { %4645 = vst [vmem:[%s7403_s6 + $0xf8] sm:$0xff] %v4613_v3  }
 0x4e9   :  { %5316 = dma.done.wait [#allocation4], 8192  }
 0x4ea   :  { %5317 = vsyncadd [#allocation4], 4294959104 }
 0x4eb   :  { %4157 = vsyncpa [#allocation4], 1 }

</bundles_post_ra>
